<compile_context>
chip_gen: v7x
topology: tpu7x:2x2x1
jax: 0.10.0
libtpu: 0.0.40
codegen_flags: <defaults>
</compile_context>

<pallas_src>
import jax
import jax.numpy as jnp
from jax.experimental import pallas as pl
from jax.experimental.pallas import tpu as pltpu

NUM_CLASSES = 10


# ------------------------------ fused kernel -------------------------------

def _conv3x3_relu_pool(x, w_ref, b_ref, rm_ref, H, W, Cin, Cout):
    """x: [1, H, W, Cin] f32 value -> pooled [(H//2)*(W//2), Cout] flat (h-major)."""
    # 'SAME' zero padding built in-register (no HBM, no unaligned stores).
    zc = jnp.zeros((1, H, 1, Cin), jnp.float32)
    xp = jnp.concatenate([zc, x, zc], axis=2)                  # [1, H, W+2, Cin]
    zr = jnp.zeros((1, 1, W + 2, Cin), jnp.float32)
    xp = jnp.concatenate([zr, xp, zr], axis=1)                 # [1, H+2, W+2, Cin]

    # conv = 9 accumulated shifted-slice matmuls (im2col folded into the kernel).
    acc = jnp.zeros((H * W, Cout), jnp.float32)
    for ky in range(3):
        for kx in range(3):
            patch = xp[:, ky:ky + H, kx:kx + W, :].reshape(H * W, Cin)
            acc = acc + jnp.dot(patch, w_ref[ky * 3 + kx],
                                preferred_element_type=jnp.float32)
    y = jnp.maximum(acc + b_ref[...], 0.0)                     # bias + ReLU, [H*W, Cout]

    # 2x2/2 max-pool.  Rows (H): pair via leading-dim reshape + max.
    y = y.reshape(H // 2, 2, W, Cout)
    rm_ref[...] = jnp.maximum(y[:, 0], y[:, 1]).reshape((H // 2) * W, Cout)
    # Columns (W): even/odd columns are exactly even/odd rows of the flat
    # [rows, C] layout (W is even), read with stride-2 from VMEM scratch.
    half = (H // 2) * (W // 2)
    return jnp.maximum(rm_ref[pl.ds(0, half, stride=2), :],
                       rm_ref[pl.ds(1, half, stride=2), :])    # [half, Cout]


def _simple_cnn_kernel(x_ref, w1_ref, b1_ref, w2_ref, b2_ref, w3_ref, b3_ref,
                       wfc_ref, bfc_ref, out_ref, rm1, rm2, rm3):
    x = x_ref[...]                                                     # [1,32,32,3]
    p1 = _conv3x3_relu_pool(x, w1_ref, b1_ref, rm1, 32, 32, 3, 8)      # [256, 8]
    p2 = _conv3x3_relu_pool(p1.reshape(1, 16, 16, 8),
                            w2_ref, b2_ref, rm2, 16, 16, 8, 16)        # [64, 16]
    p3 = _conv3x3_relu_pool(p2.reshape(1, 8, 8, 16),
                            w3_ref, b3_ref, rm3, 8, 8, 16, 32)         # [16, 32]

    # fc1: contract over (h, w, c) without flattening activations; the weight
    # was permuted to NHWC order (r = h*4 + w) at trace time.
    logits = bfc_ref[...]                                              # [1, 10]
    for r in range(16):
        logits = logits + jnp.dot(p3[r:r + 1, :], wfc_ref[r],
                                  preferred_element_type=jnp.float32)

    # softmax over classes -- exact normalization (tiny [1, 10] tile), so the
    # row sums are exactly 1 up to f32 rounding.
    m = jnp.max(logits, axis=-1, keepdims=True)
    e = jnp.exp(logits - m)
    denom = jnp.sum(e, axis=-1, keepdims=True)
    probs = e / denom
    out_ref[...] = probs.reshape(1, 1, NUM_CLASSES)


# ------------------------------ host wrapper -------------------------------

def simple_cnn_forward(x_nchw, params):
    b = x_nchw.shape[0]
    x = jnp.transpose(x_nchw, (0, 2, 3, 1)).astype(jnp.float32)        # NHWC

    def prep_w(wt):   # torch [Cout, Cin, 3, 3] -> [9, Cin, Cout], tap order (ky, kx)
        cout, cin = wt.shape[0], wt.shape[1]
        return jnp.transpose(wt, (2, 3, 1, 0)).reshape(9, cin, cout)

    w1, w2, w3 = prep_w(params["w1"]), prep_w(params["w2"]), prep_w(params["w3"])
    b1 = params["b1"].reshape(1, -1)
    b2 = params["b2"].reshape(1, -1)
    b3 = params["b3"].reshape(1, -1)
    # torch fc weight [N, 512] flattens NCHW (c, h, w); permute once to
    # [(h*4+w), c, N] so the kernel consumes NHWC activations directly.
    wfc = jnp.transpose(params["wfc"].reshape(NUM_CLASSES, 32, 4, 4),
                        (2, 3, 1, 0)).reshape(16, 32, NUM_CLASSES)
    bfc = params["bfc"].reshape(1, NUM_CLASSES)

    out = pl.pallas_call(
        _simple_cnn_kernel,
        out_shape=jax.ShapeDtypeStruct((b, 1, NUM_CLASSES), jnp.float32),
        grid_spec=pltpu.PrefetchScalarGridSpec(
            num_scalar_prefetch=0,
            grid=(b,),                                  # one image per grid step
            in_specs=[
                pl.BlockSpec((1, 32, 32, 3), lambda i: (i, 0, 0, 0)),
                pl.BlockSpec((9, 3, 8), lambda i: (0, 0, 0)),
                pl.BlockSpec((1, 8), lambda i: (0, 0)),
                pl.BlockSpec((9, 8, 16), lambda i: (0, 0, 0)),
                pl.BlockSpec((1, 16), lambda i: (0, 0)),
                pl.BlockSpec((9, 16, 32), lambda i: (0, 0, 0)),
                pl.BlockSpec((1, 32), lambda i: (0, 0)),
                pl.BlockSpec((16, 32, NUM_CLASSES), lambda i: (0, 0, 0)),
                pl.BlockSpec((1, NUM_CLASSES), lambda i: (0, 0)),
            ],
            out_specs=pl.BlockSpec((1, 1, NUM_CLASSES), lambda i: (i, 0, 0)),
            scratch_shapes=[
                pltpu.VMEM((512, 8), jnp.float32),      # layer-1 row-max scratch
                pltpu.VMEM((128, 16), jnp.float32),     # layer-2 row-max scratch
                pltpu.VMEM((32, 32), jnp.float32),      # layer-3 row-max scratch
            ],
        ),
        compiler_params=pltpu.CompilerParams(
            dimension_semantics=("parallel",)),         # megacore: one image per core
    )(x, w1, b1, w2, b2, w3, b3, wfc, bfc)
    return out.reshape(b, NUM_CLASSES)


# ------------------------ pure-JAX reference (check) ------------------------

def reference_forward(x_nchw, params):
    x = x_nchw.astype(jnp.float32)

    def conv(z, wt, bt):
        y = jax.lax.conv_general_dilated(
            z, wt, (1, 1), ((1, 1), (1, 1)),
            dimension_numbers=("NCHW", "OIHW", "NCHW"))
        return jax.nn.relu(y + bt.reshape(1, -1, 1, 1))

    def pool(z):
        return jax.lax.reduce_window(z, -jnp.inf, jax.lax.max,
                                     (1, 1, 2, 2), (1, 1, 2, 2), "VALID")

    x = pool(conv(x, params["w1"], params["b1"]))
    x = pool(conv(x, params["w2"], params["b2"]))
    x = pool(conv(x, params["w3"], params["b3"]))
    x = x.reshape(x.shape[0], -1)
    logits = x @ params["wfc"].T + params["bfc"]
    return jax.nn.softmax(logits, axis=1)


# ---------------------------------- main -----------------------------------

def init_params(key):
    ks = jax.random.split(key, 8)
    return {
        "w1": jax.random.normal(ks[0], (8, 3, 3, 3), jnp.float32) * 0.1,
        "b1": jax.random.normal(ks[1], (8,), jnp.float32) * 0.1,
        "w2": jax.random.normal(ks[2], (16, 8, 3, 3), jnp.float32) * 0.1,
        "b2": jax.random.normal(ks[3], (16,), jnp.float32) * 0.1,
        "w3": jax.random.normal(ks[4], (32, 16, 3, 3), jnp.float32) * 0.1,
        "b3": jax.random.normal(ks[5], (32,), jnp.float32) * 0.1,
        "wfc": jax.random.normal(ks[6], (NUM_CLASSES, 32 * 4 * 4), jnp.float32) * 0.05,
        "bfc": jax.random.normal(ks[7], (NUM_CLASSES,), jnp.float32) * 0.05,
    }


if __name__ == "__main__":
    key = jax.random.PRNGKey(0)
    k_x, k_p = jax.random.split(key)
    # smallest shape consistent with fc1 = Linear(32*4*4, .): 32x32 spatial, batch=2
    x = jax.random.normal(k_x, (2, 3, 32, 32), jnp.float32)   # NCHW like PyTorch
    params = init_params(k_p)

    out = jax.jit(simple_cnn_forward)(x, params)
    out = jax.block_until_ready(out)

    ref = jax.block_until_ready(reference_forward(x, params))
    assert out.shape == (2, NUM_CLASSES)
    assert jnp.allclose(out, ref, rtol=2e-3, atol=1e-3), "mismatch vs reference"
    assert jnp.allclose(jnp.sum(out, axis=1), 1.0, atol=1e-4), "softmax rows != 1"

    print("KERNEL_OK")
</pallas_src>

<mosaic_0001>
module attributes {stable_mosaic.version = 11 : i64} {
  func.func @_simple_cnn_kernel(%arg0: i32, %arg1: memref<1x32x32x3xf32, #tpu.memory_space<vmem>>, %arg2: memref<9x3x8xf32, #tpu.memory_space<vmem>>, %arg3: memref<1x8xf32, #tpu.memory_space<vmem>>, %arg4: memref<9x8x16xf32, #tpu.memory_space<vmem>>, %arg5: memref<1x16xf32, #tpu.memory_space<vmem>>, %arg6: memref<9x16x32xf32, #tpu.memory_space<vmem>>, %arg7: memref<1x32xf32, #tpu.memory_space<vmem>>, %arg8: memref<16x32x10xf32, #tpu.memory_space<vmem>>, %arg9: memref<1x10xf32, #tpu.memory_space<vmem>>, %arg10: memref<1x1x10xf32, #tpu.memory_space<vmem>>, %arg11: memref<512x8xf32, #tpu.memory_space<vmem>>, %arg12: memref<128x16xf32, #tpu.memory_space<vmem>>, %arg13: memref<32x32xf32, #tpu.memory_space<vmem>>) attributes {dimension_semantics = [#tpu.dimension_semantics<parallel>], iteration_bounds = array<i64: 2>, scalar_prefetch = 0 : i64, scratch_operands = 3 : i64, tpu.core_type = #tpu.core_type<tc>, window_params = [{transform_indices = @transform_0, window_bounds = array<i64: 1, 32, 32, 3>}, {pipeline_mode = #tpu.pipeline_mode<synchronous>, transform_indices = @transform_1, window_bounds = array<i64: 9, 3, 8>}, {pipeline_mode = #tpu.pipeline_mode<synchronous>, transform_indices = @transform_2, window_bounds = array<i64: 1, 8>}, {pipeline_mode = #tpu.pipeline_mode<synchronous>, transform_indices = @transform_3, window_bounds = array<i64: 9, 8, 16>}, {pipeline_mode = #tpu.pipeline_mode<synchronous>, transform_indices = @transform_4, window_bounds = array<i64: 1, 16>}, {pipeline_mode = #tpu.pipeline_mode<synchronous>, transform_indices = @transform_5, window_bounds = array<i64: 9, 16, 32>}, {pipeline_mode = #tpu.pipeline_mode<synchronous>, transform_indices = @transform_6, window_bounds = array<i64: 1, 32>}, {pipeline_mode = #tpu.pipeline_mode<synchronous>, transform_indices = @transform_7, window_bounds = array<i64: 16, 32, 10>}, {pipeline_mode = #tpu.pipeline_mode<synchronous>, transform_indices = @transform_8, window_bounds = array<i64: 1, 10>}, {transform_indices = @transform_9, window_bounds = array<i64: 1, 1, 10>}]} {
    %c0 = arith.constant 0 : index
    %c0_0 = arith.constant 0 : index
    %c0_1 = arith.constant 0 : index
    %c0_2 = arith.constant 0 : index
    %0 = vector.load %arg1[%c0, %c0_0, %c0_1, %c0_2] : memref<1x32x32x3xf32, #tpu.memory_space<vmem>>, vector<1x32x32x3xf32>
    %cst = arith.constant 0.000000e+00 : f32
    %1 = vector.broadcast %cst : f32 to vector<1x32x1x3xf32>
    %2 = tpu.concatenate %1, %0, %1 in 2 : vector<1x32x1x3xf32>, vector<1x32x32x3xf32>, vector<1x32x1x3xf32> -> vector<1x32x34x3xf32>
    %cst_3 = arith.constant 0.000000e+00 : f32
    %3 = vector.broadcast %cst_3 : f32 to vector<1x1x34x3xf32>
    %4 = tpu.concatenate %3, %2, %3 in 1 : vector<1x1x34x3xf32>, vector<1x32x34x3xf32>, vector<1x1x34x3xf32> -> vector<1x34x34x3xf32>
    %cst_4 = arith.constant 0.000000e+00 : f32
    %5 = vector.broadcast %cst_4 : f32 to vector<1024x8xf32>
    %6 = vector.extract_strided_slice %4 {offsets = [0, 0, 0, 0], sizes = [1, 32, 32, 3], strides = [1, 1, 1, 1]} : vector<1x34x34x3xf32> to vector<1x32x32x3xf32>
    %7 = vector.shape_cast %6 : vector<1x32x32x3xf32> to vector<1024x3xf32>
    %c0_5 = arith.constant 0 : index
    %c0_6 = arith.constant 0 : index
    %c0_7 = arith.constant 0 : index
    %8 = vector.load %arg2[%c0_5, %c0_6, %c0_7] : memref<9x3x8xf32, #tpu.memory_space<vmem>>, vector<1x3x8xf32>
    %9 = vector.shape_cast %8 : vector<1x3x8xf32> to vector<3x8xf32>
    %cst_8 = arith.constant dense<0.000000e+00> : vector<1024x8xf32>
    %10 = tpu.matmul %7, %9, %cst_8 {dimension_numbers = #tpu.dot_dimension_numbers<[1], [0], [0], [1], [0, 0, 1, 1], [], []>} : vector<1024x3xf32>, vector<3x8xf32>, vector<1024x8xf32> -> vector<1024x8xf32>
    %11 = arith.addf %5, %10 : vector<1024x8xf32>
    %12 = vector.extract_strided_slice %4 {offsets = [0, 0, 1, 0], sizes = [1, 32, 32, 3], strides = [1, 1, 1, 1]} : vector<1x34x34x3xf32> to vector<1x32x32x3xf32>
    %13 = vector.shape_cast %12 : vector<1x32x32x3xf32> to vector<1024x3xf32>
    %c1 = arith.constant 1 : index
    %c0_9 = arith.constant 0 : index
    %c0_10 = arith.constant 0 : index
    %14 = vector.load %arg2[%c1, %c0_9, %c0_10] : memref<9x3x8xf32, #tpu.memory_space<vmem>>, vector<1x3x8xf32>
    %15 = vector.shape_cast %14 : vector<1x3x8xf32> to vector<3x8xf32>
    %cst_11 = arith.constant dense<0.000000e+00> : vector<1024x8xf32>
    %16 = tpu.matmul %13, %15, %cst_11 {dimension_numbers = #tpu.dot_dimension_numbers<[1], [0], [0], [1], [0, 0, 1, 1], [], []>} : vector<1024x3xf32>, vector<3x8xf32>, vector<1024x8xf32> -> vector<1024x8xf32>
    %17 = arith.addf %11, %16 : vector<1024x8xf32>
    %18 = vector.extract_strided_slice %4 {offsets = [0, 0, 2, 0], sizes = [1, 32, 32, 3], strides = [1, 1, 1, 1]} : vector<1x34x34x3xf32> to vector<1x32x32x3xf32>
    %19 = vector.shape_cast %18 : vector<1x32x32x3xf32> to vector<1024x3xf32>
    %c2 = arith.constant 2 : index
    %c0_12 = arith.constant 0 : index
    %c0_13 = arith.constant 0 : index
    %20 = vector.load %arg2[%c2, %c0_12, %c0_13] : memref<9x3x8xf32, #tpu.memory_space<vmem>>, vector<1x3x8xf32>
    %21 = vector.shape_cast %20 : vector<1x3x8xf32> to vector<3x8xf32>
    %cst_14 = arith.constant dense<0.000000e+00> : vector<1024x8xf32>
    %22 = tpu.matmul %19, %21, %cst_14 {dimension_numbers = #tpu.dot_dimension_numbers<[1], [0], [0], [1], [0, 0, 1, 1], [], []>} : vector<1024x3xf32>, vector<3x8xf32>, vector<1024x8xf32> -> vector<1024x8xf32>
    %23 = arith.addf %17, %22 : vector<1024x8xf32>
    %24 = vector.extract_strided_slice %4 {offsets = [0, 1, 0, 0], sizes = [1, 32, 32, 3], strides = [1, 1, 1, 1]} : vector<1x34x34x3xf32> to vector<1x32x32x3xf32>
    %25 = vector.shape_cast %24 : vector<1x32x32x3xf32> to vector<1024x3xf32>
    %c3 = arith.constant 3 : index
    %c0_15 = arith.constant 0 : index
    %c0_16 = arith.constant 0 : index
    %26 = vector.load %arg2[%c3, %c0_15, %c0_16] : memref<9x3x8xf32, #tpu.memory_space<vmem>>, vector<1x3x8xf32>
    %27 = vector.shape_cast %26 : vector<1x3x8xf32> to vector<3x8xf32>
    %cst_17 = arith.constant dense<0.000000e+00> : vector<1024x8xf32>
    %28 = tpu.matmul %25, %27, %cst_17 {dimension_numbers = #tpu.dot_dimension_numbers<[1], [0], [0], [1], [0, 0, 1, 1], [], []>} : vector<1024x3xf32>, vector<3x8xf32>, vector<1024x8xf32> -> vector<1024x8xf32>
    %29 = arith.addf %23, %28 : vector<1024x8xf32>
    %30 = vector.extract_strided_slice %4 {offsets = [0, 1, 1, 0], sizes = [1, 32, 32, 3], strides = [1, 1, 1, 1]} : vector<1x34x34x3xf32> to vector<1x32x32x3xf32>
    %31 = vector.shape_cast %30 : vector<1x32x32x3xf32> to vector<1024x3xf32>
    %c4 = arith.constant 4 : index
    %c0_18 = arith.constant 0 : index
    %c0_19 = arith.constant 0 : index
    %32 = vector.load %arg2[%c4, %c0_18, %c0_19] : memref<9x3x8xf32, #tpu.memory_space<vmem>>, vector<1x3x8xf32>
    %33 = vector.shape_cast %32 : vector<1x3x8xf32> to vector<3x8xf32>
    %cst_20 = arith.constant dense<0.000000e+00> : vector<1024x8xf32>
    %34 = tpu.matmul %31, %33, %cst_20 {dimension_numbers = #tpu.dot_dimension_numbers<[1], [0], [0], [1], [0, 0, 1, 1], [], []>} : vector<1024x3xf32>, vector<3x8xf32>, vector<1024x8xf32> -> vector<1024x8xf32>
    %35 = arith.addf %29, %34 : vector<1024x8xf32>
    %36 = vector.extract_strided_slice %4 {offsets = [0, 1, 2, 0], sizes = [1, 32, 32, 3], strides = [1, 1, 1, 1]} : vector<1x34x34x3xf32> to vector<1x32x32x3xf32>
    %37 = vector.shape_cast %36 : vector<1x32x32x3xf32> to vector<1024x3xf32>
    %c5 = arith.constant 5 : index
    %c0_21 = arith.constant 0 : index
    %c0_22 = arith.constant 0 : index
    %38 = vector.load %arg2[%c5, %c0_21, %c0_22] : memref<9x3x8xf32, #tpu.memory_space<vmem>>, vector<1x3x8xf32>
    %39 = vector.shape_cast %38 : vector<1x3x8xf32> to vector<3x8xf32>
    %cst_23 = arith.constant dense<0.000000e+00> : vector<1024x8xf32>
    %40 = tpu.matmul %37, %39, %cst_23 {dimension_numbers = #tpu.dot_dimension_numbers<[1], [0], [0], [1], [0, 0, 1, 1], [], []>} : vector<1024x3xf32>, vector<3x8xf32>, vector<1024x8xf32> -> vector<1024x8xf32>
    %41 = arith.addf %35, %40 : vector<1024x8xf32>
    %42 = vector.extract_strided_slice %4 {offsets = [0, 2, 0, 0], sizes = [1, 32, 32, 3], strides = [1, 1, 1, 1]} : vector<1x34x34x3xf32> to vector<1x32x32x3xf32>
    %43 = vector.shape_cast %42 : vector<1x32x32x3xf32> to vector<1024x3xf32>
    %c6 = arith.constant 6 : index
    %c0_24 = arith.constant 0 : index
    %c0_25 = arith.constant 0 : index
    %44 = vector.load %arg2[%c6, %c0_24, %c0_25] : memref<9x3x8xf32, #tpu.memory_space<vmem>>, vector<1x3x8xf32>
    %45 = vector.shape_cast %44 : vector<1x3x8xf32> to vector<3x8xf32>
    %cst_26 = arith.constant dense<0.000000e+00> : vector<1024x8xf32>
    %46 = tpu.matmul %43, %45, %cst_26 {dimension_numbers = #tpu.dot_dimension_numbers<[1], [0], [0], [1], [0, 0, 1, 1], [], []>} : vector<1024x3xf32>, vector<3x8xf32>, vector<1024x8xf32> -> vector<1024x8xf32>
    %47 = arith.addf %41, %46 : vector<1024x8xf32>
    %48 = vector.extract_strided_slice %4 {offsets = [0, 2, 1, 0], sizes = [1, 32, 32, 3], strides = [1, 1, 1, 1]} : vector<1x34x34x3xf32> to vector<1x32x32x3xf32>
    %49 = vector.shape_cast %48 : vector<1x32x32x3xf32> to vector<1024x3xf32>
    %c7 = arith.constant 7 : index
    %c0_27 = arith.constant 0 : index
    %c0_28 = arith.constant 0 : index
    %50 = vector.load %arg2[%c7, %c0_27, %c0_28] : memref<9x3x8xf32, #tpu.memory_space<vmem>>, vector<1x3x8xf32>
    %51 = vector.shape_cast %50 : vector<1x3x8xf32> to vector<3x8xf32>
    %cst_29 = arith.constant dense<0.000000e+00> : vector<1024x8xf32>
    %52 = tpu.matmul %49, %51, %cst_29 {dimension_numbers = #tpu.dot_dimension_numbers<[1], [0], [0], [1], [0, 0, 1, 1], [], []>} : vector<1024x3xf32>, vector<3x8xf32>, vector<1024x8xf32> -> vector<1024x8xf32>
    %53 = arith.addf %47, %52 : vector<1024x8xf32>
    %54 = vector.extract_strided_slice %4 {offsets = [0, 2, 2, 0], sizes = [1, 32, 32, 3], strides = [1, 1, 1, 1]} : vector<1x34x34x3xf32> to vector<1x32x32x3xf32>
    %55 = vector.shape_cast %54 : vector<1x32x32x3xf32> to vector<1024x3xf32>
    %c8 = arith.constant 8 : index
    %c0_30 = arith.constant 0 : index
    %c0_31 = arith.constant 0 : index
    %56 = vector.load %arg2[%c8, %c0_30, %c0_31] : memref<9x3x8xf32, #tpu.memory_space<vmem>>, vector<1x3x8xf32>
    %57 = vector.shape_cast %56 : vector<1x3x8xf32> to vector<3x8xf32>
    %cst_32 = arith.constant dense<0.000000e+00> : vector<1024x8xf32>
    %58 = tpu.matmul %55, %57, %cst_32 {dimension_numbers = #tpu.dot_dimension_numbers<[1], [0], [0], [1], [0, 0, 1, 1], [], []>} : vector<1024x3xf32>, vector<3x8xf32>, vector<1024x8xf32> -> vector<1024x8xf32>
    %59 = arith.addf %53, %58 : vector<1024x8xf32>
    %c0_33 = arith.constant 0 : index
    %c0_34 = arith.constant 0 : index
    %60 = vector.load %arg3[%c0_33, %c0_34] : memref<1x8xf32, #tpu.memory_space<vmem>>, vector<1x8xf32>
    %61 = vector.broadcast %60 : vector<1x8xf32> to vector<1024x8xf32>
    %62 = arith.addf %59, %61 : vector<1024x8xf32>
    %cst_35 = arith.constant 0.000000e+00 : f32
    %63 = vector.broadcast %cst_35 : f32 to vector<1024x8xf32>
    %64 = arith.maximumf %62, %63 : vector<1024x8xf32>
    %65 = vector.shape_cast %64 : vector<1024x8xf32> to vector<16x2x32x8xf32>
    %66 = vector.extract_strided_slice %65 {offsets = [0, 0, 0, 0], sizes = [16, 1, 32, 8], strides = [1, 1, 1, 1]} : vector<16x2x32x8xf32> to vector<16x1x32x8xf32>
    %67 = vector.shape_cast %66 : vector<16x1x32x8xf32> to vector<16x32x8xf32>
    %68 = vector.extract_strided_slice %65 {offsets = [0, 1, 0, 0], sizes = [16, 1, 32, 8], strides = [1, 1, 1, 1]} : vector<16x2x32x8xf32> to vector<16x1x32x8xf32>
    %69 = vector.shape_cast %68 : vector<16x1x32x8xf32> to vector<16x32x8xf32>
    %70 = arith.maximumf %67, %69 : vector<16x32x8xf32>
    %71 = vector.shape_cast %70 : vector<16x32x8xf32> to vector<512x8xf32>
    %c0_36 = arith.constant 0 : index
    %c0_37 = arith.constant 0 : index
    %72 = vector.load %arg11[%c0_36, %c0_37] : memref<512x8xf32, #tpu.memory_space<vmem>>, vector<512x8xf32>
    tpu.vector_store %arg11[%c0_36, %c0_37], %71 {strides = array<i32>} : memref<512x8xf32, #tpu.memory_space<vmem>>, vector<512x8xf32>,
    %c0_38 = arith.constant 0 : index
    %c0_39 = arith.constant 0 : index
    %73 = tpu.strided_load %arg11[%c0_38, %c0_39] {strides = array<i32: 2, 1>} : memref<512x8xf32, #tpu.memory_space<vmem>>, vector<256x8xf32>
    %c1_40 = arith.constant 1 : index
    %c0_41 = arith.constant 0 : index
    %74 = tpu.strided_load %arg11[%c1_40, %c0_41] {strides = array<i32: 2, 1>} : memref<512x8xf32, #tpu.memory_space<vmem>>, vector<256x8xf32>
    %75 = arith.maximumf %73, %74 : vector<256x8xf32>
    %76 = vector.shape_cast %75 : vector<256x8xf32> to vector<1x16x16x8xf32>
    %cst_42 = arith.constant 0.000000e+00 : f32
    %77 = vector.broadcast %cst_42 : f32 to vector<1x16x1x8xf32>
    %78 = tpu.concatenate %77, %76, %77 in 2 : vector<1x16x1x8xf32>, vector<1x16x16x8xf32>, vector<1x16x1x8xf32> -> vector<1x16x18x8xf32>
    %cst_43 = arith.constant 0.000000e+00 : f32
    %79 = vector.broadcast %cst_43 : f32 to vector<1x1x18x8xf32>
    %80 = tpu.concatenate %79, %78, %79 in 1 : vector<1x1x18x8xf32>, vector<1x16x18x8xf32>, vector<1x1x18x8xf32> -> vector<1x18x18x8xf32>
    %cst_44 = arith.constant 0.000000e+00 : f32
    %81 = vector.broadcast %cst_44 : f32 to vector<256x16xf32>
    %82 = vector.extract_strided_slice %80 {offsets = [0, 0, 0, 0], sizes = [1, 16, 16, 8], strides = [1, 1, 1, 1]} : vector<1x18x18x8xf32> to vector<1x16x16x8xf32>
    %83 = vector.shape_cast %82 : vector<1x16x16x8xf32> to vector<256x8xf32>
    %c0_45 = arith.constant 0 : index
    %c0_46 = arith.constant 0 : index
    %c0_47 = arith.constant 0 : index
    %84 = vector.load %arg4[%c0_45, %c0_46, %c0_47] : memref<9x8x16xf32, #tpu.memory_space<vmem>>, vector<1x8x16xf32>
    %85 = vector.shape_cast %84 : vector<1x8x16xf32> to vector<8x16xf32>
    %cst_48 = arith.constant dense<0.000000e+00> : vector<256x16xf32>
    %86 = tpu.matmul %83, %85, %cst_48 {dimension_numbers = #tpu.dot_dimension_numbers<[1], [0], [0], [1], [0, 0, 1, 1], [], []>} : vector<256x8xf32>, vector<8x16xf32>, vector<256x16xf32> -> vector<256x16xf32>
    %87 = arith.addf %81, %86 : vector<256x16xf32>
    %88 = vector.extract_strided_slice %80 {offsets = [0, 0, 1, 0], sizes = [1, 16, 16, 8], strides = [1, 1, 1, 1]} : vector<1x18x18x8xf32> to vector<1x16x16x8xf32>
    %89 = vector.shape_cast %88 : vector<1x16x16x8xf32> to vector<256x8xf32>
    %c1_49 = arith.constant 1 : index
    %c0_50 = arith.constant 0 : index
    %c0_51 = arith.constant 0 : index
    %90 = vector.load %arg4[%c1_49, %c0_50, %c0_51] : memref<9x8x16xf32, #tpu.memory_space<vmem>>, vector<1x8x16xf32>
    %91 = vector.shape_cast %90 : vector<1x8x16xf32> to vector<8x16xf32>
    %cst_52 = arith.constant dense<0.000000e+00> : vector<256x16xf32>
    %92 = tpu.matmul %89, %91, %cst_52 {dimension_numbers = #tpu.dot_dimension_numbers<[1], [0], [0], [1], [0, 0, 1, 1], [], []>} : vector<256x8xf32>, vector<8x16xf32>, vector<256x16xf32> -> vector<256x16xf32>
    %93 = arith.addf %87, %92 : vector<256x16xf32>
    %94 = vector.extract_strided_slice %80 {offsets = [0, 0, 2, 0], sizes = [1, 16, 16, 8], strides = [1, 1, 1, 1]} : vector<1x18x18x8xf32> to vector<1x16x16x8xf32>
    %95 = vector.shape_cast %94 : vector<1x16x16x8xf32> to vector<256x8xf32>
    %c2_53 = arith.constant 2 : index
    %c0_54 = arith.constant 0 : index
    %c0_55 = arith.constant 0 : index
    %96 = vector.load %arg4[%c2_53, %c0_54, %c0_55] : memref<9x8x16xf32, #tpu.memory_space<vmem>>, vector<1x8x16xf32>
    %97 = vector.shape_cast %96 : vector<1x8x16xf32> to vector<8x16xf32>
    %cst_56 = arith.constant dense<0.000000e+00> : vector<256x16xf32>
    %98 = tpu.matmul %95, %97, %cst_56 {dimension_numbers = #tpu.dot_dimension_numbers<[1], [0], [0], [1], [0, 0, 1, 1], [], []>} : vector<256x8xf32>, vector<8x16xf32>, vector<256x16xf32> -> vector<256x16xf32>
    %99 = arith.addf %93, %98 : vector<256x16xf32>
    %100 = vector.extract_strided_slice %80 {offsets = [0, 1, 0, 0], sizes = [1, 16, 16, 8], strides = [1, 1, 1, 1]} : vector<1x18x18x8xf32> to vector<1x16x16x8xf32>
    %101 = vector.shape_cast %100 : vector<1x16x16x8xf32> to vector<256x8xf32>
    %c3_57 = arith.constant 3 : index
    %c0_58 = arith.constant 0 : index
    %c0_59 = arith.constant 0 : index
    %102 = vector.load %arg4[%c3_57, %c0_58, %c0_59] : memref<9x8x16xf32, #tpu.memory_space<vmem>>, vector<1x8x16xf32>
    %103 = vector.shape_cast %102 : vector<1x8x16xf32> to vector<8x16xf32>
    %cst_60 = arith.constant dense<0.000000e+00> : vector<256x16xf32>
    %104 = tpu.matmul %101, %103, %cst_60 {dimension_numbers = #tpu.dot_dimension_numbers<[1], [0], [0], [1], [0, 0, 1, 1], [], []>} : vector<256x8xf32>, vector<8x16xf32>, vector<256x16xf32> -> vector<256x16xf32>
    %105 = arith.addf %99, %104 : vector<256x16xf32>
    %106 = vector.extract_strided_slice %80 {offsets = [0, 1, 1, 0], sizes = [1, 16, 16, 8], strides = [1, 1, 1, 1]} : vector<1x18x18x8xf32> to vector<1x16x16x8xf32>
    %107 = vector.shape_cast %106 : vector<1x16x16x8xf32> to vector<256x8xf32>
    %c4_61 = arith.constant 4 : index
    %c0_62 = arith.constant 0 : index
    %c0_63 = arith.constant 0 : index
    %108 = vector.load %arg4[%c4_61, %c0_62, %c0_63] : memref<9x8x16xf32, #tpu.memory_space<vmem>>, vector<1x8x16xf32>
    %109 = vector.shape_cast %108 : vector<1x8x16xf32> to vector<8x16xf32>
    %cst_64 = arith.constant dense<0.000000e+00> : vector<256x16xf32>
    %110 = tpu.matmul %107, %109, %cst_64 {dimension_numbers = #tpu.dot_dimension_numbers<[1], [0], [0], [1], [0, 0, 1, 1], [], []>} : vector<256x8xf32>, vector<8x16xf32>, vector<256x16xf32> -> vector<256x16xf32>
    %111 = arith.addf %105, %110 : vector<256x16xf32>
    %112 = vector.extract_strided_slice %80 {offsets = [0, 1, 2, 0], sizes = [1, 16, 16, 8], strides = [1, 1, 1, 1]} : vector<1x18x18x8xf32> to vector<1x16x16x8xf32>
    %113 = vector.shape_cast %112 : vector<1x16x16x8xf32> to vector<256x8xf32>
    %c5_65 = arith.constant 5 : index
    %c0_66 = arith.constant 0 : index
    %c0_67 = arith.constant 0 : index
    %114 = vector.load %arg4[%c5_65, %c0_66, %c0_67] : memref<9x8x16xf32, #tpu.memory_space<vmem>>, vector<1x8x16xf32>
    %115 = vector.shape_cast %114 : vector<1x8x16xf32> to vector<8x16xf32>
    %cst_68 = arith.constant dense<0.000000e+00> : vector<256x16xf32>
    %116 = tpu.matmul %113, %115, %cst_68 {dimension_numbers = #tpu.dot_dimension_numbers<[1], [0], [0], [1], [0, 0, 1, 1], [], []>} : vector<256x8xf32>, vector<8x16xf32>, vector<256x16xf32> -> vector<256x16xf32>
    %117 = arith.addf %111, %116 : vector<256x16xf32>
    %118 = vector.extract_strided_slice %80 {offsets = [0, 2, 0, 0], sizes = [1, 16, 16, 8], strides = [1, 1, 1, 1]} : vector<1x18x18x8xf32> to vector<1x16x16x8xf32>
    %119 = vector.shape_cast %118 : vector<1x16x16x8xf32> to vector<256x8xf32>
    %c6_69 = arith.constant 6 : index
    %c0_70 = arith.constant 0 : index
    %c0_71 = arith.constant 0 : index
    %120 = vector.load %arg4[%c6_69, %c0_70, %c0_71] : memref<9x8x16xf32, #tpu.memory_space<vmem>>, vector<1x8x16xf32>
    %121 = vector.shape_cast %120 : vector<1x8x16xf32> to vector<8x16xf32>
    %cst_72 = arith.constant dense<0.000000e+00> : vector<256x16xf32>
    %122 = tpu.matmul %119, %121, %cst_72 {dimension_numbers = #tpu.dot_dimension_numbers<[1], [0], [0], [1], [0, 0, 1, 1], [], []>} : vector<256x8xf32>, vector<8x16xf32>, vector<256x16xf32> -> vector<256x16xf32>
    %123 = arith.addf %117, %122 : vector<256x16xf32>
    %124 = vector.extract_strided_slice %80 {offsets = [0, 2, 1, 0], sizes = [1, 16, 16, 8], strides = [1, 1, 1, 1]} : vector<1x18x18x8xf32> to vector<1x16x16x8xf32>
    %125 = vector.shape_cast %124 : vector<1x16x16x8xf32> to vector<256x8xf32>
    %c7_73 = arith.constant 7 : index
    %c0_74 = arith.constant 0 : index
    %c0_75 = arith.constant 0 : index
    %126 = vector.load %arg4[%c7_73, %c0_74, %c0_75] : memref<9x8x16xf32, #tpu.memory_space<vmem>>, vector<1x8x16xf32>
    %127 = vector.shape_cast %126 : vector<1x8x16xf32> to vector<8x16xf32>
    %cst_76 = arith.constant dense<0.000000e+00> : vector<256x16xf32>
    %128 = tpu.matmul %125, %127, %cst_76 {dimension_numbers = #tpu.dot_dimension_numbers<[1], [0], [0], [1], [0, 0, 1, 1], [], []>} : vector<256x8xf32>, vector<8x16xf32>, vector<256x16xf32> -> vector<256x16xf32>
    %129 = arith.addf %123, %128 : vector<256x16xf32>
    %130 = vector.extract_strided_slice %80 {offsets = [0, 2, 2, 0], sizes = [1, 16, 16, 8], strides = [1, 1, 1, 1]} : vector<1x18x18x8xf32> to vector<1x16x16x8xf32>
    %131 = vector.shape_cast %130 : vector<1x16x16x8xf32> to vector<256x8xf32>
    %c8_77 = arith.constant 8 : index
    %c0_78 = arith.constant 0 : index
    %c0_79 = arith.constant 0 : index
    %132 = vector.load %arg4[%c8_77, %c0_78, %c0_79] : memref<9x8x16xf32, #tpu.memory_space<vmem>>, vector<1x8x16xf32>
    %133 = vector.shape_cast %132 : vector<1x8x16xf32> to vector<8x16xf32>
    %cst_80 = arith.constant dense<0.000000e+00> : vector<256x16xf32>
    %134 = tpu.matmul %131, %133, %cst_80 {dimension_numbers = #tpu.dot_dimension_numbers<[1], [0], [0], [1], [0, 0, 1, 1], [], []>} : vector<256x8xf32>, vector<8x16xf32>, vector<256x16xf32> -> vector<256x16xf32>
    %135 = arith.addf %129, %134 : vector<256x16xf32>
    %c0_81 = arith.constant 0 : index
    %c0_82 = arith.constant 0 : index
    %136 = vector.load %arg5[%c0_81, %c0_82] : memref<1x16xf32, #tpu.memory_space<vmem>>, vector<1x16xf32>
    %137 = vector.broadcast %136 : vector<1x16xf32> to vector<256x16xf32>
    %138 = arith.addf %135, %137 : vector<256x16xf32>
    %cst_83 = arith.constant 0.000000e+00 : f32
    %139 = vector.broadcast %cst_83 : f32 to vector<256x16xf32>
    %140 = arith.maximumf %138, %139 : vector<256x16xf32>
    %141 = vector.shape_cast %140 : vector<256x16xf32> to vector<8x2x16x16xf32>
    %142 = vector.extract_strided_slice %141 {offsets = [0, 0, 0, 0], sizes = [8, 1, 16, 16], strides = [1, 1, 1, 1]} : vector<8x2x16x16xf32> to vector<8x1x16x16xf32>
    %143 = vector.shape_cast %142 : vector<8x1x16x16xf32> to vector<8x16x16xf32>
    %144 = vector.extract_strided_slice %141 {offsets = [0, 1, 0, 0], sizes = [8, 1, 16, 16], strides = [1, 1, 1, 1]} : vector<8x2x16x16xf32> to vector<8x1x16x16xf32>
    %145 = vector.shape_cast %144 : vector<8x1x16x16xf32> to vector<8x16x16xf32>
    %146 = arith.maximumf %143, %145 : vector<8x16x16xf32>
    %147 = vector.shape_cast %146 : vector<8x16x16xf32> to vector<128x16xf32>
    %c0_84 = arith.constant 0 : index
    %c0_85 = arith.constant 0 : index
    %148 = vector.load %arg12[%c0_84, %c0_85] : memref<128x16xf32, #tpu.memory_space<vmem>>, vector<128x16xf32>
    tpu.vector_store %arg12[%c0_84, %c0_85], %147 {strides = array<i32>} : memref<128x16xf32, #tpu.memory_space<vmem>>, vector<128x16xf32>,
    %c0_86 = arith.constant 0 : index
    %c0_87 = arith.constant 0 : index
    %149 = tpu.strided_load %arg12[%c0_86, %c0_87] {strides = array<i32: 2, 1>} : memref<128x16xf32, #tpu.memory_space<vmem>>, vector<64x16xf32>
    %c1_88 = arith.constant 1 : index
    %c0_89 = arith.constant 0 : index
    %150 = tpu.strided_load %arg12[%c1_88, %c0_89] {strides = array<i32: 2, 1>} : memref<128x16xf32, #tpu.memory_space<vmem>>, vector<64x16xf32>
    %151 = arith.maximumf %149, %150 : vector<64x16xf32>
    %152 = vector.shape_cast %151 : vector<64x16xf32> to vector<1x8x8x16xf32>
    %cst_90 = arith.constant 0.000000e+00 : f32
    %153 = vector.broadcast %cst_90 : f32 to vector<1x8x1x16xf32>
    %154 = tpu.concatenate %153, %152, %153 in 2 : vector<1x8x1x16xf32>, vector<1x8x8x16xf32>, vector<1x8x1x16xf32> -> vector<1x8x10x16xf32>
    %cst_91 = arith.constant 0.000000e+00 : f32
    %155 = vector.broadcast %cst_91 : f32 to vector<1x1x10x16xf32>
    %156 = tpu.concatenate %155, %154, %155 in 1 : vector<1x1x10x16xf32>, vector<1x8x10x16xf32>, vector<1x1x10x16xf32> -> vector<1x10x10x16xf32>
    %cst_92 = arith.constant 0.000000e+00 : f32
    %157 = vector.broadcast %cst_92 : f32 to vector<64x32xf32>
    %158 = vector.extract_strided_slice %156 {offsets = [0, 0, 0, 0], sizes = [1, 8, 8, 16], strides = [1, 1, 1, 1]} : vector<1x10x10x16xf32> to vector<1x8x8x16xf32>
    %159 = vector.shape_cast %158 : vector<1x8x8x16xf32> to vector<64x16xf32>
    %c0_93 = arith.constant 0 : index
    %c0_94 = arith.constant 0 : index
    %c0_95 = arith.constant 0 : index
    %160 = vector.load %arg6[%c0_93, %c0_94, %c0_95] : memref<9x16x32xf32, #tpu.memory_space<vmem>>, vector<1x16x32xf32>
    %161 = vector.shape_cast %160 : vector<1x16x32xf32> to vector<16x32xf32>
    %cst_96 = arith.constant dense<0.000000e+00> : vector<64x32xf32>
    %162 = tpu.matmul %159, %161, %cst_96 {dimension_numbers = #tpu.dot_dimension_numbers<[1], [0], [0], [1], [0, 0, 1, 1], [], []>} : vector<64x16xf32>, vector<16x32xf32>, vector<64x32xf32> -> vector<64x32xf32>
    %163 = arith.addf %157, %162 : vector<64x32xf32>
    %164 = vector.extract_strided_slice %156 {offsets = [0, 0, 1, 0], sizes = [1, 8, 8, 16], strides = [1, 1, 1, 1]} : vector<1x10x10x16xf32> to vector<1x8x8x16xf32>
    %165 = vector.shape_cast %164 : vector<1x8x8x16xf32> to vector<64x16xf32>
    %c1_97 = arith.constant 1 : index
    %c0_98 = arith.constant 0 : index
    %c0_99 = arith.constant 0 : index
    %166 = vector.load %arg6[%c1_97, %c0_98, %c0_99] : memref<9x16x32xf32, #tpu.memory_space<vmem>>, vector<1x16x32xf32>
    %167 = vector.shape_cast %166 : vector<1x16x32xf32> to vector<16x32xf32>
    %cst_100 = arith.constant dense<0.000000e+00> : vector<64x32xf32>
    %168 = tpu.matmul %165, %167, %cst_100 {dimension_numbers = #tpu.dot_dimension_numbers<[1], [0], [0], [1], [0, 0, 1, 1], [], []>} : vector<64x16xf32>, vector<16x32xf32>, vector<64x32xf32> -> vector<64x32xf32>
    %169 = arith.addf %163, %168 : vector<64x32xf32>
    %170 = vector.extract_strided_slice %156 {offsets = [0, 0, 2, 0], sizes = [1, 8, 8, 16], strides = [1, 1, 1, 1]} : vector<1x10x10x16xf32> to vector<1x8x8x16xf32>
    %171 = vector.shape_cast %170 : vector<1x8x8x16xf32> to vector<64x16xf32>
    %c2_101 = arith.constant 2 : index
    %c0_102 = arith.constant 0 : index
    %c0_103 = arith.constant 0 : index
    %172 = vector.load %arg6[%c2_101, %c0_102, %c0_103] : memref<9x16x32xf32, #tpu.memory_space<vmem>>, vector<1x16x32xf32>
    %173 = vector.shape_cast %172 : vector<1x16x32xf32> to vector<16x32xf32>
    %cst_104 = arith.constant dense<0.000000e+00> : vector<64x32xf32>
    %174 = tpu.matmul %171, %173, %cst_104 {dimension_numbers = #tpu.dot_dimension_numbers<[1], [0], [0], [1], [0, 0, 1, 1], [], []>} : vector<64x16xf32>, vector<16x32xf32>, vector<64x32xf32> -> vector<64x32xf32>
    %175 = arith.addf %169, %174 : vector<64x32xf32>
    %176 = vector.extract_strided_slice %156 {offsets = [0, 1, 0, 0], sizes = [1, 8, 8, 16], strides = [1, 1, 1, 1]} : vector<1x10x10x16xf32> to vector<1x8x8x16xf32>
    %177 = vector.shape_cast %176 : vector<1x8x8x16xf32> to vector<64x16xf32>
    %c3_105 = arith.constant 3 : index
    %c0_106 = arith.constant 0 : index
    %c0_107 = arith.constant 0 : index
    %178 = vector.load %arg6[%c3_105, %c0_106, %c0_107] : memref<9x16x32xf32, #tpu.memory_space<vmem>>, vector<1x16x32xf32>
    %179 = vector.shape_cast %178 : vector<1x16x32xf32> to vector<16x32xf32>
    %cst_108 = arith.constant dense<0.000000e+00> : vector<64x32xf32>
    %180 = tpu.matmul %177, %179, %cst_108 {dimension_numbers = #tpu.dot_dimension_numbers<[1], [0], [0], [1], [0, 0, 1, 1], [], []>} : vector<64x16xf32>, vector<16x32xf32>, vector<64x32xf32> -> vector<64x32xf32>
    %181 = arith.addf %175, %180 : vector<64x32xf32>
    %182 = vector.extract_strided_slice %156 {offsets = [0, 1, 1, 0], sizes = [1, 8, 8, 16], strides = [1, 1, 1, 1]} : vector<1x10x10x16xf32> to vector<1x8x8x16xf32>
    %183 = vector.shape_cast %182 : vector<1x8x8x16xf32> to vector<64x16xf32>
    %c4_109 = arith.constant 4 : index
    %c0_110 = arith.constant 0 : index
    %c0_111 = arith.constant 0 : index
    %184 = vector.load %arg6[%c4_109, %c0_110, %c0_111] : memref<9x16x32xf32, #tpu.memory_space<vmem>>, vector<1x16x32xf32>
    %185 = vector.shape_cast %184 : vector<1x16x32xf32> to vector<16x32xf32>
    %cst_112 = arith.constant dense<0.000000e+00> : vector<64x32xf32>
    %186 = tpu.matmul %183, %185, %cst_112 {dimension_numbers = #tpu.dot_dimension_numbers<[1], [0], [0], [1], [0, 0, 1, 1], [], []>} : vector<64x16xf32>, vector<16x32xf32>, vector<64x32xf32> -> vector<64x32xf32>
    %187 = arith.addf %181, %186 : vector<64x32xf32>
    %188 = vector.extract_strided_slice %156 {offsets = [0, 1, 2, 0], sizes = [1, 8, 8, 16], strides = [1, 1, 1, 1]} : vector<1x10x10x16xf32> to vector<1x8x8x16xf32>
    %189 = vector.shape_cast %188 : vector<1x8x8x16xf32> to vector<64x16xf32>
    %c5_113 = arith.constant 5 : index
    %c0_114 = arith.constant 0 : index
    %c0_115 = arith.constant 0 : index
    %190 = vector.load %arg6[%c5_113, %c0_114, %c0_115] : memref<9x16x32xf32, #tpu.memory_space<vmem>>, vector<1x16x32xf32>
    %191 = vector.shape_cast %190 : vector<1x16x32xf32> to vector<16x32xf32>
    %cst_116 = arith.constant dense<0.000000e+00> : vector<64x32xf32>
    %192 = tpu.matmul %189, %191, %cst_116 {dimension_numbers = #tpu.dot_dimension_numbers<[1], [0], [0], [1], [0, 0, 1, 1], [], []>} : vector<64x16xf32>, vector<16x32xf32>, vector<64x32xf32> -> vector<64x32xf32>
    %193 = arith.addf %187, %192 : vector<64x32xf32>
    %194 = vector.extract_strided_slice %156 {offsets = [0, 2, 0, 0], sizes = [1, 8, 8, 16], strides = [1, 1, 1, 1]} : vector<1x10x10x16xf32> to vector<1x8x8x16xf32>
    %195 = vector.shape_cast %194 : vector<1x8x8x16xf32> to vector<64x16xf32>
    %c6_117 = arith.constant 6 : index
    %c0_118 = arith.constant 0 : index
    %c0_119 = arith.constant 0 : index
    %196 = vector.load %arg6[%c6_117, %c0_118, %c0_119] : memref<9x16x32xf32, #tpu.memory_space<vmem>>, vector<1x16x32xf32>
    %197 = vector.shape_cast %196 : vector<1x16x32xf32> to vector<16x32xf32>
    %cst_120 = arith.constant dense<0.000000e+00> : vector<64x32xf32>
    %198 = tpu.matmul %195, %197, %cst_120 {dimension_numbers = #tpu.dot_dimension_numbers<[1], [0], [0], [1], [0, 0, 1, 1], [], []>} : vector<64x16xf32>, vector<16x32xf32>, vector<64x32xf32> -> vector<64x32xf32>
    %199 = arith.addf %193, %198 : vector<64x32xf32>
    %200 = vector.extract_strided_slice %156 {offsets = [0, 2, 1, 0], sizes = [1, 8, 8, 16], strides = [1, 1, 1, 1]} : vector<1x10x10x16xf32> to vector<1x8x8x16xf32>
    %201 = vector.shape_cast %200 : vector<1x8x8x16xf32> to vector<64x16xf32>
    %c7_121 = arith.constant 7 : index
    %c0_122 = arith.constant 0 : index
    %c0_123 = arith.constant 0 : index
    %202 = vector.load %arg6[%c7_121, %c0_122, %c0_123] : memref<9x16x32xf32, #tpu.memory_space<vmem>>, vector<1x16x32xf32>
    %203 = vector.shape_cast %202 : vector<1x16x32xf32> to vector<16x32xf32>
    %cst_124 = arith.constant dense<0.000000e+00> : vector<64x32xf32>
    %204 = tpu.matmul %201, %203, %cst_124 {dimension_numbers = #tpu.dot_dimension_numbers<[1], [0], [0], [1], [0, 0, 1, 1], [], []>} : vector<64x16xf32>, vector<16x32xf32>, vector<64x32xf32> -> vector<64x32xf32>
    %205 = arith.addf %199, %204 : vector<64x32xf32>
    %206 = vector.extract_strided_slice %156 {offsets = [0, 2, 2, 0], sizes = [1, 8, 8, 16], strides = [1, 1, 1, 1]} : vector<1x10x10x16xf32> to vector<1x8x8x16xf32>
    %207 = vector.shape_cast %206 : vector<1x8x8x16xf32> to vector<64x16xf32>
    %c8_125 = arith.constant 8 : index
    %c0_126 = arith.constant 0 : index
    %c0_127 = arith.constant 0 : index
    %208 = vector.load %arg6[%c8_125, %c0_126, %c0_127] : memref<9x16x32xf32, #tpu.memory_space<vmem>>, vector<1x16x32xf32>
    %209 = vector.shape_cast %208 : vector<1x16x32xf32> to vector<16x32xf32>
    %cst_128 = arith.constant dense<0.000000e+00> : vector<64x32xf32>
    %210 = tpu.matmul %207, %209, %cst_128 {dimension_numbers = #tpu.dot_dimension_numbers<[1], [0], [0], [1], [0, 0, 1, 1], [], []>} : vector<64x16xf32>, vector<16x32xf32>, vector<64x32xf32> -> vector<64x32xf32>
    %211 = arith.addf %205, %210 : vector<64x32xf32>
    %c0_129 = arith.constant 0 : index
    %c0_130 = arith.constant 0 : index
    %212 = vector.load %arg7[%c0_129, %c0_130] : memref<1x32xf32, #tpu.memory_space<vmem>>, vector<1x32xf32>
    %213 = vector.broadcast %212 : vector<1x32xf32> to vector<64x32xf32>
    %214 = arith.addf %211, %213 : vector<64x32xf32>
    %cst_131 = arith.constant 0.000000e+00 : f32
    %215 = vector.broadcast %cst_131 : f32 to vector<64x32xf32>
    %216 = arith.maximumf %214, %215 : vector<64x32xf32>
    %217 = vector.shape_cast %216 : vector<64x32xf32> to vector<4x2x8x32xf32>
    %218 = vector.extract_strided_slice %217 {offsets = [0, 0, 0, 0], sizes = [4, 1, 8, 32], strides = [1, 1, 1, 1]} : vector<4x2x8x32xf32> to vector<4x1x8x32xf32>
    %219 = vector.shape_cast %218 : vector<4x1x8x32xf32> to vector<4x8x32xf32>
    %220 = vector.extract_strided_slice %217 {offsets = [0, 1, 0, 0], sizes = [4, 1, 8, 32], strides = [1, 1, 1, 1]} : vector<4x2x8x32xf32> to vector<4x1x8x32xf32>
    %221 = vector.shape_cast %220 : vector<4x1x8x32xf32> to vector<4x8x32xf32>
    %222 = arith.maximumf %219, %221 : vector<4x8x32xf32>
    %223 = vector.shape_cast %222 : vector<4x8x32xf32> to vector<32x32xf32>
    %c0_132 = arith.constant 0 : index
    %c0_133 = arith.constant 0 : index
    %224 = vector.load %arg13[%c0_132, %c0_133] : memref<32x32xf32, #tpu.memory_space<vmem>>, vector<32x32xf32>
    tpu.vector_store %arg13[%c0_132, %c0_133], %223 {strides = array<i32>} : memref<32x32xf32, #tpu.memory_space<vmem>>, vector<32x32xf32>,
    %c0_134 = arith.constant 0 : index
    %c0_135 = arith.constant 0 : index
    %225 = tpu.strided_load %arg13[%c0_134, %c0_135] {strides = array<i32: 2, 1>} : memref<32x32xf32, #tpu.memory_space<vmem>>, vector<16x32xf32>
    %c1_136 = arith.constant 1 : index
    %c0_137 = arith.constant 0 : index
    %226 = tpu.strided_load %arg13[%c1_136, %c0_137] {strides = array<i32: 2, 1>} : memref<32x32xf32, #tpu.memory_space<vmem>>, vector<16x32xf32>
    %227 = arith.maximumf %225, %226 : vector<16x32xf32>
    %c0_138 = arith.constant 0 : index
    %c0_139 = arith.constant 0 : index
    %228 = vector.load %arg9[%c0_138, %c0_139] : memref<1x10xf32, #tpu.memory_space<vmem>>, vector<1x10xf32>
    %229 = vector.extract_strided_slice %227 {offsets = [0, 0], sizes = [1, 32], strides = [1, 1]} : vector<16x32xf32> to vector<1x32xf32>
    %c0_140 = arith.constant 0 : index
    %c0_141 = arith.constant 0 : index
    %c0_142 = arith.constant 0 : index
    %230 = vector.load %arg8[%c0_140, %c0_141, %c0_142] : memref<16x32x10xf32, #tpu.memory_space<vmem>>, vector<1x32x10xf32>
    %231 = vector.shape_cast %230 : vector<1x32x10xf32> to vector<32x10xf32>
    %cst_143 = arith.constant dense<0.000000e+00> : vector<1x10xf32>
    %232 = tpu.matmul %229, %231, %cst_143 {dimension_numbers = #tpu.dot_dimension_numbers<[1], [0], [0], [1], [0, 0, 1, 1], [], []>} : vector<1x32xf32>, vector<32x10xf32>, vector<1x10xf32> -> vector<1x10xf32>
    %233 = arith.addf %228, %232 : vector<1x10xf32>
    %234 = vector.extract_strided_slice %227 {offsets = [1, 0], sizes = [1, 32], strides = [1, 1]} : vector<16x32xf32> to vector<1x32xf32>
    %c1_144 = arith.constant 1 : index
    %c0_145 = arith.constant 0 : index
    %c0_146 = arith.constant 0 : index
    %235 = vector.load %arg8[%c1_144, %c0_145, %c0_146] : memref<16x32x10xf32, #tpu.memory_space<vmem>>, vector<1x32x10xf32>
    %236 = vector.shape_cast %235 : vector<1x32x10xf32> to vector<32x10xf32>
    %cst_147 = arith.constant dense<0.000000e+00> : vector<1x10xf32>
    %237 = tpu.matmul %234, %236, %cst_147 {dimension_numbers = #tpu.dot_dimension_numbers<[1], [0], [0], [1], [0, 0, 1, 1], [], []>} : vector<1x32xf32>, vector<32x10xf32>, vector<1x10xf32> -> vector<1x10xf32>
    %238 = arith.addf %233, %237 : vector<1x10xf32>
    %239 = vector.extract_strided_slice %227 {offsets = [2, 0], sizes = [1, 32], strides = [1, 1]} : vector<16x32xf32> to vector<1x32xf32>
    %c2_148 = arith.constant 2 : index
    %c0_149 = arith.constant 0 : index
    %c0_150 = arith.constant 0 : index
    %240 = vector.load %arg8[%c2_148, %c0_149, %c0_150] : memref<16x32x10xf32, #tpu.memory_space<vmem>>, vector<1x32x10xf32>
    %241 = vector.shape_cast %240 : vector<1x32x10xf32> to vector<32x10xf32>
    %cst_151 = arith.constant dense<0.000000e+00> : vector<1x10xf32>
    %242 = tpu.matmul %239, %241, %cst_151 {dimension_numbers = #tpu.dot_dimension_numbers<[1], [0], [0], [1], [0, 0, 1, 1], [], []>} : vector<1x32xf32>, vector<32x10xf32>, vector<1x10xf32> -> vector<1x10xf32>
    %243 = arith.addf %238, %242 : vector<1x10xf32>
    %244 = vector.extract_strided_slice %227 {offsets = [3, 0], sizes = [1, 32], strides = [1, 1]} : vector<16x32xf32> to vector<1x32xf32>
    %c3_152 = arith.constant 3 : index
    %c0_153 = arith.constant 0 : index
    %c0_154 = arith.constant 0 : index
    %245 = vector.load %arg8[%c3_152, %c0_153, %c0_154] : memref<16x32x10xf32, #tpu.memory_space<vmem>>, vector<1x32x10xf32>
    %246 = vector.shape_cast %245 : vector<1x32x10xf32> to vector<32x10xf32>
    %cst_155 = arith.constant dense<0.000000e+00> : vector<1x10xf32>
    %247 = tpu.matmul %244, %246, %cst_155 {dimension_numbers = #tpu.dot_dimension_numbers<[1], [0], [0], [1], [0, 0, 1, 1], [], []>} : vector<1x32xf32>, vector<32x10xf32>, vector<1x10xf32> -> vector<1x10xf32>
    %248 = arith.addf %243, %247 : vector<1x10xf32>
    %249 = vector.extract_strided_slice %227 {offsets = [4, 0], sizes = [1, 32], strides = [1, 1]} : vector<16x32xf32> to vector<1x32xf32>
    %c4_156 = arith.constant 4 : index
    %c0_157 = arith.constant 0 : index
    %c0_158 = arith.constant 0 : index
    %250 = vector.load %arg8[%c4_156, %c0_157, %c0_158] : memref<16x32x10xf32, #tpu.memory_space<vmem>>, vector<1x32x10xf32>
    %251 = vector.shape_cast %250 : vector<1x32x10xf32> to vector<32x10xf32>
    %cst_159 = arith.constant dense<0.000000e+00> : vector<1x10xf32>
    %252 = tpu.matmul %249, %251, %cst_159 {dimension_numbers = #tpu.dot_dimension_numbers<[1], [0], [0], [1], [0, 0, 1, 1], [], []>} : vector<1x32xf32>, vector<32x10xf32>, vector<1x10xf32> -> vector<1x10xf32>
    %253 = arith.addf %248, %252 : vector<1x10xf32>
    %254 = vector.extract_strided_slice %227 {offsets = [5, 0], sizes = [1, 32], strides = [1, 1]} : vector<16x32xf32> to vector<1x32xf32>
    %c5_160 = arith.constant 5 : index
    %c0_161 = arith.constant 0 : index
    %c0_162 = arith.constant 0 : index
    %255 = vector.load %arg8[%c5_160, %c0_161, %c0_162] : memref<16x32x10xf32, #tpu.memory_space<vmem>>, vector<1x32x10xf32>
    %256 = vector.shape_cast %255 : vector<1x32x10xf32> to vector<32x10xf32>
    %cst_163 = arith.constant dense<0.000000e+00> : vector<1x10xf32>
    %257 = tpu.matmul %254, %256, %cst_163 {dimension_numbers = #tpu.dot_dimension_numbers<[1], [0], [0], [1], [0, 0, 1, 1], [], []>} : vector<1x32xf32>, vector<32x10xf32>, vector<1x10xf32> -> vector<1x10xf32>
    %258 = arith.addf %253, %257 : vector<1x10xf32>
    %259 = vector.extract_strided_slice %227 {offsets = [6, 0], sizes = [1, 32], strides = [1, 1]} : vector<16x32xf32> to vector<1x32xf32>
    %c6_164 = arith.constant 6 : index
    %c0_165 = arith.constant 0 : index
    %c0_166 = arith.constant 0 : index
    %260 = vector.load %arg8[%c6_164, %c0_165, %c0_166] : memref<16x32x10xf32, #tpu.memory_space<vmem>>, vector<1x32x10xf32>
    %261 = vector.shape_cast %260 : vector<1x32x10xf32> to vector<32x10xf32>
    %cst_167 = arith.constant dense<0.000000e+00> : vector<1x10xf32>
    %262 = tpu.matmul %259, %261, %cst_167 {dimension_numbers = #tpu.dot_dimension_numbers<[1], [0], [0], [1], [0, 0, 1, 1], [], []>} : vector<1x32xf32>, vector<32x10xf32>, vector<1x10xf32> -> vector<1x10xf32>
    %263 = arith.addf %258, %262 : vector<1x10xf32>
    %264 = vector.extract_strided_slice %227 {offsets = [7, 0], sizes = [1, 32], strides = [1, 1]} : vector<16x32xf32> to vector<1x32xf32>
    %c7_168 = arith.constant 7 : index
    %c0_169 = arith.constant 0 : index
    %c0_170 = arith.constant 0 : index
    %265 = vector.load %arg8[%c7_168, %c0_169, %c0_170] : memref<16x32x10xf32, #tpu.memory_space<vmem>>, vector<1x32x10xf32>
    %266 = vector.shape_cast %265 : vector<1x32x10xf32> to vector<32x10xf32>
    %cst_171 = arith.constant dense<0.000000e+00> : vector<1x10xf32>
    %267 = tpu.matmul %264, %266, %cst_171 {dimension_numbers = #tpu.dot_dimension_numbers<[1], [0], [0], [1], [0, 0, 1, 1], [], []>} : vector<1x32xf32>, vector<32x10xf32>, vector<1x10xf32> -> vector<1x10xf32>
    %268 = arith.addf %263, %267 : vector<1x10xf32>
    %269 = vector.extract_strided_slice %227 {offsets = [8, 0], sizes = [1, 32], strides = [1, 1]} : vector<16x32xf32> to vector<1x32xf32>
    %c8_172 = arith.constant 8 : index
    %c0_173 = arith.constant 0 : index
    %c0_174 = arith.constant 0 : index
    %270 = vector.load %arg8[%c8_172, %c0_173, %c0_174] : memref<16x32x10xf32, #tpu.memory_space<vmem>>, vector<1x32x10xf32>
    %271 = vector.shape_cast %270 : vector<1x32x10xf32> to vector<32x10xf32>
    %cst_175 = arith.constant dense<0.000000e+00> : vector<1x10xf32>
    %272 = tpu.matmul %269, %271, %cst_175 {dimension_numbers = #tpu.dot_dimension_numbers<[1], [0], [0], [1], [0, 0, 1, 1], [], []>} : vector<1x32xf32>, vector<32x10xf32>, vector<1x10xf32> -> vector<1x10xf32>
    %273 = arith.addf %268, %272 : vector<1x10xf32>
    %274 = vector.extract_strided_slice %227 {offsets = [9, 0], sizes = [1, 32], strides = [1, 1]} : vector<16x32xf32> to vector<1x32xf32>
    %c9 = arith.constant 9 : index
    %c0_176 = arith.constant 0 : index
    %c0_177 = arith.constant 0 : index
    %275 = vector.load %arg8[%c9, %c0_176, %c0_177] : memref<16x32x10xf32, #tpu.memory_space<vmem>>, vector<1x32x10xf32>
    %276 = vector.shape_cast %275 : vector<1x32x10xf32> to vector<32x10xf32>
    %cst_178 = arith.constant dense<0.000000e+00> : vector<1x10xf32>
    %277 = tpu.matmul %274, %276, %cst_178 {dimension_numbers = #tpu.dot_dimension_numbers<[1], [0], [0], [1], [0, 0, 1, 1], [], []>} : vector<1x32xf32>, vector<32x10xf32>, vector<1x10xf32> -> vector<1x10xf32>
    %278 = arith.addf %273, %277 : vector<1x10xf32>
    %279 = vector.extract_strided_slice %227 {offsets = [10, 0], sizes = [1, 32], strides = [1, 1]} : vector<16x32xf32> to vector<1x32xf32>
    %c10 = arith.constant 10 : index
    %c0_179 = arith.constant 0 : index
    %c0_180 = arith.constant 0 : index
    %280 = vector.load %arg8[%c10, %c0_179, %c0_180] : memref<16x32x10xf32, #tpu.memory_space<vmem>>, vector<1x32x10xf32>
    %281 = vector.shape_cast %280 : vector<1x32x10xf32> to vector<32x10xf32>
    %cst_181 = arith.constant dense<0.000000e+00> : vector<1x10xf32>
    %282 = tpu.matmul %279, %281, %cst_181 {dimension_numbers = #tpu.dot_dimension_numbers<[1], [0], [0], [1], [0, 0, 1, 1], [], []>} : vector<1x32xf32>, vector<32x10xf32>, vector<1x10xf32> -> vector<1x10xf32>
    %283 = arith.addf %278, %282 : vector<1x10xf32>
    %284 = vector.extract_strided_slice %227 {offsets = [11, 0], sizes = [1, 32], strides = [1, 1]} : vector<16x32xf32> to vector<1x32xf32>
    %c11 = arith.constant 11 : index
    %c0_182 = arith.constant 0 : index
    %c0_183 = arith.constant 0 : index
    %285 = vector.load %arg8[%c11, %c0_182, %c0_183] : memref<16x32x10xf32, #tpu.memory_space<vmem>>, vector<1x32x10xf32>
    %286 = vector.shape_cast %285 : vector<1x32x10xf32> to vector<32x10xf32>
    %cst_184 = arith.constant dense<0.000000e+00> : vector<1x10xf32>
    %287 = tpu.matmul %284, %286, %cst_184 {dimension_numbers = #tpu.dot_dimension_numbers<[1], [0], [0], [1], [0, 0, 1, 1], [], []>} : vector<1x32xf32>, vector<32x10xf32>, vector<1x10xf32> -> vector<1x10xf32>
    %288 = arith.addf %283, %287 : vector<1x10xf32>
    %289 = vector.extract_strided_slice %227 {offsets = [12, 0], sizes = [1, 32], strides = [1, 1]} : vector<16x32xf32> to vector<1x32xf32>
    %c12 = arith.constant 12 : index
    %c0_185 = arith.constant 0 : index
    %c0_186 = arith.constant 0 : index
    %290 = vector.load %arg8[%c12, %c0_185, %c0_186] : memref<16x32x10xf32, #tpu.memory_space<vmem>>, vector<1x32x10xf32>
    %291 = vector.shape_cast %290 : vector<1x32x10xf32> to vector<32x10xf32>
    %cst_187 = arith.constant dense<0.000000e+00> : vector<1x10xf32>
    %292 = tpu.matmul %289, %291, %cst_187 {dimension_numbers = #tpu.dot_dimension_numbers<[1], [0], [0], [1], [0, 0, 1, 1], [], []>} : vector<1x32xf32>, vector<32x10xf32>, vector<1x10xf32> -> vector<1x10xf32>
    %293 = arith.addf %288, %292 : vector<1x10xf32>
    %294 = vector.extract_strided_slice %227 {offsets = [13, 0], sizes = [1, 32], strides = [1, 1]} : vector<16x32xf32> to vector<1x32xf32>
    %c13 = arith.constant 13 : index
    %c0_188 = arith.constant 0 : index
    %c0_189 = arith.constant 0 : index
    %295 = vector.load %arg8[%c13, %c0_188, %c0_189] : memref<16x32x10xf32, #tpu.memory_space<vmem>>, vector<1x32x10xf32>
    %296 = vector.shape_cast %295 : vector<1x32x10xf32> to vector<32x10xf32>
    %cst_190 = arith.constant dense<0.000000e+00> : vector<1x10xf32>
    %297 = tpu.matmul %294, %296, %cst_190 {dimension_numbers = #tpu.dot_dimension_numbers<[1], [0], [0], [1], [0, 0, 1, 1], [], []>} : vector<1x32xf32>, vector<32x10xf32>, vector<1x10xf32> -> vector<1x10xf32>
    %298 = arith.addf %293, %297 : vector<1x10xf32>
    %299 = vector.extract_strided_slice %227 {offsets = [14, 0], sizes = [1, 32], strides = [1, 1]} : vector<16x32xf32> to vector<1x32xf32>
    %c14 = arith.constant 14 : index
    %c0_191 = arith.constant 0 : index
    %c0_192 = arith.constant 0 : index
    %300 = vector.load %arg8[%c14, %c0_191, %c0_192] : memref<16x32x10xf32, #tpu.memory_space<vmem>>, vector<1x32x10xf32>
    %301 = vector.shape_cast %300 : vector<1x32x10xf32> to vector<32x10xf32>
    %cst_193 = arith.constant dense<0.000000e+00> : vector<1x10xf32>
    %302 = tpu.matmul %299, %301, %cst_193 {dimension_numbers = #tpu.dot_dimension_numbers<[1], [0], [0], [1], [0, 0, 1, 1], [], []>} : vector<1x32xf32>, vector<32x10xf32>, vector<1x10xf32> -> vector<1x10xf32>
    %303 = arith.addf %298, %302 : vector<1x10xf32>
    %304 = vector.extract_strided_slice %227 {offsets = [15, 0], sizes = [1, 32], strides = [1, 1]} : vector<16x32xf32> to vector<1x32xf32>
    %c15 = arith.constant 15 : index
    %c0_194 = arith.constant 0 : index
    %c0_195 = arith.constant 0 : index
    %305 = vector.load %arg8[%c15, %c0_194, %c0_195] : memref<16x32x10xf32, #tpu.memory_space<vmem>>, vector<1x32x10xf32>
    %306 = vector.shape_cast %305 : vector<1x32x10xf32> to vector<32x10xf32>
    %cst_196 = arith.constant dense<0.000000e+00> : vector<1x10xf32>
    %307 = tpu.matmul %304, %306, %cst_196 {dimension_numbers = #tpu.dot_dimension_numbers<[1], [0], [0], [1], [0, 0, 1, 1], [], []>} : vector<1x32xf32>, vector<32x10xf32>, vector<1x10xf32> -> vector<1x10xf32>
    %308 = arith.addf %303, %307 : vector<1x10xf32>
    %cst_197 = arith.constant dense<0xFF800000> : vector<1xf32>
    %309 = vector.multi_reduction <maximumf>, %308, %cst_197 [1] : vector<1x10xf32> to vector<1xf32>
    %310 = vector.shape_cast %309 : vector<1xf32> to vector<1x1xf32>
    %311 = vector.broadcast %310 : vector<1x1xf32> to vector<1x10xf32>
    %312 = arith.subf %308, %311 : vector<1x10xf32>
    %313 = math.exp %312 : vector<1x10xf32>
    %cst_198 = arith.constant dense<0.000000e+00> : vector<1xf32>
    %314 = vector.multi_reduction <add>, %313, %cst_198 [1] : vector<1x10xf32> to vector<1xf32>
    %315 = vector.shape_cast %314 : vector<1xf32> to vector<1x1xf32>
    %316 = vector.broadcast %315 : vector<1x1xf32> to vector<1x10xf32>
    %317 = arith.divf %313, %316 : vector<1x10xf32>
    %318 = vector.shape_cast %317 : vector<1x10xf32> to vector<1x1x10xf32>
    %c0_199 = arith.constant 0 : index
    %c0_200 = arith.constant 0 : index
    %c0_201 = arith.constant 0 : index
    %319 = vector.load %arg10[%c0_199, %c0_200, %c0_201] : memref<1x1x10xf32, #tpu.memory_space<vmem>>, vector<1x1x10xf32>
    tpu.vector_store %arg10[%c0_199, %c0_200, %c0_201], %318 {strides = array<i32>} : memref<1x1x10xf32, #tpu.memory_space<vmem>>, vector<1x1x10xf32>,
    return
  }
  func.func @transform_0(%arg0: i32) -> (i32, i32, i32, i32) {
    %c0_i32 = arith.constant 0 : i32
    %c0_i32_0 = arith.constant 0 : i32
    %c0_i32_1 = arith.constant 0 : i32
    %c0_i32_2 = arith.constant 0 : i32
    return %arg0, %c0_i32, %c0_i32_0, %c0_i32_1 : i32, i32, i32, i32
  }
  func.func @transform_1(%arg0: i32) -> (i32, i32, i32) {
    %c0_i32 = arith.constant 0 : i32
    %c0_i32_0 = arith.constant 0 : i32
    %c0_i32_1 = arith.constant 0 : i32
    %c0_i32_2 = arith.constant 0 : i32
    return %c0_i32, %c0_i32_0, %c0_i32_1 : i32, i32, i32
  }
  func.func @transform_2(%arg0: i32) -> (i32, i32) {
    %c0_i32 = arith.constant 0 : i32
    %c0_i32_0 = arith.constant 0 : i32
    %c0_i32_1 = arith.constant 0 : i32
    return %c0_i32, %c0_i32_0 : i32, i32
  }
  func.func @transform_3(%arg0: i32) -> (i32, i32, i32) {
    %c0_i32 = arith.constant 0 : i32
    %c0_i32_0 = arith.constant 0 : i32
    %c0_i32_1 = arith.constant 0 : i32
    %c0_i32_2 = arith.constant 0 : i32
    return %c0_i32, %c0_i32_0, %c0_i32_1 : i32, i32, i32
  }
  func.func @transform_4(%arg0: i32) -> (i32, i32) {
    %c0_i32 = arith.constant 0 : i32
    %c0_i32_0 = arith.constant 0 : i32
    %c0_i32_1 = arith.constant 0 : i32
    return %c0_i32, %c0_i32_0 : i32, i32
  }
  func.func @transform_5(%arg0: i32) -> (i32, i32, i32) {
    %c0_i32 = arith.constant 0 : i32
    %c0_i32_0 = arith.constant 0 : i32
    %c0_i32_1 = arith.constant 0 : i32
    %c0_i32_2 = arith.constant 0 : i32
    return %c0_i32, %c0_i32_0, %c0_i32_1 : i32, i32, i32
  }
  func.func @transform_6(%arg0: i32) -> (i32, i32) {
    %c0_i32 = arith.constant 0 : i32
    %c0_i32_0 = arith.constant 0 : i32
    %c0_i32_1 = arith.constant 0 : i32
    return %c0_i32, %c0_i32_0 : i32, i32
  }
  func.func @transform_7(%arg0: i32) -> (i32, i32, i32) {
    %c0_i32 = arith.constant 0 : i32
    %c0_i32_0 = arith.constant 0 : i32
    %c0_i32_1 = arith.constant 0 : i32
    %c0_i32_2 = arith.constant 0 : i32
    return %c0_i32, %c0_i32_0, %c0_i32_1 : i32, i32, i32
  }
  func.func @transform_8(%arg0: i32) -> (i32, i32) {
    %c0_i32 = arith.constant 0 : i32
    %c0_i32_0 = arith.constant 0 : i32
    %c0_i32_1 = arith.constant 0 : i32
    return %c0_i32, %c0_i32_0 : i32, i32
  }
  func.func @transform_9(%arg0: i32) -> (i32, i32, i32) {
    %c0_i32 = arith.constant 0 : i32
    %c0_i32_0 = arith.constant 0 : i32
    %c0_i32_1 = arith.constant 0 : i32
    return %arg0, %c0_i32, %c0_i32_0 : i32, i32, i32
  }
}

</mosaic_0001>

<bundles_post_ra>
// kernel: simple_cnn_forward.1
= control target key start
LH: loop header
LB: loop body
LE: loop exit
PB: predicated region body
PF: predicated region fallthrough
CT: control target
= control target key end

     0   :  { %14 = vsyncpa [#allocation6], 0  ;;  %s29814_s0 = inlined_call_operand.vmem [shape: f32[2,32,32,3], index: 0, kind: input, shape index: {}]   ;;  %s29815_s1 = inlined_call_operand.vmem [shape: f32[9,3,8], index: 1, kind: input, shape index: {}]   ;;  %s29816_s2 = inlined_call_operand.vmem [shape: f32[1,8], index: 2, kind: input, shape index: {}]   ;;  %s29817_s3 = inlined_call_operand.vmem [shape: f32[9,8,16], index: 3, kind: input, shape index: {}]   ;;  %s29818_s4 = inlined_call_operand.vmem [shape: f32[1,16], index: 4, kind: input, shape index: {}]   ;;  %s29819_s5 = inlined_call_operand.vmem [shape: f32[9,16,32], index: 5, kind: input, shape index: {}]   ;;  %s29820_s6 = inlined_call_operand.vmem [shape: f32[1,32], index: 6, kind: input, shape index: {}]   ;;  %s29821_s7 = inlined_call_operand.vmem [shape: f32[16,32,10], index: 7, kind: input, shape index: {}]   ;;  %s29822_s8 = inlined_call_operand.vmem [shape: f32[1,10], index: 8, kind: input, shape index: {}]   ;;  %s29823_s9 = inlined_call_operand.hbm [shape: f32[2,1,10], index: 9, kind: output, shape index: {}]  }
   0x1   :  { %16 = vsyncpa [#allocation6 + $0x1], 0  ;;  %s23159_s30 = smov 0   ;;  %s23161_s10 = smov 0  }
   0x2   :  { %s23163_s11 = smov 0   ;;  %s23165_s12 = smov 0  }
   0x3 LB: > { %s23180_s13 = sadd.s32 4294967295, %s23103_s12   ;;  %s15712_s14 = sadd.s32 4294967294, %s23103_s12   ;;  %s23103_s12 = sphi %s23165_s12, %s31962_s12   ;;  %s23099_s11 = sphi %s23163_s11, %s31961_s11   ;;  %s23095_s10 = sphi %s23161_s10, %s31960_s10   ;;  %s23091_s30 = sphi %s23159_s30, %s31959_s30  }
   0x4   : > { %s23184_s15 = sadd.s32 1, %s23103_s12   ;;  %s223_s16 = sadd.s32 1, %s23099_s11 }
   0x5   : > { %s220_s17 = ssub.s32 %s23103_s12, %s23184_s15  ;;  %p233_p0 = scmp.ne.s32.totalorder %s23099_s11, %s23095_s10 }
   0x6   : > { %p221_p1 = scmp.eq.s32.totalorder %s220_s17, 0  ;;  %p234_p2 = scmp.eq.s32.totalorder %s23180_s13, 1 }
   0x7   : > { %p239_p3 = scmp.ne.s32.totalorder %s23095_s10, %s23091_s30  ;;  %p240_p4 = scmp.eq.s32.totalorder %s15712_s14, 1 }
   0x8   : > { %s23195_s18 = scalar_select %p221_p1, %s23099_s11, %s223_s16  }
   0x9   : > { %p23197_p5 = por %p234_p2, %p233_p0  ;;  %p23201_p6 = por %p240_p4, %p239_p3 }
   0xa   : > { %p15715_p7 = scmp.ge.s32.totalorder %s23103_s12, 1  ;;  %p290_p8 = scmp.lt.s32.totalorder %s23103_s12, 3 }
   0xc   : > { %p291_p9 = pnand %p15715_p7, %p290_p8 }
   0xe   : > { %294 = sbr.rel (%p291_p9) target bundleno = 3571 (0xdf3), region = 56 }
  0x15   : > { %vm1538_vm0 = vcmask 1042432   ;;  %v15973_v0 = vld [vmem:[%s29815_s1 + $0x8] sm:$0x7]  ;;  %vm1287_vm1 = vcmask 23552   ;;  %p325_p10 = scmp.lt.s32.totalorder %s23180_s13, 1  ;;  %v29827_v1 = vmov 0.0  }
  0x16   : > { %19356 = vmatprep.subr.msk.mxu0 %vm1538_vm0, %v15973_v0  ;;  %v23213_v2 = vrot.slane %v29827_v1, 2  ;;  %v16103_v3 = vld [vmem:[%s29815_s1 + $0xc] sm:$0x7]  ;;  %v23226_v4 = vld [vmem:[%s29815_s1 + $0x10] sm:$0x7]  ;;  %vm586_vm2 = vcmask 1040384  }
  0x17   : > { %19357 = vmatpush3.msk.msra.mxu0 %vm1538_vm0, %v15973_v0  ;;  %s326_s25 = scalar_select %p325_p10, %s23180_s13, 1  ;;  %vm3205_vm3 = vcmask 1045504   ;;  %vm1003_vm4 = vcmask 1046528   ;;  %vm9974_vm5 = vcmask 64512   ;;  %vm13085_vm6 = vcmask 130048  }
  0x18   : > { %30576 = vst [vmem:[#allocation8_spill] sm:$0xff] %v23213_v2  ;;  %19358 = vmatprep.mubr.msk.f32.mxu0 %vm1287_vm1, %v23213_v2  ;;  %19550 = vmatprep.subr.msk.mxu0 %vm1538_vm0, %v16103_v3  ;;  %vm23107_vm7 = vmmov 0   ;;  %vm14353_vm8 = vcmask 261120   ;;  %vm15631_vm9 = vcmask 73728   ;;  %s323_s22 = sand.u32 1, %s23095_s10   ;;  %s17336_s23 = sshll.u32 %s23180_s13, 4 }
  0x19   : > { %19359 = vmatmul.mubr.msk.f32.vlgmr.msra.gmra.mrb[0].mxu0 %vm1287_vm1, %v23213_v2  ;;  %s17339_s28 = sshll.u32 %s326_s25, 10  ;;  %s324_s24 = scalar_lea.vmem [#allocation5], %s323_s22 }
  0x1a   : > { %19551 = vmatpush3.msk.msra.mxu0 %vm1538_vm0, %v16103_v3  ;;  %19361 = vmatprep.mubr.msk.f32.mxu0 %vm1287_vm1, %v23213_v2  ;;  %s23236_s16 = scalar_lea.vmem %s29814_s0, %s17339_s28  ;;  %s15657_s25 = sshll.u32 %s324_s24, 4  ;;  %s29773_s25 = int_to_ptr.vmem [resolvable:$true] %s15657_s25 }
  0x1b   : > { %v330_v5 = vld [vmem:[%s23236_s16] sm:$0xff]  ;;  %v331_v6 = vld [vmem:[%s23236_s16 + $0x8] sm:$0xff]  ;;  %v332_v7 = vld [vmem:[%s23236_s16 + $0x10] sm:$0xff]  ;;  %19744 = vmatprep.subr.msk.mxu0 %vm1538_vm0, %v23226_v4  ;;  %s29771_s28 = scalar_lea.hbm %s29823_s9, %s17336_s23  ;;  %s15645_s29 = scalar_lea.sflag [#allocation6], %s323_s22 }
  0x1c   : > { %v587_v8 = vrot.slane %v330_v5, 7  ;;  %v588_v9 = vrot.slane %v331_v6, 7  ;;  %v590_v10 = vrot.slane %v332_v7, 7  ;;  %v333_v11 = vld [vmem:[%s23236_s16 + $0x18] sm:$0xff]  ;;  %v334_v12 = vld [vmem:[%s23236_s16 + $0x20] sm:$0xff]  ;;  %v335_v13 = vld [vmem:[%s23236_s16 + $0x28] sm:$0xff] }
  0x1d   : > { %19362 = vmatmul.mubr.msk.f32.gmra.mrb[2].mxu0 %vm1287_vm1, %v23213_v2  ;;  %v592_v14 = vrot.slane %v333_v11, 7  ;;  %v594_v15 = vrot.slane %v334_v12, 7  ;;  %v595_v16 = vrot.slane %v335_v13, 7  ;;  %v336_v17 = vld [vmem:[%s23236_s16 + $0x30] sm:$0xff]  ;;  %v337_v26 = vld [vmem:[%s23236_s16 + $0x38] sm:$0xff]  ;;  %v338_v31 = vld [vmem:[%s23236_s16 + $0x40] sm:$0xff] }
  0x1e   : > { %v23250_v18 = vsel %vm586_vm2, %v587_v8, %v588_v9  ;;  %v23253_v19 = vsel %vm586_vm2, 0.0, %v587_v8  ;;  %v23256_v20 = vsel %vm586_vm2, %v588_v9, %v590_v10  ;;  %v597_v21 = vrot.slane %v336_v17, 7  ;;  %v339_v32 = vld [vmem:[%s23236_s16 + $0x48] sm:$0xff]  ;;  %v340_v41 = vld [vmem:[%s23236_s16 + $0x50] sm:$0xff]  ;;  %v341_v44 = vld [vmem:[%s23236_s16 + $0x58] sm:$0xff]  ;;  %s23041_s14 = scalar_lea.vmem %s29773_s25, 16 }
  0x1f   : > { %30577 = vst [vmem:[#allocation9_spill] sm:$0xff] %v23250_v18  ;;  %30578 = vst [vmem:[#allocation10_spill] sm:$0xff] %v23253_v19  ;;  %v3208_v22 = vrot.slane %v23253_v19, 2  ;;  %v3209_v23 = vrot.slane %v23250_v18, 2  ;;  %v3211_v24 = vrot.slane %v23256_v20, 2  ;;  %v23262_v25 = vsel %vm586_vm2, %v590_v10, %v592_v14  ;;  %v342_v55 = vld [vmem:[%s23236_s16 + $0x60] sm:$0xff]  ;;  %p23042_p11 = scmp.ne.s32.totalorder %s29773_s25, %s23041_s14 }
  0x20   : > { %30579 = vst [vmem:[#allocation11_spill] sm:$0xff] %v23256_v20  ;;  %30580 = vst [vmem:[#allocation12_spill] sm:$0xff] %v23262_v25  ;;  %v3213_v27 = vrot.slane %v23262_v25, 2  ;;  %v23267_v28 = vsel %vm586_vm2, %v592_v14, 0.0  ;;  %v23270_v29 = vsel %vm586_vm2, %v594_v15, %v595_v16  ;;  %v23273_v30 = vsel %vm586_vm2, 0.0, %v594_v15  ;;  %v343_v56 = vld [vmem:[%s23236_s16 + $0x68] sm:$0xff] }
  0x21   : > { %30581 = vst [vmem:[#allocation13_spill] sm:$0xff] %v23270_v29  ;;  %30582 = vst [vmem:[#allocation14_spill] sm:$0xff] %v23273_v30  ;;  %v23278_v33 = vsel %vm3205_vm3, %v3208_v22, %v3209_v23  ;;  %v23281_v34 = vsel %vm3205_vm3, %v3209_v23, %v3211_v24  ;;  %v3215_v35 = vrot.slane %v23267_v28, 2  ;;  %v3217_v36 = vrot.slane %v23273_v30, 2  ;;  %v344_v5 = vld [vmem:[%s23236_s16 + $0x70] sm:$0xff]  ;;  %v345_v6 = vld [vmem:[%s23236_s16 + $0x78] sm:$0xff]  ;;  %p23043_p12 = pnand %p23042_p11, %p23197_p5 }
  0x22   : > { %30583 = vst [vmem:[#allocation15_spill] sm:$0xff] %v23278_v33  ;;  %30584 = vst [vmem:[#allocation16_spill] sm:$0xff] %v23281_v34  ;;  %19364 = vmatprep.mubr.msk.f32.mxu0 %vm1287_vm1, %v23278_v33  ;;  %v23288_v37 = vsel %vm3205_vm3, %v3211_v24, %v3213_v27  ;;  %v3218_v38 = vrot.slane %v23270_v29, 2  ;;  %v23292_v39 = vsel %vm586_vm2, %v595_v16, %v597_v21  ;;  %v599_v40 = vrot.slane %v337_v26, 7  ;;  %v364_v1 = vld [vmem:[%s23236_s16 + $0x110] sm:$0xff]  ;;  %v23660_v33 = vld [vmem:[%s23236_s16 + $0x178] sm:$0xff] }
  0x23   : > { %30585 = vst [vmem:[#allocation17_spill] sm:$0xff] %v23288_v37  ;;  %30586 = vst [vmem:[#allocation18_spill] sm:$0xff] %v23292_v39  ;;  %19365 = vmatmul.mubr.msk.f32.gmra.mrb[4].mxu0 %vm1287_vm1, %v23281_v34  ;;  %v601_v42 = vrot.slane %v338_v31, 7  ;;  %v602_v43 = vrot.slane %v339_v32, 7  ;;  %v23301_v45 = vsel %vm3205_vm3, %v3213_v27, %v3215_v35  ;;  %v3220_v46 = vrot.slane %v23292_v39, 2  ;;  %p23044_p13 = pneg %p23043_p12  ;;  %s23108_s13 = smov [#allocation5]  }
  0x24   : > { %19367 = vmatprep.mubr.msk.f32.mxu0 %vm1287_vm1, %v23288_v37  ;;  %30587 = vst [vmem:[#allocation19_spill] sm:$0xff] %v23301_v45  ;;  %v23305_v47 = vsel %vm586_vm2, %v597_v21, %v599_v40  ;;  %v23308_v48 = vsel %vm3205_vm3, %v3217_v36, %v3218_v38  ;;  %v23312_v50 = vsel %vm586_vm2, %v599_v40, 0.0  ;;  %v604_v51 = vrot.slane %v340_v41, 7  ;;  %v376_v37 = vld [vmem:[%s23236_s16 + $0x170] sm:$0xff]  ;;  %30640 = vst [vmem:[#allocation72_spill] sm:$0xff] %v23660_v33 }
  0x25   : > { %30588 = vst [vmem:[#allocation20_spill] sm:$0xff] %v23305_v47  ;;  %30589 = vst [vmem:[#allocation21_spill] sm:$0xff] %v23308_v48  ;;  %v3222_v49 = vrot.slane %v23305_v47, 2  ;;  %v23315_v52 = vsel %vm586_vm2, %v601_v42, %v602_v43  ;;  %v23318_v53 = vsel %vm586_vm2, 0.0, %v601_v42  ;;  %v606_v54 = vrot.slane %v341_v44, 7  ;;  %v347_v44 = vld [vmem:[%s23236_s16 + $0x88] sm:$0xff] }
  0x26   : > { %30590 = vst [vmem:[#allocation22_spill] sm:$0xff] %v23315_v52  ;;  %30591 = vst [vmem:[#allocation23_spill] sm:$0xff] %v23318_v53  ;;  %v23327_v57 = vsel %vm3205_vm3, %v3218_v38, %v3220_v46  ;;  %v3224_v58 = vrot.slane %v23312_v50, 2  ;;  %v3226_v60 = vrot.slane %v23318_v53, 2  ;;  %v3227_v61 = vrot.slane %v23315_v52, 2 }
  0x27   : > { %19368 = vmatmul.mubr.msk.f32.gmra.mrb[6].mxu0 %vm1287_vm1, %v23301_v45  ;;  %30592 = vst [vmem:[#allocation24_spill] sm:$0xff] %v23327_v57  ;;  %v23331_v59 = vsel %vm3205_vm3, %v3220_v46, %v3222_v49  ;;  %v23336_v62 = vsel %vm586_vm2, %v602_v43, %v604_v51  ;;  %v23339_v63 = vsel %vm586_vm2, %v604_v51, %v606_v54  ;;  %v608_v0 = vrot.slane %v342_v55, 7  ;;  %v348_v46 = vld [vmem:[%s23236_s16 + $0x90] sm:$0xff]  ;;  %v23457_v55 = vld [vmem:[%s23236_s16 + $0x98] sm:$0xff] }
  0x28   : > { %19370 = vmatprep.mubr.msk.f32.mxu0 %vm1287_vm1, %v23308_v48  ;;  %30593 = vst [vmem:[#allocation25_spill] sm:$0xff] %v23331_v59  ;;  %30594 = vst [vmem:[#allocation26_spill] sm:$0xff] %v23336_v62  ;;  %v609_v3 = vrot.slane %v343_v56, 7  ;;  %v23348_v7 = vsel %vm3205_vm3, %v3222_v49, %v3224_v58  ;;  %v3229_v8 = vrot.slane %v23336_v62, 2  ;;  %v23352_v9 = vsel %vm3205_vm3, %v3226_v60, %v3227_v61  ;;  %v350_v56 = vld [vmem:[%s23236_s16 + $0xa0] sm:$0xff] }
  0x29   : > { %30595 = vst [vmem:[#allocation27_spill] sm:$0xff] %v23339_v63  ;;  %30596 = vst [vmem:[#allocation28_spill] sm:$0xff] %v23348_v7  ;;  %v3231_v10 = vrot.slane %v23339_v63, 2  ;;  %v23356_v11 = vsel %vm586_vm2, %v606_v54, 0.0  ;;  %v611_v12 = vrot.slane %v344_v5, 7  ;;  %v23362_v14 = vsel %vm586_vm2, 0.0, %v608_v0 }
  0x2a   : > { %30597 = vst [vmem:[#allocation29_spill] sm:$0xff] %v23352_v9  ;;  %v23359_v13 = vsel %vm586_vm2, %v608_v0, %v609_v3  ;;  %30599 = vst [vmem:[#allocation31_spill] sm:$0xff] %v23362_v14  ;;  %v613_v15 = vrot.slane %v345_v6, 7  ;;  %v23369_v16 = vsel %vm3205_vm3, %v3227_v61, %v3229_v8  ;;  %v3233_v17 = vrot.slane %v23356_v11, 2  ;;  %v352_v5 = vld [vmem:[%s23236_s16 + $0xb0] sm:$0xff]  ;;  %v374_v48 = vld [vmem:[%s23236_s16 + $0x160] sm:$0xff] }
  0x2b   : > { %19371 = vmatmul.mubr.msk.f32.gmra.mrb[8].mxu0 %vm1287_vm1, %v23327_v57  ;;  %30598 = vst [vmem:[#allocation30_spill] sm:$0xff] %v23359_v13  ;;  %30600 = vst [vmem:[#allocation32_spill] sm:$0xff] %v23369_v16  ;;  %v23373_v21 = vsel %vm3205_vm3, %v3229_v8, %v3231_v10  ;;  %v3235_v22 = vrot.slane %v23362_v14, 2  ;;  %v3236_v23 = vrot.slane %v23359_v13, 2  ;;  %v23378_v24 = vsel %vm586_vm2, %v609_v3, %v611_v12  ;;  %v351_v3 = vld [vmem:[%s23236_s16 + $0xa8] sm:$0xff]  ;;  %v23631_v57 = vld [vmem:[%s23236_s16 + $0x158] sm:$0xff] }
  0x2c   : > { %19373 = vmatprep.mubr.msk.f32.mxu0 %vm1287_vm1, %v23331_v59  ;;  %30601 = vst [vmem:[#allocation33_spill] sm:$0xff] %v23373_v21  ;;  %30602 = vst [vmem:[#allocation34_spill] sm:$0xff] %v23378_v24  ;;  %v23381_v26 = vsel %vm586_vm2, %v611_v12, %v613_v15  ;;  %v23388_v27 = vsel %vm3205_vm3, %v3231_v10, %v3233_v17  ;;  %v3238_v31 = vrot.slane %v23378_v24, 2  ;;  %v23396_v36 = vsel %vm586_vm2, %v613_v15, 0.0  ;;  %v23486_v15 = vld [vmem:[%s23236_s16 + $0xb8] sm:$0xff]  ;;  %v354_v17 = vld [vmem:[%s23236_s16 + $0xc0] sm:$0xff] }
  0x2d   : > { %30603 = vst [vmem:[#allocation35_spill] sm:$0xff] %v23381_v26  ;;  %30604 = vst [vmem:[#allocation36_spill] sm:$0xff] %v23388_v27  ;;  %v23392_v32 = vsel %vm3205_vm3, %v3235_v22, %v3236_v23  ;;  %v3240_v35 = vrot.slane %v23381_v26, 2  ;;  %v3242_v40 = vrot.slane %v23396_v36, 2  ;;  %v616_v49 = vrot.slane %v347_v44, 7 }
  0x2e   : > { %30605 = vst [vmem:[#allocation37_spill] sm:$0xff] %v23392_v32  ;;  %v23403_v38 = vsel %vm3205_vm3, %v3236_v23, %v3238_v31  ;;  %v618_v54 = vrot.slane %v348_v46, 7  ;;  %v29825_v60 = vrot.slane %v23457_v55, 7  ;;  %v622_v0 = vrot.slane %v350_v56, 7  ;;  %v358_v56 = vld [vmem:[%s23236_s16 + $0xe0] sm:$0xff]  ;;  %30635 = vst [vmem:[#allocation67_spill] sm:$0xff] %v23631_v57 }
  0x2f   : > { %19374 = vmatmul.mubr.msk.f32.gmra.mrb[10].mxu0 %vm1287_vm1, %v23348_v7  ;;  %30606 = vst [vmem:[#allocation38_spill] sm:$0xff] %v23403_v38  ;;  %v23407_v41 = vsel %vm3205_vm3, %v3238_v31, %v3240_v35  ;;  %v23414_v42 = vsel %vm3205_vm3, %v3240_v35, %v3242_v40  ;;  %v623_v8 = vrot.slane %v351_v3, 7  ;;  %v625_v12 = vrot.slane %v352_v5, 7  ;;  %v355_v40 = vld [vmem:[%s23236_s16 + $0xc8] sm:$0xff]  ;;  %v372_v7 = vld [vmem:[%s23236_s16 + $0x150] sm:$0xff] }
  0x30   : > { %19376 = vmatprep.mubr.msk.f32.mxu0 %vm1287_vm1, %v23352_v9  ;;  %30607 = vst [vmem:[#allocation39_spill] sm:$0xff] %v23407_v41  ;;  %30608 = vst [vmem:[#allocation40_spill] sm:$0xff] %v23414_v42  ;;  %v23469_v61 = vsel %vm586_vm2, %v616_v49, %v618_v54  ;;  %v23480_v6 = vsel %vm586_vm2, %v618_v54, %v29825_v60  ;;  %v23483_v10 = vsel %vm586_vm2, 0.0, %v622_v0  ;;  %v29824_v23 = vrot.slane %v23486_v15, 7  ;;  %v23515_v54 = vld [vmem:[%s23236_s16 + $0xd8] sm:$0xff] }
  0x31   : > { %30611 = vst [vmem:[#allocation43_spill] sm:$0xff] %v23469_v61  ;;  %30612 = vst [vmem:[#allocation44_spill] sm:$0xff] %v23480_v6  ;;  %v23494_v22 = vsel %vm586_vm2, %v622_v0, %v623_v8  ;;  %v23498_v31 = vsel %vm586_vm2, %v623_v8, %v625_v12  ;;  %v629_v35 = vrot.slane %v354_v17, 7  ;;  %v630_v44 = vrot.slane %v355_v40, 7  ;;  %v360_v17 = vld [vmem:[%s23236_s16 + $0xf0] sm:$0xff] }
  0x32   : > { %30613 = vst [vmem:[#allocation45_spill] sm:$0xff] %v23483_v10  ;;  %30614 = vst [vmem:[#allocation46_spill] sm:$0xff] %v23494_v22  ;;  %v29826_v3 = vrot.slane %v23515_v54, 7  ;;  %v636_v8 = vrot.slane %v358_v56, 7  ;;  %v23544_v56 = vld [vmem:[%s23236_s16 + $0xf8] sm:$0xff] }
  0x33   : > { %19377 = vmatmul.mubr.msk.f32.gmra.mrb[12].mxu0 %vm1287_vm1, %v23369_v16  ;;  %30615 = vst [vmem:[#allocation47_spill] sm:$0xff] %v23498_v31  ;;  %v23512_v46 = vsel %vm586_vm2, 0.0, %v629_v35  ;;  %v23523_v0 = vsel %vm586_vm2, %v629_v35, %v630_v44  ;;  %v370_v16 = vld [vmem:[%s23236_s16 + $0x140] sm:$0xff] }
  0x34   : > { %19379 = vmatprep.mubr.msk.f32.mxu0 %vm1287_vm1, %v23373_v21  ;;  %30617 = vst [vmem:[#allocation49_spill] sm:$0xff] %v23512_v46  ;;  %30618 = vst [vmem:[#allocation50_spill] sm:$0xff] %v23523_v0  ;;  %v23602_v21 = vld [vmem:[%s23236_s16 + $0x138] sm:$0xff] }
  0x35   : > { %30630 = vst [vmem:[#allocation62_spill] sm:$0xff] %v23602_v21 }
  0x37   : > { %19380 = vmatmul.mubr.msk.f32.gmra.mrb[14].mxu0 %vm1287_vm1, %v23388_v27 }
  0x38   : > { %19382 = vmatprep.mubr.msk.f32.mxu0 %vm1287_vm1, %v23392_v32  ;;  %v368_v32 = vld [vmem:[%s23236_s16 + $0x130] sm:$0xff] }
  0x3b   : > { %19383 = vmatmul.mubr.msk.f32.gmra.mrb[16].mxu0 %vm1287_vm1, %v23403_v38 }
  0x3c   : > { %19385 = vmatprep.mubr.msk.f32.mxu0 %vm1287_vm1, %v23407_v41  ;;  %v366_v41 = vld [vmem:[%s23236_s16 + $0x120] sm:$0xff] }
  0x3f   : > { %19386 = vmatmul.mubr.msk.f32.gmra.mrb[18].mxu0 %vm1287_vm1, %v23414_v42  ;;  %v23573_v42 = vld [vmem:[%s23236_s16 + $0x118] sm:$0xff] }
  0x40   : > { %19552 = vmatprep.mubr.msk.f32.mxu0 %vm1287_vm1, %v23253_v19 }
  0x43   : > { %19553 = vmatmul.mubr.msk.f32.vlgmr.msra.gmra.mrb[0].mxu0 %vm1287_vm1, %v23250_v18 }
  0x44   : > { %19745 = vmatpush3.msk.msra.mxu0 %vm1538_vm0, %v23226_v4  ;;  %19555 = vmatprep.mubr.msk.f32.mxu0 %vm1287_vm1, %v23256_v20  ;;  %v346_v4 = vld [vmem:[%s23236_s16 + $0x80] sm:$0xff] }
  0x45   : > { %v615_v43 = vrot.slane %v346_v4, 7  ;;  %v356_v4 = vld [vmem:[%s23236_s16 + $0xd0] sm:$0xff] }
  0x47   : > { %19556 = vmatmul.mubr.msk.f32.gmra.mrb[2].mxu0 %vm1287_vm1, %v23262_v25  ;;  %v23454_v51 = vsel %vm586_vm2, 0.0, %v615_v43  ;;  %v23465_v58 = vsel %vm586_vm2, %v615_v43, %v616_v49  ;;  %v23509_v43 = vsel %vm586_vm2, %v625_v12, %v29824_v23  ;;  %v632_v49 = vrot.slane %v356_v4, 7  ;;  %v359_v12 = vld [vmem:[%s23236_s16 + $0xe8] sm:$0xff]  ;;  %v362_v23 = vld [vmem:[%s23236_s16 + $0x100] sm:$0xff] }
  0x48   : > { %19558 = vmatprep.mubr.msk.f32.mxu0 %vm1287_vm1, %v23273_v30  ;;  %30609 = vst [vmem:[#allocation41_spill] sm:$0xff] %v23454_v51  ;;  %30610 = vst [vmem:[#allocation42_spill] sm:$0xff] %v23465_v58  ;;  %v637_v40 = vrot.slane %v359_v12, 7  ;;  %v23541_v4 = vsel %vm586_vm2, 0.0, %v636_v8 }
  0x49   : > { %30616 = vst [vmem:[#allocation48_spill] sm:$0xff] %v23509_v43  ;;  %v23527_v5 = vsel %vm586_vm2, %v630_v44, %v632_v49  ;;  %v23538_v35 = vsel %vm586_vm2, %v632_v49, %v29826_v3  ;;  %30621 = vst [vmem:[#allocation53_spill] sm:$0xff] %v23541_v4  ;;  %v639_v44 = vrot.slane %v360_v17, 7  ;;  %v29837_v49 = vrot.slane %v23544_v56, 7  ;;  %v363_v3 = vld [vmem:[%s23236_s16 + $0x108] sm:$0xff] }
  0x4a   : > { %30619 = vst [vmem:[#allocation51_spill] sm:$0xff] %v23527_v5  ;;  %30620 = vst [vmem:[#allocation52_spill] sm:$0xff] %v23538_v35  ;;  %v23552_v60 = vsel %vm586_vm2, %v636_v8, %v637_v40  ;;  %v643_v17 = vrot.slane %v362_v23, 7  ;;  %v644_v2 = vrot.slane %v363_v3, 7  ;;  %v646_v23 = vrot.slane %v364_v1, 7 }
  0x4b   : > { %19559 = vmatmul.mubr.msk.f32.gmra.mrb[4].mxu0 %vm1287_vm1, %v23270_v29  ;;  %30622 = vst [vmem:[#allocation54_spill] sm:$0xff] %v23552_v60  ;;  %v23556_v12 = vsel %vm586_vm2, %v637_v40, %v639_v44  ;;  %v23567_v8 = vsel %vm586_vm2, %v639_v44, %v29837_v49  ;;  %v29848_v3 = vrot.slane %v23573_v42, 7  ;;  %v650_v1 = vrot.slane %v366_v41, 7  ;;  %v367_v49 = vld [vmem:[%s23236_s16 + $0x128] sm:$0xff] }
  0x4c   : > { %19561 = vmatprep.mubr.msk.f32.mxu0 %vm1287_vm1, %v23292_v39  ;;  %30623 = vst [vmem:[#allocation55_spill] sm:$0xff] %v23556_v12  ;;  %30624 = vst [vmem:[#allocation56_spill] sm:$0xff] %v23567_v8  ;;  %v23570_v40 = vsel %vm586_vm2, 0.0, %v643_v17  ;;  %v23581_v38 = vsel %vm586_vm2, %v643_v17, %v644_v2  ;;  %v23585_v44 = vsel %vm586_vm2, %v644_v2, %v646_v23  ;;  %v651_v27 = vrot.slane %v367_v49, 7 }
  0x4d   : > { %30625 = vst [vmem:[#allocation57_spill] sm:$0xff] %v23570_v40  ;;  %30626 = vst [vmem:[#allocation58_spill] sm:$0xff] %v23581_v38  ;;  %v23596_v17 = vsel %vm586_vm2, %v646_v23, %v29848_v3  ;;  %v23599_v2 = vsel %vm586_vm2, 0.0, %v650_v1  ;;  %v653_v41 = vrot.slane %v368_v32, 7  ;;  %v29858_v49 = vrot.slane %v23602_v21, 7  ;;  %v371_v3 = vld [vmem:[%s23236_s16 + $0x148] sm:$0xff] }
  0x4e   : > { %30627 = vst [vmem:[#allocation59_spill] sm:$0xff] %v23585_v44  ;;  %30628 = vst [vmem:[#allocation60_spill] sm:$0xff] %v23596_v17  ;;  %v23610_v9 = vsel %vm586_vm2, %v650_v1, %v651_v27  ;;  %v657_v32 = vrot.slane %v370_v16, 7  ;;  %v658_v59 = vrot.slane %v371_v3, 7  ;;  %v660_v16 = vrot.slane %v372_v7, 7  ;;  %v402_v21 = vld [vmem:[%s23236_s16 + $0x240] sm:$0xff] }
  0x4f   : > { %19562 = vmatmul.mubr.msk.f32.gmra.mrb[6].mxu0 %vm1287_vm1, %v23305_v47  ;;  %30629 = vst [vmem:[#allocation61_spill] sm:$0xff] %v23599_v2  ;;  %30631 = vst [vmem:[#allocation63_spill] sm:$0xff] %v23610_v9  ;;  %v23614_v23 = vsel %vm586_vm2, %v651_v27, %v653_v41  ;;  %v23625_v1 = vsel %vm586_vm2, %v653_v41, %v29858_v49  ;;  %v29865_v3 = vrot.slane %v23631_v57, 7  ;;  %v664_v7 = vrot.slane %v374_v48, 7  ;;  %v375_v49 = vld [vmem:[%s23236_s16 + $0x168] sm:$0xff] }
  0x50   : > { %19564 = vmatprep.mubr.msk.f32.mxu0 %vm1287_vm1, %v23318_v53  ;;  %30632 = vst [vmem:[#allocation64_spill] sm:$0xff] %v23614_v23  ;;  %30633 = vst [vmem:[#allocation65_spill] sm:$0xff] %v23625_v1  ;;  %v23628_v27 = vsel %vm586_vm2, 0.0, %v657_v32  ;;  %v23639_v45 = vsel %vm586_vm2, %v657_v32, %v658_v59  ;;  %v23643_v41 = vsel %vm586_vm2, %v658_v59, %v660_v16  ;;  %v665_v34 = vrot.slane %v375_v49, 7 }
  0x51   : > { %30634 = vst [vmem:[#allocation66_spill] sm:$0xff] %v23628_v27  ;;  %30636 = vst [vmem:[#allocation68_spill] sm:$0xff] %v23639_v45  ;;  %v23654_v32 = vsel %vm586_vm2, %v660_v16, %v29865_v3  ;;  %v23657_v59 = vsel %vm586_vm2, 0.0, %v664_v7  ;;  %v667_v48 = vrot.slane %v376_v37, 7  ;;  %v29875_v49 = vrot.slane %v23660_v33, 7  ;;  %v379_v3 = vld [vmem:[%s23236_s16 + $0x188] sm:$0xff] }
  0x52   : > { %30637 = vst [vmem:[#allocation69_spill] sm:$0xff] %v23643_v41  ;;  %30638 = vst [vmem:[#allocation70_spill] sm:$0xff] %v23654_v32  ;;  %v23668_v57 = vsel %vm586_vm2, %v664_v7, %v665_v34 }
  0x53   : > { %19565 = vmatmul.mubr.msk.f32.gmra.mrb[8].mxu0 %vm1287_vm1, %v23315_v52  ;;  %30639 = vst [vmem:[#allocation71_spill] sm:$0xff] %v23657_v59  ;;  %30641 = vst [vmem:[#allocation73_spill] sm:$0xff] %v23668_v57  ;;  %v23672_v16 = vsel %vm586_vm2, %v665_v34, %v667_v48  ;;  %v23683_v7 = vsel %vm586_vm2, %v667_v48, %v29875_v49  ;;  %v383_v49 = vld [vmem:[%s23236_s16 + $0x1a8] sm:$0xff] }
  0x54   : > { %19567 = vmatprep.mubr.msk.f32.mxu0 %vm1287_vm1, %v23336_v62  ;;  %30642 = vst [vmem:[#allocation74_spill] sm:$0xff] %v23672_v16  ;;  %30643 = vst [vmem:[#allocation75_spill] sm:$0xff] %v23683_v7 }
  0x57   : > { %19568 = vmatmul.mubr.msk.f32.gmra.mrb[10].mxu0 %vm1287_vm1, %v23339_v63 }
  0x58   : > { %19570 = vmatprep.mubr.msk.f32.mxu0 %vm1287_vm1, %v23362_v14 }
  0x5b   : > { %19571 = vmatmul.mubr.msk.f32.gmra.mrb[12].mxu0 %vm1287_vm1, %v23359_v13 }
  0x5c   : > { %19573 = vmatprep.mubr.msk.f32.mxu0 %vm1287_vm1, %v23378_v24 }
  0x5f   : > { %19574 = vmatmul.mubr.msk.f32.gmra.mrb[14].mxu0 %vm1287_vm1, %v23381_v26 }
  0x60   : > { %19576 = vmatprep.mubr.msk.f32.mxu0 %vm1287_vm1, %v23454_v51 }
  0x63   : > { %19577 = vmatmul.mubr.msk.f32.gmra.mrb[16].mxu0 %vm1287_vm1, %v23465_v58 }
  0x64   : > { %19579 = vmatprep.mubr.msk.f32.mxu0 %vm1287_vm1, %v23469_v61 }
  0x67   : > { %19580 = vmatmul.mubr.msk.f32.gmra.mrb[18].mxu0 %vm1287_vm1, %v23480_v6 }
  0x68   : > { %19582 = vmatprep.mubr.msk.f32.mxu0 %vm1287_vm1, %v23483_v10 }
  0x6b   : > { %19583 = vmatmul.mubr.msk.f32.gmra.mrb[20].mxu0 %vm1287_vm1, %v23494_v22 }
  0x6c   : > { %19585 = vmatprep.mubr.msk.f32.mxu0 %vm1287_vm1, %v23498_v31 }
  0x6f   : > { %19586 = vmatmul.mubr.msk.f32.gmra.mrb[22].mxu0 %vm1287_vm1, %v23509_v43 }
  0x70   : > { %19588 = vmatprep.mubr.msk.f32.mxu0 %vm1287_vm1, %v23512_v46 }
  0x73   : > { %19589 = vmatmul.mubr.msk.f32.gmra.mrb[24].mxu0 %vm1287_vm1, %v23523_v0 }
  0x74   : > { %19591 = vmatprep.mubr.msk.f32.mxu0 %vm1287_vm1, %v23527_v5 }
  0x77   : > { %19592 = vmatmul.mubr.msk.f32.gmra.mrb[26].mxu0 %vm1287_vm1, %v23538_v35 }
  0x78   : > { %19594 = vmatprep.mubr.msk.f32.mxu0 %vm1287_vm1, %v23541_v4 }
  0x7b   : > { %19595 = vmatmul.mubr.msk.f32.gmra.mrb[28].mxu0 %vm1287_vm1, %v23552_v60 }
  0x7c   : > { %19597 = vmatprep.mubr.msk.f32.mxu0 %vm1287_vm1, %v23556_v12 }
  0x7f   : > { %19598 = vmatmul.mubr.msk.f32.gmra.mrb[30].mxu0 %vm1287_vm1, %v23567_v8 }
  0x80   : > { %19600 = vmatprep.mubr.msk.f32.mxu0 %vm1287_vm1, %v23570_v40 }
  0x83   : > { %19601 = vmatmul.mubr.msk.f32.gmra.mrb[32].mxu0 %vm1287_vm1, %v23581_v38 }
  0x84   : > { %19603 = vmatprep.mubr.msk.f32.mxu0 %vm1287_vm1, %v23585_v44 }
  0x87   : > { %19604 = vmatmul.mubr.msk.f32.gmra.mrb[34].mxu0 %vm1287_vm1, %v23596_v17 }
  0x88   : > { %19606 = vmatprep.mubr.msk.f32.mxu0 %vm1287_vm1, %v23599_v2 }
  0x8b   : > { %19607 = vmatmul.mubr.msk.f32.gmra.mrb[36].mxu0 %vm1287_vm1, %v23610_v9 }
  0x8c   : > { %19609 = vmatprep.mubr.msk.f32.mxu0 %vm1287_vm1, %v23614_v23 }
  0x8f   : > { %19610 = vmatmul.mubr.msk.f32.gmra.mrb[38].mxu0 %vm1287_vm1, %v23625_v1  ;;  %v442_v1 = vld [vmem:[%s23236_s16 + $0x380] sm:$0xff] }
  0x90   : > { %19612 = vmatprep.mubr.msk.f32.mxu0 %vm1287_vm1, %v23628_v27  ;;  %v378_v27 = vld [vmem:[%s23236_s16 + $0x180] sm:$0xff] }
  0x91   : > { %v671_v37 = vrot.slane %v378_v27, 7 }
  0x93   : > { %19613 = vmatmul.mubr.msk.f32.gmra.mrb[40].mxu0 %vm1287_vm1, %v23639_v45  ;;  %v23686_v34 = vsel %vm586_vm2, 0.0, %v671_v37  ;;  %v382_v45 = vld [vmem:[%s23236_s16 + $0x1a0] sm:$0xff] }
  0x94   : > { %19615 = vmatprep.mubr.msk.f32.mxu0 %vm1287_vm1, %v23643_v41  ;;  %v380_v41 = vld [vmem:[%s23236_s16 + $0x190] sm:$0xff]  ;;  %30644 = vst [vmem:[#allocation76_spill] sm:$0xff] %v23686_v34 }
  0x95   : > { %v674_v27 = vrot.slane %v380_v41, 7  ;;  %v678_v41 = vrot.slane %v382_v45, 7 }
  0x97   : > { %19616 = vmatmul.mubr.msk.f32.gmra.mrb[42].mxu0 %vm1287_vm1, %v23654_v32  ;;  %v23689_v32 = vld [vmem:[%s23236_s16 + $0x198] sm:$0xff] }
  0x98   : > { %19618 = vmatprep.mubr.msk.f32.mxu0 %vm1287_vm1, %v23657_v59  ;;  %v672_v59 = vrot.slane %v379_v3, 7  ;;  %30645 = vst [vmem:[#allocation77_spill] sm:$0xff] %v23689_v32  ;;  %v29885_v3 = vrot.slane %v23689_v32, 7 }
  0x9a   : > { %v23697_v33 = vsel %vm586_vm2, %v671_v37, %v672_v59  ;;  %v23701_v48 = vsel %vm586_vm2, %v672_v59, %v674_v27  ;;  %v23712_v37 = vsel %vm586_vm2, %v674_v27, %v29885_v3  ;;  %v23715_v59 = vsel %vm586_vm2, 0.0, %v678_v41  ;;  %v387_v3 = vld [vmem:[%s23236_s16 + $0x1c8] sm:$0xff] }
  0x9b   : > { %19619 = vmatmul.mubr.msk.f32.gmra.mrb[44].mxu0 %vm1287_vm1, %v23668_v57  ;;  %30646 = vst [vmem:[#allocation78_spill] sm:$0xff] %v23697_v33  ;;  %30647 = vst [vmem:[#allocation79_spill] sm:$0xff] %v23701_v48  ;;  %v386_v57 = vld [vmem:[%s23236_s16 + $0x1c0] sm:$0xff] }
  0x9c   : > { %19621 = vmatprep.mubr.msk.f32.mxu0 %vm1287_vm1, %v23672_v16  ;;  %v384_v16 = vld [vmem:[%s23236_s16 + $0x1b0] sm:$0xff]  ;;  %30648 = vst [vmem:[#allocation80_spill] sm:$0xff] %v23712_v37  ;;  %30649 = vst [vmem:[#allocation81_spill] sm:$0xff] %v23715_v59 }
  0x9d   : > { %v681_v45 = vrot.slane %v384_v16, 7  ;;  %v685_v16 = vrot.slane %v386_v57, 7 }
  0x9f   : > { %19622 = vmatmul.mubr.msk.f32.gmra.mrb[46].mxu0 %vm1287_vm1, %v23683_v7  ;;  %v23718_v7 = vld [vmem:[%s23236_s16 + $0x1b8] sm:$0xff] }
  0xa0   : > { %19624 = vmatprep.mubr.msk.f32.mxu0 %vm1287_vm1, %v23686_v34  ;;  %v679_v34 = vrot.slane %v383_v49, 7  ;;  %30650 = vst [vmem:[#allocation82_spill] sm:$0xff] %v23718_v7  ;;  %v29895_v49 = vrot.slane %v23718_v7, 7 }
  0xa2   : > { %v23726_v32 = vsel %vm586_vm2, %v678_v41, %v679_v34  ;;  %v23730_v27 = vsel %vm586_vm2, %v679_v34, %v681_v45  ;;  %v23741_v41 = vsel %vm586_vm2, %v681_v45, %v29895_v49  ;;  %v23744_v34 = vsel %vm586_vm2, 0.0, %v685_v16  ;;  %v391_v49 = vld [vmem:[%s23236_s16 + $0x1e8] sm:$0xff] }
  0xa3   : > { %19625 = vmatmul.mubr.msk.f32.gmra.mrb[48].mxu0 %vm1287_vm1, %v23697_v33  ;;  %30651 = vst [vmem:[#allocation83_spill] sm:$0xff] %v23726_v32  ;;  %30652 = vst [vmem:[#allocation84_spill] sm:$0xff] %v23730_v27  ;;  %v390_v33 = vld [vmem:[%s23236_s16 + $0x1e0] sm:$0xff] }
  0xa4   : > { %19627 = vmatprep.mubr.msk.f32.mxu0 %vm1287_vm1, %v23701_v48  ;;  %v388_v48 = vld [vmem:[%s23236_s16 + $0x1d0] sm:$0xff]  ;;  %30653 = vst [vmem:[#allocation85_spill] sm:$0xff] %v23741_v41  ;;  %30654 = vst [vmem:[#allocation86_spill] sm:$0xff] %v23744_v34 }
  0xa5   : > { %v688_v57 = vrot.slane %v388_v48, 7  ;;  %v692_v48 = vrot.slane %v390_v33, 7 }
  0xa7   : > { %19628 = vmatmul.mubr.msk.f32.gmra.mrb[50].mxu0 %vm1287_vm1, %v23712_v37  ;;  %v23747_v37 = vld [vmem:[%s23236_s16 + $0x1d8] sm:$0xff] }
  0xa8   : > { %19630 = vmatprep.mubr.msk.f32.mxu0 %vm1287_vm1, %v23715_v59  ;;  %v686_v59 = vrot.slane %v387_v3, 7  ;;  %30655 = vst [vmem:[#allocation87_spill] sm:$0xff] %v23747_v37  ;;  %v29905_v3 = vrot.slane %v23747_v37, 7 }
  0xaa   : > { %v23755_v7 = vsel %vm586_vm2, %v685_v16, %v686_v59  ;;  %v23759_v45 = vsel %vm586_vm2, %v686_v59, %v688_v57  ;;  %v23770_v16 = vsel %vm586_vm2, %v688_v57, %v29905_v3  ;;  %v23773_v59 = vsel %vm586_vm2, 0.0, %v692_v48  ;;  %v395_v3 = vld [vmem:[%s23236_s16 + $0x208] sm:$0xff] }
  0xab   : > { %19631 = vmatmul.mubr.msk.f32.gmra.mrb[52].mxu0 %vm1287_vm1, %v23726_v32  ;;  %30656 = vst [vmem:[#allocation88_spill] sm:$0xff] %v23755_v7  ;;  %30657 = vst [vmem:[#allocation89_spill] sm:$0xff] %v23759_v45  ;;  %v394_v32 = vld [vmem:[%s23236_s16 + $0x200] sm:$0xff] }
  0xac   : > { %19633 = vmatprep.mubr.msk.f32.mxu0 %vm1287_vm1, %v23730_v27  ;;  %v392_v27 = vld [vmem:[%s23236_s16 + $0x1f0] sm:$0xff]  ;;  %30658 = vst [vmem:[#allocation90_spill] sm:$0xff] %v23770_v16  ;;  %30659 = vst [vmem:[#allocation91_spill] sm:$0xff] %v23773_v59 }
  0xad   : > { %v695_v33 = vrot.slane %v392_v27, 7  ;;  %v699_v27 = vrot.slane %v394_v32, 7 }
  0xaf   : > { %19634 = vmatmul.mubr.msk.f32.gmra.mrb[54].mxu0 %vm1287_vm1, %v23741_v41  ;;  %v23776_v41 = vld [vmem:[%s23236_s16 + $0x1f8] sm:$0xff] }
  0xb0   : > { %19636 = vmatprep.mubr.msk.f32.mxu0 %vm1287_vm1, %v23744_v34  ;;  %v693_v34 = vrot.slane %v391_v49, 7  ;;  %30660 = vst [vmem:[#allocation92_spill] sm:$0xff] %v23776_v41  ;;  %v29915_v49 = vrot.slane %v23776_v41, 7 }
  0xb2   : > { %v23784_v37 = vsel %vm586_vm2, %v692_v48, %v693_v34  ;;  %v23788_v57 = vsel %vm586_vm2, %v693_v34, %v695_v33  ;;  %v23799_v48 = vsel %vm586_vm2, %v695_v33, %v29915_v49  ;;  %v23802_v34 = vsel %vm586_vm2, 0.0, %v699_v27 }
  0xb3   : > { %19637 = vmatmul.mubr.msk.f32.gmra.mrb[56].mxu0 %vm1287_vm1, %v23755_v7  ;;  %30661 = vst [vmem:[#allocation93_spill] sm:$0xff] %v23784_v37  ;;  %30662 = vst [vmem:[#allocation94_spill] sm:$0xff] %v23788_v57  ;;  %v398_v7 = vld [vmem:[%s23236_s16 + $0x220] sm:$0xff] }
  0xb4   : > { %19639 = vmatprep.mubr.msk.f32.mxu0 %vm1287_vm1, %v23759_v45  ;;  %v396_v45 = vld [vmem:[%s23236_s16 + $0x210] sm:$0xff]  ;;  %30663 = vst [vmem:[#allocation95_spill] sm:$0xff] %v23799_v48  ;;  %30664 = vst [vmem:[#allocation96_spill] sm:$0xff] %v23802_v34  ;;  %v706_v49 = vrot.slane %v398_v7, 7 }
  0xb5   : > { %v702_v32 = vrot.slane %v396_v45, 7  ;;  %v23819_v45 = vld [vmem:[%s29815_s1 + $0x14] sm:$0x7] }
  0xb6   : > { %19938 = vmatprep.subr.msk.mxu0 %vm1538_vm0, %v23819_v45  ;;  %v23838_v7 = vsel %vm586_vm2, 0.0, %v706_v49 }
  0xb7   : > { %19640 = vmatmul.mubr.msk.f32.gmra.mrb[58].mxu0 %vm1287_vm1, %v23770_v16  ;;  %v23805_v16 = vld [vmem:[%s23236_s16 + $0x218] sm:$0xff]  ;;  %30669 = vst [vmem:[#allocation101_spill] sm:$0xff] %v23838_v7 }
  0xb8   : > { %19642 = vmatprep.mubr.msk.f32.mxu0 %vm1287_vm1, %v23773_v59  ;;  %v700_v59 = vrot.slane %v395_v3, 7  ;;  %30665 = vst [vmem:[#allocation97_spill] sm:$0xff] %v23805_v16  ;;  %v29926_v3 = vrot.slane %v23805_v16, 7 }
  0xba   : > { %v23813_v41 = vsel %vm586_vm2, %v699_v27, %v700_v59  ;;  %v23822_v33 = vsel %vm586_vm2, %v700_v59, %v702_v32  ;;  %v23835_v27 = vsel %vm586_vm2, %v702_v32, %v29926_v3  ;;  %v403_v3 = vld [vmem:[%s23236_s16 + $0x248] sm:$0xff] }
  0xbb   : > { %19643 = vmatmul.mubr.msk.f32.gmra.mrb[60].mxu0 %vm1287_vm1, %v23784_v37  ;;  %30666 = vst [vmem:[#allocation98_spill] sm:$0xff] %v23813_v41  ;;  %30667 = vst [vmem:[#allocation99_spill] sm:$0xff] %v23822_v33  ;;  %v23841_v37 = vld [vmem:[%s23236_s16 + $0x238] sm:$0xff] }
  0xbc   : > { %19645 = vmatprep.mubr.msk.f32.mxu0 %vm1287_vm1, %v23788_v57  ;;  %30668 = vst [vmem:[#allocation100_spill] sm:$0xff] %v23835_v27  ;;  %30670 = vst [vmem:[#allocation102_spill] sm:$0xff] %v23841_v37 }
  0xbf   : > { %19646 = vmatmul.mubr.msk.f32.gmra.mrb[62].mxu0 %vm1287_vm1, %v23799_v48  ;;  %v399_v48 = vld [vmem:[%s23236_s16 + $0x228] sm:$0xff] }
  0xc0   : > { %19648 = vmatprep.mubr.msk.f32.mxu0 %vm1287_vm1, %v23802_v34  ;;  %v400_v34 = vld [vmem:[%s23236_s16 + $0x230] sm:$0xff]  ;;  %v707_v59 = vrot.slane %v399_v48, 7  ;;  %v29936_v48 = vrot.slane %v23841_v37, 7 }
  0xc1   : > { %v709_v57 = vrot.slane %v400_v34, 7  ;;  %v713_v34 = vrot.slane %v402_v21, 7 }
  0xc2   : > { %v23849_v16 = vsel %vm586_vm2, %v706_v49, %v707_v59 }
  0xc3   : > { %19649 = vmatmul.mubr.msk.f32.gmra.mrb[64].mxu0 %vm1287_vm1, %v23813_v41  ;;  %30671 = vst [vmem:[#allocation103_spill] sm:$0xff] %v23849_v16  ;;  %v23853_v32 = vsel %vm586_vm2, %v707_v59, %v709_v57  ;;  %v23864_v49 = vsel %vm586_vm2, %v709_v57, %v29936_v48  ;;  %v23867_v59 = vsel %vm586_vm2, 0.0, %v713_v34  ;;  %v406_v41 = vld [vmem:[%s23236_s16 + $0x260] sm:$0xff]  ;;  %v407_v48 = vld [vmem:[%s23236_s16 + $0x268] sm:$0xff] }
  0xc4   : > { %19651 = vmatprep.mubr.msk.f32.mxu0 %vm1287_vm1, %v23822_v33  ;;  %30672 = vst [vmem:[#allocation104_spill] sm:$0xff] %v23853_v32  ;;  %v404_v33 = vld [vmem:[%s23236_s16 + $0x250] sm:$0xff]  ;;  %30673 = vst [vmem:[#allocation105_spill] sm:$0xff] %v23864_v49 }
  0xc5   : > { %30674 = vst [vmem:[#allocation106_spill] sm:$0xff] %v23867_v59  ;;  %v716_v21 = vrot.slane %v404_v33, 7  ;;  %v720_v33 = vrot.slane %v406_v41, 7 }
  0xc7   : > { %19652 = vmatmul.mubr.msk.f32.gmra.mrb[66].mxu0 %vm1287_vm1, %v23835_v27  ;;  %v23870_v27 = vld [vmem:[%s23236_s16 + $0x258] sm:$0xff] }
  0xc8   : > { %19654 = vmatprep.mubr.msk.f32.mxu0 %vm1287_vm1, %v23838_v7  ;;  %v714_v7 = vrot.slane %v403_v3, 7  ;;  %30675 = vst [vmem:[#allocation107_spill] sm:$0xff] %v23870_v27  ;;  %v29946_v57 = vrot.slane %v23870_v27, 7 }
  0xca   : > { %v23878_v37 = vsel %vm586_vm2, %v713_v34, %v714_v7  ;;  %v23882_v3 = vsel %vm586_vm2, %v714_v7, %v716_v21  ;;  %v23893_v34 = vsel %vm586_vm2, %v716_v21, %v29946_v57  ;;  %v23896_v7 = vsel %vm586_vm2, 0.0, %v720_v33  ;;  %v411_v57 = vld [vmem:[%s23236_s16 + $0x288] sm:$0xff] }
  0xcb   : > { %19655 = vmatmul.mubr.msk.f32.gmra.mrb[68].mxu0 %vm1287_vm1, %v23849_v16  ;;  %30676 = vst [vmem:[#allocation108_spill] sm:$0xff] %v23878_v37  ;;  %30677 = vst [vmem:[#allocation109_spill] sm:$0xff] %v23882_v3  ;;  %v410_v16 = vld [vmem:[%s23236_s16 + $0x280] sm:$0xff] }
  0xcc   : > { %19657 = vmatprep.mubr.msk.f32.mxu0 %vm1287_vm1, %v23853_v32  ;;  %v408_v32 = vld [vmem:[%s23236_s16 + $0x270] sm:$0xff]  ;;  %30678 = vst [vmem:[#allocation110_spill] sm:$0xff] %v23893_v34  ;;  %30679 = vst [vmem:[#allocation111_spill] sm:$0xff] %v23896_v7 }
  0xcd   : > { %v723_v41 = vrot.slane %v408_v32, 7  ;;  %v727_v32 = vrot.slane %v410_v16, 7 }
  0xcf   : > { %19658 = vmatmul.mubr.msk.f32.gmra.mrb[70].mxu0 %vm1287_vm1, %v23864_v49  ;;  %v23899_v49 = vld [vmem:[%s23236_s16 + $0x278] sm:$0xff] }
  0xd0   : > { %19660 = vmatprep.mubr.msk.f32.mxu0 %vm1287_vm1, %v23867_v59  ;;  %v721_v59 = vrot.slane %v407_v48, 7  ;;  %30680 = vst [vmem:[#allocation112_spill] sm:$0xff] %v23899_v49  ;;  %v29956_v48 = vrot.slane %v23899_v49, 7 }
  0xd2   : > { %v23907_v27 = vsel %vm586_vm2, %v720_v33, %v721_v59  ;;  %v23911_v21 = vsel %vm586_vm2, %v721_v59, %v723_v41  ;;  %v23922_v33 = vsel %vm586_vm2, %v723_v41, %v29956_v48  ;;  %v23925_v59 = vsel %vm586_vm2, 0.0, %v727_v32  ;;  %v415_v48 = vld [vmem:[%s23236_s16 + $0x2a8] sm:$0xff] }
  0xd3   : > { %19661 = vmatmul.mubr.msk.f32.gmra.mrb[72].mxu0 %vm1287_vm1, %v23878_v37  ;;  %30681 = vst [vmem:[#allocation113_spill] sm:$0xff] %v23907_v27  ;;  %30682 = vst [vmem:[#allocation114_spill] sm:$0xff] %v23911_v21  ;;  %v414_v37 = vld [vmem:[%s23236_s16 + $0x2a0] sm:$0xff] }
  0xd4   : > { %19663 = vmatprep.mubr.msk.f32.mxu0 %vm1287_vm1, %v23882_v3  ;;  %v412_v3 = vld [vmem:[%s23236_s16 + $0x290] sm:$0xff]  ;;  %30683 = vst [vmem:[#allocation115_spill] sm:$0xff] %v23922_v33  ;;  %30684 = vst [vmem:[#allocation116_spill] sm:$0xff] %v23925_v59 }
  0xd5   : > { %v730_v16 = vrot.slane %v412_v3, 7  ;;  %v734_v3 = vrot.slane %v414_v37, 7 }
  0xd7   : > { %19664 = vmatmul.mubr.msk.f32.gmra.mrb[74].mxu0 %vm1287_vm1, %v23893_v34  ;;  %v23928_v34 = vld [vmem:[%s23236_s16 + $0x298] sm:$0xff] }
  0xd8   : > { %19666 = vmatprep.mubr.msk.f32.mxu0 %vm1287_vm1, %v23896_v7  ;;  %v728_v7 = vrot.slane %v411_v57, 7  ;;  %30685 = vst [vmem:[#allocation117_spill] sm:$0xff] %v23928_v34  ;;  %v29966_v57 = vrot.slane %v23928_v34, 7 }
  0xda   : > { %v23936_v49 = vsel %vm586_vm2, %v727_v32, %v728_v7  ;;  %v23940_v41 = vsel %vm586_vm2, %v728_v7, %v730_v16  ;;  %v23951_v32 = vsel %vm586_vm2, %v730_v16, %v29966_v57  ;;  %v23954_v7 = vsel %vm586_vm2, 0.0, %v734_v3  ;;  %v419_v57 = vld [vmem:[%s23236_s16 + $0x2c8] sm:$0xff] }
  0xdb   : > { %19667 = vmatmul.mubr.msk.f32.gmra.mrb[76].mxu0 %vm1287_vm1, %v23907_v27  ;;  %30686 = vst [vmem:[#allocation118_spill] sm:$0xff] %v23936_v49  ;;  %30687 = vst [vmem:[#allocation119_spill] sm:$0xff] %v23940_v41  ;;  %v418_v27 = vld [vmem:[%s23236_s16 + $0x2c0] sm:$0xff] }
  0xdc   : > { %19669 = vmatprep.mubr.msk.f32.mxu0 %vm1287_vm1, %v23911_v21  ;;  %v416_v21 = vld [vmem:[%s23236_s16 + $0x2b0] sm:$0xff]  ;;  %30688 = vst [vmem:[#allocation120_spill] sm:$0xff] %v23951_v32  ;;  %30689 = vst [vmem:[#allocation121_spill] sm:$0xff] %v23954_v7 }
  0xdd   : > { %v737_v37 = vrot.slane %v416_v21, 7  ;;  %v741_v21 = vrot.slane %v418_v27, 7 }
  0xdf   : > { %19670 = vmatmul.mubr.msk.f32.gmra.mrb[78].mxu0 %vm1287_vm1, %v23922_v33  ;;  %v23957_v33 = vld [vmem:[%s23236_s16 + $0x2b8] sm:$0xff] }
  0xe0   : > { %19672 = vmatprep.mubr.msk.f32.mxu0 %vm1287_vm1, %v23925_v59  ;;  %v735_v59 = vrot.slane %v415_v48, 7  ;;  %30690 = vst [vmem:[#allocation122_spill] sm:$0xff] %v23957_v33  ;;  %v29976_v48 = vrot.slane %v23957_v33, 7 }
  0xe2   : > { %v23965_v34 = vsel %vm586_vm2, %v734_v3, %v735_v59  ;;  %v23969_v16 = vsel %vm586_vm2, %v735_v59, %v737_v37  ;;  %v23980_v3 = vsel %vm586_vm2, %v737_v37, %v29976_v48  ;;  %v23983_v59 = vsel %vm586_vm2, 0.0, %v741_v21  ;;  %v423_v48 = vld [vmem:[%s23236_s16 + $0x2e8] sm:$0xff] }
  0xe3   : > { %19673 = vmatmul.mubr.msk.f32.gmra.mrb[80].mxu0 %vm1287_vm1, %v23936_v49  ;;  %30691 = vst [vmem:[#allocation123_spill] sm:$0xff] %v23965_v34  ;;  %30692 = vst [vmem:[#allocation124_spill] sm:$0xff] %v23969_v16  ;;  %v422_v49 = vld [vmem:[%s23236_s16 + $0x2e0] sm:$0xff] }
  0xe4   : > { %19675 = vmatprep.mubr.msk.f32.mxu0 %vm1287_vm1, %v23940_v41  ;;  %v420_v41 = vld [vmem:[%s23236_s16 + $0x2d0] sm:$0xff]  ;;  %30693 = vst [vmem:[#allocation125_spill] sm:$0xff] %v23980_v3  ;;  %30694 = vst [vmem:[#allocation126_spill] sm:$0xff] %v23983_v59 }
  0xe5   : > { %v744_v27 = vrot.slane %v420_v41, 7  ;;  %v748_v41 = vrot.slane %v422_v49, 7 }
  0xe7   : > { %19676 = vmatmul.mubr.msk.f32.gmra.mrb[82].mxu0 %vm1287_vm1, %v23951_v32  ;;  %v23986_v32 = vld [vmem:[%s23236_s16 + $0x2d8] sm:$0xff] }
  0xe8   : > { %19678 = vmatprep.mubr.msk.f32.mxu0 %vm1287_vm1, %v23954_v7  ;;  %v742_v7 = vrot.slane %v419_v57, 7  ;;  %30695 = vst [vmem:[#allocation127_spill] sm:$0xff] %v23986_v32  ;;  %v29986_v57 = vrot.slane %v23986_v32, 7 }
  0xea   : > { %v23994_v33 = vsel %vm586_vm2, %v741_v21, %v742_v7  ;;  %v23998_v37 = vsel %vm586_vm2, %v742_v7, %v744_v27  ;;  %v24009_v21 = vsel %vm586_vm2, %v744_v27, %v29986_v57  ;;  %v24012_v7 = vsel %vm586_vm2, 0.0, %v748_v41  ;;  %v427_v57 = vld [vmem:[%s23236_s16 + $0x308] sm:$0xff] }
  0xeb   : > { %19679 = vmatmul.mubr.msk.f32.gmra.mrb[84].mxu0 %vm1287_vm1, %v23965_v34  ;;  %30696 = vst [vmem:[#allocation128_spill] sm:$0xff] %v23994_v33  ;;  %30697 = vst [vmem:[#allocation129_spill] sm:$0xff] %v23998_v37  ;;  %v426_v34 = vld [vmem:[%s23236_s16 + $0x300] sm:$0xff] }
  0xec   : > { %19681 = vmatprep.mubr.msk.f32.mxu0 %vm1287_vm1, %v23969_v16  ;;  %v424_v16 = vld [vmem:[%s23236_s16 + $0x2f0] sm:$0xff]  ;;  %30698 = vst [vmem:[#allocation130_spill] sm:$0xff] %v24009_v21  ;;  %30699 = vst [vmem:[#allocation131_spill] sm:$0xff] %v24012_v7 }
  0xed   : > { %v751_v49 = vrot.slane %v424_v16, 7  ;;  %v755_v16 = vrot.slane %v426_v34, 7 }
  0xef   : > { %19682 = vmatmul.mubr.msk.f32.gmra.mrb[86].mxu0 %vm1287_vm1, %v23980_v3  ;;  %v24015_v3 = vld [vmem:[%s23236_s16 + $0x2f8] sm:$0xff] }
  0xf0   : > { %19684 = vmatprep.mubr.msk.f32.mxu0 %vm1287_vm1, %v23983_v59  ;;  %v749_v59 = vrot.slane %v423_v48, 7  ;;  %30700 = vst [vmem:[#allocation132_spill] sm:$0xff] %v24015_v3  ;;  %v29996_v48 = vrot.slane %v24015_v3, 7 }
  0xf2   : > { %v24023_v32 = vsel %vm586_vm2, %v748_v41, %v749_v59  ;;  %v24027_v27 = vsel %vm586_vm2, %v749_v59, %v751_v49  ;;  %v24038_v41 = vsel %vm586_vm2, %v751_v49, %v29996_v48  ;;  %v24041_v59 = vsel %vm586_vm2, 0.0, %v755_v16  ;;  %v431_v48 = vld [vmem:[%s23236_s16 + $0x328] sm:$0xff] }
  0xf3   : > { %19685 = vmatmul.mubr.msk.f32.gmra.mrb[88].mxu0 %vm1287_vm1, %v23994_v33  ;;  %30701 = vst [vmem:[#allocation133_spill] sm:$0xff] %v24023_v32  ;;  %30702 = vst [vmem:[#allocation134_spill] sm:$0xff] %v24027_v27  ;;  %v430_v33 = vld [vmem:[%s23236_s16 + $0x320] sm:$0xff] }
  0xf4   : > { %19687 = vmatprep.mubr.msk.f32.mxu0 %vm1287_vm1, %v23998_v37  ;;  %v428_v37 = vld [vmem:[%s23236_s16 + $0x310] sm:$0xff]  ;;  %30703 = vst [vmem:[#allocation135_spill] sm:$0xff] %v24038_v41  ;;  %30704 = vst [vmem:[#allocation136_spill] sm:$0xff] %v24041_v59 }
  0xf5   : > { %v758_v34 = vrot.slane %v428_v37, 7  ;;  %v762_v37 = vrot.slane %v430_v33, 7 }
  0xf7   : > { %19688 = vmatmul.mubr.msk.f32.gmra.mrb[90].mxu0 %vm1287_vm1, %v24009_v21  ;;  %v24044_v21 = vld [vmem:[%s23236_s16 + $0x318] sm:$0xff] }
  0xf8   : > { %19690 = vmatprep.mubr.msk.f32.mxu0 %vm1287_vm1, %v24012_v7  ;;  %v756_v7 = vrot.slane %v427_v57, 7  ;;  %30705 = vst [vmem:[#allocation137_spill] sm:$0xff] %v24044_v21  ;;  %v30006_v57 = vrot.slane %v24044_v21, 7 }
  0xfa   : > { %v24052_v3 = vsel %vm586_vm2, %v755_v16, %v756_v7  ;;  %v24056_v49 = vsel %vm586_vm2, %v756_v7, %v758_v34  ;;  %v24067_v16 = vsel %vm586_vm2, %v758_v34, %v30006_v57  ;;  %v24070_v7 = vsel %vm586_vm2, 0.0, %v762_v37  ;;  %v435_v57 = vld [vmem:[%s23236_s16 + $0x348] sm:$0xff] }
  0xfb   : > { %19691 = vmatmul.mubr.msk.f32.gmra.mrb[92].mxu0 %vm1287_vm1, %v24023_v32  ;;  %30706 = vst [vmem:[#allocation138_spill] sm:$0xff] %v24052_v3  ;;  %30707 = vst [vmem:[#allocation139_spill] sm:$0xff] %v24056_v49  ;;  %v434_v32 = vld [vmem:[%s23236_s16 + $0x340] sm:$0xff] }
  0xfc   : > { %19693 = vmatprep.mubr.msk.f32.mxu0 %vm1287_vm1, %v24027_v27  ;;  %v432_v27 = vld [vmem:[%s23236_s16 + $0x330] sm:$0xff]  ;;  %30708 = vst [vmem:[#allocation140_spill] sm:$0xff] %v24067_v16  ;;  %30709 = vst [vmem:[#allocation141_spill] sm:$0xff] %v24070_v7 }
  0xfd   : > { %v765_v33 = vrot.slane %v432_v27, 7  ;;  %v769_v27 = vrot.slane %v434_v32, 7 }
  0xff   : > { %19694 = vmatmul.mubr.msk.f32.gmra.mrb[94].mxu0 %vm1287_vm1, %v24038_v41  ;;  %v24073_v41 = vld [vmem:[%s23236_s16 + $0x338] sm:$0xff] }
 0x100   : > { %19696 = vmatprep.mubr.msk.f32.mxu0 %vm1287_vm1, %v24041_v59  ;;  %v763_v59 = vrot.slane %v431_v48, 7  ;;  %30710 = vst [vmem:[#allocation142_spill] sm:$0xff] %v24073_v41  ;;  %v30020_v48 = vrot.slane %v24073_v41, 7  ;;  %v15718_v41 = vld [vmem:[%s29815_s1 + $0x4] sm:$0x7] }
 0x101   : > { %18968 = vmatprep.subr.msk.mxu1 %vm1538_vm0, %v15718_v41 }
 0x102   : > { %v24081_v21 = vsel %vm586_vm2, %v762_v37, %v763_v59  ;;  %v24085_v34 = vsel %vm586_vm2, %v763_v59, %v765_v33  ;;  %v24096_v37 = vsel %vm586_vm2, %v765_v33, %v30020_v48  ;;  %v24102_v59 = vld [vmem:[%s23236_s16 + $0x358] sm:$0xff]  ;;  %18969 = vmatpush3.msk.msra.mxu1 %vm1538_vm0, %v15718_v41 }
 0x103   : > { %19697 = vmatmul.mubr.msk.f32.gmra.mrb[96].mxu0 %vm1287_vm1, %v24052_v3  ;;  %30711 = vst [vmem:[#allocation143_spill] sm:$0xff] %v24081_v21  ;;  %30712 = vst [vmem:[#allocation144_spill] sm:$0xff] %v24085_v34  ;;  %v438_v3 = vld [vmem:[%s23236_s16 + $0x360] sm:$0xff] }
 0x104   : > { %19699 = vmatprep.mubr.msk.f32.mxu0 %vm1287_vm1, %v24056_v49  ;;  %v436_v49 = vld [vmem:[%s23236_s16 + $0x350] sm:$0xff]  ;;  %30713 = vst [vmem:[#allocation145_spill] sm:$0xff] %v24096_v37  ;;  %30715 = vst [vmem:[#allocation147_spill] sm:$0xff] %v24102_v59  ;;  %v776_v48 = vrot.slane %v438_v3, 7 }
 0x105   : > { %v772_v32 = vrot.slane %v436_v49, 7  ;;  %v30034_v49 = vrot.slane %v24102_v59, 7  ;;  %v1011_v59 = vrot.slane %v23262_v25, 1  ;;  %v1013_v25 = vrot.slane %v23267_v28, 1 }
 0x107   : > { %19700 = vmatmul.mubr.msk.f32.gmra.mrb[98].mxu0 %vm1287_vm1, %v24067_v16  ;;  %v24099_v16 = vsel %vm586_vm2, 0.0, %v769_v27  ;;  %v24141_v3 = vsel %vm586_vm2, %v772_v32, %v30034_v49  ;;  %v443_v49 = vld [vmem:[%s23236_s16 + $0x388] sm:$0xff] }
 0x108   : > { %19702 = vmatprep.mubr.msk.f32.mxu0 %vm1287_vm1, %v24070_v7  ;;  %v770_v7 = vrot.slane %v435_v57, 7  ;;  %30714 = vst [vmem:[#allocation146_spill] sm:$0xff] %v24099_v16  ;;  %30720 = vst [vmem:[#allocation151_spill] sm:$0xff] %v24141_v3 }
 0x10a   : > { %v24116_v57 = vsel %vm586_vm2, %v769_v27, %v770_v7  ;;  %v24121_v33 = vsel %vm586_vm2, %v770_v7, %v772_v32  ;;  %v1006_v27 = vrot.slane %v23253_v19, 1  ;;  %v24144_v7 = vsel %vm586_vm2, 0.0, %v776_v48  ;;  %v24147_v19 = vld [vmem:[%s23236_s16 + $0x378] sm:$0xff] }
 0x10b   : > { %19703 = vmatmul.mubr.msk.f32.gmra.mrb[100].mxu0 %vm1287_vm1, %v24081_v21  ;;  %30718 = vst [vmem:[#allocation149_spill] sm:$0xff] %v24116_v57  ;;  %30719 = vst [vmem:[#allocation150_spill] sm:$0xff] %v24121_v33  ;;  %v30725_v28 = vrot.slane %v24147_v19, 7 }
 0x10c   : > { %19705 = vmatprep.mubr.msk.f32.mxu0 %vm1287_vm1, %v24085_v34  ;;  %v30716_v34 = vmov 0.0   ;;  %30721 = vst [vmem:[#allocation152_spill] sm:$0xff] %v24144_v7  ;;  %30722 = vst [vmem:[#allocation153_spill] sm:$0xff] %v24147_v19 }
 0x10d   : > { %v24111_v21 = vrot.slane %v30716_v34, 1  ;;  %v440_v34 = vld [vmem:[%s23236_s16 + $0x370] sm:$0xff] }
 0x10f   : > { %19706 = vmatmul.mubr.msk.f32.gmra.mrb[102].mxu0 %vm1287_vm1, %v24096_v37  ;;  %30717 = vst [vmem:[#allocation148_spill] sm:$0xff] %v24111_v21  ;;  %v439_v37 = vld [vmem:[%s23236_s16 + $0x368] sm:$0xff]  ;;  %18970 = vmatprep.mubr.msk.f32.mxu1 %vm1287_vm1, %v24111_v21 }
 0x110   : > { %19708 = vmatprep.mubr.msk.f32.mxu0 %vm1287_vm1, %v24099_v16  ;;  %v1007_v16 = vrot.slane %v23250_v18, 1  ;;  %18971 = vmatmul.mubr.msk.f32.vlgmr.msra.gmra.mrb[0].mxu1 %vm1287_vm1, %v24111_v21  ;;  %v777_v41 = vrot.slane %v439_v37, 7  ;;  %v779_v18 = vrot.slane %v440_v34, 7  ;;  %v1016_v37 = vrot.slane %v23270_v29, 1  ;;  %v24198_v29 = vld [vmem:[%s23236_s16 + $0x398] sm:$0xff] }
 0x111   : > { %18973 = vmatprep.mubr.msk.f32.mxu1 %vm1287_vm1, %v24111_v21  ;;  %30728 = vst [vmem:[#allocation158_spill] sm:$0xff] %v24198_v29 }
 0x112   : > { %v24152_v23 = vsel %vm1003_vm4, %v1006_v27, %v1007_v16  ;;  %v24164_v34 = vsel %vm586_vm2, %v776_v48, %v777_v41  ;;  %v24168_v32 = vsel %vm586_vm2, %v777_v41, %v779_v18  ;;  %v783_v27 = vrot.slane %v442_v1, 7 }
 0x113   : > { %19709 = vmatmul.mubr.msk.f32.gmra.mrb[104].mxu0 %vm1287_vm1, %v24116_v57  ;;  %v1009_v57 = vrot.slane %v23256_v20, 1  ;;  %30723 = vst [vmem:[#allocation154_spill] sm:$0xff] %v24164_v34  ;;  %30724 = vst [vmem:[#allocation155_spill] sm:$0xff] %v24168_v32  ;;  %v444_v20 = vld [vmem:[%s23236_s16 + $0x390] sm:$0xff]  ;;  %v1015_v48 = vrot.slane %v23273_v30, 1  ;;  %v24192_v1 = vsel %vm586_vm2, %v779_v18, %v30725_v28  ;;  %v24201_v30 = vsel %vm1003_vm4, %v1011_v59, %v1013_v25 }
 0x114   : > { %19711 = vmatprep.mubr.msk.f32.mxu0 %vm1287_vm1, %v24121_v33  ;;  %18974 = vmatmul.mubr.msk.f32.gmra.mrb[2].mxu1 %vm1287_vm1, %v24111_v21  ;;  %30726 = vst [vmem:[#allocation156_spill] sm:$0xff] %v24192_v1  ;;  %v786_v41 = vrot.slane %v444_v20, 7  ;;  %v1020_v18 = vrot.slane %v23305_v47, 1  ;;  %v1022_v47 = vrot.slane %v23312_v50, 1  ;;  %v1025_v25 = vrot.slane %v23315_v52, 1  ;;  %v24252_v52 = vld [vmem:[%s23236_s16 + $0x3b8] sm:$0xff] }
 0x115   : > { %18976 = vmatprep.mubr.msk.f32.mxu1 %vm1287_vm1, %v24152_v23  ;;  %v24172_v21 = vsel %vm1003_vm4, %v1007_v16, %v1009_v57  ;;  %v784_v16 = vrot.slane %v443_v49, 7  ;;  %v24206_v19 = vsel %vm1003_vm4, %v1015_v48, %v1016_v37  ;;  %v447_v48 = vld [vmem:[%s23236_s16 + $0x3a8] sm:$0xff]  ;;  %v30734_v50 = vrot.slane %v24198_v29, 7  ;;  %30737 = vst [vmem:[#allocation166_spill] sm:$0xff] %v24252_v52 }
 0x116   : > { %30729 = vst [vmem:[#allocation159_spill] sm:$0xff] %v24206_v19 }
 0x117   : > { %19712 = vmatmul.mubr.msk.f32.gmra.mrb[106].mxu0 %vm1287_vm1, %v24141_v3  ;;  %v24218_v20 = vsel %vm586_vm2, %v783_v27, %v784_v16 }
 0x118   : > { %19714 = vmatprep.mubr.msk.f32.mxu0 %vm1287_vm1, %v24144_v7  ;;  %v24177_v7 = vsel %vm1003_vm4, %v1009_v57, %v1011_v59  ;;  %18977 = vmatmul.mubr.msk.f32.gmra.mrb[4].mxu1 %vm1287_vm1, %v24172_v21  ;;  %v24195_v57 = vsel %vm586_vm2, 0.0, %v783_v27  ;;  %30730 = vst [vmem:[#allocation160_spill] sm:$0xff] %v24218_v20  ;;  %v24222_v59 = vsel %vm586_vm2, %v784_v16, %v786_v41  ;;  %v1024_v27 = vrot.slane %v23318_v53, 1 }
 0x119   : > { %18979 = vmatprep.mubr.msk.f32.mxu1 %vm1287_vm1, %v24177_v7  ;;  %30727 = vst [vmem:[#allocation157_spill] sm:$0xff] %v24195_v57  ;;  %30731 = vst [vmem:[#allocation161_spill] sm:$0xff] %v24222_v59  ;;  %v24255_v53 = vsel %vm1003_vm4, %v1020_v18, %v1022_v47  ;;  %v1034_v47 = vrot.slane %v23359_v13, 1  ;;  %v24306_v13 = vld [vmem:[%s23236_s16 + $0x3d8] sm:$0xff] }
 0x11a   : > { %30738 = vst [vmem:[#allocation167_spill] sm:$0xff] %v24255_v53  ;;  %v24260_v29 = vsel %vm1003_vm4, %v1024_v27, %v1025_v25  ;;  %v451_v27 = vld [vmem:[%s23236_s16 + $0x3c8] sm:$0xff]  ;;  %30747 = vst [vmem:[#allocation175_spill] sm:$0xff] %v24306_v13 }
 0x11b   : > { %19715 = vmatmul.mubr.msk.f32.gmra.mrb[108].mxu0 %vm1287_vm1, %v24164_v34  ;;  %v1018_v34 = vrot.slane %v23292_v39, 1  ;;  %v448_v39 = vld [vmem:[%s23236_s16 + $0x3b0] sm:$0xff]  ;;  %30739 = vst [vmem:[#allocation168_spill] sm:$0xff] %v24260_v29 }
 0x11c   : > { %19717 = vmatprep.mubr.msk.f32.mxu0 %vm1287_vm1, %v24168_v32  ;;  %v446_v32 = vld [vmem:[%s23236_s16 + $0x3a0] sm:$0xff]  ;;  %18980 = vmatmul.mubr.msk.f32.gmra.mrb[6].mxu1 %vm1287_vm1, %v24201_v30  ;;  %v793_v16 = vrot.slane %v448_v39, 7 }
 0x11d   : > { %18982 = vmatprep.mubr.msk.f32.mxu1 %vm1287_vm1, %v24206_v19  ;;  %v790_v49 = vrot.slane %v446_v32, 7  ;;  %v24226_v28 = vsel %vm1003_vm4, %v1016_v37, %v1018_v34  ;;  %v791_v37 = vrot.slane %v447_v48, 7 }
 0x11e   : > { %30732 = vst [vmem:[#allocation162_spill] sm:$0xff] %v24226_v28 }
 0x11f   : > { %19718 = vmatmul.mubr.msk.f32.gmra.mrb[110].mxu0 %vm1287_vm1, %v24192_v1  ;;  %v24249_v32 = vsel %vm586_vm2, 0.0, %v790_v49  ;;  %v24272_v39 = vsel %vm586_vm2, %v790_v49, %v791_v37  ;;  %v1033_v49 = vrot.slane %v23362_v14, 1 }
 0x120   : > { %19720 = vmatprep.mubr.msk.f32.mxu0 %vm1287_vm1, %v24195_v57  ;;  %v24231_v57 = vsel %vm1003_vm4, %v1018_v34, %v1020_v18  ;;  %18983 = vmatmul.mubr.msk.f32.gmra.mrb[8].mxu1 %vm1287_vm1, %v24226_v28  ;;  %v24246_v34 = vsel %vm586_vm2, %v786_v41, %v30734_v50  ;;  %30736 = vst [vmem:[#allocation165_spill] sm:$0xff] %v24249_v32  ;;  %v1029_v41 = vrot.slane %v23339_v63, 1  ;;  %30740 = vst [vmem:[#allocation169_spill] sm:$0xff] %v24272_v39 }
 0x121   : > { %30733 = vst [vmem:[#allocation163_spill] sm:$0xff] %v24231_v57  ;;  %18985 = vmatprep.mubr.msk.f32.mxu1 %vm1287_vm1, %v24231_v57  ;;  %30735 = vst [vmem:[#allocation164_spill] sm:$0xff] %v24246_v34  ;;  %v24276_v18 = vsel %vm586_vm2, %v791_v37, %v793_v16  ;;  %v1031_v63 = vrot.slane %v23356_v11, 1  ;;  %v30744_v11 = vrot.slane %v24252_v52, 7  ;;  %v24314_v52 = vsel %vm1003_vm4, %v1033_v49, %v1034_v47  ;;  %v455_v49 = vld [vmem:[%s23236_s16 + $0x3e8] sm:$0xff] }
 0x122   : > { %30741 = vst [vmem:[#allocation170_spill] sm:$0xff] %v24276_v18  ;;  %30749 = vst [vmem:[#allocation177_spill] sm:$0xff] %v24314_v52 }
 0x123   : > { %19721 = vmatmul.mubr.msk.f32.gmra.mrb[112].mxu0 %vm1287_vm1, %v24218_v20  ;;  %v1027_v20 = vrot.slane %v23336_v62, 1  ;;  %v452_v62 = vld [vmem:[%s23236_s16 + $0x3d0] sm:$0xff]  ;;  %v24309_v14 = vsel %vm1003_vm4, %v1029_v41, %v1031_v63  ;;  %v30095_v63 = vrot.slane %v24306_v13, 7  ;;  %v1047_v13 = vrot.slane %v23480_v6, 1 }
 0x124   : > { %19723 = vmatprep.mubr.msk.f32.mxu0 %vm1287_vm1, %v24222_v59  ;;  %v450_v59 = vld [vmem:[%s23236_s16 + $0x3c0] sm:$0xff]  ;;  %18986 = vmatmul.mubr.msk.f32.gmra.mrb[10].mxu1 %vm1287_vm1, %v24255_v53  ;;  %v800_v37 = vrot.slane %v452_v62, 7  ;;  %30748 = vst [vmem:[#allocation176_spill] sm:$0xff] %v24309_v14  ;;  %v1052_v6 = vrot.slane %v23494_v22, 1  ;;  %v30761_v22 = vrot.slane %v23486_v15, 7 }
 0x125   : > { %18988 = vmatprep.mubr.msk.f32.mxu1 %vm1287_vm1, %v24260_v29  ;;  %v797_v48 = vrot.slane %v450_v59, 7  ;;  %v24280_v50 = vsel %vm1003_vm4, %v1025_v25, %v1027_v20  ;;  %v798_v25 = vrot.slane %v451_v27, 7 }
 0x126   : > { %30742 = vst [vmem:[#allocation171_spill] sm:$0xff] %v24280_v50 }
 0x127   : > { %19724 = vmatmul.mubr.msk.f32.gmra.mrb[114].mxu0 %vm1287_vm1, %v24246_v34  ;;  %v24303_v59 = vsel %vm586_vm2, 0.0, %v797_v48  ;;  %v24326_v62 = vsel %vm586_vm2, %v797_v48, %v798_v25  ;;  %v1042_v48 = vrot.slane %v23454_v51, 1  ;;  %v1045_v51 = vrot.slane %v23469_v61, 1 }
 0x128   : > { %19726 = vmatprep.mubr.msk.f32.mxu0 %vm1287_vm1, %v24249_v32  ;;  %v24285_v32 = vsel %vm1003_vm4, %v1027_v20, %v1029_v41  ;;  %18989 = vmatmul.mubr.msk.f32.gmra.mrb[12].mxu1 %vm1287_vm1, %v24280_v50  ;;  %v24300_v20 = vsel %vm586_vm2, %v793_v16, %v30744_v11  ;;  %30746 = vst [vmem:[#allocation174_spill] sm:$0xff] %v24303_v59  ;;  %v1038_v16 = vrot.slane %v23381_v26, 1  ;;  %30750 = vst [vmem:[#allocation178_spill] sm:$0xff] %v24326_v62 }
 0x129   : > { %30743 = vst [vmem:[#allocation172_spill] sm:$0xff] %v24285_v32  ;;  %18991 = vmatprep.mubr.msk.f32.mxu1 %vm1287_vm1, %v24285_v32  ;;  %30745 = vst [vmem:[#allocation173_spill] sm:$0xff] %v24300_v20  ;;  %v24330_v41 = vsel %vm586_vm2, %v798_v25, %v800_v37  ;;  %v1040_v26 = vrot.slane %v23396_v36, 1  ;;  %v24354_v36 = vsel %vm586_vm2, %v800_v37, %v30095_v63  ;;  %v24360_v25 = vld [vmem:[%s23236_s16 + $0x3f8] sm:$0xff]  ;;  %v30755_v37 = vrot.slane %v23457_v55, 7 }
 0x12a   : > { %v1051_v63 = vrot.slane %v23483_v10, 1  ;;  %v24423_v10 = vsel %vm586_vm2, %v30761_v22, 0.0 }
 0x12b   : > { %19727 = vmatmul.mubr.msk.f32.gmra.mrb[116].mxu0 %vm1287_vm1, %v24272_v39  ;;  %v1036_v39 = vrot.slane %v23378_v24, 1  ;;  %v456_v24 = vld [vmem:[%s23236_s16 + $0x3f0] sm:$0xff]  ;;  %30762 = vst [vmem:[#allocation188_spill] sm:$0xff] %v24423_v10  ;;  %v1058_v15 = vrot.slane %v24423_v10, 1  ;;  %v30798_v10 = vld [vmem:[#allocation67_spill] sm:$0xff] }
 0x12c   : > { %19729 = vmatprep.mubr.msk.f32.mxu0 %vm1287_vm1, %v24276_v18  ;;  %v454_v18 = vld [vmem:[%s23236_s16 + $0x3e0] sm:$0xff]  ;;  %18992 = vmatmul.mubr.msk.f32.gmra.mrb[14].mxu1 %vm1287_vm1, %v24309_v14  ;;  %s23045_s16 = sshll.u32 %s23108_s13, 4  ;;  %s23046_s16 = int_to_ptr.vmem [resolvable:$false] %s23045_s16 }
 0x12d   : > { %18994 = vmatprep.mubr.msk.f32.mxu1 %vm1287_vm1, %v24314_v52  ;;  %v804_v27 = vrot.slane %v454_v18, 7  ;;  %v24334_v11 = vsel %vm1003_vm4, %v1034_v47, %v1036_v39  ;;  %v807_v18 = vrot.slane %v456_v24, 7  ;;  %s23047_s17 = scalar_lea.vmem %s23046_s16, 32  ;;  %p23048_p0 = scmp.lt.s32.totalorder %s29773_s25, %s23046_s16 }
 0x12e   : > { %30751 = vst [vmem:[#allocation179_spill] sm:$0xff] %v24334_v11  ;;  %p23049_p1 = scmp.lt.s32.totalorder %s23047_s17, %s23041_s14 }
 0x12f   : > { %19730 = vmatmul.mubr.msk.f32.gmra.mrb[118].mxu0 %vm1287_vm1, %v24300_v20  ;;  %v24339_v20 = vsel %vm1003_vm4, %v1036_v39, %v1038_v16  ;;  %v805_v39 = vrot.slane %v455_v49, 7  ;;  %v24357_v47 = vsel %vm586_vm2, 0.0, %v804_v27  ;;  %v24373_v49 = vsel %vm586_vm2, %v30755_v37, 0.0 }
 0x130   : > { %19732 = vmatprep.mubr.msk.f32.mxu0 %vm1287_vm1, %v24303_v59  ;;  %30752 = vst [vmem:[#allocation180_spill] sm:$0xff] %v24339_v20  ;;  %v1043_v59 = vrot.slane %v23465_v58, 1  ;;  %18995 = vmatmul.mubr.msk.f32.gmra.mrb[16].mxu1 %vm1287_vm1, %v24334_v11  ;;  %v24363_v58 = vsel %vm1003_vm4, %v1038_v16, %v1040_v26  ;;  %30756 = vst [vmem:[#allocation183_spill] sm:$0xff] %v24373_v49  ;;  %v30103_v26 = vrot.slane %v24360_v25, 7  ;;  %p23050_p2 = por %p23049_p1, %p23048_p0 }
 0x131   : > { %18997 = vmatprep.mubr.msk.f32.mxu1 %vm1287_vm1, %v24339_v20  ;;  %30753 = vst [vmem:[#allocation181_spill] sm:$0xff] %v24363_v58  ;;  %v24384_v24 = vsel %vm586_vm2, %v804_v27, %v805_v39  ;;  %v24388_v55 = vsel %vm586_vm2, %v805_v39, %v807_v18  ;;  %v24395_v37 = vsel %vm1003_vm4, %v1045_v51, %v1047_v13  ;;  %v1054_v27 = vrot.slane %v23498_v31, 1 }
 0x132   : > { %v24391_v16 = vsel %vm1003_vm4, %v1043_v59, %v1045_v51  ;;  %30758 = vst [vmem:[#allocation185_spill] sm:$0xff] %v24395_v37  ;;  %v24410_v51 = vsel %vm586_vm2, %v807_v18, %v30103_v26  ;;  %v24417_v39 = vsel %vm1003_vm4, %v1051_v63, %v1052_v6  ;;  %v1060_v63 = vrot.slane %v23512_v46, 1  ;;  %p23051_p3 = pnand %p23050_p2, %p23044_p13 }
 0x133   : > { %19733 = vmatmul.mubr.msk.f32.gmra.mrb[120].mxu0 %vm1287_vm1, %v24326_v62  ;;  %v24367_v62 = vsel %vm1003_vm4, %v1042_v48, %v1043_v59  ;;  %30757 = vst [vmem:[#allocation184_spill] sm:$0xff] %v24391_v16  ;;  %v1049_v48 = vrot.slane %v24373_v49, 1  ;;  %30760 = vst [vmem:[#allocation187_spill] sm:$0xff] %v24417_v39  ;;  %v1056_v49 = vrot.slane %v23509_v43, 1  ;;  %v1061_v18 = vrot.slane %v23523_v0, 1 }
 0x134   : > { %19735 = vmatprep.mubr.msk.f32.mxu0 %vm1287_vm1, %v24330_v41  ;;  %30754 = vst [vmem:[#allocation182_spill] sm:$0xff] %v24367_v62  ;;  %18998 = vmatmul.mubr.msk.f32.gmra.mrb[18].mxu1 %vm1287_vm1, %v24363_v58 }
 0x135   : > { %19000 = vmatprep.mubr.msk.f32.mxu1 %vm1287_vm1, %v24367_v62  ;;  %v24413_v59 = vsel %vm1003_vm4, %v1047_v13, %v1049_v48  ;;  %v24434_v13 = vsel %vm1003_vm4, %v1052_v6, %v1054_v27  ;;  %v24438_v22 = vsel %vm1003_vm4, %v1054_v27, %v1056_v49  ;;  %v24453_v6 = vsel %vm1003_vm4, %v1056_v49, %v1058_v15 }
 0x136   : > { %30759 = vst [vmem:[#allocation186_spill] sm:$0xff] %v24413_v59  ;;  %30763 = vst [vmem:[#allocation189_spill] sm:$0xff] %v24434_v13  ;;  %v24457_v48 = vsel %vm1003_vm4, %v1060_v63, %v1061_v18  ;;  %v1065_v27 = vrot.slane %v23538_v35, 1  ;;  %v1069_v49 = vrot.slane %v23541_v4, 1  ;;  %v1070_v15 = vrot.slane %v23552_v60, 1 }
 0x137   : > { %19736 = vmatmul.mubr.msk.f32.gmra.mrb[122].mxu0 %vm1287_vm1, %v24354_v36  ;;  %30764 = vst [vmem:[#allocation190_spill] sm:$0xff] %v24438_v22  ;;  %30765 = vst [vmem:[#allocation191_spill] sm:$0xff] %v24453_v6  ;;  %v1072_v63 = vrot.slane %v23556_v12, 1 }
 0x138   : > { %19738 = vmatprep.mubr.msk.f32.mxu0 %vm1287_vm1, %v24357_v47  ;;  %19001 = vmatmul.mubr.msk.f32.gmra.mrb[20].mxu1 %vm1287_vm1, %v24391_v16  ;;  %30766 = vst [vmem:[#allocation192_spill] sm:$0xff] %v24457_v48 }
 0x139   : > { %19003 = vmatprep.mubr.msk.f32.mxu1 %vm1287_vm1, %v24395_v37 }
 0x13b   : > { %19739 = vmatmul.mubr.msk.f32.gmra.mrb[124].mxu0 %vm1287_vm1, %v24384_v24 }
 0x13c   : > { %19741 = vmatprep.mubr.msk.f32.mxu0 %vm1287_vm1, %v24388_v55  ;;  %19004 = vmatmul.mubr.msk.f32.gmra.mrb[22].mxu1 %vm1287_vm1, %v24413_v59 }
 0x13d   : > { %19006 = vmatprep.mubr.msk.f32.mxu1 %vm1287_vm1, %v24417_v39 }
 0x13f   : > { %19742 = vmatmul.mubr.msk.f32.gmra.mrb[126].mxu0 %vm1287_vm1, %v24410_v51 }
 0x140   : > { %19746 = vmatprep.mubr.msk.f32.mxu0 %vm1287_vm1, %v24152_v23  ;;  %19007 = vmatmul.mubr.msk.f32.gmra.mrb[24].mxu1 %vm1287_vm1, %v24434_v13  ;;  %v1063_v23 = vrot.slane %v23527_v5, 1 }
 0x141   : > { %19009 = vmatprep.mubr.msk.f32.mxu1 %vm1287_vm1, %v24438_v22 }
 0x143   : > { %19747 = vmatmul.mubr.msk.f32.vlgmr.msra.gmra.mrb[0].mxu0 %vm1287_vm1, %v24172_v21  ;;  %v30767_v21 = vrot.slane %v23515_v54, 7 }
 0x144   : > { %19939 = vmatpush3.msk.msra.mxu0 %vm1538_vm0, %v23819_v45  ;;  %19749 = vmatprep.mubr.msk.f32.mxu0 %vm1287_vm1, %v24177_v7  ;;  %v24474_v45 = vsel %vm1003_vm4, %v1061_v18, %v1063_v23  ;;  %v24478_v7 = vsel %vm1003_vm4, %v1063_v23, %v1065_v27  ;;  %v24495_v18 = vsel %vm1003_vm4, %v1069_v49, %v1070_v15  ;;  %v1074_v23 = vrot.slane %v23567_v8, 1 }
 0x145   : > { %v24463_v26 = vsel %vm586_vm2, %v30767_v21, 0.0  ;;  %19010 = vmatmul.mubr.msk.f32.gmra.mrb[26].mxu1 %vm1287_vm1, %v24453_v6  ;;  %30769 = vst [vmem:[#allocation194_spill] sm:$0xff] %v24474_v45  ;;  %30770 = vst [vmem:[#allocation195_spill] sm:$0xff] %v24478_v7  ;;  %v30773_v21 = vrot.slane %v23544_v56, 7  ;;  %v1078_v49 = vrot.slane %v23570_v40, 1 }
 0x146   : > { %30768 = vst [vmem:[#allocation193_spill] sm:$0xff] %v24463_v26  ;;  %19012 = vmatprep.mubr.msk.f32.mxu1 %vm1287_vm1, %v24457_v48  ;;  %v1067_v54 = vrot.slane %v24463_v26, 1  ;;  %30772 = vst [vmem:[#allocation197_spill] sm:$0xff] %v24495_v18 }
 0x147   : > { %19750 = vmatmul.mubr.msk.f32.gmra.mrb[2].mxu0 %vm1287_vm1, %v24201_v30 }
 0x148   : > { %19752 = vmatprep.mubr.msk.f32.mxu0 %vm1287_vm1, %v24206_v19  ;;  %v24491_v30 = vsel %vm1003_vm4, %v1065_v27, %v1067_v54  ;;  %v24512_v27 = vsel %vm1003_vm4, %v1070_v15, %v1072_v63  ;;  %v24516_v54 = vsel %vm1003_vm4, %v1072_v63, %v1074_v23  ;;  %v1081_v63 = vrot.slane %v23585_v44, 1 }
 0x149   : > { %19013 = vmatmul.mubr.msk.f32.gmra.mrb[28].mxu1 %vm1287_vm1, %v24474_v45  ;;  %30771 = vst [vmem:[#allocation196_spill] sm:$0xff] %v24491_v30  ;;  %30775 = vst [vmem:[#allocation199_spill] sm:$0xff] %v24512_v27 }
 0x14a   : > { %19015 = vmatprep.mubr.msk.f32.mxu1 %vm1287_vm1, %v24478_v7  ;;  %30776 = vst [vmem:[#allocation200_spill] sm:$0xff] %v24516_v54 }
 0x14b   : > { %19753 = vmatmul.mubr.msk.f32.gmra.mrb[4].mxu0 %vm1287_vm1, %v24226_v28  ;;  %v24501_v28 = vsel %vm586_vm2, %v30773_v21, 0.0  ;;  %v1079_v21 = vrot.slane %v23581_v38, 1 }
 0x14c   : > { %19755 = vmatprep.mubr.msk.f32.mxu0 %vm1287_vm1, %v24231_v57  ;;  %30774 = vst [vmem:[#allocation198_spill] sm:$0xff] %v24501_v28  ;;  %v1076_v56 = vrot.slane %v24501_v28, 1  ;;  %v30779_v57 = vrot.slane %v23573_v42, 7 }
 0x14d   : > { %19016 = vmatmul.mubr.msk.f32.gmra.mrb[30].mxu1 %vm1287_vm1, %v24491_v30 }
 0x14e   : > { %19018 = vmatprep.mubr.msk.f32.mxu1 %vm1287_vm1, %v24495_v18  ;;  %v24529_v15 = vsel %vm1003_vm4, %v1074_v23, %v1076_v56  ;;  %v24550_v23 = vsel %vm1003_vm4, %v1079_v21, %v1081_v63  ;;  %v1087_v56 = vrot.slane %v23599_v2, 1 }
 0x14f   : > { %19756 = vmatmul.mubr.msk.f32.gmra.mrb[6].mxu0 %vm1287_vm1, %v24255_v53  ;;  %30777 = vst [vmem:[#allocation201_spill] sm:$0xff] %v24529_v15  ;;  %v1083_v53 = vrot.slane %v23596_v17, 1  ;;  %30781 = vst [vmem:[#allocation204_spill] sm:$0xff] %v24550_v23 }
 0x150   : > { %19758 = vmatprep.mubr.msk.f32.mxu0 %vm1287_vm1, %v24260_v29  ;;  %v24533_v29 = vsel %vm1003_vm4, %v1078_v49, %v1079_v21  ;;  %v1088_v49 = vrot.slane %v23610_v9, 1 }
 0x151   : > { %19019 = vmatmul.mubr.msk.f32.gmra.mrb[32].mxu1 %vm1287_vm1, %v24512_v27  ;;  %30778 = vst [vmem:[#allocation202_spill] sm:$0xff] %v24533_v29 }
 0x152   : > { %19021 = vmatprep.mubr.msk.f32.mxu1 %vm1287_vm1, %v24516_v54 }
 0x153   : > { %19759 = vmatmul.mubr.msk.f32.gmra.mrb[8].mxu0 %vm1287_vm1, %v24280_v50  ;;  %v24539_v50 = vsel %vm586_vm2, %v30779_v57, 0.0  ;;  %v24554_v57 = vsel %vm1003_vm4, %v1081_v63, %v1083_v53  ;;  %v30784_v63 = vld [vmem:[#allocation64_spill] sm:$0xff] }
 0x154   : > { %19761 = vmatprep.mubr.msk.f32.mxu0 %vm1287_vm1, %v24285_v32  ;;  %30780 = vst [vmem:[#allocation203_spill] sm:$0xff] %v24539_v50  ;;  %v1085_v42 = vrot.slane %v24539_v50, 1  ;;  %30782 = vst [vmem:[#allocation205_spill] sm:$0xff] %v24554_v57  ;;  %v30786_v32 = vld [vmem:[#allocation65_spill] sm:$0xff]  ;;  %v30787_v50 = vld [vmem:[#allocation62_spill] sm:$0xff] }
 0x155   : > { %19022 = vmatmul.mubr.msk.f32.gmra.mrb[34].mxu1 %vm1287_vm1, %v24529_v15  ;;  %v1092_v19 = vrot.slane %v30786_v32, 1  ;;  %v30788_v28 = vrot.slane %v30787_v50, 7 }
 0x156   : > { %19024 = vmatprep.mubr.msk.f32.mxu1 %vm1287_vm1, %v24533_v29  ;;  %v24567_v21 = vsel %vm1003_vm4, %v1083_v53, %v1085_v42  ;;  %v30792_v42 = vld [vmem:[#allocation66_spill] sm:$0xff] }
 0x157   : > { %19762 = vmatmul.mubr.msk.f32.gmra.mrb[10].mxu0 %vm1287_vm1, %v24309_v14  ;;  %30783 = vst [vmem:[#allocation206_spill] sm:$0xff] %v24567_v21  ;;  %v24571_v14 = vsel %vm1003_vm4, %v1087_v56, %v1088_v49  ;;  %v1096_v56 = vrot.slane %v30792_v42, 1  ;;  %v30799_v42 = vrot.slane %v30798_v10, 7 }
 0x158   : > { %19764 = vmatprep.mubr.msk.f32.mxu0 %vm1287_vm1, %v24314_v52  ;;  %v1090_v52 = vrot.slane %v30784_v63, 1  ;;  %30785 = vst [vmem:[#allocation207_spill] sm:$0xff] %v24571_v14 }
 0x159   : > { %19025 = vmatmul.mubr.msk.f32.gmra.mrb[36].mxu1 %vm1287_vm1, %v24550_v23 }
 0x15a   : > { %19027 = vmatprep.mubr.msk.f32.mxu1 %vm1287_vm1, %v24554_v57  ;;  %v24588_v53 = vsel %vm1003_vm4, %v1088_v49, %v1090_v52 }
 0x15b   : > { %19765 = vmatmul.mubr.msk.f32.gmra.mrb[12].mxu0 %vm1287_vm1, %v24334_v11  ;;  %v24577_v11 = vsel %vm586_vm2, %v30788_v28, 0.0  ;;  %30790 = vst [vmem:[#allocation208_spill] sm:$0xff] %v24588_v53  ;;  %v24592_v28 = vsel %vm1003_vm4, %v1090_v52, %v1092_v19  ;;  %v30795_v52 = vld [vmem:[#allocation69_spill] sm:$0xff] }
 0x15c   : > { %19767 = vmatprep.mubr.msk.f32.mxu0 %vm1287_vm1, %v24339_v20  ;;  %30789 = vst [vmem:[#allocation62_spill] sm:$0xff] %v24577_v11  ;;  %v1094_v50 = vrot.slane %v24577_v11, 1  ;;  %30791 = vst [vmem:[#allocation209_spill] sm:$0xff] %v24592_v28  ;;  %v30793_v20 = vld [vmem:[#allocation68_spill] sm:$0xff]  ;;  %v30797_v11 = vld [vmem:[#allocation70_spill] sm:$0xff] }
 0x15d   : > { %19028 = vmatmul.mubr.msk.f32.gmra.mrb[38].mxu1 %vm1287_vm1, %v24567_v21  ;;  %v1097_v26 = vrot.slane %v30793_v20, 1  ;;  %v1101_v20 = vrot.slane %v30797_v11, 1 }
 0x15e   : > { %19030 = vmatprep.mubr.msk.f32.mxu1 %vm1287_vm1, %v24571_v14  ;;  %v24605_v49 = vsel %vm1003_vm4, %v1092_v19, %v1094_v50 }
 0x15f   : > { %19768 = vmatmul.mubr.msk.f32.gmra.mrb[14].mxu0 %vm1287_vm1, %v24363_v58  ;;  %30794 = vst [vmem:[#allocation210_spill] sm:$0xff] %v24605_v49  ;;  %v24609_v58 = vsel %vm1003_vm4, %v1096_v56, %v1097_v26 }
 0x160   : > { %19770 = vmatprep.mubr.msk.f32.mxu0 %vm1287_vm1, %v24367_v62  ;;  %v1099_v62 = vrot.slane %v30795_v52, 1  ;;  %30796 = vst [vmem:[#allocation211_spill] sm:$0xff] %v24609_v58 }
 0x161   : > { %19031 = vmatmul.mubr.msk.f32.gmra.mrb[40].mxu1 %vm1287_vm1, %v24588_v53 }
 0x162   : > { %19033 = vmatprep.mubr.msk.f32.mxu1 %vm1287_vm1, %v24592_v28  ;;  %v24626_v19 = vsel %vm1003_vm4, %v1097_v26, %v1099_v62  ;;  %v24630_v50 = vsel %vm1003_vm4, %v1099_v62, %v1101_v20  ;;  %v30806_v62 = vld [vmem:[#allocation74_spill] sm:$0xff] }
 0x163   : > { %19771 = vmatmul.mubr.msk.f32.gmra.mrb[16].mxu0 %vm1287_vm1, %v24391_v16  ;;  %v24615_v16 = vsel %vm586_vm2, %v30799_v42, 0.0  ;;  %30801 = vst [vmem:[#allocation212_spill] sm:$0xff] %v24626_v19  ;;  %30802 = vst [vmem:[#allocation213_spill] sm:$0xff] %v24630_v50  ;;  %v30803_v42 = vld [vmem:[#allocation71_spill] sm:$0xff] }
 0x164   : > { %19773 = vmatprep.mubr.msk.f32.mxu0 %vm1287_vm1, %v24395_v37  ;;  %30800 = vst [vmem:[#allocation67_spill] sm:$0xff] %v24615_v16  ;;  %v1103_v10 = vrot.slane %v24615_v16, 1  ;;  %v1105_v56 = vrot.slane %v30803_v42, 1  ;;  %v30804_v37 = vld [vmem:[#allocation73_spill] sm:$0xff]  ;;  %v30808_v16 = vld [vmem:[#allocation75_spill] sm:$0xff]  ;;  %v30809_v42 = vld [vmem:[#allocation72_spill] sm:$0xff] }
 0x165   : > { %19034 = vmatmul.mubr.msk.f32.gmra.mrb[42].mxu1 %vm1287_vm1, %v24605_v49  ;;  %v1106_v11 = vrot.slane %v30804_v37, 1  ;;  %v1110_v37 = vrot.slane %v30808_v16, 1  ;;  %v30810_v52 = vrot.slane %v30809_v42, 7  ;;  %v30814_v42 = vld [vmem:[#allocation76_spill] sm:$0xff] }
 0x166   : > { %19036 = vmatprep.mubr.msk.f32.mxu1 %vm1287_vm1, %v24609_v58  ;;  %v24643_v26 = vsel %vm1003_vm4, %v1101_v20, %v1103_v10 }
 0x167   : > { %19774 = vmatmul.mubr.msk.f32.gmra.mrb[18].mxu0 %vm1287_vm1, %v24413_v59  ;;  %30805 = vst [vmem:[#allocation214_spill] sm:$0xff] %v24643_v26  ;;  %v24647_v59 = vsel %vm1003_vm4, %v1105_v56, %v1106_v11  ;;  %v1114_v56 = vrot.slane %v30814_v42, 1  ;;  %v30820_v42 = vld [vmem:[#allocation77_spill] sm:$0xff] }
 0x168   : > { %19776 = vmatprep.mubr.msk.f32.mxu0 %vm1287_vm1, %v24417_v39  ;;  %v1108_v39 = vrot.slane %v30806_v62, 1  ;;  %30807 = vst [vmem:[#allocation215_spill] sm:$0xff] %v24647_v59  ;;  %v30821_v62 = vrot.slane %v30820_v42, 7  ;;  %v30825_v42 = vld [vmem:[#allocation81_spill] sm:$0xff] }
 0x169   : > { %19037 = vmatmul.mubr.msk.f32.gmra.mrb[44].mxu1 %vm1287_vm1, %v24626_v19 }
 0x16a   : > { %19039 = vmatprep.mubr.msk.f32.mxu1 %vm1287_vm1, %v24630_v50  ;;  %v24664_v20 = vsel %vm1003_vm4, %v1106_v11, %v1108_v39 }
 0x16b   : > { %19777 = vmatmul.mubr.msk.f32.gmra.mrb[20].mxu0 %vm1287_vm1, %v24434_v13  ;;  %v24653_v13 = vsel %vm586_vm2, %v30810_v52, 0.0  ;;  %30812 = vst [vmem:[#allocation216_spill] sm:$0xff] %v24664_v20  ;;  %v24668_v52 = vsel %vm1003_vm4, %v1108_v39, %v1110_v37  ;;  %v30817_v39 = vld [vmem:[#allocation79_spill] sm:$0xff] }
 0x16c   : > { %19779 = vmatprep.mubr.msk.f32.mxu0 %vm1287_vm1, %v24438_v22  ;;  %30811 = vst [vmem:[#allocation72_spill] sm:$0xff] %v24653_v13  ;;  %v1112_v10 = vrot.slane %v24653_v13, 1  ;;  %30813 = vst [vmem:[#allocation217_spill] sm:$0xff] %v24668_v52  ;;  %v30815_v22 = vld [vmem:[#allocation78_spill] sm:$0xff]  ;;  %v30819_v13 = vld [vmem:[#allocation80_spill] sm:$0xff] }
 0x16d   : > { %19040 = vmatmul.mubr.msk.f32.gmra.mrb[46].mxu1 %vm1287_vm1, %v24643_v26  ;;  %v1115_v16 = vrot.slane %v30815_v22, 1  ;;  %v1119_v22 = vrot.slane %v30819_v13, 1 }
 0x16e   : > { %19042 = vmatprep.mubr.msk.f32.mxu1 %vm1287_vm1, %v24647_v59  ;;  %v24681_v11 = vsel %vm1003_vm4, %v1110_v37, %v1112_v10 }
 0x16f   : > { %19780 = vmatmul.mubr.msk.f32.gmra.mrb[22].mxu0 %vm1287_vm1, %v24453_v6  ;;  %30816 = vst [vmem:[#allocation218_spill] sm:$0xff] %v24681_v11  ;;  %v24685_v6 = vsel %vm1003_vm4, %v1114_v56, %v1115_v16  ;;  %v1123_v56 = vrot.slane %v30825_v42, 1  ;;  %v30831_v42 = vld [vmem:[#allocation82_spill] sm:$0xff] }
 0x170   : > { %19782 = vmatprep.mubr.msk.f32.mxu0 %vm1287_vm1, %v24457_v48  ;;  %v1117_v48 = vrot.slane %v30817_v39, 1  ;;  %30818 = vst [vmem:[#allocation219_spill] sm:$0xff] %v24685_v6  ;;  %v30832_v39 = vrot.slane %v30831_v42, 7  ;;  %v30836_v42 = vld [vmem:[#allocation86_spill] sm:$0xff] }
 0x171   : > { %19043 = vmatmul.mubr.msk.f32.gmra.mrb[48].mxu1 %vm1287_vm1, %v24664_v20 }
 0x172   : > { %19045 = vmatprep.mubr.msk.f32.mxu1 %vm1287_vm1, %v24668_v52  ;;  %v24702_v37 = vsel %vm1003_vm4, %v1115_v16, %v1117_v48 }
 0x173   : > { %19783 = vmatmul.mubr.msk.f32.gmra.mrb[24].mxu0 %vm1287_vm1, %v24474_v45  ;;  %v24691_v45 = vsel %vm586_vm2, %v30821_v62, 0.0  ;;  %30823 = vst [vmem:[#allocation220_spill] sm:$0xff] %v24702_v37  ;;  %v24706_v62 = vsel %vm1003_vm4, %v1117_v48, %v1119_v22  ;;  %v30828_v48 = vld [vmem:[#allocation84_spill] sm:$0xff] }
 0x174   : > { %19785 = vmatprep.mubr.msk.f32.mxu0 %vm1287_vm1, %v24478_v7  ;;  %30822 = vst [vmem:[#allocation77_spill] sm:$0xff] %v24691_v45  ;;  %v1121_v10 = vrot.slane %v24691_v45, 1  ;;  %30824 = vst [vmem:[#allocation221_spill] sm:$0xff] %v24706_v62  ;;  %v30826_v7 = vld [vmem:[#allocation83_spill] sm:$0xff]  ;;  %v30830_v45 = vld [vmem:[#allocation85_spill] sm:$0xff] }
 0x175   : > { %19046 = vmatmul.mubr.msk.f32.gmra.mrb[50].mxu1 %vm1287_vm1, %v24681_v11  ;;  %v1124_v13 = vrot.slane %v30826_v7, 1  ;;  %v1128_v7 = vrot.slane %v30830_v45, 1 }
 0x176   : > { %19048 = vmatprep.mubr.msk.f32.mxu1 %vm1287_vm1, %v24685_v6  ;;  %v24719_v16 = vsel %vm1003_vm4, %v1119_v22, %v1121_v10 }
 0x177   : > { %19786 = vmatmul.mubr.msk.f32.gmra.mrb[26].mxu0 %vm1287_vm1, %v24491_v30  ;;  %30827 = vst [vmem:[#allocation222_spill] sm:$0xff] %v24719_v16  ;;  %v24723_v30 = vsel %vm1003_vm4, %v1123_v56, %v1124_v13  ;;  %v1132_v56 = vrot.slane %v30836_v42, 1  ;;  %v30842_v42 = vld [vmem:[#allocation87_spill] sm:$0xff] }
 0x178   : > { %19788 = vmatprep.mubr.msk.f32.mxu0 %vm1287_vm1, %v24495_v18  ;;  %v1126_v18 = vrot.slane %v30828_v48, 1  ;;  %30829 = vst [vmem:[#allocation223_spill] sm:$0xff] %v24723_v30  ;;  %v30843_v48 = vrot.slane %v30842_v42, 7  ;;  %v30847_v42 = vld [vmem:[#allocation91_spill] sm:$0xff] }
 0x179   : > { %19049 = vmatmul.mubr.msk.f32.gmra.mrb[52].mxu1 %vm1287_vm1, %v24702_v37 }
 0x17a   : > { %19051 = vmatprep.mubr.msk.f32.mxu1 %vm1287_vm1, %v24706_v62  ;;  %v24740_v22 = vsel %vm1003_vm4, %v1124_v13, %v1126_v18 }
 0x17b   : > { %19789 = vmatmul.mubr.msk.f32.gmra.mrb[28].mxu0 %vm1287_vm1, %v24512_v27  ;;  %v24729_v27 = vsel %vm586_vm2, %v30832_v39, 0.0  ;;  %30834 = vst [vmem:[#allocation224_spill] sm:$0xff] %v24740_v22  ;;  %v24744_v39 = vsel %vm1003_vm4, %v1126_v18, %v1128_v7  ;;  %v30839_v18 = vld [vmem:[#allocation89_spill] sm:$0xff] }
 0x17c   : > { %19791 = vmatprep.mubr.msk.f32.mxu0 %vm1287_vm1, %v24516_v54  ;;  %30833 = vst [vmem:[#allocation82_spill] sm:$0xff] %v24729_v27  ;;  %v1130_v10 = vrot.slane %v24729_v27, 1  ;;  %30835 = vst [vmem:[#allocation225_spill] sm:$0xff] %v24744_v39  ;;  %v30837_v54 = vld [vmem:[#allocation88_spill] sm:$0xff]  ;;  %v30841_v27 = vld [vmem:[#allocation90_spill] sm:$0xff] }
 0x17d   : > { %19052 = vmatmul.mubr.msk.f32.gmra.mrb[54].mxu1 %vm1287_vm1, %v24719_v16  ;;  %v1133_v45 = vrot.slane %v30837_v54, 1  ;;  %v1137_v54 = vrot.slane %v30841_v27, 1 }
 0x17e   : > { %19054 = vmatprep.mubr.msk.f32.mxu1 %vm1287_vm1, %v24723_v30  ;;  %v24757_v13 = vsel %vm1003_vm4, %v1128_v7, %v1130_v10 }
 0x17f   : > { %19792 = vmatmul.mubr.msk.f32.gmra.mrb[30].mxu0 %vm1287_vm1, %v24529_v15  ;;  %30838 = vst [vmem:[#allocation226_spill] sm:$0xff] %v24757_v13  ;;  %v24761_v15 = vsel %vm1003_vm4, %v1132_v56, %v1133_v45  ;;  %v1141_v56 = vrot.slane %v30847_v42, 1  ;;  %v30853_v42 = vld [vmem:[#allocation92_spill] sm:$0xff] }
 0x180   : > { %19794 = vmatprep.mubr.msk.f32.mxu0 %vm1287_vm1, %v24533_v29  ;;  %v1135_v29 = vrot.slane %v30839_v18, 1  ;;  %30840 = vst [vmem:[#allocation227_spill] sm:$0xff] %v24761_v15  ;;  %v30854_v18 = vrot.slane %v30853_v42, 7  ;;  %v30858_v42 = vld [vmem:[#allocation96_spill] sm:$0xff] }
 0x181   : > { %19055 = vmatmul.mubr.msk.f32.gmra.mrb[56].mxu1 %vm1287_vm1, %v24740_v22 }
 0x182   : > { %19057 = vmatprep.mubr.msk.f32.mxu1 %vm1287_vm1, %v24744_v39  ;;  %v24778_v7 = vsel %vm1003_vm4, %v1133_v45, %v1135_v29 }
 0x183   : > { %19795 = vmatmul.mubr.msk.f32.gmra.mrb[32].mxu0 %vm1287_vm1, %v24550_v23  ;;  %v24767_v23 = vsel %vm586_vm2, %v30843_v48, 0.0  ;;  %30845 = vst [vmem:[#allocation228_spill] sm:$0xff] %v24778_v7  ;;  %v24782_v48 = vsel %vm1003_vm4, %v1135_v29, %v1137_v54  ;;  %v30850_v29 = vld [vmem:[#allocation94_spill] sm:$0xff] }
 0x184   : > { %19797 = vmatprep.mubr.msk.f32.mxu0 %vm1287_vm1, %v24554_v57  ;;  %30844 = vst [vmem:[#allocation87_spill] sm:$0xff] %v24767_v23  ;;  %v1139_v10 = vrot.slane %v24767_v23, 1  ;;  %30846 = vst [vmem:[#allocation229_spill] sm:$0xff] %v24782_v48  ;;  %v30848_v57 = vld [vmem:[#allocation93_spill] sm:$0xff]  ;;  %v30852_v23 = vld [vmem:[#allocation95_spill] sm:$0xff] }
 0x185   : > { %19058 = vmatmul.mubr.msk.f32.gmra.mrb[58].mxu1 %vm1287_vm1, %v24757_v13  ;;  %v1142_v27 = vrot.slane %v30848_v57, 1  ;;  %v1146_v57 = vrot.slane %v30852_v23, 1 }
 0x186   : > { %19060 = vmatprep.mubr.msk.f32.mxu1 %vm1287_vm1, %v24761_v15  ;;  %v24795_v45 = vsel %vm1003_vm4, %v1137_v54, %v1139_v10 }
 0x187   : > { %19798 = vmatmul.mubr.msk.f32.gmra.mrb[34].mxu0 %vm1287_vm1, %v24567_v21  ;;  %30849 = vst [vmem:[#allocation230_spill] sm:$0xff] %v24795_v45  ;;  %v24799_v21 = vsel %vm1003_vm4, %v1141_v56, %v1142_v27  ;;  %v1150_v56 = vrot.slane %v30858_v42, 1  ;;  %v30864_v42 = vld [vmem:[#allocation97_spill] sm:$0xff] }
 0x188   : > { %19800 = vmatprep.mubr.msk.f32.mxu0 %vm1287_vm1, %v24571_v14  ;;  %v1144_v14 = vrot.slane %v30850_v29, 1  ;;  %30851 = vst [vmem:[#allocation231_spill] sm:$0xff] %v24799_v21  ;;  %v30865_v29 = vrot.slane %v30864_v42, 7  ;;  %v30869_v42 = vld [vmem:[#allocation101_spill] sm:$0xff] }
 0x189   : > { %19061 = vmatmul.mubr.msk.f32.gmra.mrb[60].mxu1 %vm1287_vm1, %v24778_v7 }
 0x18a   : > { %19063 = vmatprep.mubr.msk.f32.mxu1 %vm1287_vm1, %v24782_v48  ;;  %v24816_v54 = vsel %vm1003_vm4, %v1142_v27, %v1144_v14 }
 0x18b   : > { %19801 = vmatmul.mubr.msk.f32.gmra.mrb[36].mxu0 %vm1287_vm1, %v24588_v53  ;;  %v24805_v53 = vsel %vm586_vm2, %v30854_v18, 0.0  ;;  %30856 = vst [vmem:[#allocation232_spill] sm:$0xff] %v24816_v54  ;;  %v24820_v18 = vsel %vm1003_vm4, %v1144_v14, %v1146_v57  ;;  %v30861_v14 = vld [vmem:[#allocation99_spill] sm:$0xff] }
 0x18c   : > { %19803 = vmatprep.mubr.msk.f32.mxu0 %vm1287_vm1, %v24592_v28  ;;  %30855 = vst [vmem:[#allocation92_spill] sm:$0xff] %v24805_v53  ;;  %v1148_v10 = vrot.slane %v24805_v53, 1  ;;  %30857 = vst [vmem:[#allocation233_spill] sm:$0xff] %v24820_v18  ;;  %v30859_v28 = vld [vmem:[#allocation98_spill] sm:$0xff]  ;;  %v30863_v53 = vld [vmem:[#allocation100_spill] sm:$0xff] }
 0x18d   : > { %19064 = vmatmul.mubr.msk.f32.gmra.mrb[62].mxu1 %vm1287_vm1, %v24795_v45  ;;  %v1151_v23 = vrot.slane %v30859_v28, 1  ;;  %v1155_v28 = vrot.slane %v30863_v53, 1 }
 0x18e   : > { %19066 = vmatprep.mubr.msk.f32.mxu1 %vm1287_vm1, %v24799_v21  ;;  %v24833_v27 = vsel %vm1003_vm4, %v1146_v57, %v1148_v10 }
 0x18f   : > { %19804 = vmatmul.mubr.msk.f32.gmra.mrb[38].mxu0 %vm1287_vm1, %v24605_v49  ;;  %30860 = vst [vmem:[#allocation234_spill] sm:$0xff] %v24833_v27  ;;  %v24837_v49 = vsel %vm1003_vm4, %v1150_v56, %v1151_v23  ;;  %v1159_v56 = vrot.slane %v30869_v42, 1  ;;  %v30875_v42 = vld [vmem:[#allocation102_spill] sm:$0xff] }
 0x190   : > { %19806 = vmatprep.mubr.msk.f32.mxu0 %vm1287_vm1, %v24609_v58  ;;  %v1153_v58 = vrot.slane %v30861_v14, 1  ;;  %30862 = vst [vmem:[#allocation235_spill] sm:$0xff] %v24837_v49  ;;  %v30876_v14 = vrot.slane %v30875_v42, 7  ;;  %v30880_v42 = vld [vmem:[#allocation106_spill] sm:$0xff] }
 0x191   : > { %19067 = vmatmul.mubr.msk.f32.gmra.mrb[64].mxu1 %vm1287_vm1, %v24816_v54 }
 0x192   : > { %19069 = vmatprep.mubr.msk.f32.mxu1 %vm1287_vm1, %v24820_v18  ;;  %v24854_v57 = vsel %vm1003_vm4, %v1151_v23, %v1153_v58 }
 0x193   : > { %19807 = vmatmul.mubr.msk.f32.gmra.mrb[40].mxu0 %vm1287_vm1, %v24626_v19  ;;  %v24843_v19 = vsel %vm586_vm2, %v30865_v29, 0.0  ;;  %30867 = vst [vmem:[#allocation236_spill] sm:$0xff] %v24854_v57  ;;  %v24858_v29 = vsel %vm1003_vm4, %v1153_v58, %v1155_v28  ;;  %v30872_v58 = vld [vmem:[#allocation104_spill] sm:$0xff] }
 0x194   : > { %19809 = vmatprep.mubr.msk.f32.mxu0 %vm1287_vm1, %v24630_v50  ;;  %30866 = vst [vmem:[#allocation97_spill] sm:$0xff] %v24843_v19  ;;  %v1157_v10 = vrot.slane %v24843_v19, 1  ;;  %30868 = vst [vmem:[#allocation237_spill] sm:$0xff] %v24858_v29  ;;  %v30870_v50 = vld [vmem:[#allocation103_spill] sm:$0xff]  ;;  %v30874_v19 = vld [vmem:[#allocation105_spill] sm:$0xff] }
 0x195   : > { %19070 = vmatmul.mubr.msk.f32.gmra.mrb[66].mxu1 %vm1287_vm1, %v24833_v27  ;;  %v1160_v53 = vrot.slane %v30870_v50, 1  ;;  %v1164_v50 = vrot.slane %v30874_v19, 1 }
 0x196   : > { %19072 = vmatprep.mubr.msk.f32.mxu1 %vm1287_vm1, %v24837_v49  ;;  %v24871_v23 = vsel %vm1003_vm4, %v1155_v28, %v1157_v10 }
 0x197   : > { %19810 = vmatmul.mubr.msk.f32.gmra.mrb[42].mxu0 %vm1287_vm1, %v24643_v26  ;;  %30871 = vst [vmem:[#allocation238_spill] sm:$0xff] %v24871_v23  ;;  %v24875_v26 = vsel %vm1003_vm4, %v1159_v56, %v1160_v53  ;;  %v1168_v56 = vrot.slane %v30880_v42, 1  ;;  %v30886_v42 = vld [vmem:[#allocation107_spill] sm:$0xff] }
 0x198   : > { %19812 = vmatprep.mubr.msk.f32.mxu0 %vm1287_vm1, %v24647_v59  ;;  %v1162_v59 = vrot.slane %v30872_v58, 1  ;;  %30873 = vst [vmem:[#allocation239_spill] sm:$0xff] %v24875_v26  ;;  %v30887_v58 = vrot.slane %v30886_v42, 7  ;;  %v30891_v42 = vld [vmem:[#allocation111_spill] sm:$0xff] }
 0x199   : > { %19073 = vmatmul.mubr.msk.f32.gmra.mrb[68].mxu1 %vm1287_vm1, %v24854_v57 }
 0x19a   : > { %19075 = vmatprep.mubr.msk.f32.mxu1 %vm1287_vm1, %v24858_v29  ;;  %v24892_v28 = vsel %vm1003_vm4, %v1160_v53, %v1162_v59 }
 0x19b   : > { %19813 = vmatmul.mubr.msk.f32.gmra.mrb[44].mxu0 %vm1287_vm1, %v24664_v20  ;;  %v24881_v20 = vsel %vm586_vm2, %v30876_v14, 0.0  ;;  %30878 = vst [vmem:[#allocation240_spill] sm:$0xff] %v24892_v28  ;;  %v24896_v14 = vsel %vm1003_vm4, %v1162_v59, %v1164_v50  ;;  %v30883_v59 = vld [vmem:[#allocation109_spill] sm:$0xff] }
 0x19c   : > { %19815 = vmatprep.mubr.msk.f32.mxu0 %vm1287_vm1, %v24668_v52  ;;  %30877 = vst [vmem:[#allocation102_spill] sm:$0xff] %v24881_v20  ;;  %v1166_v10 = vrot.slane %v24881_v20, 1  ;;  %30879 = vst [vmem:[#allocation241_spill] sm:$0xff] %v24896_v14  ;;  %v30881_v52 = vld [vmem:[#allocation108_spill] sm:$0xff]  ;;  %v30885_v20 = vld [vmem:[#allocation110_spill] sm:$0xff] }
 0x19d   : > { %19076 = vmatmul.mubr.msk.f32.gmra.mrb[70].mxu1 %vm1287_vm1, %v24871_v23  ;;  %v1169_v19 = vrot.slane %v30881_v52, 1  ;;  %v1173_v52 = vrot.slane %v30885_v20, 1 }
 0x19e   : > { %19078 = vmatprep.mubr.msk.f32.mxu1 %vm1287_vm1, %v24875_v26  ;;  %v24909_v53 = vsel %vm1003_vm4, %v1164_v50, %v1166_v10 }
 0x19f   : > { %19816 = vmatmul.mubr.msk.f32.gmra.mrb[46].mxu0 %vm1287_vm1, %v24681_v11  ;;  %30882 = vst [vmem:[#allocation242_spill] sm:$0xff] %v24909_v53  ;;  %v24913_v11 = vsel %vm1003_vm4, %v1168_v56, %v1169_v19  ;;  %v1177_v56 = vrot.slane %v30891_v42, 1  ;;  %v30897_v42 = vld [vmem:[#allocation112_spill] sm:$0xff] }
 0x1a0   : > { %19818 = vmatprep.mubr.msk.f32.mxu0 %vm1287_vm1, %v24685_v6  ;;  %v1171_v6 = vrot.slane %v30883_v59, 1  ;;  %30884 = vst [vmem:[#allocation243_spill] sm:$0xff] %v24913_v11  ;;  %v30898_v59 = vrot.slane %v30897_v42, 7  ;;  %v30902_v42 = vld [vmem:[#allocation116_spill] sm:$0xff] }
 0x1a1   : > { %19079 = vmatmul.mubr.msk.f32.gmra.mrb[72].mxu1 %vm1287_vm1, %v24892_v28 }
 0x1a2   : > { %19081 = vmatprep.mubr.msk.f32.mxu1 %vm1287_vm1, %v24896_v14  ;;  %v24930_v50 = vsel %vm1003_vm4, %v1169_v19, %v1171_v6 }
 0x1a3   : > { %19819 = vmatmul.mubr.msk.f32.gmra.mrb[48].mxu0 %vm1287_vm1, %v24702_v37  ;;  %v24919_v37 = vsel %vm586_vm2, %v30887_v58, 0.0  ;;  %30889 = vst [vmem:[#allocation244_spill] sm:$0xff] %v24930_v50  ;;  %v24934_v58 = vsel %vm1003_vm4, %v1171_v6, %v1173_v52  ;;  %v30894_v6 = vld [vmem:[#allocation114_spill] sm:$0xff] }
 0x1a4   : > { %19821 = vmatprep.mubr.msk.f32.mxu0 %vm1287_vm1, %v24706_v62  ;;  %30888 = vst [vmem:[#allocation107_spill] sm:$0xff] %v24919_v37  ;;  %v1175_v10 = vrot.slane %v24919_v37, 1  ;;  %30890 = vst [vmem:[#allocation245_spill] sm:$0xff] %v24934_v58  ;;  %v30892_v62 = vld [vmem:[#allocation113_spill] sm:$0xff]  ;;  %v30896_v37 = vld [vmem:[#allocation115_spill] sm:$0xff] }
 0x1a5   : > { %19082 = vmatmul.mubr.msk.f32.gmra.mrb[74].mxu1 %vm1287_vm1, %v24909_v53  ;;  %v1178_v20 = vrot.slane %v30892_v62, 1  ;;  %v1182_v62 = vrot.slane %v30896_v37, 1 }
 0x1a6   : > { %19084 = vmatprep.mubr.msk.f32.mxu1 %vm1287_vm1, %v24913_v11  ;;  %v24947_v19 = vsel %vm1003_vm4, %v1173_v52, %v1175_v10 }
 0x1a7   : > { %19822 = vmatmul.mubr.msk.f32.gmra.mrb[50].mxu0 %vm1287_vm1, %v24719_v16  ;;  %30893 = vst [vmem:[#allocation246_spill] sm:$0xff] %v24947_v19  ;;  %v24951_v16 = vsel %vm1003_vm4, %v1177_v56, %v1178_v20  ;;  %v1186_v56 = vrot.slane %v30902_v42, 1  ;;  %v30908_v42 = vld [vmem:[#allocation117_spill] sm:$0xff] }
 0x1a8   : > { %19824 = vmatprep.mubr.msk.f32.mxu0 %vm1287_vm1, %v24723_v30  ;;  %v1180_v30 = vrot.slane %v30894_v6, 1  ;;  %30895 = vst [vmem:[#allocation247_spill] sm:$0xff] %v24951_v16  ;;  %v30909_v6 = vrot.slane %v30908_v42, 7  ;;  %v30913_v42 = vld [vmem:[#allocation121_spill] sm:$0xff] }
 0x1a9   : > { %19085 = vmatmul.mubr.msk.f32.gmra.mrb[76].mxu1 %vm1287_vm1, %v24930_v50 }
 0x1aa   : > { %19087 = vmatprep.mubr.msk.f32.mxu1 %vm1287_vm1, %v24934_v58  ;;  %v24968_v52 = vsel %vm1003_vm4, %v1178_v20, %v1180_v30 }
 0x1ab   : > { %19825 = vmatmul.mubr.msk.f32.gmra.mrb[52].mxu0 %vm1287_vm1, %v24740_v22  ;;  %v24957_v22 = vsel %vm586_vm2, %v30898_v59, 0.0  ;;  %30900 = vst [vmem:[#allocation248_spill] sm:$0xff] %v24968_v52  ;;  %v24972_v59 = vsel %vm1003_vm4, %v1180_v30, %v1182_v62  ;;  %v30905_v30 = vld [vmem:[#allocation119_spill] sm:$0xff] }
 0x1ac   : > { %19827 = vmatprep.mubr.msk.f32.mxu0 %vm1287_vm1, %v24744_v39  ;;  %30899 = vst [vmem:[#allocation112_spill] sm:$0xff] %v24957_v22  ;;  %v1184_v10 = vrot.slane %v24957_v22, 1  ;;  %30901 = vst [vmem:[#allocation249_spill] sm:$0xff] %v24972_v59  ;;  %v30903_v39 = vld [vmem:[#allocation118_spill] sm:$0xff]  ;;  %v30907_v22 = vld [vmem:[#allocation120_spill] sm:$0xff] }
 0x1ad   : > { %19088 = vmatmul.mubr.msk.f32.gmra.mrb[78].mxu1 %vm1287_vm1, %v24947_v19  ;;  %v1187_v37 = vrot.slane %v30903_v39, 1  ;;  %v1191_v39 = vrot.slane %v30907_v22, 1 }
 0x1ae   : > { %19090 = vmatprep.mubr.msk.f32.mxu1 %vm1287_vm1, %v24951_v16  ;;  %v24985_v20 = vsel %vm1003_vm4, %v1182_v62, %v1184_v10 }
 0x1af   : > { %19828 = vmatmul.mubr.msk.f32.gmra.mrb[54].mxu0 %vm1287_vm1, %v24757_v13  ;;  %30904 = vst [vmem:[#allocation250_spill] sm:$0xff] %v24985_v20  ;;  %v24989_v13 = vsel %vm1003_vm4, %v1186_v56, %v1187_v37  ;;  %v1195_v56 = vrot.slane %v30913_v42, 1  ;;  %v30919_v42 = vld [vmem:[#allocation122_spill] sm:$0xff] }
 0x1b0   : > { %19830 = vmatprep.mubr.msk.f32.mxu0 %vm1287_vm1, %v24761_v15  ;;  %v1189_v15 = vrot.slane %v30905_v30, 1  ;;  %30906 = vst [vmem:[#allocation251_spill] sm:$0xff] %v24989_v13  ;;  %v30920_v30 = vrot.slane %v30919_v42, 7 }
 0x1b1   : > { %19091 = vmatmul.mubr.msk.f32.gmra.mrb[80].mxu1 %vm1287_vm1, %v24968_v52 }
 0x1b2   : > { %19093 = vmatprep.mubr.msk.f32.mxu1 %vm1287_vm1, %v24972_v59  ;;  %v25006_v62 = vsel %vm1003_vm4, %v1187_v37, %v1189_v15 }
 0x1b3   : > { %19831 = vmatmul.mubr.msk.f32.gmra.mrb[56].mxu0 %vm1287_vm1, %v24778_v7  ;;  %v24995_v7 = vsel %vm586_vm2, %v30909_v6, 0.0  ;;  %30911 = vst [vmem:[#allocation252_spill] sm:$0xff] %v25006_v62  ;;  %v25010_v6 = vsel %vm1003_vm4, %v1189_v15, %v1191_v39  ;;  %v30916_v15 = vld [vmem:[#allocation124_spill] sm:$0xff] }
 0x1b4   : > { %19833 = vmatprep.mubr.msk.f32.mxu0 %vm1287_vm1, %v24782_v48  ;;  %30910 = vst [vmem:[#allocation117_spill] sm:$0xff] %v24995_v7  ;;  %v1193_v10 = vrot.slane %v24995_v7, 1  ;;  %30912 = vst [vmem:[#allocation253_spill] sm:$0xff] %v25010_v6  ;;  %v30914_v48 = vld [vmem:[#allocation123_spill] sm:$0xff]  ;;  %v30918_v7 = vld [vmem:[#allocation125_spill] sm:$0xff] }
 0x1b5   : > { %19094 = vmatmul.mubr.msk.f32.gmra.mrb[82].mxu1 %vm1287_vm1, %v24985_v20  ;;  %v1196_v22 = vrot.slane %v30914_v48, 1  ;;  %v1200_v48 = vrot.slane %v30918_v7, 1 }
 0x1b6   : > { %19096 = vmatprep.mubr.msk.f32.mxu1 %vm1287_vm1, %v24989_v13  ;;  %v25023_v37 = vsel %vm1003_vm4, %v1191_v39, %v1193_v10  ;;  %v25046_v39 = vld [vmem:[%s29815_s1 + $0x18] sm:$0x7] }
 0x1b7   : > { %19834 = vmatmul.mubr.msk.f32.gmra.mrb[58].mxu0 %vm1287_vm1, %v24795_v45  ;;  %30915 = vst [vmem:[#allocation254_spill] sm:$0xff] %v25023_v37  ;;  %v25027_v45 = vsel %vm1003_vm4, %v1195_v56, %v1196_v22  ;;  %20132 = vmatprep.subr.msk.mxu0 %vm1538_vm0, %v25046_v39  ;;  %v30924_v56 = vld [vmem:[#allocation126_spill] sm:$0xff] }
 0x1b8   : > { %19836 = vmatprep.mubr.msk.f32.mxu0 %vm1287_vm1, %v24799_v21  ;;  %v1198_v21 = vrot.slane %v30916_v15, 1  ;;  %30917 = vst [vmem:[#allocation255_spill] sm:$0xff] %v25027_v45  ;;  %v30930_v15 = vld [vmem:[#allocation127_spill] sm:$0xff] }
 0x1b9   : > { %19097 = vmatmul.mubr.msk.f32.gmra.mrb[84].mxu1 %vm1287_vm1, %v25006_v62  ;;  %v30931_v32 = vrot.slane %v30930_v15, 7  ;;  %v30935_v15 = vld [vmem:[#allocation131_spill] sm:$0xff] }
 0x1ba   : > { %19099 = vmatprep.mubr.msk.f32.mxu1 %vm1287_vm1, %v25010_v6  ;;  %v25055_v42 = vsel %vm1003_vm4, %v1198_v21, %v1200_v48 }
 0x1bb   : > { %19837 = vmatmul.mubr.msk.f32.gmra.mrb[60].mxu0 %vm1287_vm1, %v24816_v54  ;;  %v25033_v54 = vsel %vm586_vm2, %v30920_v30, 0.0  ;;  %v25049_v30 = vsel %vm1003_vm4, %v1196_v22, %v1198_v21  ;;  %30923 = vst [vmem:[#allocation257_spill] sm:$0xff] %v25055_v42  ;;  %v30927_v21 = vld [vmem:[#allocation129_spill] sm:$0xff] }
 0x1bc   : > { %19839 = vmatprep.mubr.msk.f32.mxu0 %vm1287_vm1, %v24820_v18  ;;  %30921 = vst [vmem:[#allocation122_spill] sm:$0xff] %v25033_v54  ;;  %30922 = vst [vmem:[#allocation256_spill] sm:$0xff] %v25049_v30  ;;  %v1202_v10 = vrot.slane %v25033_v54, 1  ;;  %v30925_v18 = vld [vmem:[#allocation128_spill] sm:$0xff]  ;;  %v1207_v54 = vrot.slane %v30927_v21, 1 }
 0x1bd   : > { %19100 = vmatmul.mubr.msk.f32.gmra.mrb[86].mxu1 %vm1287_vm1, %v25023_v37 }
 0x1be   : > { %19102 = vmatprep.mubr.msk.f32.mxu1 %vm1287_vm1, %v25027_v45  ;;  %v25068_v22 = vsel %vm1003_vm4, %v1200_v48, %v1202_v10  ;;  %v1213_v10 = vrot.slane %v30935_v15, 1  ;;  %v30941_v15 = vld [vmem:[#allocation132_spill] sm:$0xff] }
 0x1bf   : > { %19840 = vmatmul.mubr.msk.f32.gmra.mrb[62].mxu0 %vm1287_vm1, %v24833_v27  ;;  %v1204_v27 = vrot.slane %v30924_v56, 1  ;;  %30926 = vst [vmem:[#allocation258_spill] sm:$0xff] %v25068_v22  ;;  %v30942_v21 = vrot.slane %v30941_v15, 7  ;;  %v30946_v15 = vld [vmem:[#allocation136_spill] sm:$0xff] }
 0x1c0   : > { %19842 = vmatprep.mubr.msk.f32.mxu0 %vm1287_vm1, %v24837_v49  ;;  %v1205_v49 = vrot.slane %v30925_v18, 1  ;;  %v30929_v18 = vld [vmem:[#allocation130_spill] sm:$0xff] }
 0x1c1   : > { %19103 = vmatmul.mubr.msk.f32.gmra.mrb[88].mxu1 %vm1287_vm1, %v25049_v30  ;;  %v1209_v7 = vrot.slane %v30929_v18, 1 }
 0x1c2   : > { %19105 = vmatprep.mubr.msk.f32.mxu1 %vm1287_vm1, %v25055_v42  ;;  %v25072_v56 = vsel %vm1003_vm4, %v1204_v27, %v1205_v49  ;;  %v25089_v48 = vsel %vm1003_vm4, %v1205_v49, %v1207_v54 }
 0x1c3   : > { %19843 = vmatmul.mubr.msk.f32.gmra.mrb[64].mxu0 %vm1287_vm1, %v24854_v57  ;;  %30928 = vst [vmem:[#allocation259_spill] sm:$0xff] %v25072_v56  ;;  %v25078_v57 = vsel %vm586_vm2, %v30931_v32, 0.0  ;;  %30933 = vst [vmem:[#allocation260_spill] sm:$0xff] %v25089_v48  ;;  %v25093_v32 = vsel %vm1003_vm4, %v1207_v54, %v1209_v7  ;;  %v30938_v54 = vld [vmem:[#allocation134_spill] sm:$0xff] }
 0x1c4   : > { %19845 = vmatprep.mubr.msk.f32.mxu0 %vm1287_vm1, %v24858_v29  ;;  %30932 = vst [vmem:[#allocation127_spill] sm:$0xff] %v25078_v57  ;;  %v1211_v27 = vrot.slane %v25078_v57, 1  ;;  %30934 = vst [vmem:[#allocation261_spill] sm:$0xff] %v25093_v32  ;;  %v30936_v29 = vld [vmem:[#allocation133_spill] sm:$0xff]  ;;  %v30940_v57 = vld [vmem:[#allocation135_spill] sm:$0xff] }
 0x1c5   : > { %19106 = vmatmul.mubr.msk.f32.gmra.mrb[90].mxu1 %vm1287_vm1, %v25068_v22  ;;  %v1214_v18 = vrot.slane %v30936_v29, 1  ;;  %v1218_v29 = vrot.slane %v30940_v57, 1 }
 0x1c6   : > { %19108 = vmatprep.mubr.msk.f32.mxu1 %vm1287_vm1, %v25072_v56  ;;  %v25106_v49 = vsel %vm1003_vm4, %v1209_v7, %v1211_v27 }
 0x1c7   : > { %19846 = vmatmul.mubr.msk.f32.gmra.mrb[66].mxu0 %vm1287_vm1, %v24871_v23  ;;  %30937 = vst [vmem:[#allocation262_spill] sm:$0xff] %v25106_v49  ;;  %v25110_v23 = vsel %vm1003_vm4, %v1213_v10, %v1214_v18  ;;  %v1222_v10 = vrot.slane %v30946_v15, 1  ;;  %v30952_v15 = vld [vmem:[#allocation137_spill] sm:$0xff] }
 0x1c8   : > { %19848 = vmatprep.mubr.msk.f32.mxu0 %vm1287_vm1, %v24875_v26  ;;  %v1216_v26 = vrot.slane %v30938_v54, 1  ;;  %30939 = vst [vmem:[#allocation263_spill] sm:$0xff] %v25110_v23  ;;  %v30953_v54 = vrot.slane %v30952_v15, 7  ;;  %v30957_v15 = vld [vmem:[#allocation141_spill] sm:$0xff] }
 0x1c9   : > { %19109 = vmatmul.mubr.msk.f32.gmra.mrb[92].mxu1 %vm1287_vm1, %v25089_v48 }
 0x1ca   : > { %19111 = vmatprep.mubr.msk.f32.mxu1 %vm1287_vm1, %v25093_v32  ;;  %v25127_v7 = vsel %vm1003_vm4, %v1214_v18, %v1216_v26 }
 0x1cb   : > { %19849 = vmatmul.mubr.msk.f32.gmra.mrb[68].mxu0 %vm1287_vm1, %v24892_v28  ;;  %v25116_v28 = vsel %vm586_vm2, %v30942_v21, 0.0  ;;  %30944 = vst [vmem:[#allocation264_spill] sm:$0xff] %v25127_v7  ;;  %v25131_v21 = vsel %vm1003_vm4, %v1216_v26, %v1218_v29  ;;  %v30949_v26 = vld [vmem:[#allocation139_spill] sm:$0xff] }
 0x1cc   : > { %19851 = vmatprep.mubr.msk.f32.mxu0 %vm1287_vm1, %v24896_v14  ;;  %30943 = vst [vmem:[#allocation132_spill] sm:$0xff] %v25116_v28  ;;  %v1220_v27 = vrot.slane %v25116_v28, 1  ;;  %30945 = vst [vmem:[#allocation265_spill] sm:$0xff] %v25131_v21  ;;  %v30947_v14 = vld [vmem:[#allocation138_spill] sm:$0xff]  ;;  %v30951_v28 = vld [vmem:[#allocation140_spill] sm:$0xff] }
 0x1cd   : > { %19112 = vmatmul.mubr.msk.f32.gmra.mrb[94].mxu1 %vm1287_vm1, %v25106_v49  ;;  %v1223_v57 = vrot.slane %v30947_v14, 1  ;;  %v1227_v14 = vrot.slane %v30951_v28, 1 }
 0x1ce   : > { %19114 = vmatprep.mubr.msk.f32.mxu1 %vm1287_vm1, %v25110_v23  ;;  %v25144_v18 = vsel %vm1003_vm4, %v1218_v29, %v1220_v27 }
 0x1cf   : > { %19852 = vmatmul.mubr.msk.f32.gmra.mrb[70].mxu0 %vm1287_vm1, %v24909_v53  ;;  %30948 = vst [vmem:[#allocation266_spill] sm:$0xff] %v25144_v18  ;;  %v25148_v53 = vsel %vm1003_vm4, %v1222_v10, %v1223_v57  ;;  %v1231_v10 = vrot.slane %v30957_v15, 1  ;;  %v30963_v15 = vld [vmem:[#allocation142_spill] sm:$0xff] }
 0x1d0   : > { %19854 = vmatprep.mubr.msk.f32.mxu0 %vm1287_vm1, %v24913_v11  ;;  %v1225_v11 = vrot.slane %v30949_v26, 1  ;;  %30950 = vst [vmem:[#allocation267_spill] sm:$0xff] %v25148_v53  ;;  %v30964_v26 = vrot.slane %v30963_v15, 7  ;;  %v30968_v15 = vld [vmem:[#allocation146_spill] sm:$0xff] }
 0x1d1   : > { %19115 = vmatmul.mubr.msk.f32.gmra.mrb[96].mxu1 %vm1287_vm1, %v25127_v7 }
 0x1d2   : > { %19117 = vmatprep.mubr.msk.f32.mxu1 %vm1287_vm1, %v25131_v21  ;;  %v25165_v29 = vsel %vm1003_vm4, %v1223_v57, %v1225_v11 }
 0x1d3   : > { %19855 = vmatmul.mubr.msk.f32.gmra.mrb[72].mxu0 %vm1287_vm1, %v24930_v50  ;;  %v25154_v50 = vsel %vm586_vm2, %v30953_v54, 0.0  ;;  %30955 = vst [vmem:[#allocation268_spill] sm:$0xff] %v25165_v29  ;;  %v25169_v54 = vsel %vm1003_vm4, %v1225_v11, %v1227_v14  ;;  %v30960_v11 = vld [vmem:[#allocation144_spill] sm:$0xff] }
 0x1d4   : > { %19857 = vmatprep.mubr.msk.f32.mxu0 %vm1287_vm1, %v24934_v58  ;;  %30954 = vst [vmem:[#allocation137_spill] sm:$0xff] %v25154_v50  ;;  %v1229_v27 = vrot.slane %v25154_v50, 1  ;;  %30956 = vst [vmem:[#allocation269_spill] sm:$0xff] %v25169_v54  ;;  %v30958_v58 = vld [vmem:[#allocation143_spill] sm:$0xff]  ;;  %v30962_v50 = vld [vmem:[#allocation145_spill] sm:$0xff] }
 0x1d5   : > { %19118 = vmatmul.mubr.msk.f32.gmra.mrb[98].mxu1 %vm1287_vm1, %v25144_v18  ;;  %v1232_v28 = vrot.slane %v30958_v58, 1  ;;  %v1236_v58 = vrot.slane %v30962_v50, 1 }
 0x1d6   : > { %19120 = vmatprep.mubr.msk.f32.mxu1 %vm1287_vm1, %v25148_v53  ;;  %v25182_v57 = vsel %vm1003_vm4, %v1227_v14, %v1229_v27 }
 0x1d7   : > { %19858 = vmatmul.mubr.msk.f32.gmra.mrb[74].mxu0 %vm1287_vm1, %v24947_v19  ;;  %30959 = vst [vmem:[#allocation270_spill] sm:$0xff] %v25182_v57  ;;  %v25186_v19 = vsel %vm1003_vm4, %v1231_v10, %v1232_v28  ;;  %v1240_v10 = vrot.slane %v30968_v15, 1 }
 0x1d8   : > { %19860 = vmatprep.mubr.msk.f32.mxu0 %vm1287_vm1, %v24951_v16  ;;  %v1234_v16 = vrot.slane %v30960_v11, 1  ;;  %30961 = vst [vmem:[#allocation271_spill] sm:$0xff] %v25186_v19 }
 0x1d9   : > { %19121 = vmatmul.mubr.msk.f32.gmra.mrb[100].mxu1 %vm1287_vm1, %v25165_v29 }
 0x1da   : > { %19123 = vmatprep.mubr.msk.f32.mxu1 %vm1287_vm1, %v25169_v54  ;;  %v25203_v14 = vsel %vm1003_vm4, %v1232_v28, %v1234_v16 }
 0x1db   : > { %19861 = vmatmul.mubr.msk.f32.gmra.mrb[76].mxu0 %vm1287_vm1, %v24968_v52  ;;  %v25192_v52 = vsel %vm586_vm2, %v30964_v26, 0.0  ;;  %30966 = vst [vmem:[#allocation272_spill] sm:$0xff] %v25203_v14  ;;  %v25207_v26 = vsel %vm1003_vm4, %v1234_v16, %v1236_v58  ;;  %v1243_v16 = vrot.slane %v24121_v33, 1 }
 0x1dc   : > { %19863 = vmatprep.mubr.msk.f32.mxu0 %vm1287_vm1, %v24972_v59  ;;  %30965 = vst [vmem:[#allocation142_spill] sm:$0xff] %v25192_v52  ;;  %v1238_v27 = vrot.slane %v25192_v52, 1  ;;  %30967 = vst [vmem:[#allocation273_spill] sm:$0xff] %v25207_v26  ;;  %v30969_v59 = vld [vmem:[#allocation149_spill] sm:$0xff]  ;;  %v30972_v52 = vld [vmem:[#allocation147_spill] sm:$0xff] }
 0x1dd   : > { %19124 = vmatmul.mubr.msk.f32.gmra.mrb[102].mxu1 %vm1287_vm1, %v25182_v57  ;;  %v1241_v50 = vrot.slane %v30969_v59, 1  ;;  %v30973_v59 = vrot.slane %v30972_v52, 7 }
 0x1de   : > { %19126 = vmatprep.mubr.msk.f32.mxu1 %vm1287_vm1, %v25186_v19  ;;  %v25220_v28 = vsel %vm1003_vm4, %v1236_v58, %v1238_v27  ;;  %v30977_v27 = vld [vmem:[#allocation152_spill] sm:$0xff] }
 0x1df   : > { %19864 = vmatmul.mubr.msk.f32.gmra.mrb[78].mxu0 %vm1287_vm1, %v24985_v20  ;;  %30970 = vst [vmem:[#allocation274_spill] sm:$0xff] %v25220_v28  ;;  %v1245_v20 = vrot.slane %v24141_v3, 1  ;;  %v25241_v58 = vsel %vm1003_vm4, %v1241_v50, %v1243_v16 }
 0x1e0   : > { %19866 = vmatprep.mubr.msk.f32.mxu0 %vm1287_vm1, %v24989_v13  ;;  %v25224_v13 = vsel %vm1003_vm4, %v1240_v10, %v1241_v50  ;;  %30975 = vst [vmem:[#allocation276_spill] sm:$0xff] %v25241_v58  ;;  %v1249_v10 = vrot.slane %v30977_v27, 1 }
 0x1e1   : > { %19127 = vmatmul.mubr.msk.f32.gmra.mrb[104].mxu1 %vm1287_vm1, %v25203_v14  ;;  %30971 = vst [vmem:[#allocation275_spill] sm:$0xff] %v25224_v13 }
 0x1e2   : > { %19129 = vmatprep.mubr.msk.f32.mxu1 %vm1287_vm1, %v25207_v26 }
 0x1e3   : > { %19867 = vmatmul.mubr.msk.f32.gmra.mrb[80].mxu0 %vm1287_vm1, %v25006_v62  ;;  %v25230_v62 = vsel %vm586_vm2, %v30973_v59, 0.0  ;;  %v25245_v59 = vsel %vm1003_vm4, %v1243_v16, %v1245_v20  ;;  %v30980_v16 = vld [vmem:[#allocation155_spill] sm:$0xff] }
 0x1e4   : > { %19869 = vmatprep.mubr.msk.f32.mxu0 %vm1287_vm1, %v25010_v6  ;;  %30974 = vst [vmem:[#allocation147_spill] sm:$0xff] %v25230_v62  ;;  %v1247_v52 = vrot.slane %v25230_v62, 1  ;;  %30976 = vst [vmem:[#allocation277_spill] sm:$0xff] %v25245_v59  ;;  %v30978_v6 = vld [vmem:[#allocation154_spill] sm:$0xff]  ;;  %v1254_v62 = vrot.slane %v24192_v1, 1 }
 0x1e5   : > { %19130 = vmatmul.mubr.msk.f32.gmra.mrb[106].mxu1 %vm1287_vm1, %v25220_v28  ;;  %v1250_v3 = vrot.slane %v30978_v6, 1  ;;  %v30982_v6 = vld [vmem:[#allocation153_spill] sm:$0xff] }
 0x1e6   : > { %19132 = vmatprep.mubr.msk.f32.mxu1 %vm1287_vm1, %v25224_v13  ;;  %v25258_v50 = vsel %vm1003_vm4, %v1245_v20, %v1247_v52  ;;  %v30983_v27 = vrot.slane %v30982_v6, 7 }
 0x1e7   : > { %19870 = vmatmul.mubr.msk.f32.gmra.mrb[82].mxu0 %vm1287_vm1, %v25023_v37  ;;  %30979 = vst [vmem:[#allocation278_spill] sm:$0xff] %v25258_v50  ;;  %v25262_v37 = vsel %vm1003_vm4, %v1249_v10, %v1250_v3 }
 0x1e8   : > { %19872 = vmatprep.mubr.msk.f32.mxu0 %vm1287_vm1, %v25027_v45  ;;  %v1252_v45 = vrot.slane %v30980_v16, 1  ;;  %30981 = vst [vmem:[#allocation155_spill] sm:$0xff] %v25262_v37 }
 0x1e9   : > { %19133 = vmatmul.mubr.msk.f32.gmra.mrb[108].mxu1 %vm1287_vm1, %v25241_v58 }
 0x1ea   : > { %19135 = vmatprep.mubr.msk.f32.mxu1 %vm1287_vm1, %v25245_v59  ;;  %v25279_v20 = vsel %vm1003_vm4, %v1250_v3, %v1252_v45  ;;  %v25283_v52 = vsel %vm1003_vm4, %v1252_v45, %v1254_v62  ;;  %v30990_v45 = vld [vmem:[#allocation161_spill] sm:$0xff] }
 0x1eb   : > { %19873 = vmatmul.mubr.msk.f32.gmra.mrb[84].mxu0 %vm1287_vm1, %v25049_v30  ;;  %v25268_v30 = vsel %vm586_vm2, %v30983_v27, 0.0  ;;  %30985 = vst [vmem:[#allocation279_spill] sm:$0xff] %v25279_v20  ;;  %30986 = vst [vmem:[#allocation280_spill] sm:$0xff] %v25283_v52  ;;  %v30987_v27 = vld [vmem:[#allocation157_spill] sm:$0xff] }
 0x1ec   : > { %19875 = vmatprep.mubr.msk.f32.mxu0 %vm1287_vm1, %v25055_v42  ;;  %30984 = vst [vmem:[#allocation153_spill] sm:$0xff] %v25268_v30  ;;  %v1256_v6 = vrot.slane %v25268_v30, 1  ;;  %v1258_v10 = vrot.slane %v30987_v27, 1  ;;  %v30988_v42 = vld [vmem:[#allocation160_spill] sm:$0xff]  ;;  %v1263_v30 = vrot.slane %v24246_v34, 1 }
 0x1ed   : > { %19136 = vmatmul.mubr.msk.f32.gmra.mrb[110].mxu1 %vm1287_vm1, %v25258_v50  ;;  %v1259_v1 = vrot.slane %v30988_v42, 1  ;;  %v30992_v42 = vld [vmem:[#allocation158_spill] sm:$0xff] }
 0x1ee   : > { %19138 = vmatprep.mubr.msk.f32.mxu1 %vm1287_vm1, %v25262_v37  ;;  %v25296_v3 = vsel %vm1003_vm4, %v1254_v62, %v1256_v6  ;;  %v30993_v27 = vrot.slane %v30992_v42, 7 }
 0x1ef   : > { %19876 = vmatmul.mubr.msk.f32.gmra.mrb[86].mxu0 %vm1287_vm1, %v25068_v22  ;;  %30989 = vst [vmem:[#allocation281_spill] sm:$0xff] %v25296_v3  ;;  %v25300_v22 = vsel %vm1003_vm4, %v1258_v10, %v1259_v1 }
 0x1f0   : > { %19878 = vmatprep.mubr.msk.f32.mxu0 %vm1287_vm1, %v25072_v56  ;;  %v1261_v56 = vrot.slane %v30990_v45, 1  ;;  %30991 = vst [vmem:[#allocation282_spill] sm:$0xff] %v25300_v22 }
 0x1f1   : > { %19139 = vmatmul.mubr.msk.f32.gmra.mrb[112].mxu1 %vm1287_vm1, %v25279_v20 }
 0x1f2   : > { %19141 = vmatprep.mubr.msk.f32.mxu1 %vm1287_vm1, %v25283_v52  ;;  %v25317_v62 = vsel %vm1003_vm4, %v1259_v1, %v1261_v56  ;;  %v25321_v6 = vsel %vm1003_vm4, %v1261_v56, %v1263_v30  ;;  %v31000_v56 = vld [vmem:[#allocation170_spill] sm:$0xff] }
 0x1f3   : > { %19879 = vmatmul.mubr.msk.f32.gmra.mrb[88].mxu0 %vm1287_vm1, %v25089_v48  ;;  %v25306_v48 = vsel %vm586_vm2, %v30993_v27, 0.0  ;;  %30995 = vst [vmem:[#allocation283_spill] sm:$0xff] %v25317_v62  ;;  %30996 = vst [vmem:[#allocation284_spill] sm:$0xff] %v25321_v6  ;;  %v30997_v27 = vld [vmem:[#allocation165_spill] sm:$0xff] }
 0x1f4   : > { %19881 = vmatprep.mubr.msk.f32.mxu0 %vm1287_vm1, %v25093_v32  ;;  %30994 = vst [vmem:[#allocation158_spill] sm:$0xff] %v25306_v48  ;;  %v1265_v42 = vrot.slane %v25306_v48, 1  ;;  %v1267_v10 = vrot.slane %v30997_v27, 1  ;;  %v30998_v32 = vld [vmem:[#allocation169_spill] sm:$0xff]  ;;  %v31003_v27 = vld [vmem:[#allocation166_spill] sm:$0xff] }
 0x1f5   : > { %19142 = vmatmul.mubr.msk.f32.gmra.mrb[114].mxu1 %vm1287_vm1, %v25296_v3  ;;  %v1268_v34 = vrot.slane %v30998_v32, 1  ;;  %v31002_v48 = vld [vmem:[#allocation173_spill] sm:$0xff]  ;;  %v31004_v45 = vrot.slane %v31003_v27, 7  ;;  %v31008_v27 = vld [vmem:[#allocation174_spill] sm:$0xff] }
 0x1f6   : > { %19144 = vmatprep.mubr.msk.f32.mxu1 %vm1287_vm1, %v25300_v22  ;;  %v25334_v1 = vsel %vm1003_vm4, %v1263_v30, %v1265_v42  ;;  %v1272_v32 = vrot.slane %v31002_v48, 1 }
 0x1f7   : > { %19882 = vmatmul.mubr.msk.f32.gmra.mrb[90].mxu0 %vm1287_vm1, %v25106_v49  ;;  %30999 = vst [vmem:[#allocation285_spill] sm:$0xff] %v25334_v1  ;;  %v25338_v49 = vsel %vm1003_vm4, %v1267_v10, %v1268_v34  ;;  %v1276_v10 = vrot.slane %v31008_v27, 1 }
 0x1f8   : > { %19884 = vmatprep.mubr.msk.f32.mxu0 %vm1287_vm1, %v25110_v23  ;;  %v1270_v23 = vrot.slane %v31000_v56, 1  ;;  %31001 = vst [vmem:[#allocation170_spill] sm:$0xff] %v25338_v49 }
 0x1f9   : > { %19145 = vmatmul.mubr.msk.f32.gmra.mrb[116].mxu1 %vm1287_vm1, %v25317_v62 }
 0x1fa   : > { %19147 = vmatprep.mubr.msk.f32.mxu1 %vm1287_vm1, %v25321_v6  ;;  %v25355_v30 = vsel %vm1003_vm4, %v1268_v34, %v1270_v23 }
 0x1fb   : > { %19885 = vmatmul.mubr.msk.f32.gmra.mrb[92].mxu0 %vm1287_vm1, %v25127_v7  ;;  %v25344_v7 = vsel %vm586_vm2, %v31004_v45, 0.0  ;;  %31006 = vst [vmem:[#allocation286_spill] sm:$0xff] %v25355_v30  ;;  %v25359_v45 = vsel %vm1003_vm4, %v1270_v23, %v1272_v32  ;;  %v1279_v23 = vrot.slane %v24330_v41, 1 }
 0x1fc   : > { %19887 = vmatprep.mubr.msk.f32.mxu0 %vm1287_vm1, %v25131_v21  ;;  %31005 = vst [vmem:[#allocation166_spill] sm:$0xff] %v25344_v7  ;;  %v1274_v42 = vrot.slane %v25344_v7, 1  ;;  %31007 = vst [vmem:[#allocation287_spill] sm:$0xff] %v25359_v45  ;;  %v31009_v21 = vld [vmem:[#allocation178_spill] sm:$0xff]  ;;  %v31012_v7 = vld [vmem:[#allocation175_spill] sm:$0xff] }
 0x1fd   : > { %19148 = vmatmul.mubr.msk.f32.gmra.mrb[118].mxu1 %vm1287_vm1, %v25334_v1  ;;  %v1277_v48 = vrot.slane %v31009_v21, 1  ;;  %v31013_v21 = vrot.slane %v31012_v7, 7 }
 0x1fe   : > { %19150 = vmatprep.mubr.msk.f32.mxu1 %vm1287_vm1, %v25338_v49  ;;  %v25372_v34 = vsel %vm1003_vm4, %v1272_v32, %v1274_v42  ;;  %v939_v42 = vld [vmem:[%s29815_s1] sm:$0x7] }
 0x1ff   : > { %19888 = vmatmul.mubr.msk.f32.gmra.mrb[94].mxu0 %vm1287_vm1, %v25144_v18  ;;  %31010 = vst [vmem:[#allocation174_spill] sm:$0xff] %v25372_v34  ;;  %v1281_v18 = vrot.slane %v24354_v36, 1  ;;  %v25393_v32 = vsel %vm1003_vm4, %v1277_v48, %v1279_v23  ;;  %19162 = vmatprep.subr.msk.mxu1 %vm1538_vm0, %v939_v42 }
 0x200   : > { %19890 = vmatprep.mubr.msk.f32.mxu0 %vm1287_vm1, %v25148_v53  ;;  %v25376_v53 = vsel %vm1003_vm4, %v1276_v10, %v1277_v48  ;;  %31014 = vst [vmem:[#allocation175_spill] sm:$0xff] %v25393_v32  ;;  %v31017_v10 = vmov 0.0   ;;  %19163 = vmatpush3.msk.msra.mxu1 %vm1538_vm0, %v939_v42  ;;  %v31020_v42 = vld [vmem:[#allocation11_spill] sm:$0xff] }
 0x201   : > { %19151 = vmatmul.mubr.msk.f32.gmra.mrb[120].mxu1 %vm1287_vm1, %v25355_v30  ;;  %31011 = vst [vmem:[#allocation288_spill] sm:$0xff] %v25376_v53 }
 0x202   : > { %19153 = vmatprep.mubr.msk.f32.mxu1 %vm1287_vm1, %v25359_v45 }
 0x203   : > { %19891 = vmatmul.mubr.msk.f32.gmra.mrb[96].mxu0 %vm1287_vm1, %v25165_v29  ;;  %v25382_v29 = vsel %vm586_vm2, %v31013_v21, 0.0  ;;  %v25397_v21 = vsel %vm1003_vm4, %v1279_v23, %v1281_v18  ;;  %v31018_v23 = vld [vmem:[#allocation10_spill] sm:$0xff] }
 0x204   : > { %19893 = vmatprep.mubr.msk.f32.mxu0 %vm1287_vm1, %v25169_v54  ;;  %v1283_v7 = vrot.slane %v25382_v29, 1  ;;  %31015 = vst [vmem:[#allocation289_spill] sm:$0xff] %v25397_v21 }
 0x205   : > { %19154 = vmatmul.mubr.msk.f32.gmra.mrb[122].mxu1 %vm1287_vm1, %v25372_v34 }
 0x206   : > { %19156 = vmatprep.mubr.msk.f32.mxu1 %vm1287_vm1, %v25376_v53  ;;  %v25408_v48 = vsel %vm1003_vm4, %v1281_v18, %v1283_v7  ;;  %v23039_v18 = vld [vmem:[%s29815_s1 + $0x8] sm:$0x7] }
 0x207   : > { %19894 = vmatmul.mubr.msk.f32.gmra.mrb[98].mxu0 %vm1287_vm1, %v25182_v57  ;;  %31016 = vst [vmem:[#allocation290_spill] sm:$0xff] %v25408_v48  ;;  %21616 = vmatprep.subr.msk.mxu1 %vm1538_vm0, %v23039_v18  ;;  %v31019_v7 = vld [vmem:[#allocation9_spill] sm:$0xff]  ;;  %v31067_v57 = vld [vmem:[#allocation66_spill] sm:$0xff] }
 0x208   : > { %19896 = vmatprep.mubr.msk.f32.mxu0 %vm1287_vm1, %v25186_v19  ;;  %v31066_v19 = vld [vmem:[#allocation65_spill] sm:$0xff] }
 0x209   : > { %19157 = vmatmul.mubr.msk.f32.gmra.mrb[124].mxu1 %vm1287_vm1, %v25393_v32 }
 0x20a   : > { %19159 = vmatprep.mubr.msk.f32.mxu1 %vm1287_vm1, %v25397_v21 }
 0x20b   : > { %19897 = vmatmul.mubr.msk.f32.gmra.mrb[100].mxu0 %vm1287_vm1, %v25203_v14 }
 0x20c   : > { %19899 = vmatprep.mubr.msk.f32.mxu0 %vm1287_vm1, %v25207_v26 }
 0x20d   : > { %19160 = vmatmul.mubr.msk.f32.gmra.mrb[126].mxu1 %vm1287_vm1, %v25408_v48 }
 0x20e   : > { %19164 = vmatprep.mubr.f32.mxu1 %v31017_v10 }
 0x20f   : > { %19900 = vmatmul.mubr.msk.f32.gmra.mrb[102].mxu0 %vm1287_vm1, %v25220_v28 }
 0x210   : > { %19902 = vmatprep.mubr.msk.f32.mxu0 %vm1287_vm1, %v25224_v13  ;;  %v31060_v13 = vld [vmem:[#allocation40_spill] sm:$0xff] }
 0x211   : > { %19165 = vmatmul.mubr.f32.vlgmr.msra.gmra.mrb[0].mxu1 %v31017_v10 }
 0x212   : > { %19167 = vmatprep.mubr.f32.mxu1 %v31017_v10  ;;  %21617 = vmatpush3.msk.msra.mxu1 %vm1538_vm0, %v23039_v18  ;;  %v31021_v18 = vld [vmem:[#allocation12_spill] sm:$0xff] }
 0x213   : > { %19903 = vmatmul.mubr.msk.f32.gmra.mrb[104].mxu0 %vm1287_vm1, %v25241_v58  ;;  %v31045_v58 = vld [vmem:[#allocation16_spill] sm:$0xff] }
 0x214   : > { %19905 = vmatprep.mubr.msk.f32.mxu0 %vm1287_vm1, %v25245_v59  ;;  %v31035_v59 = vld [vmem:[#allocation35_spill] sm:$0xff] }
 0x215   : > { %19168 = vmatmul.mubr.f32.gmra.mrb[2].mxu1 %v31017_v10  ;;  %v3262_v10 = vrot.slane %v23512_v46, 2 }
 0x216   : > { %19170 = vmatprep.mubr.msk.f32.mxu1 %vm1287_vm1, %v31018_v23  ;;  %v31022_v23 = vld [vmem:[#allocation14_spill] sm:$0xff] }
 0x217   : > { %19906 = vmatmul.mubr.msk.f32.gmra.mrb[106].mxu0 %vm1287_vm1, %v25258_v50 }
 0x218   : > { %19908 = vmatprep.mubr.msk.f32.mxu0 %vm1287_vm1, %v25262_v37  ;;  %v31034_v37 = vrot.slane %v24360_v25, 7 }
 0x219   : > { %19171 = vmatmul.mubr.msk.f32.gmra.mrb[4].mxu1 %vm1287_vm1, %v31019_v7  ;;  %v31023_v7 = vld [vmem:[#allocation13_spill] sm:$0xff] }
 0x21a   : > { %19173 = vmatprep.mubr.msk.f32.mxu1 %vm1287_vm1, %v31020_v42  ;;  %v31024_v42 = vld [vmem:[#allocation18_spill] sm:$0xff]  ;;  %v25506_v50 = vsel %vm586_vm2, %v31034_v37, 0.0 }
 0x21b   : > { %19909 = vmatmul.mubr.msk.f32.gmra.mrb[108].mxu0 %vm1287_vm1, %v25279_v20  ;;  %v5430_v25 = vrot.slane %v25506_v50, 1 }
 0x21c   : > { %19911 = vmatprep.mubr.msk.f32.mxu0 %vm1287_vm1, %v25283_v52  ;;  %v31031_v52 = vld [vmem:[#allocation30_spill] sm:$0xff] }
 0x21d   : > { %19174 = vmatmul.mubr.msk.f32.gmra.mrb[6].mxu1 %vm1287_vm1, %v31021_v18  ;;  %v31025_v18 = vld [vmem:[#allocation20_spill] sm:$0xff] }
 0x21e   : > { %19176 = vmatprep.mubr.msk.f32.mxu1 %vm1287_vm1, %v31022_v23  ;;  %v31109_v23 = vld [vmem:[#allocation91_spill] sm:$0xff] }
 0x21f   : > { %19912 = vmatmul.mubr.msk.f32.gmra.mrb[110].mxu0 %vm1287_vm1, %v25296_v3  ;;  %v31026_v3 = vld [vmem:[#allocation23_spill] sm:$0xff] }
 0x220   : > { %19914 = vmatprep.mubr.msk.f32.mxu0 %vm1287_vm1, %v25300_v22  ;;  %v31027_v22 = vld [vmem:[#allocation22_spill] sm:$0xff] }
 0x221   : > { %19177 = vmatmul.mubr.msk.f32.gmra.mrb[8].mxu1 %vm1287_vm1, %v31023_v7  ;;  %v31105_v7 = vld [vmem:[#allocation89_spill] sm:$0xff] }
 0x222   : > { %19179 = vmatprep.mubr.msk.f32.mxu1 %vm1287_vm1, %v31024_v42  ;;  %v31104_v42 = vld [vmem:[#allocation88_spill] sm:$0xff] }
 0x223   : > { %19915 = vmatmul.mubr.msk.f32.gmra.mrb[112].mxu0 %vm1287_vm1, %v25317_v62  ;;  %v31028_v62 = vld [vmem:[#allocation26_spill] sm:$0xff] }
 0x224   : > { %19917 = vmatprep.mubr.msk.f32.mxu0 %vm1287_vm1, %v25321_v6  ;;  %v31029_v6 = vld [vmem:[#allocation27_spill] sm:$0xff] }
 0x225   : > { %19180 = vmatmul.mubr.msk.f32.gmra.mrb[10].mxu1 %vm1287_vm1, %v31025_v18 }
 0x226   : > { %19182 = vmatprep.mubr.msk.f32.mxu1 %vm1287_vm1, %v31026_v3  ;;  %v31100_v3 = vld [vmem:[#allocation86_spill] sm:$0xff] }
 0x227   : > { %19918 = vmatmul.mubr.msk.f32.gmra.mrb[114].mxu0 %vm1287_vm1, %v25334_v1  ;;  %v31030_v1 = vld [vmem:[#allocation31_spill] sm:$0xff] }
 0x228   : > { %19920 = vmatprep.mubr.msk.f32.mxu0 %vm1287_vm1, %v25338_v49  ;;  %v5424_v49 = vrot.slane %v24384_v24, 1 }
 0x229   : > { %19183 = vmatmul.mubr.msk.f32.gmra.mrb[12].mxu1 %vm1287_vm1, %v31027_v22  ;;  %v31097_v22 = vld [vmem:[#allocation84_spill] sm:$0xff] }
 0x22a   : > { %19185 = vmatprep.mubr.msk.f32.mxu1 %vm1287_vm1, %v31028_v62  ;;  %v31096_v62 = vld [vmem:[#allocation83_spill] sm:$0xff] }
 0x22b   : > { %19921 = vmatmul.mubr.msk.f32.gmra.mrb[116].mxu0 %vm1287_vm1, %v25355_v30  ;;  %v5423_v30 = vrot.slane %v24357_v47, 1 }
 0x22c   : > { %19923 = vmatprep.mubr.msk.f32.mxu0 %vm1287_vm1, %v25359_v45  ;;  %v31032_v45 = vld [vmem:[#allocation34_spill] sm:$0xff] }
 0x22d   : > { %19186 = vmatmul.mubr.msk.f32.gmra.mrb[14].mxu1 %vm1287_vm1, %v31029_v6  ;;  %v25501_v20 = vsel %vm1003_vm4, %v5423_v30, %v5424_v49  ;;  %v3290_v6 = vrot.slane %v23610_v9, 2 }
 0x22e   : > { %19188 = vmatprep.mubr.msk.f32.mxu1 %vm1287_vm1, %v31030_v1  ;;  %31033 = vst [vmem:[#allocation10_spill] sm:$0xff] %v25501_v20  ;;  %v31093_v1 = vld [vmem:[#allocation81_spill] sm:$0xff] }
 0x22f   : > { %19924 = vmatmul.mubr.msk.f32.gmra.mrb[118].mxu0 %vm1287_vm1, %v25372_v34  ;;  %v5426_v34 = vrot.slane %v24388_v55, 1 }
 0x230   : > { %19926 = vmatprep.mubr.msk.f32.mxu0 %vm1287_vm1, %v25376_v53  ;;  %v5428_v53 = vrot.slane %v24410_v51, 1 }
 0x231   : > { %19189 = vmatmul.mubr.msk.f32.gmra.mrb[16].mxu1 %vm1287_vm1, %v31031_v52  ;;  %v25517_v30 = vsel %vm1003_vm4, %v5424_v49, %v5426_v34  ;;  %v31089_v52 = vld [vmem:[#allocation79_spill] sm:$0xff] }
 0x232   : > { %19191 = vmatprep.mubr.msk.f32.mxu1 %vm1287_vm1, %v31032_v45  ;;  %31037 = vst [vmem:[#allocation9_spill] sm:$0xff] %v25517_v30  ;;  %v25521_v37 = vsel %vm1003_vm4, %v5426_v34, %v5428_v53  ;;  %v25532_v49 = vsel %vm1003_vm4, %v5428_v53, %v5430_v25  ;;  %v31042_v34 = vld [vmem:[#allocation45_spill] sm:$0xff]  ;;  %v31047_v25 = vld [vmem:[#allocation19_spill] sm:$0xff]  ;;  %v31088_v45 = vld [vmem:[#allocation78_spill] sm:$0xff] }
 0x233   : > { %19927 = vmatmul.mubr.msk.f32.gmra.mrb[120].mxu0 %vm1287_vm1, %v25393_v32  ;;  %v31036_v32 = vld [vmem:[#allocation41_spill] sm:$0xff]  ;;  %31038 = vst [vmem:[#allocation11_spill] sm:$0xff] %v25521_v37  ;;  %31040 = vst [vmem:[#allocation12_spill] sm:$0xff] %v25532_v49  ;;  %v3253_v26 = vrot.slane %v31042_v34, 2 }
 0x234   : > { %19929 = vmatprep.mubr.msk.f32.mxu0 %vm1287_vm1, %v25397_v21  ;;  %v31039_v21 = vld [vmem:[#allocation42_spill] sm:$0xff]  ;;  %v31046_v53 = vld [vmem:[#allocation17_spill] sm:$0xff] }
 0x235   : > { %19192 = vmatmul.mubr.msk.f32.gmra.mrb[18].mxu1 %vm1287_vm1, %v31035_v59  ;;  %v3281_v59 = vrot.slane %v23581_v38, 2 }
 0x236   : > { %19194 = vmatprep.mubr.msk.f32.mxu1 %vm1287_vm1, %v31036_v32 }
 0x237   : > { %19930 = vmatmul.mubr.msk.f32.gmra.mrb[122].mxu0 %vm1287_vm1, %v25408_v48  ;;  %v31043_v48 = vld [vmem:[#allocation15_spill] sm:$0xff] }
 0x238   : > { %19932 = vmatprep.mubr.msk.f32.mxu0 %vm1287_vm1, %v25501_v20  ;;  %v31041_v20 = vld [vmem:[#allocation44_spill] sm:$0xff] }
 0x239   : > { %19195 = vmatmul.mubr.msk.f32.gmra.mrb[20].mxu1 %vm1287_vm1, %v31039_v21 }
 0x23a   : > { %19197 = vmatprep.mubr.msk.f32.mxu1 %vm1287_vm1, %v23469_v61 }
 0x23b   : > { %19933 = vmatmul.mubr.msk.f32.gmra.mrb[124].mxu0 %vm1287_vm1, %v25517_v30  ;;  %v31044_v30 = vld [vmem:[#allocation46_spill] sm:$0xff] }
 0x23c   : > { %19935 = vmatprep.mubr.msk.f32.mxu0 %vm1287_vm1, %v25521_v37  ;;  %v3249_v37 = vrot.slane %v31041_v20, 2  ;;  %v3254_v14 = vrot.slane %v31044_v30, 2 }
 0x23d   : > { %19198 = vmatmul.mubr.msk.f32.gmra.mrb[22].mxu1 %vm1287_vm1, %v31041_v20  ;;  %v3272_v20 = vrot.slane %v23552_v60, 2 }
 0x23e   : > { %19200 = vmatprep.mubr.msk.f32.mxu1 %vm1287_vm1, %v31042_v34  ;;  %v31076_v34 = vld [vmem:[#allocation71_spill] sm:$0xff] }
 0x23f   : > { %19936 = vmatmul.mubr.msk.f32.gmra.mrb[126].mxu0 %vm1287_vm1, %v25532_v49  ;;  %v3247_v49 = vrot.slane %v23469_v61, 2  ;;  %v31080_v61 = vld [vmem:[#allocation73_spill] sm:$0xff] }
 0x240   : > { %19940 = vmatprep.mubr.msk.f32.mxu0 %vm1287_vm1, %v31043_v48  ;;  %v31048_v48 = vld [vmem:[#allocation21_spill] sm:$0xff] }
 0x241   : > { %19201 = vmatmul.mubr.msk.f32.gmra.mrb[24].mxu1 %vm1287_vm1, %v31044_v30  ;;  %v25620_v28 = vsel %vm3205_vm3, %v3247_v49, %v3249_v37  ;;  %v31072_v30 = vld [vmem:[#allocation69_spill] sm:$0xff] }
 0x242   : > { %19203 = vmatprep.mubr.msk.f32.mxu1 %vm1287_vm1, %v23498_v31  ;;  %31063 = vst [vmem:[#allocation17_spill] sm:$0xff] %v25620_v28 }
 0x243   : > { %19941 = vmatmul.mubr.msk.f32.vlgmr.msra.gmra.mrb[0].mxu0 %vm1287_vm1, %v31045_v58  ;;  %v31049_v58 = vld [vmem:[#allocation24_spill] sm:$0xff] }
 0x244   : > { %20133 = vmatpush3.msk.msra.mxu0 %vm1538_vm0, %v25046_v39  ;;  %19943 = vmatprep.mubr.msk.f32.mxu0 %vm1287_vm1, %v31046_v53  ;;  %v31050_v39 = vld [vmem:[#allocation25_spill] sm:$0xff]  ;;  %v31051_v53 = vld [vmem:[#allocation28_spill] sm:$0xff] }
 0x245   : > { %19204 = vmatmul.mubr.msk.f32.gmra.mrb[26].mxu1 %vm1287_vm1, %v23509_v43 }
 0x246   : > { %19206 = vmatprep.mubr.msk.f32.mxu1 %vm1287_vm1, %v23512_v46  ;;  %v31075_v46 = vld [vmem:[#allocation70_spill] sm:$0xff] }
 0x247   : > { %19944 = vmatmul.mubr.msk.f32.gmra.mrb[2].mxu0 %vm1287_vm1, %v31047_v25  ;;  %v31052_v25 = vld [vmem:[#allocation29_spill] sm:$0xff] }
 0x248   : > { %19946 = vmatprep.mubr.msk.f32.mxu0 %vm1287_vm1, %v31048_v48  ;;  %v3245_v48 = vrot.slane %v31039_v21, 2  ;;  %v31081_v21 = vld [vmem:[#allocation74_spill] sm:$0xff] }
 0x249   : > { %19207 = vmatmul.mubr.msk.f32.gmra.mrb[28].mxu1 %vm1287_vm1, %v23523_v0 }
 0x24a   : > { %19209 = vmatprep.mubr.msk.f32.mxu1 %vm1287_vm1, %v23527_v5 }
 0x24b   : > { %19947 = vmatmul.mubr.msk.f32.gmra.mrb[4].mxu0 %vm1287_vm1, %v31049_v58  ;;  %v31053_v58 = vld [vmem:[#allocation32_spill] sm:$0xff] }
 0x24c   : > { %19949 = vmatprep.mubr.msk.f32.mxu0 %vm1287_vm1, %v31050_v39  ;;  %v31054_v39 = vld [vmem:[#allocation33_spill] sm:$0xff] }
 0x24d   : > { %19210 = vmatmul.mubr.msk.f32.gmra.mrb[30].mxu1 %vm1287_vm1, %v23538_v35 }
 0x24e   : > { %19212 = vmatprep.mubr.msk.f32.mxu1 %vm1287_vm1, %v23541_v4 }
 0x24f   : > { %19950 = vmatmul.mubr.msk.f32.gmra.mrb[6].mxu0 %vm1287_vm1, %v31051_v53  ;;  %v31055_v53 = vld [vmem:[#allocation36_spill] sm:$0xff] }
 0x250   : > { %19952 = vmatprep.mubr.msk.f32.mxu0 %vm1287_vm1, %v31052_v25  ;;  %v31056_v25 = vld [vmem:[#allocation37_spill] sm:$0xff] }
 0x251   : > { %19213 = vmatmul.mubr.msk.f32.gmra.mrb[32].mxu1 %vm1287_vm1, %v23552_v60  ;;  %v3276_v60 = vrot.slane %v23567_v8, 2 }
 0x252   : > { %19215 = vmatprep.mubr.msk.f32.mxu1 %vm1287_vm1, %v23556_v12 }
 0x253   : > { %19953 = vmatmul.mubr.msk.f32.gmra.mrb[8].mxu0 %vm1287_vm1, %v31053_v58  ;;  %v3244_v58 = vrot.slane %v31036_v32, 2  ;;  %v31085_v32 = vld [vmem:[#allocation76_spill] sm:$0xff] }
 0x254   : > { %19955 = vmatprep.mubr.msk.f32.mxu0 %vm1287_vm1, %v31054_v39  ;;  %v31057_v39 = vld [vmem:[#allocation38_spill] sm:$0xff] }
 0x255   : > { %19216 = vmatmul.mubr.msk.f32.gmra.mrb[34].mxu1 %vm1287_vm1, %v23567_v8  ;;  %v3280_v8 = vrot.slane %v23570_v40, 2 }
 0x256   : > { %19218 = vmatprep.mubr.msk.f32.mxu1 %vm1287_vm1, %v23570_v40  ;;  %v31092_v40 = vld [vmem:[#allocation80_spill] sm:$0xff] }
 0x257   : > { %19956 = vmatmul.mubr.msk.f32.gmra.mrb[10].mxu0 %vm1287_vm1, %v31055_v53  ;;  %v31058_v53 = vld [vmem:[#allocation39_spill] sm:$0xff] }
 0x258   : > { %19958 = vmatprep.mubr.msk.f32.mxu0 %vm1287_vm1, %v31056_v25  ;;  %v25604_v25 = vsel %vm3205_vm3, %v3244_v58, %v3245_v48 }
 0x259   : > { %19219 = vmatmul.mubr.msk.f32.gmra.mrb[36].mxu1 %vm1287_vm1, %v23581_v38  ;;  %31059 = vst [vmem:[#allocation15_spill] sm:$0xff] %v25604_v25  ;;  %v3285_v38 = vrot.slane %v23596_v17, 2 }
 0x25a   : > { %19221 = vmatprep.mubr.msk.f32.mxu1 %vm1287_vm1, %v23585_v44 }
 0x25b   : > { %19959 = vmatmul.mubr.msk.f32.gmra.mrb[12].mxu0 %vm1287_vm1, %v31057_v39  ;;  %v31062_v39 = vld [vmem:[#allocation183_spill] sm:$0xff] }
 0x25c   : > { %19961 = vmatprep.mubr.msk.f32.mxu0 %vm1287_vm1, %v31058_v53  ;;  %v25616_v53 = vsel %vm3205_vm3, %v3245_v48, %v3247_v49  ;;  %v3251_v58 = vrot.slane %v31062_v39, 2  ;;  %v3256_v49 = vrot.slane %v23498_v31, 2  ;;  %v25637_v39 = vsel %vm3205_vm3, %v3253_v26, %v3254_v14  ;;  %v31071_v31 = vld [vmem:[#allocation68_spill] sm:$0xff] }
 0x25d   : > { %19222 = vmatmul.mubr.msk.f32.gmra.mrb[38].mxu1 %vm1287_vm1, %v23596_v17  ;;  %31061 = vst [vmem:[#allocation16_spill] sm:$0xff] %v25616_v53  ;;  %31065 = vst [vmem:[#allocation183_spill] sm:$0xff] %v25637_v39  ;;  %v3289_v17 = vrot.slane %v23599_v2, 2  ;;  %v3299_v18 = vrot.slane %v31071_v31, 2 }
 0x25e   : > { %19224 = vmatprep.mubr.msk.f32.mxu1 %vm1287_vm1, %v23599_v2  ;;  %v25633_v48 = vsel %vm3205_vm3, %v3249_v37, %v3251_v58  ;;  %v25649_v37 = vsel %vm3205_vm3, %v3254_v14, %v3256_v49  ;;  %v31069_v58 = vld [vmem:[#allocation188_spill] sm:$0xff]  ;;  %v31099_v2 = vld [vmem:[#allocation85_spill] sm:$0xff] }
 0x25f   : > { %19962 = vmatmul.mubr.msk.f32.gmra.mrb[14].mxu0 %vm1287_vm1, %v31060_v13  ;;  %31064 = vst [vmem:[#allocation19_spill] sm:$0xff] %v25633_v48  ;;  %v3258_v13 = vrot.slane %v23509_v43, 2  ;;  %31068 = vst [vmem:[#allocation291_spill] sm:$0xff] %v25649_v37  ;;  %v3260_v26 = vrot.slane %v31069_v58, 2  ;;  %v3263_v43 = vrot.slane %v23523_v0, 2  ;;  %v3267_v0 = vrot.slane %v23538_v35, 2 }
 0x260   : > { %19964 = vmatprep.mubr.msk.f32.mxu0 %vm1287_vm1, %v25604_v25  ;;  %v3271_v35 = vrot.slane %v23541_v4, 2  ;;  %v31084_v4 = vld [vmem:[#allocation75_spill] sm:$0xff] }
 0x261   : > { %19225 = vmatmul.mubr.msk.f32.gmra.mrb[40].mxu1 %vm1287_vm1, %v23610_v9  ;;  %v25653_v54 = vsel %vm3205_vm3, %v3256_v49, %v3258_v13  ;;  %v25666_v14 = vsel %vm3205_vm3, %v3258_v13, %v3260_v26  ;;  %v3265_v49 = vrot.slane %v23527_v5, 2  ;;  %v25670_v58 = vsel %vm3205_vm3, %v3262_v10, %v3263_v43  ;;  %v31078_v26 = vld [vmem:[#allocation193_spill] sm:$0xff] }
 0x262   : > { %19227 = vmatprep.mubr.msk.f32.mxu1 %vm1287_vm1, %v30784_v63  ;;  %31070 = vst [vmem:[#allocation188_spill] sm:$0xff] %v25653_v54  ;;  %31073 = vst [vmem:[#allocation292_spill] sm:$0xff] %v25666_v14  ;;  %v3269_v10 = vrot.slane %v31078_v26, 2  ;;  %v25703_v26 = vsel %vm3205_vm3, %v3271_v35, %v3272_v20  ;;  %v3294_v9 = vrot.slane %v31066_v19, 2 }
 0x263   : > { %19965 = vmatmul.mubr.msk.f32.gmra.mrb[16].mxu0 %vm1287_vm1, %v25616_v53  ;;  %31074 = vst [vmem:[#allocation293_spill] sm:$0xff] %v25670_v58  ;;  %v25682_v13 = vsel %vm3205_vm3, %v3263_v43, %v3265_v49  ;;  %v25686_v5 = vsel %vm3205_vm3, %v3265_v49, %v3267_v0  ;;  %v3274_v49 = vrot.slane %v23556_v12, 2  ;;  %31083 = vst [vmem:[#allocation296_spill] sm:$0xff] %v25703_v26 }
 0x264   : > { %19967 = vmatprep.mubr.msk.f32.mxu0 %vm1287_vm1, %v25620_v28  ;;  %31077 = vst [vmem:[#allocation294_spill] sm:$0xff] %v25682_v13  ;;  %31079 = vst [vmem:[#allocation193_spill] sm:$0xff] %v25686_v5  ;;  %v25699_v43 = vsel %vm3205_vm3, %v3267_v0, %v3269_v10  ;;  %v31086_v10 = vld [vmem:[#allocation198_spill] sm:$0xff] }
 0x265   : > { %19228 = vmatmul.mubr.msk.f32.gmra.mrb[42].mxu1 %vm1287_vm1, %v31066_v19  ;;  %31082 = vst [vmem:[#allocation295_spill] sm:$0xff] %v25699_v43  ;;  %v25715_v0 = vsel %vm3205_vm3, %v3272_v20, %v3274_v49  ;;  %v3278_v35 = vrot.slane %v31086_v10, 2  ;;  %v25719_v12 = vsel %vm3205_vm3, %v3274_v49, %v3276_v60  ;;  %v3283_v49 = vrot.slane %v23585_v44, 2 }
 0x266   : > { %19230 = vmatprep.mubr.msk.f32.mxu1 %vm1287_vm1, %v31067_v57  ;;  %31087 = vst [vmem:[#allocation198_spill] sm:$0xff] %v25719_v12  ;;  %v25736_v10 = vsel %vm3205_vm3, %v3280_v8, %v3281_v59  ;;  %v3298_v19 = vrot.slane %v31067_v57, 2  ;;  %v31108_v57 = vld [vmem:[#allocation90_spill] sm:$0xff] }
 0x267   : > { %19968 = vmatmul.mubr.msk.f32.gmra.mrb[18].mxu0 %vm1287_vm1, %v25633_v48  ;;  %v25732_v20 = vsel %vm3205_vm3, %v3276_v60, %v3278_v35  ;;  %31091 = vst [vmem:[#allocation298_spill] sm:$0xff] %v25736_v10  ;;  %v25748_v60 = vsel %vm3205_vm3, %v3281_v59, %v3283_v49  ;;  %v31094_v35 = vld [vmem:[#allocation203_spill] sm:$0xff]  ;;  %v25752_v44 = vsel %vm3205_vm3, %v3283_v49, %v3285_v38  ;;  %v3292_v49 = vrot.slane %v30784_v63, 2 }
 0x268   : > { %19970 = vmatprep.mubr.msk.f32.mxu0 %vm1287_vm1, %v25637_v39  ;;  %31090 = vst [vmem:[#allocation297_spill] sm:$0xff] %v25732_v20  ;;  %v3287_v8 = vrot.slane %v31094_v35, 2  ;;  %31095 = vst [vmem:[#allocation203_spill] sm:$0xff] %v25752_v44  ;;  %v25769_v35 = vsel %vm3205_vm3, %v3289_v17, %v3290_v6 }
 0x269   : > { %19231 = vmatmul.mubr.msk.f32.gmra.mrb[44].mxu1 %vm1287_vm1, %v31071_v31  ;;  %v25785_v63 = vsel %vm3205_vm3, %v3292_v49, %v3294_v9  ;;  %v3303_v31 = vrot.slane %v31075_v46, 2 }
 0x26a   : > { %19233 = vmatprep.mubr.msk.f32.mxu1 %vm1287_vm1, %v31072_v30  ;;  %v25765_v59 = vsel %vm3205_vm3, %v3285_v38, %v3287_v8  ;;  %v25781_v38 = vsel %vm3205_vm3, %v3290_v6, %v3292_v49  ;;  %v31102_v8 = vld [vmem:[#allocation62_spill] sm:$0xff]  ;;  %v3301_v49 = vrot.slane %v31072_v30, 2 }
 0x26b   : > { %19971 = vmatmul.mubr.msk.f32.gmra.mrb[20].mxu0 %vm1287_vm1, %v25649_v37  ;;  %31098 = vst [vmem:[#allocation299_spill] sm:$0xff] %v25765_v59  ;;  %31101 = vst [vmem:[#allocation300_spill] sm:$0xff] %v25781_v38  ;;  %v3296_v17 = vrot.slane %v31102_v8, 2  ;;  %v25802_v8 = vsel %vm3205_vm3, %v3298_v19, %v3299_v18 }
 0x26c   : > { %19973 = vmatprep.mubr.msk.f32.mxu0 %vm1287_vm1, %v25653_v54  ;;  %31103 = vst [vmem:[#allocation62_spill] sm:$0xff] %v25785_v63  ;;  %31107 = vst [vmem:[#allocation302_spill] sm:$0xff] %v25802_v8  ;;  %v25818_v30 = vsel %vm3205_vm3, %v3301_v49, %v3303_v31 }
 0x26d   : > { %19234 = vmatmul.mubr.msk.f32.gmra.mrb[46].mxu1 %vm1287_vm1, %v31075_v46  ;;  %v25798_v6 = vsel %vm3205_vm3, %v3294_v9, %v3296_v17  ;;  %v25814_v9 = vsel %vm3205_vm3, %v3299_v18, %v3301_v49  ;;  %v31111_v17 = vld [vmem:[#allocation67_spill] sm:$0xff]  ;;  %v3307_v46 = vrot.slane %v31076_v34, 2  ;;  %v3310_v49 = vrot.slane %v31081_v21, 2 }
 0x26e   : > { %19236 = vmatprep.mubr.msk.f32.mxu1 %vm1287_vm1, %v31076_v34  ;;  %31106 = vst [vmem:[#allocation301_spill] sm:$0xff] %v25798_v6  ;;  %31110 = vst [vmem:[#allocation303_spill] sm:$0xff] %v25814_v9  ;;  %v3305_v19 = vrot.slane %v31111_v17, 2  ;;  %v31117_v34 = vld [vmem:[#allocation95_spill] sm:$0xff] }
 0x26f   : > { %19974 = vmatmul.mubr.msk.f32.gmra.mrb[22].mxu0 %vm1287_vm1, %v25666_v14  ;;  %31112 = vst [vmem:[#allocation67_spill] sm:$0xff] %v25818_v30 }
 0x270   : > { %19976 = vmatprep.mubr.msk.f32.mxu0 %vm1287_vm1, %v25670_v58  ;;  %v25831_v18 = vsel %vm3205_vm3, %v3303_v31, %v3305_v19  ;;  %v31120_v19 = vld [vmem:[#allocation72_spill] sm:$0xff] }
 0x271   : > { %19237 = vmatmul.mubr.msk.f32.gmra.mrb[48].mxu1 %vm1287_vm1, %v31080_v61  ;;  %31115 = vst [vmem:[#allocation304_spill] sm:$0xff] %v25831_v18 }
 0x272   : > { %19239 = vmatprep.mubr.msk.f32.mxu1 %vm1287_vm1, %v31081_v21 }
 0x273   : > { %19977 = vmatmul.mubr.msk.f32.gmra.mrb[24].mxu0 %vm1287_vm1, %v25682_v13 }
 0x274   : > { %19979 = vmatprep.mubr.msk.f32.mxu0 %vm1287_vm1, %v25686_v5 }
 0x275   : > { %19240 = vmatmul.mubr.msk.f32.gmra.mrb[50].mxu1 %vm1287_vm1, %v31084_v4 }
 0x276   : > { %19242 = vmatprep.mubr.msk.f32.mxu1 %vm1287_vm1, %v31085_v32 }
 0x277   : > { %19980 = vmatmul.mubr.msk.f32.gmra.mrb[26].mxu0 %vm1287_vm1, %v25699_v43 }
 0x278   : > { %19982 = vmatprep.mubr.msk.f32.mxu0 %vm1287_vm1, %v25703_v26 }
 0x279   : > { %19243 = vmatmul.mubr.msk.f32.gmra.mrb[52].mxu1 %vm1287_vm1, %v31088_v45 }
 0x27a   : > { %19245 = vmatprep.mubr.msk.f32.mxu1 %vm1287_vm1, %v31089_v52 }
 0x27b   : > { %19983 = vmatmul.mubr.msk.f32.gmra.mrb[28].mxu0 %vm1287_vm1, %v25715_v0 }
 0x27c   : > { %19985 = vmatprep.mubr.msk.f32.mxu0 %vm1287_vm1, %v25719_v12 }
 0x27d   : > { %19246 = vmatmul.mubr.msk.f32.gmra.mrb[54].mxu1 %vm1287_vm1, %v31092_v40 }
 0x27e   : > { %19248 = vmatprep.mubr.msk.f32.mxu1 %vm1287_vm1, %v31093_v1 }
 0x27f   : > { %19986 = vmatmul.mubr.msk.f32.gmra.mrb[30].mxu0 %vm1287_vm1, %v25732_v20 }
 0x280   : > { %19988 = vmatprep.mubr.msk.f32.mxu0 %vm1287_vm1, %v25736_v10 }
 0x281   : > { %19249 = vmatmul.mubr.msk.f32.gmra.mrb[56].mxu1 %vm1287_vm1, %v31096_v62 }
 0x282   : > { %19251 = vmatprep.mubr.msk.f32.mxu1 %vm1287_vm1, %v31097_v22 }
 0x283   : > { %19989 = vmatmul.mubr.msk.f32.gmra.mrb[32].mxu0 %vm1287_vm1, %v25748_v60 }
 0x284   : > { %19991 = vmatprep.mubr.msk.f32.mxu0 %vm1287_vm1, %v25752_v44 }
 0x285   : > { %19252 = vmatmul.mubr.msk.f32.gmra.mrb[58].mxu1 %vm1287_vm1, %v31099_v2 }
 0x286   : > { %19254 = vmatprep.mubr.msk.f32.mxu1 %vm1287_vm1, %v31100_v3 }
 0x287   : > { %19992 = vmatmul.mubr.msk.f32.gmra.mrb[34].mxu0 %vm1287_vm1, %v25765_v59 }
 0x288   : > { %19994 = vmatprep.mubr.msk.f32.mxu0 %vm1287_vm1, %v25769_v35 }
 0x289   : > { %19255 = vmatmul.mubr.msk.f32.gmra.mrb[60].mxu1 %vm1287_vm1, %v31104_v42 }
 0x28a   : > { %19257 = vmatprep.mubr.msk.f32.mxu1 %vm1287_vm1, %v31105_v7 }
 0x28b   : > { %19995 = vmatmul.mubr.msk.f32.gmra.mrb[36].mxu0 %vm1287_vm1, %v25781_v38  ;;  %v31113_v38 = vld [vmem:[#allocation93_spill] sm:$0xff] }
 0x28c   : > { %19997 = vmatprep.mubr.msk.f32.mxu0 %vm1287_vm1, %v25785_v63  ;;  %v3308_v63 = vrot.slane %v31080_v61, 2  ;;  %v3312_v61 = vrot.slane %v31084_v4, 2  ;;  %v3316_v4 = vrot.slane %v31085_v32, 2  ;;  %v31126_v32 = vld [vmem:[#allocation100_spill] sm:$0xff] }
 0x28d   : > { %19258 = vmatmul.mubr.msk.f32.gmra.mrb[62].mxu1 %vm1287_vm1, %v31108_v57 }
 0x28e   : > { %19260 = vmatprep.mubr.msk.f32.mxu1 %vm1287_vm1, %v31109_v23  ;;  %v25835_v17 = vsel %vm3205_vm3, %v3307_v46, %v3308_v63  ;;  %v25847_v31 = vsel %vm3205_vm3, %v3308_v63, %v3310_v49  ;;  %v3314_v46 = vrot.slane %v31120_v19, 2  ;;  %v25851_v21 = vsel %vm3205_vm3, %v3310_v49, %v3312_v61 }
 0x28f   : > { %19998 = vmatmul.mubr.msk.f32.gmra.mrb[38].mxu0 %vm1287_vm1, %v25798_v6  ;;  %v31114_v6 = vld [vmem:[#allocation94_spill] sm:$0xff]  ;;  %31116 = vst [vmem:[#allocation305_spill] sm:$0xff] %v25835_v17  ;;  %31119 = vst [vmem:[#allocation306_spill] sm:$0xff] %v25847_v31  ;;  %v3319_v49 = vrot.slane %v31089_v52, 2 }
 0x290   : > { %20000 = vmatprep.mubr.msk.f32.mxu0 %vm1287_vm1, %v25802_v8  ;;  %31121 = vst [vmem:[#allocation72_spill] sm:$0xff] %v25851_v21  ;;  %v31122_v8 = vld [vmem:[#allocation98_spill] sm:$0xff]  ;;  %v25864_v63 = vsel %vm3205_vm3, %v3312_v61, %v3314_v46  ;;  %v31129_v46 = vld [vmem:[#allocation77_spill] sm:$0xff] }
 0x291   : > { %19261 = vmatmul.mubr.msk.f32.gmra.mrb[64].mxu1 %vm1287_vm1, %v31113_v38  ;;  %31124 = vst [vmem:[#allocation307_spill] sm:$0xff] %v25864_v63 }
 0x292   : > { %19263 = vmatprep.mubr.msk.f32.mxu1 %vm1287_vm1, %v31114_v6 }
 0x293   : > { %20001 = vmatmul.mubr.msk.f32.gmra.mrb[40].mxu0 %vm1287_vm1, %v25814_v9  ;;  %v31118_v9 = vld [vmem:[#allocation96_spill] sm:$0xff] }
 0x294   : > { %20003 = vmatprep.mubr.msk.f32.mxu0 %vm1287_vm1, %v25818_v30  ;;  %v3317_v30 = vrot.slane %v31088_v45, 2  ;;  %v3321_v45 = vrot.slane %v31092_v40, 2  ;;  %v3325_v40 = vrot.slane %v31093_v1, 2  ;;  %v31135_v1 = vld [vmem:[#allocation105_spill] sm:$0xff] }
 0x295   : > { %19264 = vmatmul.mubr.msk.f32.gmra.mrb[66].mxu1 %vm1287_vm1, %v31117_v34 }
 0x296   : > { %19266 = vmatprep.mubr.msk.f32.mxu1 %vm1287_vm1, %v31118_v9  ;;  %v25868_v19 = vsel %vm3205_vm3, %v3316_v4, %v3317_v30  ;;  %v25880_v61 = vsel %vm3205_vm3, %v3317_v30, %v3319_v49  ;;  %v3323_v4 = vrot.slane %v31129_v46, 2  ;;  %v25884_v52 = vsel %vm3205_vm3, %v3319_v49, %v3321_v45 }
 0x297   : > { %20004 = vmatmul.mubr.msk.f32.gmra.mrb[42].mxu0 %vm1287_vm1, %v25831_v18  ;;  %v31123_v18 = vld [vmem:[#allocation99_spill] sm:$0xff]  ;;  %31125 = vst [vmem:[#allocation308_spill] sm:$0xff] %v25868_v19  ;;  %31128 = vst [vmem:[#allocation309_spill] sm:$0xff] %v25880_v61  ;;  %v3328_v49 = vrot.slane %v31097_v22, 2 }
 0x298   : > { %20006 = vmatprep.mubr.msk.f32.mxu0 %vm1287_vm1, %v25835_v17  ;;  %31130 = vst [vmem:[#allocation77_spill] sm:$0xff] %v25884_v52  ;;  %v31131_v17 = vld [vmem:[#allocation103_spill] sm:$0xff]  ;;  %v25897_v30 = vsel %vm3205_vm3, %v3321_v45, %v3323_v4  ;;  %v31138_v4 = vld [vmem:[#allocation82_spill] sm:$0xff] }
 0x299   : > { %19267 = vmatmul.mubr.msk.f32.gmra.mrb[68].mxu1 %vm1287_vm1, %v31122_v8  ;;  %31133 = vst [vmem:[#allocation310_spill] sm:$0xff] %v25897_v30 }
 0x29a   : > { %19269 = vmatprep.mubr.msk.f32.mxu1 %vm1287_vm1, %v31123_v18 }
 0x29b   : > { %20007 = vmatmul.mubr.msk.f32.gmra.mrb[44].mxu0 %vm1287_vm1, %v25847_v31  ;;  %v31127_v31 = vld [vmem:[#allocation101_spill] sm:$0xff] }
 0x29c   : > { %20009 = vmatprep.mubr.msk.f32.mxu0 %vm1287_vm1, %v25851_v21  ;;  %v3326_v21 = vrot.slane %v31096_v62, 2  ;;  %v3330_v62 = vrot.slane %v31099_v2, 2  ;;  %v3334_v2 = vrot.slane %v31100_v3, 2  ;;  %v31144_v3 = vld [vmem:[#allocation110_spill] sm:$0xff] }
 0x29d   : > { %19270 = vmatmul.mubr.msk.f32.gmra.mrb[70].mxu1 %vm1287_vm1, %v31126_v32 }
 0x29e   : > { %19272 = vmatprep.mubr.msk.f32.mxu1 %vm1287_vm1, %v31127_v31  ;;  %v25901_v46 = vsel %vm3205_vm3, %v3325_v40, %v3326_v21  ;;  %v25913_v45 = vsel %vm3205_vm3, %v3326_v21, %v3328_v49  ;;  %v3332_v40 = vrot.slane %v31138_v4, 2  ;;  %v25917_v22 = vsel %vm3205_vm3, %v3328_v49, %v3330_v62 }
 0x29f   : > { %20010 = vmatmul.mubr.msk.f32.gmra.mrb[46].mxu0 %vm1287_vm1, %v25864_v63  ;;  %v31132_v63 = vld [vmem:[#allocation104_spill] sm:$0xff]  ;;  %31134 = vst [vmem:[#allocation311_spill] sm:$0xff] %v25901_v46  ;;  %31137 = vst [vmem:[#allocation312_spill] sm:$0xff] %v25913_v45  ;;  %v3337_v49 = vrot.slane %v31105_v7, 2 }
 0x2a0   : > { %20012 = vmatprep.mubr.msk.f32.mxu0 %vm1287_vm1, %v25868_v19  ;;  %31139 = vst [vmem:[#allocation82_spill] sm:$0xff] %v25917_v22  ;;  %v31140_v19 = vld [vmem:[#allocation108_spill] sm:$0xff]  ;;  %v25930_v21 = vsel %vm3205_vm3, %v3330_v62, %v3332_v40  ;;  %v31147_v40 = vld [vmem:[#allocation87_spill] sm:$0xff] }
 0x2a1   : > { %19273 = vmatmul.mubr.msk.f32.gmra.mrb[72].mxu1 %vm1287_vm1, %v31131_v17  ;;  %31142 = vst [vmem:[#allocation313_spill] sm:$0xff] %v25930_v21 }
 0x2a2   : > { %19275 = vmatprep.mubr.msk.f32.mxu1 %vm1287_vm1, %v31132_v63 }
 0x2a3   : > { %20013 = vmatmul.mubr.msk.f32.gmra.mrb[48].mxu0 %vm1287_vm1, %v25880_v61  ;;  %v31136_v61 = vld [vmem:[#allocation106_spill] sm:$0xff] }
 0x2a4   : > { %20015 = vmatprep.mubr.msk.f32.mxu0 %vm1287_vm1, %v25884_v52  ;;  %v3335_v52 = vrot.slane %v31104_v42, 2  ;;  %v3339_v42 = vrot.slane %v31108_v57, 2  ;;  %v3343_v57 = vrot.slane %v31109_v23, 2  ;;  %v31153_v23 = vld [vmem:[#allocation115_spill] sm:$0xff] }
 0x2a5   : > { %19276 = vmatmul.mubr.msk.f32.gmra.mrb[74].mxu1 %vm1287_vm1, %v31135_v1 }
 0x2a6   : > { %19278 = vmatprep.mubr.msk.f32.mxu1 %vm1287_vm1, %v31136_v61  ;;  %v25934_v4 = vsel %vm3205_vm3, %v3334_v2, %v3335_v52  ;;  %v25946_v62 = vsel %vm3205_vm3, %v3335_v52, %v3337_v49  ;;  %v3341_v2 = vrot.slane %v31147_v40, 2  ;;  %v25950_v7 = vsel %vm3205_vm3, %v3337_v49, %v3339_v42 }
 0x2a7   : > { %20016 = vmatmul.mubr.msk.f32.gmra.mrb[50].mxu0 %vm1287_vm1, %v25897_v30  ;;  %v31141_v30 = vld [vmem:[#allocation109_spill] sm:$0xff]  ;;  %31143 = vst [vmem:[#allocation314_spill] sm:$0xff] %v25934_v4  ;;  %31146 = vst [vmem:[#allocation315_spill] sm:$0xff] %v25946_v62  ;;  %v3346_v49 = vrot.slane %v31114_v6, 2 }
 0x2a8   : > { %20018 = vmatprep.mubr.msk.f32.mxu0 %vm1287_vm1, %v25901_v46  ;;  %31148 = vst [vmem:[#allocation87_spill] sm:$0xff] %v25950_v7  ;;  %v31149_v46 = vld [vmem:[#allocation113_spill] sm:$0xff]  ;;  %v25963_v52 = vsel %vm3205_vm3, %v3339_v42, %v3341_v2  ;;  %v31156_v2 = vld [vmem:[#allocation92_spill] sm:$0xff] }
 0x2a9   : > { %19279 = vmatmul.mubr.msk.f32.gmra.mrb[76].mxu1 %vm1287_vm1, %v31140_v19  ;;  %31151 = vst [vmem:[#allocation316_spill] sm:$0xff] %v25963_v52 }
 0x2aa   : > { %19281 = vmatprep.mubr.msk.f32.mxu1 %vm1287_vm1, %v31141_v30 }
 0x2ab   : > { %20019 = vmatmul.mubr.msk.f32.gmra.mrb[52].mxu0 %vm1287_vm1, %v25913_v45  ;;  %v31145_v45 = vld [vmem:[#allocation111_spill] sm:$0xff] }
 0x2ac   : > { %20021 = vmatprep.mubr.msk.f32.mxu0 %vm1287_vm1, %v25917_v22  ;;  %v3344_v22 = vrot.slane %v31113_v38, 2  ;;  %v3348_v38 = vrot.slane %v31117_v34, 2  ;;  %v3352_v34 = vrot.slane %v31118_v9, 2  ;;  %v31162_v9 = vld [vmem:[#allocation120_spill] sm:$0xff] }
 0x2ad   : > { %19282 = vmatmul.mubr.msk.f32.gmra.mrb[78].mxu1 %vm1287_vm1, %v31144_v3 }
 0x2ae   : > { %19284 = vmatprep.mubr.msk.f32.mxu1 %vm1287_vm1, %v31145_v45  ;;  %v25967_v40 = vsel %vm3205_vm3, %v3343_v57, %v3344_v22  ;;  %v25979_v42 = vsel %vm3205_vm3, %v3344_v22, %v3346_v49  ;;  %v3350_v57 = vrot.slane %v31156_v2, 2  ;;  %v25983_v6 = vsel %vm3205_vm3, %v3346_v49, %v3348_v38 }
 0x2af   : > { %20022 = vmatmul.mubr.msk.f32.gmra.mrb[54].mxu0 %vm1287_vm1, %v25930_v21  ;;  %v31150_v21 = vld [vmem:[#allocation114_spill] sm:$0xff]  ;;  %31152 = vst [vmem:[#allocation317_spill] sm:$0xff] %v25967_v40  ;;  %31155 = vst [vmem:[#allocation318_spill] sm:$0xff] %v25979_v42  ;;  %v3355_v49 = vrot.slane %v31123_v18, 2 }
 0x2b0   : > { %20024 = vmatprep.mubr.msk.f32.mxu0 %vm1287_vm1, %v25934_v4  ;;  %31157 = vst [vmem:[#allocation92_spill] sm:$0xff] %v25983_v6  ;;  %v31158_v4 = vld [vmem:[#allocation118_spill] sm:$0xff]  ;;  %v25996_v22 = vsel %vm3205_vm3, %v3348_v38, %v3350_v57  ;;  %v31165_v57 = vld [vmem:[#allocation97_spill] sm:$0xff] }
 0x2b1   : > { %19285 = vmatmul.mubr.msk.f32.gmra.mrb[80].mxu1 %vm1287_vm1, %v31149_v46  ;;  %31160 = vst [vmem:[#allocation319_spill] sm:$0xff] %v25996_v22 }
 0x2b2   : > { %19287 = vmatprep.mubr.msk.f32.mxu1 %vm1287_vm1, %v31150_v21 }
 0x2b3   : > { %20025 = vmatmul.mubr.msk.f32.gmra.mrb[56].mxu0 %vm1287_vm1, %v25946_v62  ;;  %v31154_v62 = vld [vmem:[#allocation116_spill] sm:$0xff] }
 0x2b4   : > { %20027 = vmatprep.mubr.msk.f32.mxu0 %vm1287_vm1, %v25950_v7  ;;  %v3353_v7 = vrot.slane %v31122_v8, 2  ;;  %v3357_v8 = vrot.slane %v31126_v32, 2  ;;  %v26018_v32 = vld [vmem:[%s29815_s1 + $0x1c] sm:$0x7] }
 0x2b5   : > { %19288 = vmatmul.mubr.msk.f32.gmra.mrb[82].mxu1 %vm1287_vm1, %v31153_v23  ;;  %31166 = vst [vmem:[#allocation97_spill] sm:$0xff] %v26018_v32  ;;  %20326 = vmatprep.subr.msk.mxu0 %vm1538_vm0, %v26018_v32  ;;  %v31177_v32 = vld [vmem:[#allocation128_spill] sm:$0xff] }
 0x2b6   : > { %19290 = vmatprep.mubr.msk.f32.mxu1 %vm1287_vm1, %v31154_v62  ;;  %v26000_v2 = vsel %vm3205_vm3, %v3352_v34, %v3353_v7  ;;  %v26012_v38 = vsel %vm3205_vm3, %v3353_v7, %v3355_v49  ;;  %v3359_v34 = vrot.slane %v31165_v57, 2  ;;  %v26021_v18 = vsel %vm3205_vm3, %v3355_v49, %v3357_v8  ;;  %v31169_v7 = vld [vmem:[#allocation124_spill] sm:$0xff] }
 0x2b7   : > { %20028 = vmatmul.mubr.msk.f32.gmra.mrb[58].mxu0 %vm1287_vm1, %v25963_v52  ;;  %v31159_v52 = vld [vmem:[#allocation119_spill] sm:$0xff]  ;;  %31161 = vst [vmem:[#allocation320_spill] sm:$0xff] %v26000_v2  ;;  %31164 = vst [vmem:[#allocation321_spill] sm:$0xff] %v26012_v38  ;;  %v3364_v57 = vrot.slane %v31132_v63, 2 }
 0x2b8   : > { %20030 = vmatprep.mubr.msk.f32.mxu0 %vm1287_vm1, %v25967_v40  ;;  %31167 = vst [vmem:[#allocation322_spill] sm:$0xff] %v26021_v18  ;;  %v26036_v49 = vsel %vm3205_vm3, %v3357_v8, %v3359_v34  ;;  %v31172_v40 = vld [vmem:[#allocation125_spill] sm:$0xff]  ;;  %v31175_v34 = vld [vmem:[#allocation102_spill] sm:$0xff] }
 0x2b9   : > { %19291 = vmatmul.mubr.msk.f32.gmra.mrb[84].mxu1 %vm1287_vm1, %v31158_v4  ;;  %31170 = vst [vmem:[#allocation323_spill] sm:$0xff] %v26036_v49 }
 0x2ba   : > { %19293 = vmatprep.mubr.msk.f32.mxu1 %vm1287_vm1, %v31159_v52 }
 0x2bb   : > { %20031 = vmatmul.mubr.msk.f32.gmra.mrb[60].mxu0 %vm1287_vm1, %v25979_v42  ;;  %v31163_v42 = vld [vmem:[#allocation121_spill] sm:$0xff] }
 0x2bc   : > { %20033 = vmatprep.mubr.msk.f32.mxu0 %vm1287_vm1, %v25983_v6  ;;  %v3362_v6 = vrot.slane %v31131_v17, 2 }
 0x2bd   : > { %19294 = vmatmul.mubr.msk.f32.gmra.mrb[86].mxu1 %vm1287_vm1, %v31162_v9 }
 0x2be   : > { %19296 = vmatprep.mubr.msk.f32.mxu1 %vm1287_vm1, %v31163_v42  ;;  %v26052_v8 = vsel %vm3205_vm3, %v3362_v6, %v3364_v57 }
 0x2bf   : > { %20034 = vmatmul.mubr.msk.f32.gmra.mrb[62].mxu0 %vm1287_vm1, %v25996_v22  ;;  %v3361_v22 = vrot.slane %v31127_v31, 2  ;;  %v3366_v31 = vrot.slane %v31135_v1, 2  ;;  %31174 = vst [vmem:[#allocation325_spill] sm:$0xff] %v26052_v8  ;;  %v3370_v1 = vrot.slane %v31136_v61, 2  ;;  %v31181_v61 = vld [vmem:[#allocation130_spill] sm:$0xff] }
 0x2c0   : > { %20036 = vmatprep.mubr.msk.f32.mxu0 %vm1287_vm1, %v26000_v2  ;;  %v31168_v2 = vld [vmem:[#allocation123_spill] sm:$0xff] }
 0x2c1   : > { %19297 = vmatmul.mubr.msk.f32.gmra.mrb[88].mxu1 %vm1287_vm1, %v31168_v2  ;;  %v26040_v17 = vsel %vm3205_vm3, %v3361_v22, %v3362_v6  ;;  %v3368_v22 = vrot.slane %v31175_v34, 2  ;;  %v26056_v63 = vsel %vm3205_vm3, %v3364_v57, %v3366_v31  ;;  %v3373_v57 = vrot.slane %v31141_v30, 2 }
 0x2c2   : > { %19299 = vmatprep.mubr.msk.f32.mxu1 %vm1287_vm1, %v31169_v7  ;;  %31171 = vst [vmem:[#allocation324_spill] sm:$0xff] %v26040_v17  ;;  %31176 = vst [vmem:[#allocation102_spill] sm:$0xff] %v26056_v63 }
 0x2c3   : > { %20037 = vmatmul.mubr.msk.f32.gmra.mrb[64].mxu0 %vm1287_vm1, %v26012_v38  ;;  %v31173_v38 = vld [vmem:[#allocation126_spill] sm:$0xff]  ;;  %v26069_v6 = vsel %vm3205_vm3, %v3366_v31, %v3368_v22  ;;  %v31184_v22 = vld [vmem:[#allocation107_spill] sm:$0xff] }
 0x2c4   : > { %20039 = vmatprep.mubr.msk.f32.mxu0 %vm1287_vm1, %v26021_v18  ;;  %v3371_v18 = vrot.slane %v31140_v19, 2  ;;  %31179 = vst [vmem:[#allocation326_spill] sm:$0xff] %v26069_v6  ;;  %v3375_v19 = vrot.slane %v31144_v3, 2  ;;  %v3379_v3 = vrot.slane %v31145_v45, 2  ;;  %v31190_v45 = vld [vmem:[#allocation135_spill] sm:$0xff] }
 0x2c5   : > { %19300 = vmatmul.mubr.msk.f32.gmra.mrb[90].mxu1 %vm1287_vm1, %v31172_v40 }
 0x2c6   : > { %19302 = vmatprep.mubr.msk.f32.mxu1 %vm1287_vm1, %v31173_v38  ;;  %v26073_v34 = vsel %vm3205_vm3, %v3370_v1, %v3371_v18  ;;  %v26085_v31 = vsel %vm3205_vm3, %v3371_v18, %v3373_v57  ;;  %v3377_v1 = vrot.slane %v31184_v22, 2  ;;  %v26089_v30 = vsel %vm3205_vm3, %v3373_v57, %v3375_v19 }
 0x2c7   : > { %20040 = vmatmul.mubr.msk.f32.gmra.mrb[66].mxu0 %vm1287_vm1, %v26036_v49  ;;  %v31178_v49 = vld [vmem:[#allocation129_spill] sm:$0xff]  ;;  %31180 = vst [vmem:[#allocation327_spill] sm:$0xff] %v26073_v34  ;;  %31183 = vst [vmem:[#allocation328_spill] sm:$0xff] %v26085_v31  ;;  %v3382_v57 = vrot.slane %v31150_v21, 2 }
 0x2c8   : > { %20042 = vmatprep.mubr.msk.f32.mxu0 %vm1287_vm1, %v26040_v17  ;;  %31185 = vst [vmem:[#allocation107_spill] sm:$0xff] %v26089_v30  ;;  %v31186_v17 = vld [vmem:[#allocation133_spill] sm:$0xff]  ;;  %v26102_v18 = vsel %vm3205_vm3, %v3375_v19, %v3377_v1  ;;  %v31193_v1 = vld [vmem:[#allocation112_spill] sm:$0xff] }
 0x2c9   : > { %19303 = vmatmul.mubr.msk.f32.gmra.mrb[92].mxu1 %vm1287_vm1, %v31177_v32  ;;  %31188 = vst [vmem:[#allocation329_spill] sm:$0xff] %v26102_v18 }
 0x2ca   : > { %19305 = vmatprep.mubr.msk.f32.mxu1 %vm1287_vm1, %v31178_v49 }
 0x2cb   : > { %20043 = vmatmul.mubr.msk.f32.gmra.mrb[68].mxu0 %vm1287_vm1, %v26052_v8  ;;  %v31182_v8 = vld [vmem:[#allocation131_spill] sm:$0xff] }
 0x2cc   : > { %20045 = vmatprep.mubr.msk.f32.mxu0 %vm1287_vm1, %v26056_v63  ;;  %v3380_v63 = vrot.slane %v31149_v46, 2  ;;  %v3384_v46 = vrot.slane %v31153_v23, 2  ;;  %v3388_v23 = vrot.slane %v31154_v62, 2  ;;  %v31198_v62 = vld [vmem:[#allocation140_spill] sm:$0xff] }
 0x2cd   : > { %19306 = vmatmul.mubr.msk.f32.gmra.mrb[94].mxu1 %vm1287_vm1, %v31181_v61 }
 0x2ce   : > { %19308 = vmatprep.mubr.msk.f32.mxu1 %vm1287_vm1, %v31182_v8  ;;  %v26106_v22 = vsel %vm3205_vm3, %v3379_v3, %v3380_v63  ;;  %v26118_v19 = vsel %vm3205_vm3, %v3380_v63, %v3382_v57  ;;  %v3386_v3 = vrot.slane %v31193_v1, 2  ;;  %v26122_v21 = vsel %vm3205_vm3, %v3382_v57, %v3384_v46 }
 0x2cf   : > { %20046 = vmatmul.mubr.msk.f32.gmra.mrb[70].mxu0 %vm1287_vm1, %v26069_v6  ;;  %v31187_v6 = vld [vmem:[#allocation134_spill] sm:$0xff]  ;;  %31189 = vst [vmem:[#allocation330_spill] sm:$0xff] %v26106_v22  ;;  %31192 = vst [vmem:[#allocation331_spill] sm:$0xff] %v26118_v19  ;;  %v3391_v57 = vrot.slane %v31159_v52, 2 }
 0x2d0   : > { %20048 = vmatprep.mubr.msk.f32.mxu0 %vm1287_vm1, %v26073_v34  ;;  %31194 = vst [vmem:[#allocation112_spill] sm:$0xff] %v26122_v21  ;;  %v31195_v34 = vld [vmem:[#allocation138_spill] sm:$0xff]  ;;  %v26135_v63 = vsel %vm3205_vm3, %v3384_v46, %v3386_v3  ;;  %v31201_v3 = vld [vmem:[#allocation117_spill] sm:$0xff] }
 0x2d1   : > { %19309 = vmatmul.mubr.msk.f32.gmra.mrb[96].mxu1 %vm1287_vm1, %v31186_v17 }
 0x2d2   : > { %19311 = vmatprep.mubr.msk.f32.mxu1 %vm1287_vm1, %v31187_v6 }
 0x2d3   : > { %20049 = vmatmul.mubr.msk.f32.gmra.mrb[72].mxu0 %vm1287_vm1, %v26085_v31  ;;  %v31191_v31 = vld [vmem:[#allocation136_spill] sm:$0xff] }
 0x2d4   : > { %20051 = vmatprep.mubr.msk.f32.mxu0 %vm1287_vm1, %v26089_v30  ;;  %v3389_v30 = vrot.slane %v31158_v4, 2  ;;  %v3393_v4 = vrot.slane %v31162_v9, 2  ;;  %v3397_v9 = vrot.slane %v31163_v42, 2  ;;  %v31205_v42 = vld [vmem:[#allocation145_spill] sm:$0xff] }
 0x2d5   : > { %19312 = vmatmul.mubr.msk.f32.gmra.mrb[98].mxu1 %vm1287_vm1, %v31190_v45 }
 0x2d6   : > { %19314 = vmatprep.mubr.msk.f32.mxu1 %vm1287_vm1, %v31191_v31  ;;  %v26139_v1 = vsel %vm3205_vm3, %v3388_v23, %v3389_v30  ;;  %v26151_v46 = vsel %vm3205_vm3, %v3389_v30, %v3391_v57  ;;  %v3395_v23 = vrot.slane %v31201_v3, 2  ;;  %v26155_v52 = vsel %vm3205_vm3, %v3391_v57, %v3393_v4 }
 0x2d7   : > { %20052 = vmatmul.mubr.msk.f32.gmra.mrb[74].mxu0 %vm1287_vm1, %v26102_v18  ;;  %v31196_v18 = vld [vmem:[#allocation139_spill] sm:$0xff]  ;;  %31197 = vst [vmem:[#allocation332_spill] sm:$0xff] %v26139_v1  ;;  %31200 = vst [vmem:[#allocation333_spill] sm:$0xff] %v26151_v46  ;;  %v3400_v57 = vrot.slane %v31169_v7, 2 }
 0x2d8   : > { %20054 = vmatprep.mubr.msk.f32.mxu0 %vm1287_vm1, %v26106_v22  ;;  %31202 = vst [vmem:[#allocation117_spill] sm:$0xff] %v26155_v52  ;;  %v31203_v22 = vld [vmem:[#allocation143_spill] sm:$0xff]  ;;  %v26168_v30 = vsel %vm3205_vm3, %v3393_v4, %v3395_v23  ;;  %v31207_v23 = vld [vmem:[#allocation122_spill] sm:$0xff] }
 0x2d9   : > { %19315 = vmatmul.mubr.msk.f32.gmra.mrb[100].mxu1 %vm1287_vm1, %v31195_v34 }
 0x2da   : > { %19317 = vmatprep.mubr.msk.f32.mxu1 %vm1287_vm1, %v31196_v18 }
 0x2db   : > { %20055 = vmatmul.mubr.msk.f32.gmra.mrb[76].mxu0 %vm1287_vm1, %v26118_v19  ;;  %v31199_v19 = vld [vmem:[#allocation141_spill] sm:$0xff] }
 0x2dc   : > { %20057 = vmatprep.mubr.msk.f32.mxu0 %vm1287_vm1, %v26122_v21  ;;  %v3398_v21 = vrot.slane %v31168_v2, 2  ;;  %v3402_v2 = vrot.slane %v31172_v40, 2  ;;  %v3406_v40 = vrot.slane %v31173_v38, 2  ;;  %v31212_v38 = vld [vmem:[#allocation151_spill] sm:$0xff] }
 0x2dd   : > { %19318 = vmatmul.mubr.msk.f32.gmra.mrb[102].mxu1 %vm1287_vm1, %v31198_v62 }
 0x2de   : > { %19320 = vmatprep.mubr.msk.f32.mxu1 %vm1287_vm1, %v31199_v19  ;;  %v26172_v3 = vsel %vm3205_vm3, %v3397_v9, %v3398_v21  ;;  %v26184_v4 = vsel %vm3205_vm3, %v3398_v21, %v3400_v57  ;;  %v3404_v9 = vrot.slane %v31207_v23, 2  ;;  %v26188_v7 = vsel %vm3205_vm3, %v3400_v57, %v3402_v2 }
 0x2df   : > { %20058 = vmatmul.mubr.msk.f32.gmra.mrb[78].mxu0 %vm1287_vm1, %v26135_v63  ;;  %31204 = vst [vmem:[#allocation334_spill] sm:$0xff] %v26172_v3  ;;  %31206 = vst [vmem:[#allocation335_spill] sm:$0xff] %v26184_v4  ;;  %v3409_v57 = vrot.slane %v31178_v49, 2 }
 0x2e0   : > { %20060 = vmatprep.mubr.msk.f32.mxu0 %vm1287_vm1, %v26139_v1  ;;  %31208 = vst [vmem:[#allocation122_spill] sm:$0xff] %v26188_v7  ;;  %v26201_v21 = vsel %vm3205_vm3, %v3402_v2, %v3404_v9  ;;  %v31215_v9 = vld [vmem:[#allocation127_spill] sm:$0xff] }
 0x2e1   : > { %19321 = vmatmul.mubr.msk.f32.gmra.mrb[104].mxu1 %vm1287_vm1, %v31203_v22  ;;  %31210 = vst [vmem:[#allocation336_spill] sm:$0xff] %v26201_v21 }
 0x2e2   : > { %19323 = vmatprep.mubr.msk.f32.mxu1 %vm1287_vm1, %v30960_v11 }
 0x2e3   : > { %20061 = vmatmul.mubr.msk.f32.gmra.mrb[80].mxu0 %vm1287_vm1, %v26151_v46  ;;  %v31209_v46 = vld [vmem:[#allocation149_spill] sm:$0xff] }
 0x2e4   : > { %20063 = vmatprep.mubr.msk.f32.mxu0 %vm1287_vm1, %v26155_v52  ;;  %v3407_v52 = vrot.slane %v31177_v32, 2  ;;  %v3411_v32 = vrot.slane %v31181_v61, 2  ;;  %v3415_v61 = vrot.slane %v31182_v8, 2  ;;  %v31220_v8 = vld [vmem:[#allocation156_spill] sm:$0xff] }
 0x2e5   : > { %19324 = vmatmul.mubr.msk.f32.gmra.mrb[106].mxu1 %vm1287_vm1, %v31205_v42 }
 0x2e6   : > { %19326 = vmatprep.mubr.msk.f32.mxu1 %vm1287_vm1, %v30968_v15  ;;  %v26205_v23 = vsel %vm3205_vm3, %v3406_v40, %v3407_v52  ;;  %v26217_v2 = vsel %vm3205_vm3, %v3407_v52, %v3409_v57  ;;  %v3413_v40 = vrot.slane %v31215_v9, 2  ;;  %v26221_v49 = vsel %vm3205_vm3, %v3409_v57, %v3411_v32 }
 0x2e7   : > { %20064 = vmatmul.mubr.msk.f32.gmra.mrb[82].mxu0 %vm1287_vm1, %v26168_v30  ;;  %31211 = vst [vmem:[#allocation337_spill] sm:$0xff] %v26205_v23  ;;  %31216 = vst [vmem:[#allocation127_spill] sm:$0xff] %v26221_v49  ;;  %v3418_v57 = vrot.slane %v31187_v6, 2 }
 0x2e8   : > { %20066 = vmatprep.mubr.msk.f32.mxu0 %vm1287_vm1, %v26172_v3  ;;  %v31217_v3 = vld [vmem:[#allocation154_spill] sm:$0xff]  ;;  %v26234_v52 = vsel %vm3205_vm3, %v3411_v32, %v3413_v40  ;;  %v31223_v40 = vld [vmem:[#allocation132_spill] sm:$0xff] }
 0x2e9   : > { %19327 = vmatmul.mubr.msk.f32.gmra.mrb[108].mxu1 %vm1287_vm1, %v31209_v46  ;;  %31218 = vst [vmem:[#allocation154_spill] sm:$0xff] %v26234_v52 }
 0x2ea   : > { %19329 = vmatprep.mubr.msk.f32.mxu1 %vm1287_vm1, %v24121_v33 }
 0x2eb   : > { %20067 = vmatmul.mubr.msk.f32.gmra.mrb[84].mxu0 %vm1287_vm1, %v26184_v4  ;;  %v31213_v4 = vld [vmem:[#allocation152_spill] sm:$0xff] }
 0x2ec   : > { %20069 = vmatprep.mubr.msk.f32.mxu0 %vm1287_vm1, %v26188_v7  ;;  %31214 = vst [vmem:[#allocation152_spill] sm:$0xff] %v26217_v2  ;;  %v3416_v7 = vrot.slane %v31186_v17, 2  ;;  %v3420_v17 = vrot.slane %v31190_v45, 2  ;;  %v3424_v45 = vrot.slane %v31191_v31, 2  ;;  %v31227_v31 = vld [vmem:[#allocation164_spill] sm:$0xff] }
 0x2ed   : > { %19330 = vmatmul.mubr.msk.f32.gmra.mrb[110].mxu1 %vm1287_vm1, %v31212_v38 }
 0x2ee   : > { %19332 = vmatprep.mubr.msk.f32.mxu1 %vm1287_vm1, %v31213_v4  ;;  %v26238_v9 = vsel %vm3205_vm3, %v3415_v61, %v3416_v7  ;;  %v26250_v32 = vsel %vm3205_vm3, %v3416_v7, %v3418_v57  ;;  %v3422_v61 = vrot.slane %v31223_v40, 2  ;;  %v26254_v6 = vsel %vm3205_vm3, %v3418_v57, %v3420_v17 }
 0x2ef   : > { %20070 = vmatmul.mubr.msk.f32.gmra.mrb[86].mxu0 %vm1287_vm1, %v26201_v21  ;;  %31219 = vst [vmem:[#allocation338_spill] sm:$0xff] %v26238_v9  ;;  %31222 = vst [vmem:[#allocation156_spill] sm:$0xff] %v26250_v32  ;;  %v3427_v57 = vrot.slane %v31196_v18, 2 }
 0x2f0   : > { %20072 = vmatprep.mubr.msk.f32.mxu0 %vm1287_vm1, %v26205_v23  ;;  %v31225_v23 = vld [vmem:[#allocation160_spill] sm:$0xff]  ;;  %v26267_v7 = vsel %vm3205_vm3, %v3420_v17, %v3422_v61  ;;  %v31230_v61 = vld [vmem:[#allocation137_spill] sm:$0xff] }
 0x2f1   : > { %19333 = vmatmul.mubr.msk.f32.gmra.mrb[112].mxu1 %vm1287_vm1, %v31217_v3 }
 0x2f2   : > { %19335 = vmatprep.mubr.msk.f32.mxu1 %vm1287_vm1, %v30980_v16 }
 0x2f3   : > { %20073 = vmatmul.mubr.msk.f32.gmra.mrb[88].mxu0 %vm1287_vm1, %v26217_v2  ;;  %v31221_v2 = vld [vmem:[#allocation157_spill] sm:$0xff] }
 0x2f4   : > { %20075 = vmatprep.mubr.msk.f32.mxu0 %vm1287_vm1, %v26221_v49  ;;  %31224 = vst [vmem:[#allocation157_spill] sm:$0xff] %v26254_v6  ;;  %v3425_v49 = vrot.slane %v31195_v34, 2  ;;  %v3429_v34 = vrot.slane %v31198_v62, 2  ;;  %v3433_v62 = vrot.slane %v31199_v19, 2  ;;  %v31233_v19 = vld [vmem:[#allocation173_spill] sm:$0xff] }
 0x2f5   : > { %19336 = vmatmul.mubr.msk.f32.gmra.mrb[114].mxu1 %vm1287_vm1, %v31220_v8 }
 0x2f6   : > { %19338 = vmatprep.mubr.msk.f32.mxu1 %vm1287_vm1, %v31221_v2  ;;  %v26271_v40 = vsel %vm3205_vm3, %v3424_v45, %v3425_v49  ;;  %v26283_v17 = vsel %vm3205_vm3, %v3425_v49, %v3427_v57  ;;  %v3431_v45 = vrot.slane %v31230_v61, 2  ;;  %v26287_v18 = vsel %vm3205_vm3, %v3427_v57, %v3429_v34 }
 0x2f7   : > { %20076 = vmatmul.mubr.msk.f32.gmra.mrb[90].mxu0 %vm1287_vm1, %v26234_v52  ;;  %v31226_v52 = vld [vmem:[#allocation161_spill] sm:$0xff]  ;;  %31229 = vst [vmem:[#allocation132_spill] sm:$0xff] %v26283_v17  ;;  %31231 = vst [vmem:[#allocation160_spill] sm:$0xff] %v26287_v18  ;;  %v3436_v57 = vrot.slane %v30960_v11, 2 }
 0x2f8   : > { %20078 = vmatprep.mubr.msk.f32.mxu0 %vm1287_vm1, %v26238_v9  ;;  %v31232_v9 = vld [vmem:[#allocation169_spill] sm:$0xff]  ;;  %v26300_v49 = vsel %vm3205_vm3, %v3429_v34, %v3431_v45  ;;  %v31235_v45 = vld [vmem:[#allocation142_spill] sm:$0xff] }
 0x2f9   : > { %19339 = vmatmul.mubr.msk.f32.gmra.mrb[116].mxu1 %vm1287_vm1, %v31225_v23 }
 0x2fa   : > { %19341 = vmatprep.mubr.msk.f32.mxu1 %vm1287_vm1, %v31226_v52 }
 0x2fb   : > { %20079 = vmatmul.mubr.msk.f32.gmra.mrb[92].mxu0 %vm1287_vm1, %v26250_v32  ;;  %v31228_v32 = vld [vmem:[#allocation165_spill] sm:$0xff] }
 0x2fc   : > { %20081 = vmatprep.mubr.msk.f32.mxu0 %vm1287_vm1, %v26254_v6  ;;  %v3434_v6 = vrot.slane %v31203_v22, 2  ;;  %v3438_v22 = vrot.slane %v31205_v42, 2  ;;  %v3442_v42 = vrot.slane %v30968_v15, 2  ;;  %v3452_v15 = vrot.slane %v31217_v3, 2 }
 0x2fd   : > { %19342 = vmatmul.mubr.msk.f32.gmra.mrb[118].mxu1 %vm1287_vm1, %v31227_v31 }
 0x2fe   : > { %19344 = vmatprep.mubr.msk.f32.mxu1 %vm1287_vm1, %v31228_v32  ;;  %v26304_v61 = vsel %vm3205_vm3, %v3433_v62, %v3434_v6  ;;  %v26316_v34 = vsel %vm3205_vm3, %v3434_v6, %v3436_v57  ;;  %v3440_v62 = vrot.slane %v31235_v45, 2  ;;  %v26320_v11 = vsel %vm3205_vm3, %v3436_v57, %v3438_v22 }
 0x2ff   : > { %20082 = vmatmul.mubr.msk.f32.gmra.mrb[94].mxu0 %vm1287_vm1, %v26267_v7  ;;  %31234 = vst [vmem:[#allocation161_spill] sm:$0xff] %v26316_v34  ;;  %v3445_v57 = vrot.slane %v24121_v33, 2 }
 0x300   : > { %20084 = vmatprep.mubr.msk.f32.mxu0 %vm1287_vm1, %v26271_v40  ;;  %v26333_v6 = vsel %vm3205_vm3, %v3438_v22, %v3440_v62  ;;  %v31238_v62 = vld [vmem:[#allocation147_spill] sm:$0xff] }
 0x301   : > { %19345 = vmatmul.mubr.msk.f32.gmra.mrb[120].mxu1 %vm1287_vm1, %v31232_v9 }
 0x302   : > { %19347 = vmatprep.mubr.msk.f32.mxu1 %vm1287_vm1, %v31000_v56 }
 0x303   : > { %20085 = vmatmul.mubr.msk.f32.gmra.mrb[96].mxu0 %vm1287_vm1, %v26283_v17  ;;  %v31236_v17 = vld [vmem:[#allocation178_spill] sm:$0xff] }
 0x304   : > { %20087 = vmatprep.mubr.msk.f32.mxu0 %vm1287_vm1, %v26287_v18  ;;  %v3443_v18 = vrot.slane %v31209_v46, 2  ;;  %v3447_v46 = vrot.slane %v31212_v38, 2  ;;  %v3451_v38 = vrot.slane %v31213_v4, 2 }
 0x305   : > { %19348 = vmatmul.mubr.msk.f32.gmra.mrb[122].mxu1 %vm1287_vm1, %v31233_v19 }
 0x306   : > { %19350 = vmatprep.mubr.msk.f32.mxu1 %vm1287_vm1, %v31008_v27  ;;  %v26337_v45 = vsel %vm3205_vm3, %v3442_v42, %v3443_v18  ;;  %v26349_v22 = vsel %vm3205_vm3, %v3443_v18, %v3445_v57  ;;  %v3449_v42 = vrot.slane %v31238_v62, 2  ;;  %v26353_v33 = vsel %vm3205_vm3, %v3445_v57, %v3447_v46 }
 0x307   : > { %20088 = vmatmul.mubr.msk.f32.gmra.mrb[98].mxu0 %vm1287_vm1, %v26300_v49  ;;  %31237 = vst [vmem:[#allocation164_spill] sm:$0xff] %v26349_v22  ;;  %31239 = vst [vmem:[#allocation165_spill] sm:$0xff] %v26353_v33  ;;  %v3454_v57 = vrot.slane %v30980_v16, 2  ;;  %v26370_v62 = vsel %vm3205_vm3, %v3451_v38, %v3452_v15 }
 0x308   : > { %20090 = vmatprep.mubr.msk.f32.mxu0 %vm1287_vm1, %v26304_v61  ;;  %v26366_v18 = vsel %vm3205_vm3, %v3447_v46, %v3449_v42  ;;  %v31240_v42 = vld [vmem:[#allocation153_spill] sm:$0xff] }
 0x309   : > { %19351 = vmatmul.mubr.msk.f32.gmra.mrb[124].mxu1 %vm1287_vm1, %v31236_v17  ;;  %v26382_v46 = vsel %vm3205_vm3, %v3452_v15, %v3454_v57  ;;  %v3458_v38 = vrot.slane %v31240_v42, 2 }
 0x30a   : > { %19353 = vmatprep.mubr.msk.f32.mxu1 %vm1287_vm1, %v24330_v41 }
 0x30b   : > { %20091 = vmatmul.mubr.msk.f32.gmra.mrb[100].mxu0 %vm1287_vm1, %v26316_v34 }
 0x30c   : > { %20093 = vmatprep.mubr.msk.f32.mxu0 %vm1287_vm1, %v26320_v11 }
 0x30d   : > { %19354 = vmatmul.mubr.msk.f32.gmra.mrb[126].mxu1 %vm1287_vm1, %v24354_v36 }
 0x30e   : > { %19388 = vmatprep.mubr.msk.f32.mxu1 %vm1287_vm1, %v25604_v25  ;;  %v3456_v25 = vrot.slane %v31220_v8, 2 }
 0x30f   : > { %20094 = vmatmul.mubr.msk.f32.gmra.mrb[102].mxu0 %vm1287_vm1, %v26333_v6 }
 0x310   : > { %20096 = vmatprep.mubr.msk.f32.mxu0 %vm1287_vm1, %v26337_v45  ;;  %v26399_v15 = vsel %vm3205_vm3, %v3456_v25, %v3458_v38  ;;  %v31241_v38 = vld [vmem:[#allocation158_spill] sm:$0xff] }
 0x311   : > { %19389 = vmatmul.mubr.msk.f32.vlgmr.msra.gmra.mrb[20].mxu1 %vm1287_vm1, %v25616_v53  ;;  %v3460_v53 = vrot.slane %v31221_v2, 2 }
 0x312   : > { %19391 = vmatprep.mubr.msk.f32.mxu1 %vm1287_vm1, %v25620_v28  ;;  %v26386_v28 = vsel %vm3205_vm3, %v3454_v57, %v3456_v25  ;;  %v3463_v57 = vrot.slane %v31226_v52, 2 }
 0x313   : > { %20097 = vmatmul.mubr.msk.f32.gmra.mrb[104].mxu0 %vm1287_vm1, %v26349_v22 }
 0x314   : > { %20099 = vmatprep.mubr.msk.f32.mxu0 %vm1287_vm1, %v26353_v33 }
 0x315   : > { %19392 = vmatmul.mubr.msk.f32.gmra.mrb[22].mxu1 %vm1287_vm1, %v25633_v48  ;;  %v3461_v48 = vrot.slane %v31225_v23, 2 }
 0x316   : > { %19394 = vmatprep.mubr.msk.f32.mxu1 %vm1287_vm1, %v25637_v39  ;;  %v3465_v39 = vrot.slane %v31227_v31, 2 }
 0x317   : > { %20100 = vmatmul.mubr.msk.f32.gmra.mrb[106].mxu0 %vm1287_vm1, %v26366_v18  ;;  %v26403_v42 = vsel %vm3205_vm3, %v3460_v53, %v3461_v48  ;;  %v26415_v25 = vsel %vm3205_vm3, %v3461_v48, %v3463_v57  ;;  %v3467_v53 = vrot.slane %v31241_v38, 2 }
 0x318   : > { %20102 = vmatprep.mubr.msk.f32.mxu0 %vm1287_vm1, %v26370_v62 }
 0x319   : > { %19395 = vmatmul.mubr.msk.f32.gmra.mrb[24].mxu1 %vm1287_vm1, %v25649_v37  ;;  %v3469_v37 = vrot.slane %v31228_v32, 2  ;;  %v26432_v48 = vsel %vm3205_vm3, %v3465_v39, %v3467_v53  ;;  %v31242_v53 = vld [vmem:[#allocation166_spill] sm:$0xff] }
 0x31a   : > { %19397 = vmatprep.mubr.msk.f32.mxu1 %vm1287_vm1, %v25653_v54  ;;  %v26419_v54 = vsel %vm3205_vm3, %v3463_v57, %v3465_v39  ;;  %v3472_v57 = vrot.slane %v31000_v56, 2 }
 0x31b   : > { %20103 = vmatmul.mubr.msk.f32.gmra.mrb[108].mxu0 %vm1287_vm1, %v26382_v46 }
 0x31c   : > { %20105 = vmatprep.mubr.msk.f32.mxu0 %vm1287_vm1, %v26386_v28 }
 0x31d   : > { %19398 = vmatmul.mubr.msk.f32.gmra.mrb[26].mxu1 %vm1287_vm1, %v25666_v14  ;;  %v3470_v14 = vrot.slane %v31232_v9, 2 }
 0x31e   : > { %19400 = vmatprep.mubr.msk.f32.mxu1 %vm1287_vm1, %v25670_v58  ;;  %v3474_v58 = vrot.slane %v31233_v19, 2 }
 0x31f   : > { %20106 = vmatmul.mubr.msk.f32.gmra.mrb[110].mxu0 %vm1287_vm1, %v26399_v15  ;;  %v26436_v38 = vsel %vm3205_vm3, %v3469_v37, %v3470_v14  ;;  %v26448_v39 = vsel %vm3205_vm3, %v3470_v14, %v3472_v57  ;;  %v3476_v37 = vrot.slane %v31242_v53, 2 }
 0x320   : > { %20108 = vmatprep.mubr.msk.f32.mxu0 %vm1287_vm1, %v26403_v42 }
 0x321   : > { %19401 = vmatmul.mubr.msk.f32.gmra.mrb[28].mxu1 %vm1287_vm1, %v25682_v13  ;;  %v3478_v13 = vrot.slane %v31008_v27, 2  ;;  %v26465_v14 = vsel %vm3205_vm3, %v3474_v58, %v3476_v37  ;;  %v6278_v37 = vrot.slane %v24357_v47, 2 }
 0x322   : > { %19403 = vmatprep.mubr.msk.f32.mxu1 %vm1287_vm1, %v25686_v5  ;;  %v26452_v5 = vsel %vm3205_vm3, %v3472_v57, %v3474_v58  ;;  %v3481_v57 = vrot.slane %v24330_v41, 2 }
 0x323   : > { %20109 = vmatmul.mubr.msk.f32.gmra.mrb[112].mxu0 %vm1287_vm1, %v26415_v25 }
 0x324   : > { %20111 = vmatprep.mubr.msk.f32.mxu0 %vm1287_vm1, %v26419_v54 }
 0x325   : > { %19404 = vmatmul.mubr.msk.f32.gmra.mrb[30].mxu1 %vm1287_vm1, %v25699_v43  ;;  %v3479_v43 = vrot.slane %v31236_v17, 2 }
 0x326   : > { %19406 = vmatprep.mubr.msk.f32.mxu1 %vm1287_vm1, %v25703_v26  ;;  %v3483_v26 = vrot.slane %v24354_v36, 2 }
 0x327   : > { %20112 = vmatmul.mubr.msk.f32.gmra.mrb[114].mxu0 %vm1287_vm1, %v26432_v48  ;;  %v26469_v53 = vsel %vm3205_vm3, %v3478_v13, %v3479_v43  ;;  %v26481_v58 = vsel %vm3205_vm3, %v3479_v43, %v3481_v57  ;;  %v3485_v13 = vrot.slane %v25382_v29, 2  ;;  %v6281_v43 = vrot.slane %v24388_v55, 2 }
 0x328   : > { %20114 = vmatprep.mubr.msk.f32.mxu0 %vm1287_vm1, %v26436_v38  ;;  %31243 = vst [vmem:[#allocation137_spill] sm:$0xff] %v26481_v58 }
 0x329   : > { %19407 = vmatmul.mubr.msk.f32.gmra.mrb[32].mxu1 %vm1287_vm1, %v25715_v0  ;;  %v26499_v29 = vsel %vm3205_vm3, %v3483_v26, %v3485_v13  ;;  %v6285_v13 = vrot.slane %v25506_v50, 2  ;;  %v31253_v50 = vld [vmem:[#allocation302_spill] sm:$0xff] }
 0x32a   : > { %19409 = vmatprep.mubr.msk.f32.mxu1 %vm1287_vm1, %v25719_v12  ;;  %v6279_v12 = vrot.slane %v24384_v24, 2  ;;  %31245 = vst [vmem:[#allocation173_spill] sm:$0xff] %v26499_v29 }
 0x32b   : > { %20115 = vmatmul.mubr.msk.f32.gmra.mrb[116].mxu0 %vm1287_vm1, %v26448_v39 }
 0x32c   : > { %20117 = vmatprep.mubr.msk.f32.mxu0 %vm1287_vm1, %v26452_v5 }
 0x32d   : > { %19410 = vmatmul.mubr.msk.f32.gmra.mrb[34].mxu1 %vm1287_vm1, %v25732_v20  ;;  %v26487_v20 = vsel %vm3205_vm3, %v3481_v57, %v3483_v26  ;;  %v6283_v57 = vrot.slane %v24410_v51, 2  ;;  %v26514_v26 = vsel %vm3205_vm3, %v6279_v12, %v6281_v43 }
 0x32e   : > { %19412 = vmatprep.mubr.msk.f32.mxu1 %vm1287_vm1, %v25736_v10  ;;  %31244 = vst [vmem:[#allocation169_spill] sm:$0xff] %v26487_v20  ;;  %v26503_v10 = vsel %vm3205_vm3, %v6278_v37, %v6279_v12  ;;  %31247 = vst [vmem:[#allocation178_spill] sm:$0xff] %v26514_v26 }
 0x32f   : > { %20118 = vmatmul.mubr.msk.f32.gmra.mrb[118].mxu0 %vm1287_vm1, %v26465_v14  ;;  %31246 = vst [vmem:[#allocation142_spill] sm:$0xff] %v26503_v10  ;;  %v26518_v37 = vsel %vm3205_vm3, %v6281_v43, %v6283_v57  ;;  %v26529_v12 = vsel %vm3205_vm3, %v6283_v57, %v6285_v13  ;;  %v31254_v43 = vld [vmem:[#allocation14_spill] sm:$0xff]  ;;  %v31257_v57 = vld [vmem:[#allocation67_spill] sm:$0xff]  ;;  %v31258_v13 = vld [vmem:[#allocation97_spill] sm:$0xff] }
 0x330   : > { %20120 = vmatprep.mubr.msk.f32.mxu0 %vm1287_vm1, %v26469_v53  ;;  %31248 = vst [vmem:[#allocation147_spill] sm:$0xff] %v26518_v37  ;;  %31251 = vst [vmem:[#allocation153_spill] sm:$0xff] %v26529_v12 }
 0x331   : > { %19413 = vmatmul.mubr.msk.f32.gmra.mrb[36].mxu1 %vm1287_vm1, %v25748_v60 }
 0x332   : > { %19415 = vmatprep.mubr.msk.f32.mxu1 %vm1287_vm1, %v25752_v44  ;;  %v31249_v44 = vld [vmem:[#allocation300_spill] sm:$0xff] }
 0x333   : > { %20121 = vmatmul.mubr.msk.f32.gmra.mrb[120].mxu0 %vm1287_vm1, %v26481_v58 }
 0x334   : > { %20123 = vmatprep.mubr.msk.f32.mxu0 %vm1287_vm1, %v26487_v20 }
 0x335   : > { %19416 = vmatmul.mubr.msk.f32.gmra.mrb[38].mxu1 %vm1287_vm1, %v25765_v59  ;;  %v31250_v59 = vld [vmem:[#allocation62_spill] sm:$0xff] }
 0x336   : > { %19418 = vmatprep.mubr.msk.f32.mxu1 %vm1287_vm1, %v25769_v35 }
 0x337   : > { %20124 = vmatmul.mubr.msk.f32.gmra.mrb[122].mxu0 %vm1287_vm1, %v26499_v29 }
 0x338   : > { %20126 = vmatprep.mubr.msk.f32.mxu0 %vm1287_vm1, %v26503_v10  ;;  %v31252_v10 = vld [vmem:[#allocation301_spill] sm:$0xff] }
 0x339   : > { %19419 = vmatmul.mubr.msk.f32.gmra.mrb[40].mxu1 %vm1287_vm1, %v31249_v44 }
 0x33a   : > { %19421 = vmatprep.mubr.msk.f32.mxu1 %vm1287_vm1, %v31250_v59  ;;  %v31256_v59 = vld [vmem:[#allocation13_spill] sm:$0xff] }
 0x33b   : > { %20127 = vmatmul.mubr.msk.f32.gmra.mrb[124].mxu0 %vm1287_vm1, %v26514_v26  ;;  %v31255_v26 = vld [vmem:[#allocation303_spill] sm:$0xff] }
 0x33c   : > { %20129 = vmatprep.mubr.msk.f32.mxu0 %vm1287_vm1, %v26518_v37  ;;  %v31259_v37 = vld [vmem:[#allocation18_spill] sm:$0xff] }
 0x33d   : > { %19422 = vmatmul.mubr.msk.f32.gmra.mrb[42].mxu1 %vm1287_vm1, %v31252_v10 }
 0x33e   : > { %19424 = vmatprep.mubr.msk.f32.mxu1 %vm1287_vm1, %v31253_v50  ;;  %v31261_v50 = vld [vmem:[#allocation20_spill] sm:$0xff] }
 0x33f   : > { %20130 = vmatmul.mubr.msk.f32.gmra.mrb[126].mxu0 %vm1287_vm1, %v26529_v12  ;;  %v31260_v12 = vld [vmem:[#allocation304_spill] sm:$0xff] }
 0x340   : > { %20134 = vmatprep.mubr.msk.f32.mxu0 %vm1287_vm1, %v31254_v43  ;;  %v31262_v43 = vld [vmem:[#allocation305_spill] sm:$0xff] }
 0x341   : > { %19425 = vmatmul.mubr.msk.f32.gmra.mrb[44].mxu1 %vm1287_vm1, %v31255_v26  ;;  %v31263_v26 = vld [vmem:[#allocation23_spill] sm:$0xff] }
 0x342   : > { %19427 = vmatprep.mubr.msk.f32.mxu1 %vm1287_vm1, %v31257_v57  ;;  %v31265_v57 = vld [vmem:[#allocation22_spill] sm:$0xff] }
 0x343   : > { %20135 = vmatmul.mubr.msk.f32.vlgmr.msra.gmra.mrb[0].mxu0 %vm1287_vm1, %v31256_v59  ;;  %v31264_v59 = vld [vmem:[#allocation306_spill] sm:$0xff] }
 0x344   : > { %20327 = vmatpush3.msk.msra.mxu0 %vm1538_vm0, %v31258_v13  ;;  %20137 = vmatprep.mubr.msk.f32.mxu0 %vm1287_vm1, %v31259_v37  ;;  %v31266_v13 = vld [vmem:[#allocation72_spill] sm:$0xff]  ;;  %v31267_v37 = vld [vmem:[#allocation26_spill] sm:$0xff] }
 0x345   : > { %19428 = vmatmul.mubr.msk.f32.gmra.mrb[46].mxu1 %vm1287_vm1, %v31260_v12  ;;  %v31268_v12 = vld [vmem:[#allocation307_spill] sm:$0xff] }
 0x346   : > { %19430 = vmatprep.mubr.msk.f32.mxu1 %vm1287_vm1, %v31262_v43  ;;  %v31270_v43 = vld [vmem:[#allocation308_spill] sm:$0xff] }
 0x347   : > { %20138 = vmatmul.mubr.msk.f32.gmra.mrb[2].mxu0 %vm1287_vm1, %v31261_v50  ;;  %v31269_v50 = vld [vmem:[#allocation27_spill] sm:$0xff] }
 0x348   : > { %20140 = vmatprep.mubr.msk.f32.mxu0 %vm1287_vm1, %v31263_v26  ;;  %v31271_v26 = vld [vmem:[#allocation31_spill] sm:$0xff] }
 0x349   : > { %19431 = vmatmul.mubr.msk.f32.gmra.mrb[48].mxu1 %vm1287_vm1, %v31264_v59  ;;  %v31272_v59 = vld [vmem:[#allocation309_spill] sm:$0xff] }
 0x34a   : > { %19433 = vmatprep.mubr.msk.f32.mxu1 %vm1287_vm1, %v31266_v13  ;;  %v31274_v13 = vld [vmem:[#allocation77_spill] sm:$0xff] }
 0x34b   : > { %20141 = vmatmul.mubr.msk.f32.gmra.mrb[4].mxu0 %vm1287_vm1, %v31265_v57  ;;  %v31273_v57 = vld [vmem:[#allocation30_spill] sm:$0xff] }
 0x34c   : > { %20143 = vmatprep.mubr.msk.f32.mxu0 %vm1287_vm1, %v31267_v37  ;;  %v31275_v37 = vld [vmem:[#allocation34_spill] sm:$0xff] }
 0x34d   : > { %19434 = vmatmul.mubr.msk.f32.gmra.mrb[50].mxu1 %vm1287_vm1, %v31268_v12  ;;  %v31276_v12 = vld [vmem:[#allocation310_spill] sm:$0xff] }
 0x34e   : > { %19436 = vmatprep.mubr.msk.f32.mxu1 %vm1287_vm1, %v31270_v43  ;;  %v31278_v43 = vld [vmem:[#allocation311_spill] sm:$0xff] }
 0x34f   : > { %20144 = vmatmul.mubr.msk.f32.gmra.mrb[6].mxu0 %vm1287_vm1, %v31269_v50  ;;  %v31277_v50 = vld [vmem:[#allocation35_spill] sm:$0xff] }
 0x350   : > { %20146 = vmatprep.mubr.msk.f32.mxu0 %vm1287_vm1, %v31271_v26  ;;  %v31279_v26 = vld [vmem:[#allocation41_spill] sm:$0xff] }
 0x351   : > { %19437 = vmatmul.mubr.msk.f32.gmra.mrb[52].mxu1 %vm1287_vm1, %v31272_v59  ;;  %v31280_v59 = vld [vmem:[#allocation312_spill] sm:$0xff] }
 0x352   : > { %19439 = vmatprep.mubr.msk.f32.mxu1 %vm1287_vm1, %v31274_v13  ;;  %v31282_v13 = vld [vmem:[#allocation82_spill] sm:$0xff] }
 0x353   : > { %20147 = vmatmul.mubr.msk.f32.gmra.mrb[8].mxu0 %vm1287_vm1, %v31273_v57  ;;  %v31281_v57 = vld [vmem:[#allocation42_spill] sm:$0xff] }
 0x354   : > { %20149 = vmatprep.mubr.msk.f32.mxu0 %vm1287_vm1, %v31275_v37  ;;  %v31283_v37 = vld [vmem:[#allocation43_spill] sm:$0xff] }
 0x355   : > { %19440 = vmatmul.mubr.msk.f32.gmra.mrb[54].mxu1 %vm1287_vm1, %v31276_v12  ;;  %v31284_v12 = vld [vmem:[#allocation313_spill] sm:$0xff] }
 0x356   : > { %19442 = vmatprep.mubr.msk.f32.mxu1 %vm1287_vm1, %v31278_v43  ;;  %v31286_v43 = vld [vmem:[#allocation314_spill] sm:$0xff] }
 0x357   : > { %20150 = vmatmul.mubr.msk.f32.gmra.mrb[10].mxu0 %vm1287_vm1, %v31277_v50  ;;  %v31285_v50 = vld [vmem:[#allocation44_spill] sm:$0xff] }
 0x358   : > { %20152 = vmatprep.mubr.msk.f32.mxu0 %vm1287_vm1, %v31279_v26  ;;  %v31287_v26 = vld [vmem:[#allocation45_spill] sm:$0xff] }
 0x359   : > { %19443 = vmatmul.mubr.msk.f32.gmra.mrb[56].mxu1 %vm1287_vm1, %v31280_v59  ;;  %v31288_v59 = vld [vmem:[#allocation315_spill] sm:$0xff] }
 0x35a   : > { %19445 = vmatprep.mubr.msk.f32.mxu1 %vm1287_vm1, %v31282_v13  ;;  %v31290_v13 = vld [vmem:[#allocation87_spill] sm:$0xff] }
 0x35b   : > { %20153 = vmatmul.mubr.msk.f32.gmra.mrb[12].mxu0 %vm1287_vm1, %v31281_v57  ;;  %v31289_v57 = vld [vmem:[#allocation46_spill] sm:$0xff] }
 0x35c   : > { %20155 = vmatprep.mubr.msk.f32.mxu0 %vm1287_vm1, %v31283_v37  ;;  %v31291_v37 = vld [vmem:[#allocation47_spill] sm:$0xff] }
 0x35d   : > { %19446 = vmatmul.mubr.msk.f32.gmra.mrb[58].mxu1 %vm1287_vm1, %v31284_v12  ;;  %v31292_v12 = vld [vmem:[#allocation316_spill] sm:$0xff] }
 0x35e   : > { %19448 = vmatprep.mubr.msk.f32.mxu1 %vm1287_vm1, %v31286_v43  ;;  %v31294_v43 = vld [vmem:[#allocation317_spill] sm:$0xff] }
 0x35f   : > { %20156 = vmatmul.mubr.msk.f32.gmra.mrb[14].mxu0 %vm1287_vm1, %v31285_v50  ;;  %v31293_v50 = vld [vmem:[#allocation48_spill] sm:$0xff] }
 0x360   : > { %20158 = vmatprep.mubr.msk.f32.mxu0 %vm1287_vm1, %v31287_v26  ;;  %v31295_v26 = vld [vmem:[#allocation49_spill] sm:$0xff] }
 0x361   : > { %19449 = vmatmul.mubr.msk.f32.gmra.mrb[60].mxu1 %vm1287_vm1, %v31288_v59  ;;  %v31296_v59 = vld [vmem:[#allocation318_spill] sm:$0xff] }
 0x362   : > { %19451 = vmatprep.mubr.msk.f32.mxu1 %vm1287_vm1, %v31290_v13  ;;  %v31298_v13 = vld [vmem:[#allocation92_spill] sm:$0xff] }
 0x363   : > { %20159 = vmatmul.mubr.msk.f32.gmra.mrb[16].mxu0 %vm1287_vm1, %v31289_v57  ;;  %v31297_v57 = vld [vmem:[#allocation50_spill] sm:$0xff] }
 0x364   : > { %20161 = vmatprep.mubr.msk.f32.mxu0 %vm1287_vm1, %v31291_v37  ;;  %v31299_v37 = vld [vmem:[#allocation51_spill] sm:$0xff] }
 0x365   : > { %19452 = vmatmul.mubr.msk.f32.gmra.mrb[62].mxu1 %vm1287_vm1, %v31292_v12  ;;  %v31300_v12 = vld [vmem:[#allocation319_spill] sm:$0xff] }
 0x366   : > { %19454 = vmatprep.mubr.msk.f32.mxu1 %vm1287_vm1, %v31294_v43  ;;  %v31302_v43 = vld [vmem:[#allocation320_spill] sm:$0xff] }
 0x367   : > { %20162 = vmatmul.mubr.msk.f32.gmra.mrb[18].mxu0 %vm1287_vm1, %v31293_v50  ;;  %v31301_v50 = vld [vmem:[#allocation52_spill] sm:$0xff] }
 0x368   : > { %20164 = vmatprep.mubr.msk.f32.mxu0 %vm1287_vm1, %v31295_v26  ;;  %v31303_v26 = vld [vmem:[#allocation53_spill] sm:$0xff] }
 0x369   : > { %19455 = vmatmul.mubr.msk.f32.gmra.mrb[64].mxu1 %vm1287_vm1, %v31296_v59  ;;  %v31304_v59 = vld [vmem:[#allocation321_spill] sm:$0xff] }
 0x36a   : > { %19457 = vmatprep.mubr.msk.f32.mxu1 %vm1287_vm1, %v31298_v13  ;;  %v31306_v13 = vld [vmem:[#allocation322_spill] sm:$0xff] }
 0x36b   : > { %20165 = vmatmul.mubr.msk.f32.gmra.mrb[20].mxu0 %vm1287_vm1, %v31297_v57  ;;  %v31305_v57 = vld [vmem:[#allocation54_spill] sm:$0xff] }
 0x36c   : > { %20167 = vmatprep.mubr.msk.f32.mxu0 %vm1287_vm1, %v31299_v37  ;;  %v31307_v37 = vld [vmem:[#allocation55_spill] sm:$0xff] }
 0x36d   : > { %19458 = vmatmul.mubr.msk.f32.gmra.mrb[66].mxu1 %vm1287_vm1, %v31300_v12  ;;  %v31308_v12 = vld [vmem:[#allocation323_spill] sm:$0xff] }
 0x36e   : > { %19460 = vmatprep.mubr.msk.f32.mxu1 %vm1287_vm1, %v31302_v43  ;;  %v31310_v43 = vld [vmem:[#allocation324_spill] sm:$0xff] }
 0x36f   : > { %20168 = vmatmul.mubr.msk.f32.gmra.mrb[22].mxu0 %vm1287_vm1, %v31301_v50  ;;  %v31309_v50 = vld [vmem:[#allocation56_spill] sm:$0xff] }
 0x370   : > { %20170 = vmatprep.mubr.msk.f32.mxu0 %vm1287_vm1, %v31303_v26  ;;  %v31311_v26 = vld [vmem:[#allocation57_spill] sm:$0xff] }
 0x371   : > { %19461 = vmatmul.mubr.msk.f32.gmra.mrb[68].mxu1 %vm1287_vm1, %v31304_v59  ;;  %v31312_v59 = vld [vmem:[#allocation325_spill] sm:$0xff] }
 0x372   : > { %19463 = vmatprep.mubr.msk.f32.mxu1 %vm1287_vm1, %v31306_v13  ;;  %v31314_v13 = vld [vmem:[#allocation102_spill] sm:$0xff] }
 0x373   : > { %20171 = vmatmul.mubr.msk.f32.gmra.mrb[24].mxu0 %vm1287_vm1, %v31305_v57  ;;  %v31313_v57 = vld [vmem:[#allocation58_spill] sm:$0xff] }
 0x374   : > { %20173 = vmatprep.mubr.msk.f32.mxu0 %vm1287_vm1, %v31307_v37  ;;  %v31315_v37 = vld [vmem:[#allocation59_spill] sm:$0xff] }
 0x375   : > { %19464 = vmatmul.mubr.msk.f32.gmra.mrb[70].mxu1 %vm1287_vm1, %v31308_v12  ;;  %v31316_v12 = vld [vmem:[#allocation326_spill] sm:$0xff] }
 0x376   : > { %19466 = vmatprep.mubr.msk.f32.mxu1 %vm1287_vm1, %v31310_v43  ;;  %v31318_v43 = vld [vmem:[#allocation327_spill] sm:$0xff] }
 0x377   : > { %20174 = vmatmul.mubr.msk.f32.gmra.mrb[26].mxu0 %vm1287_vm1, %v31309_v50  ;;  %v31317_v50 = vld [vmem:[#allocation60_spill] sm:$0xff] }
 0x378   : > { %20176 = vmatprep.mubr.msk.f32.mxu0 %vm1287_vm1, %v31311_v26  ;;  %v31319_v26 = vld [vmem:[#allocation61_spill] sm:$0xff] }
 0x379   : > { %19467 = vmatmul.mubr.msk.f32.gmra.mrb[72].mxu1 %vm1287_vm1, %v31312_v59  ;;  %v31320_v59 = vld [vmem:[#allocation328_spill] sm:$0xff] }
 0x37a   : > { %19469 = vmatprep.mubr.msk.f32.mxu1 %vm1287_vm1, %v31314_v13  ;;  %v31322_v13 = vld [vmem:[#allocation107_spill] sm:$0xff] }
 0x37b   : > { %20177 = vmatmul.mubr.msk.f32.gmra.mrb[28].mxu0 %vm1287_vm1, %v31313_v57  ;;  %v31321_v57 = vld [vmem:[#allocation63_spill] sm:$0xff] }
 0x37c   : > { %20179 = vmatprep.mubr.msk.f32.mxu0 %vm1287_vm1, %v31315_v37  ;;  %v31323_v37 = vld [vmem:[#allocation64_spill] sm:$0xff] }
 0x37d   : > { %19470 = vmatmul.mubr.msk.f32.gmra.mrb[74].mxu1 %vm1287_vm1, %v31316_v12  ;;  %v31324_v12 = vld [vmem:[#allocation329_spill] sm:$0xff] }
 0x37e   : > { %19472 = vmatprep.mubr.msk.f32.mxu1 %vm1287_vm1, %v31318_v43  ;;  %v31326_v43 = vld [vmem:[#allocation330_spill] sm:$0xff] }
 0x37f   : > { %20180 = vmatmul.mubr.msk.f32.gmra.mrb[30].mxu0 %vm1287_vm1, %v31317_v50  ;;  %v31325_v50 = vld [vmem:[#allocation65_spill] sm:$0xff] }
 0x380   : > { %20182 = vmatprep.mubr.msk.f32.mxu0 %vm1287_vm1, %v31319_v26  ;;  %v31327_v26 = vld [vmem:[#allocation66_spill] sm:$0xff] }
 0x381   : > { %19473 = vmatmul.mubr.msk.f32.gmra.mrb[76].mxu1 %vm1287_vm1, %v31320_v59  ;;  %v31328_v59 = vld [vmem:[#allocation331_spill] sm:$0xff] }
 0x382   : > { %19475 = vmatprep.mubr.msk.f32.mxu1 %vm1287_vm1, %v31322_v13  ;;  %v31330_v13 = vld [vmem:[#allocation112_spill] sm:$0xff] }
 0x383   : > { %20183 = vmatmul.mubr.msk.f32.gmra.mrb[32].mxu0 %vm1287_vm1, %v31321_v57  ;;  %v31329_v57 = vld [vmem:[#allocation68_spill] sm:$0xff] }
 0x384   : > { %20185 = vmatprep.mubr.msk.f32.mxu0 %vm1287_vm1, %v31323_v37  ;;  %v31331_v37 = vld [vmem:[#allocation69_spill] sm:$0xff] }
 0x385   : > { %19476 = vmatmul.mubr.msk.f32.gmra.mrb[78].mxu1 %vm1287_vm1, %v31324_v12 }
 0x386   : > { %19478 = vmatprep.mubr.msk.f32.mxu1 %vm1287_vm1, %v31326_v43 }
 0x387   : > { %20186 = vmatmul.mubr.msk.f32.gmra.mrb[34].mxu0 %vm1287_vm1, %v31325_v50  ;;  %v31332_v50 = vld [vmem:[#allocation70_spill] sm:$0xff] }
 0x388   : > { %20188 = vmatprep.mubr.msk.f32.mxu0 %vm1287_vm1, %v31327_v26  ;;  %v31333_v26 = vld [vmem:[#allocation71_spill] sm:$0xff] }
 0x389   : > { %19479 = vmatmul.mubr.msk.f32.gmra.mrb[80].mxu1 %vm1287_vm1, %v31328_v59  ;;  %v31334_v59 = vld [vmem:[#allocation333_spill] sm:$0xff] }
 0x38a   : > { %19481 = vmatprep.mubr.msk.f32.mxu1 %vm1287_vm1, %v31330_v13  ;;  %v31336_v13 = vld [vmem:[#allocation117_spill] sm:$0xff] }
 0x38b   : > { %20189 = vmatmul.mubr.msk.f32.gmra.mrb[36].mxu0 %vm1287_vm1, %v31329_v57  ;;  %v31335_v57 = vld [vmem:[#allocation73_spill] sm:$0xff] }
 0x38c   : > { %20191 = vmatprep.mubr.msk.f32.mxu0 %vm1287_vm1, %v31331_v37  ;;  %v31337_v37 = vld [vmem:[#allocation74_spill] sm:$0xff] }
 0x38d   : > { %19482 = vmatmul.mubr.msk.f32.gmra.mrb[82].mxu1 %vm1287_vm1, %v26135_v63 }
 0x38e   : > { %19484 = vmatprep.mubr.msk.f32.mxu1 %vm1287_vm1, %v26139_v1  ;;  %v31339_v1 = vld [vmem:[#allocation334_spill] sm:$0xff] }
 0x38f   : > { %20192 = vmatmul.mubr.msk.f32.gmra.mrb[38].mxu0 %vm1287_vm1, %v31332_v50  ;;  %v31338_v50 = vld [vmem:[#allocation75_spill] sm:$0xff] }
 0x390   : > { %20194 = vmatprep.mubr.msk.f32.mxu0 %vm1287_vm1, %v31333_v26  ;;  %v31340_v26 = vld [vmem:[#allocation76_spill] sm:$0xff] }
 0x391   : > { %19485 = vmatmul.mubr.msk.f32.gmra.mrb[84].mxu1 %vm1287_vm1, %v31334_v59  ;;  %v31341_v59 = vld [vmem:[#allocation335_spill] sm:$0xff] }
 0x392   : > { %19487 = vmatprep.mubr.msk.f32.mxu1 %vm1287_vm1, %v31336_v13  ;;  %v31343_v13 = vld [vmem:[#allocation122_spill] sm:$0xff] }
 0x393   : > { %20195 = vmatmul.mubr.msk.f32.gmra.mrb[40].mxu0 %vm1287_vm1, %v31335_v57  ;;  %v31342_v57 = vld [vmem:[#allocation78_spill] sm:$0xff] }
 0x394   : > { %20197 = vmatprep.mubr.msk.f32.mxu0 %vm1287_vm1, %v31337_v37  ;;  %v31344_v37 = vld [vmem:[#allocation79_spill] sm:$0xff] }
 0x395   : > { %19488 = vmatmul.mubr.msk.f32.gmra.mrb[86].mxu1 %vm1287_vm1, %v26168_v30 }
 0x396   : > { %19490 = vmatprep.mubr.msk.f32.mxu1 %vm1287_vm1, %v31339_v1  ;;  %v31346_v1 = vld [vmem:[#allocation337_spill] sm:$0xff] }
 0x397   : > { %20198 = vmatmul.mubr.msk.f32.gmra.mrb[42].mxu0 %vm1287_vm1, %v31338_v50  ;;  %v31345_v50 = vld [vmem:[#allocation80_spill] sm:$0xff] }
 0x398   : > { %20200 = vmatprep.mubr.msk.f32.mxu0 %vm1287_vm1, %v31340_v26  ;;  %v31347_v26 = vld [vmem:[#allocation81_spill] sm:$0xff] }
 0x399   : > { %19491 = vmatmul.mubr.msk.f32.gmra.mrb[88].mxu1 %vm1287_vm1, %v31341_v59  ;;  %v31348_v59 = vld [vmem:[#allocation152_spill] sm:$0xff] }
 0x39a   : > { %19493 = vmatprep.mubr.msk.f32.mxu1 %vm1287_vm1, %v31343_v13  ;;  %v31350_v13 = vld [vmem:[#allocation127_spill] sm:$0xff] }
 0x39b   : > { %20201 = vmatmul.mubr.msk.f32.gmra.mrb[44].mxu0 %vm1287_vm1, %v31342_v57  ;;  %v31349_v57 = vld [vmem:[#allocation83_spill] sm:$0xff] }
 0x39c   : > { %20203 = vmatprep.mubr.msk.f32.mxu0 %vm1287_vm1, %v31344_v37  ;;  %v31351_v37 = vld [vmem:[#allocation84_spill] sm:$0xff] }
 0x39d   : > { %19494 = vmatmul.mubr.msk.f32.gmra.mrb[90].mxu1 %vm1287_vm1, %v26201_v21  ;;  %v31352_v21 = vld [vmem:[#allocation154_spill] sm:$0xff] }
 0x39e   : > { %19496 = vmatprep.mubr.msk.f32.mxu1 %vm1287_vm1, %v31346_v1  ;;  %v31354_v1 = vld [vmem:[#allocation338_spill] sm:$0xff] }
 0x39f   : > { %20204 = vmatmul.mubr.msk.f32.gmra.mrb[46].mxu0 %vm1287_vm1, %v31345_v50  ;;  %v31353_v50 = vld [vmem:[#allocation85_spill] sm:$0xff] }
 0x3a0   : > { %20206 = vmatprep.mubr.msk.f32.mxu0 %vm1287_vm1, %v31347_v26  ;;  %v31355_v26 = vld [vmem:[#allocation86_spill] sm:$0xff] }
 0x3a1   : > { %19497 = vmatmul.mubr.msk.f32.gmra.mrb[92].mxu1 %vm1287_vm1, %v31348_v59  ;;  %v31356_v59 = vld [vmem:[#allocation156_spill] sm:$0xff] }
 0x3a2   : > { %19499 = vmatprep.mubr.msk.f32.mxu1 %vm1287_vm1, %v31350_v13  ;;  %v31358_v13 = vld [vmem:[#allocation157_spill] sm:$0xff] }
 0x3a3   : > { %20207 = vmatmul.mubr.msk.f32.gmra.mrb[48].mxu0 %vm1287_vm1, %v31349_v57  ;;  %v31357_v57 = vld [vmem:[#allocation88_spill] sm:$0xff] }
 0x3a4   : > { %20209 = vmatprep.mubr.msk.f32.mxu0 %vm1287_vm1, %v31351_v37  ;;  %v31359_v37 = vld [vmem:[#allocation89_spill] sm:$0xff] }
 0x3a5   : > { %19500 = vmatmul.mubr.msk.f32.gmra.mrb[94].mxu1 %vm1287_vm1, %v31352_v21 }
 0x3a6   : > { %19502 = vmatprep.mubr.msk.f32.mxu1 %vm1287_vm1, %v31354_v1 }
 0x3a7   : > { %20210 = vmatmul.mubr.msk.f32.gmra.mrb[50].mxu0 %vm1287_vm1, %v31353_v50  ;;  %v31360_v50 = vld [vmem:[#allocation90_spill] sm:$0xff] }
 0x3a8   : > { %20212 = vmatprep.mubr.msk.f32.mxu0 %vm1287_vm1, %v31355_v26  ;;  %v31361_v26 = vld [vmem:[#allocation91_spill] sm:$0xff] }
 0x3a9   : > { %19503 = vmatmul.mubr.msk.f32.gmra.mrb[96].mxu1 %vm1287_vm1, %v31356_v59  ;;  %v31362_v59 = vld [vmem:[#allocation132_spill] sm:$0xff] }
 0x3aa   : > { %19505 = vmatprep.mubr.msk.f32.mxu1 %vm1287_vm1, %v31358_v13  ;;  %v31364_v13 = vld [vmem:[#allocation160_spill] sm:$0xff] }
 0x3ab   : > { %20213 = vmatmul.mubr.msk.f32.gmra.mrb[52].mxu0 %vm1287_vm1, %v31357_v57  ;;  %v31363_v57 = vld [vmem:[#allocation93_spill] sm:$0xff] }
 0x3ac   : > { %20215 = vmatprep.mubr.msk.f32.mxu0 %vm1287_vm1, %v31359_v37  ;;  %v31365_v37 = vld [vmem:[#allocation94_spill] sm:$0xff] }
 0x3ad   : > { %19506 = vmatmul.mubr.msk.f32.gmra.mrb[98].mxu1 %vm1287_vm1, %v26267_v7 }
 0x3ae   : > { %19508 = vmatprep.mubr.msk.f32.mxu1 %vm1287_vm1, %v26271_v40 }
 0x3af   : > { %20216 = vmatmul.mubr.msk.f32.gmra.mrb[54].mxu0 %vm1287_vm1, %v31360_v50  ;;  %v31366_v50 = vld [vmem:[#allocation95_spill] sm:$0xff] }
 0x3b0   : > { %20218 = vmatprep.mubr.msk.f32.mxu0 %vm1287_vm1, %v31361_v26  ;;  %v31367_v26 = vld [vmem:[#allocation96_spill] sm:$0xff] }
 0x3b1   : > { %19509 = vmatmul.mubr.msk.f32.gmra.mrb[100].mxu1 %vm1287_vm1, %v31362_v59 }
 0x3b2   : > { %19511 = vmatprep.mubr.msk.f32.mxu1 %vm1287_vm1, %v31364_v13  ;;  %v26785_v13 = vpop.f32.mrb[0].mxu1 }
 0x3b3   : > { %20219 = vmatmul.mubr.msk.f32.gmra.mrb[56].mxu0 %vm1287_vm1, %v31363_v57  ;;  %v31368_v57 = vld [vmem:[#allocation98_spill] sm:$0xff]  ;;  %31369 = vst [vmem:[#allocation158_spill] sm:$0xff] %v26785_v13 }
 0x3b4   : > { %20221 = vmatprep.mubr.msk.f32.mxu0 %vm1287_vm1, %v31365_v37  ;;  %v31370_v37 = vld [vmem:[#allocation99_spill] sm:$0xff] }
 0x3b5   : > { %19512 = vmatmul.mubr.msk.f32.gmra.mrb[102].mxu1 %vm1287_vm1, %v26300_v49 }
 0x3b6   : > { %19514 = vmatprep.mubr.msk.f32.mxu1 %vm1287_vm1, %v26304_v61 }
 0x3b7   : > { %20222 = vmatmul.mubr.msk.f32.gmra.mrb[58].mxu0 %vm1287_vm1, %v31366_v50  ;;  %v26791_v50 = vpop.f32.mrb[1].mxu1 }
 0x3b8   : > { %20224 = vmatprep.mubr.msk.f32.mxu0 %vm1287_vm1, %v31367_v26  ;;  %31371 = vst [vmem:[#allocation166_spill] sm:$0xff] %v26791_v50  ;;  %v31372_v26 = vld [vmem:[#allocation100_spill] sm:$0xff]  ;;  %v31379_v50 = vld [vmem:[#allocation105_spill] sm:$0xff] }
 0x3b9   : > { %19515 = vmatmul.mubr.msk.f32.gmra.mrb[104].mxu1 %vm1287_vm1, %v26316_v34  ;;  %v26797_v34 = vpop.f32.mrb[2].mxu1 }
 0x3ba   : > { %19517 = vmatprep.mubr.msk.f32.mxu1 %vm1287_vm1, %v26320_v11  ;;  %31373 = vst [vmem:[#allocation300_spill] sm:$0xff] %v26797_v34  ;;  %v26803_v13 = vpop.f32.mrb[3].mxu1 }
 0x3bb   : > { %20225 = vmatmul.mubr.msk.f32.gmra.mrb[60].mxu0 %vm1287_vm1, %v31368_v57  ;;  %v31374_v57 = vld [vmem:[#allocation101_spill] sm:$0xff]  ;;  %31375 = vst [vmem:[#allocation301_spill] sm:$0xff] %v26803_v13  ;;  %v26820_v13 = vpop.f32.mrb[4].mxu1 }
 0x3bc   : > { %20227 = vmatprep.mubr.msk.f32.mxu0 %vm1287_vm1, %v31370_v37  ;;  %v26808_v37 = vld [vmem:[%s29815_s1 + $0x20] sm:$0x7]  ;;  %v26822_v34 = vpop.f32.mrb[5].mxu1 }
 0x3bd   : > { %19518 = vmatmul.mubr.msk.f32.gmra.mrb[106].mxu1 %vm1287_vm1, %v26333_v6  ;;  %20520 = vmatprep.subr.msk.mxu0 %vm1538_vm0, %v26808_v37  ;;  %31378 = vst [vmem:[#allocation14_spill] sm:$0xff] %v26822_v34 }
 0x3be   : > { %19520 = vmatprep.mubr.msk.f32.mxu1 %vm1287_vm1, %v26337_v45 }
 0x3bf   : > { %20228 = vmatmul.mubr.msk.f32.gmra.mrb[62].mxu0 %vm1287_vm1, %v31372_v26  ;;  %v31376_v26 = vld [vmem:[#allocation103_spill] sm:$0xff] }
 0x3c0   : > { %20230 = vmatprep.mubr.msk.f32.mxu0 %vm1287_vm1, %v31374_v57  ;;  %v31377_v57 = vld [vmem:[#allocation104_spill] sm:$0xff] }
 0x3c1   : > { %19521 = vmatmul.mubr.msk.f32.gmra.mrb[108].mxu1 %vm1287_vm1, %v26349_v22  ;;  %v26828_v22 = vpop.f32.mrb[6].mxu1 }
 0x3c2   : > { %19523 = vmatprep.mubr.msk.f32.mxu1 %vm1287_vm1, %v26353_v33  ;;  %31380 = vst [vmem:[#allocation13_spill] sm:$0xff] %v26828_v22  ;;  %v26834_v33 = vpop.f32.mrb[7].mxu1 }
 0x3c3   : > { %20231 = vmatmul.mubr.msk.f32.gmra.mrb[64].mxu0 %vm1287_vm1, %v31376_v26  ;;  %v31381_v26 = vld [vmem:[#allocation106_spill] sm:$0xff]  ;;  %31382 = vst [vmem:[#allocation97_spill] sm:$0xff] %v26834_v33  ;;  %v26840_v34 = vpop.f32.mrb[8].mxu1 }
 0x3c4   : > { %20233 = vmatprep.mubr.msk.f32.mxu0 %vm1287_vm1, %v31377_v57  ;;  %v31383_v57 = vld [vmem:[#allocation108_spill] sm:$0xff]  ;;  %31384 = vst [vmem:[#allocation18_spill] sm:$0xff] %v26840_v34  ;;  %v26846_v22 = vpop.f32.mrb[9].mxu1 }
 0x3c5   : > { %19524 = vmatmul.mubr.msk.f32.gmra.mrb[110].mxu1 %vm1287_vm1, %v26366_v18  ;;  %31386 = vst [vmem:[#allocation20_spill] sm:$0xff] %v26846_v22  ;;  %v26852_v33 = vpop.f32.mrb[10].mxu1 }
 0x3c6   : > { %19526 = vmatprep.mubr.msk.f32.mxu1 %vm1287_vm1, %v26370_v62  ;;  %31388 = vst [vmem:[#allocation23_spill] sm:$0xff] %v26852_v33  ;;  %v26858_v34 = vpop.f32.mrb[11].mxu1 }
 0x3c7   : > { %20234 = vmatmul.mubr.msk.f32.gmra.mrb[66].mxu0 %vm1287_vm1, %v31379_v50  ;;  %v31385_v50 = vld [vmem:[#allocation109_spill] sm:$0xff]  ;;  %31390 = vst [vmem:[#allocation22_spill] sm:$0xff] %v26858_v34  ;;  %v26864_v22 = vpop.f32.mrb[12].mxu1 }
 0x3c8   : > { %20236 = vmatprep.mubr.msk.f32.mxu0 %vm1287_vm1, %v31381_v26  ;;  %v31387_v26 = vld [vmem:[#allocation110_spill] sm:$0xff]  ;;  %31392 = vst [vmem:[#allocation26_spill] sm:$0xff] %v26864_v22  ;;  %v26870_v33 = vpop.f32.mrb[13].mxu1 }
 0x3c9   : > { %19527 = vmatmul.mubr.msk.f32.gmra.mrb[112].mxu1 %vm1287_vm1, %v26382_v46  ;;  %31394 = vst [vmem:[#allocation27_spill] sm:$0xff] %v26870_v33  ;;  %v26876_v34 = vpop.f32.mrb[14].mxu1 }
 0x3ca   : > { %19529 = vmatprep.mubr.msk.f32.mxu1 %vm1287_vm1, %v26386_v28  ;;  %31396 = vst [vmem:[#allocation31_spill] sm:$0xff] %v26876_v34  ;;  %v26882_v22 = vpop.f32.mrb[15].mxu1 }
 0x3cb   : > { %20237 = vmatmul.mubr.msk.f32.gmra.mrb[68].mxu0 %vm1287_vm1, %v31383_v57  ;;  %v31389_v57 = vld [vmem:[#allocation111_spill] sm:$0xff]  ;;  %31398 = vst [vmem:[#allocation30_spill] sm:$0xff] %v26882_v22  ;;  %v26888_v33 = vpop.f32.mrb[16].mxu1 }
 0x3cc   : > { %20239 = vmatprep.mubr.msk.f32.mxu0 %vm1287_vm1, %v31385_v50  ;;  %v31391_v50 = vld [vmem:[#allocation113_spill] sm:$0xff]  ;;  %31400 = vst [vmem:[#allocation34_spill] sm:$0xff] %v26888_v33  ;;  %v26894_v34 = vpop.f32.mrb[17].mxu1 }
 0x3cd   : > { %19530 = vmatmul.mubr.msk.f32.gmra.mrb[114].mxu1 %vm1287_vm1, %v26399_v15  ;;  %31402 = vst [vmem:[#allocation35_spill] sm:$0xff] %v26894_v34  ;;  %v26900_v22 = vpop.f32.mrb[18].mxu1 }
 0x3ce   : > { %19532 = vmatprep.mubr.msk.f32.mxu1 %vm1287_vm1, %v26403_v42  ;;  %31404 = vst [vmem:[#allocation41_spill] sm:$0xff] %v26900_v22  ;;  %v26906_v33 = vpop.f32.mrb[19].mxu1 }
 0x3cf   : > { %20240 = vmatmul.mubr.msk.f32.gmra.mrb[70].mxu0 %vm1287_vm1, %v31387_v26  ;;  %v31393_v26 = vld [vmem:[#allocation114_spill] sm:$0xff]  ;;  %31406 = vst [vmem:[#allocation42_spill] sm:$0xff] %v26906_v33 }
 0x3d0   : > { %20242 = vmatprep.mubr.msk.f32.mxu0 %vm1287_vm1, %v31389_v57  ;;  %v31395_v57 = vld [vmem:[#allocation115_spill] sm:$0xff]  ;;  %v31412_v33 = vld [vmem:[#allocation126_spill] sm:$0xff] }
 0x3d1   : > { %19533 = vmatmul.mubr.msk.f32.gmra.mrb[116].mxu1 %vm1287_vm1, %v26415_v25 }
 0x3d2   : > { %19535 = vmatprep.mubr.msk.f32.mxu1 %vm1287_vm1, %v26419_v54 }
 0x3d3   : > { %20243 = vmatmul.mubr.msk.f32.gmra.mrb[72].mxu0 %vm1287_vm1, %v31391_v50  ;;  %v31397_v50 = vld [vmem:[#allocation116_spill] sm:$0xff] }
 0x3d4   : > { %20245 = vmatprep.mubr.msk.f32.mxu0 %vm1287_vm1, %v31393_v26  ;;  %v31399_v26 = vld [vmem:[#allocation118_spill] sm:$0xff] }
 0x3d5   : > { %19536 = vmatmul.mubr.msk.f32.gmra.mrb[118].mxu1 %vm1287_vm1, %v26432_v48 }
 0x3d6   : > { %19538 = vmatprep.mubr.msk.f32.mxu1 %vm1287_vm1, %v26436_v38 }
 0x3d7   : > { %20246 = vmatmul.mubr.msk.f32.gmra.mrb[74].mxu0 %vm1287_vm1, %v31395_v57  ;;  %v31401_v57 = vld [vmem:[#allocation119_spill] sm:$0xff] }
 0x3d8   : > { %20248 = vmatprep.mubr.msk.f32.mxu0 %vm1287_vm1, %v31397_v50  ;;  %v31403_v50 = vld [vmem:[#allocation120_spill] sm:$0xff] }
 0x3d9   : > { %19539 = vmatmul.mubr.msk.f32.gmra.mrb[120].mxu1 %vm1287_vm1, %v26448_v39 }
 0x3da   : > { %19541 = vmatprep.mubr.msk.f32.mxu1 %vm1287_vm1, %v26452_v5 }
 0x3db   : > { %20249 = vmatmul.mubr.msk.f32.gmra.mrb[76].mxu0 %vm1287_vm1, %v31399_v26  ;;  %v31405_v26 = vld [vmem:[#allocation121_spill] sm:$0xff] }
 0x3dc   : > { %20251 = vmatprep.mubr.msk.f32.mxu0 %vm1287_vm1, %v31401_v57  ;;  %v31407_v57 = vld [vmem:[#allocation123_spill] sm:$0xff] }
 0x3dd   : > { %19542 = vmatmul.mubr.msk.f32.gmra.mrb[122].mxu1 %vm1287_vm1, %v26465_v14 }
 0x3de   : > { %19544 = vmatprep.mubr.msk.f32.mxu1 %vm1287_vm1, %v26469_v53 }
 0x3df   : > { %20252 = vmatmul.mubr.msk.f32.gmra.mrb[78].mxu0 %vm1287_vm1, %v31403_v50  ;;  %v31408_v50 = vld [vmem:[#allocation124_spill] sm:$0xff] }
 0x3e0   : > { %20254 = vmatprep.mubr.msk.f32.mxu0 %vm1287_vm1, %v31405_v26  ;;  %v31411_v26 = vld [vmem:[#allocation125_spill] sm:$0xff] }
 0x3e1   : > { %19545 = vmatmul.mubr.msk.f32.gmra.mrb[124].mxu1 %vm1287_vm1, %v26481_v58 }
 0x3e2   : > { %19547 = vmatprep.mubr.msk.f32.mxu1 %vm1287_vm1, %v26487_v20  ;;  %v31415_v20 = vld [vmem:[#allocation128_spill] sm:$0xff] }
 0x3e3   : > { %20255 = vmatmul.mubr.msk.f32.gmra.mrb[80].mxu0 %vm1287_vm1, %v31407_v57 }
 0x3e4   : > { %20257 = vmatprep.mubr.msk.f32.mxu0 %vm1287_vm1, %v31408_v50  ;;  %v26916_v22 = vpop.f32.mrb[20].mxu1  ;;  %v31416_v50 = vld [vmem:[#allocation129_spill] sm:$0xff] }
 0x3e5   : > { %31409 = vst [vmem:[#allocation43_spill] sm:$0xff] %v26916_v22  ;;  %v26918_v34 = vpop.f32.mrb[21].mxu1  ;;  %19548 = vmatmul.mubr.msk.f32.gmra.mrb[126].mxu1 %vm1287_vm1, %v26499_v29  ;;  %v31419_v29 = vld [vmem:[#allocation130_spill] sm:$0xff] }
 0x3e6   : > { %31410 = vst [vmem:[#allocation44_spill] sm:$0xff] %v26918_v34 }
 0x3e7   : > { %20258 = vmatmul.mubr.msk.f32.gmra.mrb[82].mxu0 %vm1287_vm1, %v31411_v26  ;;  %v31420_v26 = vld [vmem:[#allocation131_spill] sm:$0xff] }
 0x3e8   : > { %20260 = vmatprep.mubr.msk.f32.mxu0 %vm1287_vm1, %v31412_v33  ;;  %v26926_v57 = vpop.f32.mrb[22].mxu1 }
 0x3e9   : > { %31413 = vst [vmem:[#allocation45_spill] sm:$0xff] %v26926_v57  ;;  %v26928_v58 = vpop.f32.mrb[23].mxu1 }
 0x3ea   : > { %31414 = vst [vmem:[#allocation46_spill] sm:$0xff] %v26928_v58  ;;  %v31423_v58 = vld [vmem:[#allocation133_spill] sm:$0xff] }
 0x3eb   : > { %20261 = vmatmul.mubr.msk.f32.gmra.mrb[84].mxu0 %vm1287_vm1, %v31415_v20  ;;  %v31424_v20 = vld [vmem:[#allocation134_spill] sm:$0xff] }
 0x3ec   : > { %20263 = vmatprep.mubr.msk.f32.mxu0 %vm1287_vm1, %v31416_v50  ;;  %v26934_v34 = vpop.f32.mrb[24].mxu1 }
 0x3ed   : > { %31417 = vst [vmem:[#allocation47_spill] sm:$0xff] %v26934_v34  ;;  %v26936_v22 = vpop.f32.mrb[25].mxu1 }
 0x3ee   : > { %31418 = vst [vmem:[#allocation48_spill] sm:$0xff] %v26936_v22  ;;  %v31427_v22 = vld [vmem:[#allocation135_spill] sm:$0xff] }
 0x3ef   : > { %20264 = vmatmul.mubr.msk.f32.gmra.mrb[86].mxu0 %vm1287_vm1, %v31419_v29  ;;  %v31428_v29 = vld [vmem:[#allocation136_spill] sm:$0xff] }
 0x3f0   : > { %20266 = vmatprep.mubr.msk.f32.mxu0 %vm1287_vm1, %v31420_v26  ;;  %v26942_v33 = vpop.f32.mrb[26].mxu1 }
 0x3f1   : > { %31421 = vst [vmem:[#allocation49_spill] sm:$0xff] %v26942_v33  ;;  %v26944_v57 = vpop.f32.mrb[27].mxu1 }
 0x3f2   : > { %31422 = vst [vmem:[#allocation50_spill] sm:$0xff] %v26944_v57  ;;  %v31431_v57 = vld [vmem:[#allocation138_spill] sm:$0xff] }
 0x3f3   : > { %20267 = vmatmul.mubr.msk.f32.gmra.mrb[88].mxu0 %vm1287_vm1, %v31423_v58  ;;  %v31432_v58 = vld [vmem:[#allocation139_spill] sm:$0xff] }
 0x3f4   : > { %20269 = vmatprep.mubr.msk.f32.mxu0 %vm1287_vm1, %v31424_v20  ;;  %v26950_v50 = vpop.f32.mrb[28].mxu1 }
 0x3f5   : > { %31425 = vst [vmem:[#allocation51_spill] sm:$0xff] %v26950_v50  ;;  %v26952_v34 = vpop.f32.mrb[29].mxu1 }
 0x3f6   : > { %31426 = vst [vmem:[#allocation52_spill] sm:$0xff] %v26952_v34  ;;  %v31435_v34 = vld [vmem:[#allocation140_spill] sm:$0xff] }
 0x3f7   : > { %20270 = vmatmul.mubr.msk.f32.gmra.mrb[90].mxu0 %vm1287_vm1, %v31427_v22  ;;  %v31436_v22 = vld [vmem:[#allocation141_spill] sm:$0xff] }
 0x3f8   : > { %20272 = vmatprep.mubr.msk.f32.mxu0 %vm1287_vm1, %v31428_v29  ;;  %v26958_v26 = vpop.f32.mrb[30].mxu1 }
 0x3f9   : > { %31429 = vst [vmem:[#allocation53_spill] sm:$0xff] %v26958_v26  ;;  %v26960_v33 = vpop.f32.mrb[31].mxu1 }
 0x3fa   : > { %31430 = vst [vmem:[#allocation54_spill] sm:$0xff] %v26960_v33  ;;  %v31439_v33 = vld [vmem:[#allocation143_spill] sm:$0xff] }
 0x3fb   : > { %20273 = vmatmul.mubr.msk.f32.gmra.mrb[92].mxu0 %vm1287_vm1, %v31431_v57  ;;  %v31440_v57 = vld [vmem:[#allocation144_spill] sm:$0xff] }
 0x3fc   : > { %20275 = vmatprep.mubr.msk.f32.mxu0 %vm1287_vm1, %v31432_v58  ;;  %v26966_v20 = vpop.f32.mrb[32].mxu1 }
 0x3fd   : > { %31433 = vst [vmem:[#allocation55_spill] sm:$0xff] %v26966_v20  ;;  %v26968_v50 = vpop.f32.mrb[33].mxu1 }
 0x3fe   : > { %31434 = vst [vmem:[#allocation56_spill] sm:$0xff] %v26968_v50  ;;  %v31443_v50 = vld [vmem:[#allocation145_spill] sm:$0xff] }
 0x3ff   : > { %20276 = vmatmul.mubr.msk.f32.gmra.mrb[94].mxu0 %vm1287_vm1, %v31435_v34  ;;  %v31444_v34 = vld [vmem:[#allocation146_spill] sm:$0xff] }
 0x400   : > { %20278 = vmatprep.mubr.msk.f32.mxu0 %vm1287_vm1, %v31436_v22  ;;  %v26974_v29 = vpop.f32.mrb[34].mxu1 }
 0x401   : > { %31437 = vst [vmem:[#allocation57_spill] sm:$0xff] %v26974_v29  ;;  %v26976_v26 = vpop.f32.mrb[35].mxu1 }
 0x402   : > { %31438 = vst [vmem:[#allocation58_spill] sm:$0xff] %v26976_v26  ;;  %v31445_v26 = vld [vmem:[#allocation149_spill] sm:$0xff] }
 0x403   : > { %20279 = vmatmul.mubr.msk.f32.gmra.mrb[96].mxu0 %vm1287_vm1, %v31439_v33  ;;  %v31446_v33 = vld [vmem:[#allocation150_spill] sm:$0xff] }
 0x404   : > { %20281 = vmatprep.mubr.msk.f32.mxu0 %vm1287_vm1, %v31440_v57  ;;  %v26982_v58 = vpop.f32.mrb[36].mxu1 }
 0x405   : > { %31441 = vst [vmem:[#allocation59_spill] sm:$0xff] %v26982_v58  ;;  %v26984_v20 = vpop.f32.mrb[37].mxu1 }
 0x406   : > { %31442 = vst [vmem:[#allocation60_spill] sm:$0xff] %v26984_v20  ;;  %v31447_v20 = vld [vmem:[#allocation151_spill] sm:$0xff] }
 0x407   : > { %20282 = vmatmul.mubr.msk.f32.gmra.mrb[98].mxu0 %vm1287_vm1, %v31443_v50 }
 0x408   : > { %20284 = vmatprep.mubr.msk.f32.mxu0 %vm1287_vm1, %v31444_v34  ;;  %v26990_v22 = vpop.f32.mrb[38].mxu1 }
 0x409   : > { %v26992_v29 = vpop.f32.mrb[39].mxu1 }
 0x40b   : > { %20285 = vmatmul.mubr.msk.f32.gmra.mrb[100].mxu0 %vm1287_vm1, %v31445_v26 }
 0x40c   : > { %20287 = vmatprep.mubr.msk.f32.mxu0 %vm1287_vm1, %v31446_v33  ;;  %v26998_v57 = vpop.f32.mrb[40].mxu1 }
 0x40d   : > { %v27000_v58 = vpop.f32.mrb[41].mxu1 }
 0x40f   : > { %20288 = vmatmul.mubr.msk.f32.gmra.mrb[102].mxu0 %vm1287_vm1, %v31447_v20 }
 0x410   : > { %20290 = vmatprep.mubr.msk.f32.mxu0 %vm1287_vm1, %v31213_v4  ;;  %v27006_v50 = vpop.f32.mrb[42].mxu1 }
 0x411   : > { %v27008_v34 = vpop.f32.mrb[43].mxu1 }
 0x413   : > { %20291 = vmatmul.mubr.msk.f32.gmra.mrb[104].mxu0 %vm1287_vm1, %v31217_v3 }
 0x414   : > { %20293 = vmatprep.mubr.msk.f32.mxu0 %vm1287_vm1, %v30980_v16  ;;  %v27014_v26 = vpop.f32.mrb[44].mxu1 }
 0x415   : > { %v27016_v33 = vpop.f32.mrb[45].mxu1 }
 0x417   : > { %20294 = vmatmul.mubr.msk.f32.gmra.mrb[106].mxu0 %vm1287_vm1, %v31220_v8 }
 0x418   : > { %20296 = vmatprep.mubr.msk.f32.mxu0 %vm1287_vm1, %v31221_v2  ;;  %v27022_v4 = vpop.f32.mrb[46].mxu1 }
 0x419   : > { %v27024_v20 = vpop.f32.mrb[47].mxu1 }
 0x41b   : > { %20297 = vmatmul.mubr.msk.f32.gmra.mrb[108].mxu0 %vm1287_vm1, %v31225_v23 }
 0x41c   : > { %20299 = vmatprep.mubr.msk.f32.mxu0 %vm1287_vm1, %v31226_v52  ;;  %v27030_v16 = vpop.f32.mrb[48].mxu1 }
 0x41d   : > { %v27032_v3 = vpop.f32.mrb[49].mxu1 }
 0x41f   : > { %20300 = vmatmul.mubr.msk.f32.gmra.mrb[110].mxu0 %vm1287_vm1, %v31227_v31 }
 0x420   : > { %20302 = vmatprep.mubr.msk.f32.mxu0 %vm1287_vm1, %v31228_v32  ;;  %v27038_v8 = vpop.f32.mrb[50].mxu1 }
 0x421   : > { %v27040_v2 = vpop.f32.mrb[51].mxu1 }
 0x423   : > { %20303 = vmatmul.mubr.msk.f32.gmra.mrb[112].mxu0 %vm1287_vm1, %v31232_v9 }
 0x424   : > { %20305 = vmatprep.mubr.msk.f32.mxu0 %vm1287_vm1, %v31000_v56  ;;  %v27046_v23 = vpop.f32.mrb[52].mxu1 }
 0x425   : > { %v27048_v52 = vpop.f32.mrb[53].mxu1 }
 0x427   : > { %20306 = vmatmul.mubr.msk.f32.gmra.mrb[114].mxu0 %vm1287_vm1, %v31233_v19 }
 0x428   : > { %20308 = vmatprep.mubr.msk.f32.mxu0 %vm1287_vm1, %v31008_v27  ;;  %v27054_v31 = vpop.f32.mrb[54].mxu1 }
 0x429   : > { %v27056_v32 = vpop.f32.mrb[55].mxu1 }
 0x42b   : > { %20309 = vmatmul.mubr.msk.f32.gmra.mrb[116].mxu0 %vm1287_vm1, %v31236_v17 }
 0x42c   : > { %20311 = vmatprep.mubr.msk.f32.mxu0 %vm1287_vm1, %v24330_v41  ;;  %v27062_v56 = vpop.f32.mrb[56].mxu1 }
 0x42d   : > { %v27064_v9 = vpop.f32.mrb[57].mxu1 }
 0x42f   : > { %20312 = vmatmul.mubr.msk.f32.gmra.mrb[118].mxu0 %vm1287_vm1, %v24354_v36  ;;  %v31451_v36 = vmov 0.0  }
 0x430   : > { %20314 = vmatprep.mubr.msk.f32.mxu0 %vm1287_vm1, %v24357_v47  ;;  %v27070_v27 = vpop.f32.mrb[58].mxu1 }
 0x431   : > { %31448 = vst [vmem:[#allocation61_spill] sm:$0xff] %v27070_v27  ;;  %v27072_v19 = vpop.f32.mrb[59].mxu1 }
 0x433   : > { %20315 = vmatmul.mubr.msk.f32.gmra.mrb[120].mxu0 %vm1287_vm1, %v24384_v24 }
 0x434   : > { %20317 = vmatprep.mubr.msk.f32.mxu0 %vm1287_vm1, %v24388_v55  ;;  %v27078_v41 = vpop.f32.mrb[60].mxu1 }
 0x435   : > { %31449 = vst [vmem:[#allocation63_spill] sm:$0xff] %v27078_v41  ;;  %v27080_v17 = vpop.f32.mrb[61].mxu1 }
 0x436   : > { %31450 = vst [vmem:[#allocation64_spill] sm:$0xff] %v27080_v17  ;;  %v31456_v17 = vld [vmem:[#allocation159_spill] sm:$0xff] }
 0x437   : > { %20318 = vmatmul.mubr.msk.f32.gmra.mrb[122].mxu0 %vm1287_vm1, %v24410_v51 }
 0x438   : > { %20320 = vmatprep.mubr.f32.mxu0 %v31451_v36  ;;  %v27085_v47 = vpop.f32.mrb[62].mxu1 }
 0x439   : > { %31452 = vst [vmem:[#allocation329_spill] sm:$0xff] %v27085_v47  ;;  %v27087_v27 = vpop.f32.mrb[63].mxu1  ;;  %v31459_v47 = vld [vmem:[#allocation162_spill] sm:$0xff] }
 0x43a   : > { %31453 = vst [vmem:[#allocation65_spill] sm:$0xff] %v27087_v27  ;;  %v31460_v27 = vld [vmem:[#allocation163_spill] sm:$0xff] }
 0x43b   : > { %20321 = vmatmul.mubr.f32.gmra.mrb[124].mxu0 %v31451_v36 }
 0x43c   : > { %20323 = vmatprep.mubr.f32.mxu0 %v31451_v36  ;;  %v27091_v24 = vpop.f32.mrb[64].mxu1 }
 0x43d   : > { %31454 = vst [vmem:[#allocation330_spill] sm:$0xff] %v27091_v24  ;;  %v27093_v55 = vpop.f32.mrb[65].mxu1 }
 0x43e   : > { %31455 = vst [vmem:[#allocation66_spill] sm:$0xff] %v27093_v55 }
 0x43f   : > { %20324 = vmatmul.mubr.f32.gmra.mrb[126].mxu0 %v31451_v36  ;;  %v31463_v36 = vld [vmem:[#allocation167_spill] sm:$0xff] }
 0x440   : > { %20328 = vmatprep.mubr.msk.f32.mxu0 %vm1287_vm1, %v31456_v17  ;;  %v27098_v51 = vpop.f32.mrb[66].mxu1  ;;  %v31464_v17 = vld [vmem:[#allocation168_spill] sm:$0xff] }
 0x441   : > { %31457 = vst [vmem:[#allocation68_spill] sm:$0xff] %v27098_v51  ;;  %v27100_v41 = vpop.f32.mrb[67].mxu1 }
 0x442   : > { %31458 = vst [vmem:[#allocation69_spill] sm:$0xff] %v27100_v41 }
 0x443   : > { %20329 = vmatmul.mubr.msk.f32.vlgmr.msra.gmra.mrb[0].mxu0 %vm1287_vm1, %v31459_v47  ;;  %v31467_v47 = vld [vmem:[#allocation171_spill] sm:$0xff] }
 0x444   : > { %20521 = vmatpush3.msk.msra.mxu0 %vm1538_vm0, %v26808_v37  ;;  %20331 = vmatprep.mubr.msk.f32.mxu0 %vm1287_vm1, %v31460_v27  ;;  %v27108_v24 = vpop.f32.mrb[68].mxu1  ;;  %v31468_v37 = vld [vmem:[#allocation172_spill] sm:$0xff] }
 0x445   : > { %31461 = vst [vmem:[#allocation70_spill] sm:$0xff] %v27108_v24  ;;  %v27110_v55 = vpop.f32.mrb[69].mxu1 }
 0x446   : > { %31462 = vst [vmem:[#allocation71_spill] sm:$0xff] %v27110_v55  ;;  %v31471_v55 = vld [vmem:[#allocation176_spill] sm:$0xff] }
 0x447   : > { %20332 = vmatmul.mubr.msk.f32.gmra.mrb[2].mxu0 %vm1287_vm1, %v31463_v36  ;;  %v31472_v36 = vld [vmem:[#allocation177_spill] sm:$0xff] }
 0x448   : > { %20334 = vmatprep.mubr.msk.f32.mxu0 %vm1287_vm1, %v31464_v17  ;;  %v27116_v41 = vpop.f32.mrb[70].mxu1 }
 0x449   : > { %31465 = vst [vmem:[#allocation73_spill] sm:$0xff] %v27116_v41  ;;  %v27118_v51 = vpop.f32.mrb[71].mxu1 }
 0x44a   : > { %31466 = vst [vmem:[#allocation74_spill] sm:$0xff] %v27118_v51  ;;  %v31475_v51 = vld [vmem:[#allocation179_spill] sm:$0xff] }
 0x44b   : > { %20335 = vmatmul.mubr.msk.f32.gmra.mrb[4].mxu0 %vm1287_vm1, %v31467_v47  ;;  %v31476_v47 = vld [vmem:[#allocation180_spill] sm:$0xff] }
 0x44c   : > { %20337 = vmatprep.mubr.msk.f32.mxu0 %vm1287_vm1, %v31468_v37  ;;  %v27124_v27 = vpop.f32.mrb[72].mxu1 }
 0x44d   : > { %31469 = vst [vmem:[#allocation75_spill] sm:$0xff] %v27124_v27  ;;  %v27126_v24 = vpop.f32.mrb[73].mxu1 }
 0x44e   : > { %31470 = vst [vmem:[#allocation76_spill] sm:$0xff] %v27126_v24  ;;  %v31479_v24 = vld [vmem:[#allocation181_spill] sm:$0xff] }
 0x44f   : > { %20338 = vmatmul.mubr.msk.f32.gmra.mrb[6].mxu0 %vm1287_vm1, %v31471_v55  ;;  %v31480_v55 = vld [vmem:[#allocation182_spill] sm:$0xff] }
 0x450   : > { %20340 = vmatprep.mubr.msk.f32.mxu0 %vm1287_vm1, %v31472_v36  ;;  %v27132_v17 = vpop.f32.mrb[74].mxu1 }
 0x451   : > { %31473 = vst [vmem:[#allocation78_spill] sm:$0xff] %v27132_v17  ;;  %v27134_v41 = vpop.f32.mrb[75].mxu1 }
 0x452   : > { %31474 = vst [vmem:[#allocation79_spill] sm:$0xff] %v27134_v41  ;;  %v31483_v41 = vld [vmem:[#allocation184_spill] sm:$0xff] }
 0x453   : > { %20341 = vmatmul.mubr.msk.f32.gmra.mrb[8].mxu0 %vm1287_vm1, %v31475_v51  ;;  %v31484_v51 = vld [vmem:[#allocation185_spill] sm:$0xff] }
 0x454   : > { %20343 = vmatprep.mubr.msk.f32.mxu0 %vm1287_vm1, %v31476_v47  ;;  %v27140_v37 = vpop.f32.mrb[76].mxu1 }
 0x455   : > { %31477 = vst [vmem:[#allocation80_spill] sm:$0xff] %v27140_v37  ;;  %v27142_v27 = vpop.f32.mrb[77].mxu1 }
 0x456   : > { %31478 = vst [vmem:[#allocation81_spill] sm:$0xff] %v27142_v27  ;;  %v31487_v27 = vld [vmem:[#allocation186_spill] sm:$0xff] }
 0x457   : > { %20344 = vmatmul.mubr.msk.f32.gmra.mrb[10].mxu0 %vm1287_vm1, %v31479_v24  ;;  %v31488_v24 = vld [vmem:[#allocation187_spill] sm:$0xff] }
 0x458   : > { %20346 = vmatprep.mubr.msk.f32.mxu0 %vm1287_vm1, %v31480_v55  ;;  %v27148_v36 = vpop.f32.mrb[78].mxu1 }
 0x459   : > { %31481 = vst [vmem:[#allocation83_spill] sm:$0xff] %v27148_v36  ;;  %v27150_v17 = vpop.f32.mrb[79].mxu1 }
 0x45a   : > { %31482 = vst [vmem:[#allocation84_spill] sm:$0xff] %v27150_v17  ;;  %v31491_v17 = vld [vmem:[#allocation189_spill] sm:$0xff] }
 0x45b   : > { %20347 = vmatmul.mubr.msk.f32.gmra.mrb[12].mxu0 %vm1287_vm1, %v31483_v41  ;;  %v31492_v41 = vld [vmem:[#allocation190_spill] sm:$0xff] }
 0x45c   : > { %20349 = vmatprep.mubr.msk.f32.mxu0 %vm1287_vm1, %v31484_v51  ;;  %v27156_v47 = vpop.f32.mrb[80].mxu1 }
 0x45d   : > { %31485 = vst [vmem:[#allocation154_spill] sm:$0xff] %v27156_v47  ;;  %v27158_v37 = vpop.f32.mrb[81].mxu1 }
 0x45e   : > { %31486 = vst [vmem:[#allocation85_spill] sm:$0xff] %v27158_v37  ;;  %v31495_v37 = vld [vmem:[#allocation191_spill] sm:$0xff] }
 0x45f   : > { %20350 = vmatmul.mubr.msk.f32.gmra.mrb[14].mxu0 %vm1287_vm1, %v31487_v27  ;;  %v31496_v27 = vld [vmem:[#allocation192_spill] sm:$0xff] }
 0x460   : > { %20352 = vmatprep.mubr.msk.f32.mxu0 %vm1287_vm1, %v31488_v24  ;;  %v27164_v55 = vpop.f32.mrb[82].mxu1 }
 0x461   : > { %31489 = vst [vmem:[#allocation338_spill] sm:$0xff] %v27164_v55  ;;  %v27166_v36 = vpop.f32.mrb[83].mxu1 }
 0x462   : > { %31490 = vst [vmem:[#allocation86_spill] sm:$0xff] %v27166_v36  ;;  %v31499_v36 = vld [vmem:[#allocation194_spill] sm:$0xff] }
 0x463   : > { %20353 = vmatmul.mubr.msk.f32.gmra.mrb[16].mxu0 %vm1287_vm1, %v31491_v17  ;;  %v31500_v17 = vld [vmem:[#allocation195_spill] sm:$0xff] }
 0x464   : > { %20355 = vmatprep.mubr.msk.f32.mxu0 %vm1287_vm1, %v31492_v41  ;;  %v27172_v51 = vpop.f32.mrb[84].mxu1 }
 0x465   : > { %31493 = vst [vmem:[#allocation88_spill] sm:$0xff] %v27172_v51  ;;  %v27174_v47 = vpop.f32.mrb[85].mxu1 }
 0x466   : > { %31494 = vst [vmem:[#allocation89_spill] sm:$0xff] %v27174_v47  ;;  %v31503_v47 = vld [vmem:[#allocation196_spill] sm:$0xff] }
 0x467   : > { %20356 = vmatmul.mubr.msk.f32.gmra.mrb[18].mxu0 %vm1287_vm1, %v31495_v37  ;;  %v31504_v37 = vld [vmem:[#allocation197_spill] sm:$0xff] }
 0x468   : > { %20358 = vmatprep.mubr.msk.f32.mxu0 %vm1287_vm1, %v31496_v27  ;;  %v27180_v24 = vpop.f32.mrb[86].mxu1 }
 0x469   : > { %31497 = vst [vmem:[#allocation90_spill] sm:$0xff] %v27180_v24  ;;  %v27182_v55 = vpop.f32.mrb[87].mxu1 }
 0x46a   : > { %31498 = vst [vmem:[#allocation91_spill] sm:$0xff] %v27182_v55  ;;  %v31507_v55 = vld [vmem:[#allocation199_spill] sm:$0xff] }
 0x46b   : > { %20359 = vmatmul.mubr.msk.f32.gmra.mrb[20].mxu0 %vm1287_vm1, %v31499_v36  ;;  %v31508_v36 = vld [vmem:[#allocation200_spill] sm:$0xff] }
 0x46c   : > { %20361 = vmatprep.mubr.msk.f32.mxu0 %vm1287_vm1, %v31500_v17  ;;  %v27188_v41 = vpop.f32.mrb[88].mxu1 }
 0x46d   : > { %31501 = vst [vmem:[#allocation132_spill] sm:$0xff] %v27188_v41  ;;  %v27190_v51 = vpop.f32.mrb[89].mxu1 }
 0x46e   : > { %31502 = vst [vmem:[#allocation93_spill] sm:$0xff] %v27190_v51  ;;  %v31511_v51 = vld [vmem:[#allocation201_spill] sm:$0xff] }
 0x46f   : > { %20362 = vmatmul.mubr.msk.f32.gmra.mrb[22].mxu0 %vm1287_vm1, %v31503_v47  ;;  %v31512_v47 = vld [vmem:[#allocation202_spill] sm:$0xff] }
 0x470   : > { %20364 = vmatprep.mubr.msk.f32.mxu0 %vm1287_vm1, %v31504_v37  ;;  %v27196_v27 = vpop.f32.mrb[90].mxu1 }
 0x471   : > { %31505 = vst [vmem:[#allocation94_spill] sm:$0xff] %v27196_v27  ;;  %v27198_v24 = vpop.f32.mrb[91].mxu1 }
 0x472   : > { %31506 = vst [vmem:[#allocation95_spill] sm:$0xff] %v27198_v24  ;;  %v31515_v24 = vld [vmem:[#allocation204_spill] sm:$0xff] }
 0x473   : > { %20365 = vmatmul.mubr.msk.f32.gmra.mrb[24].mxu0 %vm1287_vm1, %v31507_v55  ;;  %v31516_v55 = vld [vmem:[#allocation205_spill] sm:$0xff] }
 0x474   : > { %20367 = vmatprep.mubr.msk.f32.mxu0 %vm1287_vm1, %v31508_v36  ;;  %v27204_v17 = vpop.f32.mrb[92].mxu1 }
 0x475   : > { %31509 = vst [vmem:[#allocation96_spill] sm:$0xff] %v27204_v17  ;;  %v27206_v41 = vpop.f32.mrb[93].mxu1 }
 0x476   : > { %31510 = vst [vmem:[#allocation98_spill] sm:$0xff] %v27206_v41  ;;  %v31519_v41 = vld [vmem:[#allocation206_spill] sm:$0xff] }
 0x477   : > { %20368 = vmatmul.mubr.msk.f32.gmra.mrb[26].mxu0 %vm1287_vm1, %v31511_v51  ;;  %v31520_v51 = vld [vmem:[#allocation207_spill] sm:$0xff] }
 0x478   : > { %20370 = vmatprep.mubr.msk.f32.mxu0 %vm1287_vm1, %v31512_v47  ;;  %v27212_v37 = vpop.f32.mrb[94].mxu1 }
 0x479   : > { %31513 = vst [vmem:[#allocation99_spill] sm:$0xff] %v27212_v37  ;;  %v27214_v27 = vpop.f32.mrb[95].mxu1 }
 0x47a   : > { %31514 = vst [vmem:[#allocation100_spill] sm:$0xff] %v27214_v27  ;;  %v31523_v27 = vld [vmem:[#allocation208_spill] sm:$0xff] }
 0x47b   : > { %20371 = vmatmul.mubr.msk.f32.gmra.mrb[28].mxu0 %vm1287_vm1, %v31515_v24  ;;  %v31524_v24 = vld [vmem:[#allocation209_spill] sm:$0xff] }
 0x47c   : > { %20373 = vmatprep.mubr.msk.f32.mxu0 %vm1287_vm1, %v31516_v55  ;;  %v27220_v36 = vpop.f32.mrb[96].mxu1 }
 0x47d   : > { %31517 = vst [vmem:[#allocation101_spill] sm:$0xff] %v27220_v36  ;;  %v27222_v17 = vpop.f32.mrb[97].mxu1 }
 0x47e   : > { %31518 = vst [vmem:[#allocation103_spill] sm:$0xff] %v27222_v17  ;;  %v31527_v17 = vld [vmem:[#allocation210_spill] sm:$0xff] }
 0x47f   : > { %20374 = vmatmul.mubr.msk.f32.gmra.mrb[30].mxu0 %vm1287_vm1, %v31519_v41  ;;  %v31528_v41 = vld [vmem:[#allocation211_spill] sm:$0xff] }
 0x480   : > { %20376 = vmatprep.mubr.msk.f32.mxu0 %vm1287_vm1, %v31520_v51  ;;  %v27228_v47 = vpop.f32.mrb[98].mxu1 }
 0x481   : > { %31521 = vst [vmem:[#allocation104_spill] sm:$0xff] %v27228_v47  ;;  %v27230_v37 = vpop.f32.mrb[99].mxu1 }
 0x482   : > { %31522 = vst [vmem:[#allocation105_spill] sm:$0xff] %v27230_v37  ;;  %v31531_v37 = vld [vmem:[#allocation212_spill] sm:$0xff] }
 0x483   : > { %20377 = vmatmul.mubr.msk.f32.gmra.mrb[32].mxu0 %vm1287_vm1, %v31523_v27  ;;  %v31532_v27 = vld [vmem:[#allocation213_spill] sm:$0xff] }
 0x484   : > { %20379 = vmatprep.mubr.msk.f32.mxu0 %vm1287_vm1, %v31524_v24  ;;  %v27236_v55 = vpop.f32.mrb[100].mxu1 }
 0x485   : > { %31525 = vst [vmem:[#allocation106_spill] sm:$0xff] %v27236_v55  ;;  %v27238_v36 = vpop.f32.mrb[101].mxu1 }
 0x486   : > { %31526 = vst [vmem:[#allocation108_spill] sm:$0xff] %v27238_v36  ;;  %v31535_v36 = vld [vmem:[#allocation214_spill] sm:$0xff] }
 0x487   : > { %20380 = vmatmul.mubr.msk.f32.gmra.mrb[34].mxu0 %vm1287_vm1, %v31527_v17  ;;  %v31536_v17 = vld [vmem:[#allocation215_spill] sm:$0xff] }
 0x488   : > { %20382 = vmatprep.mubr.msk.f32.mxu0 %vm1287_vm1, %v31528_v41  ;;  %v27244_v51 = vpop.f32.mrb[102].mxu1 }
 0x489   : > { %31529 = vst [vmem:[#allocation109_spill] sm:$0xff] %v27244_v51  ;;  %v27246_v47 = vpop.f32.mrb[103].mxu1 }
 0x48a   : > { %31530 = vst [vmem:[#allocation110_spill] sm:$0xff] %v27246_v47  ;;  %v31539_v47 = vld [vmem:[#allocation216_spill] sm:$0xff] }
 0x48b   : > { %20383 = vmatmul.mubr.msk.f32.gmra.mrb[36].mxu0 %vm1287_vm1, %v31531_v37  ;;  %v31540_v37 = vld [vmem:[#allocation217_spill] sm:$0xff] }
 0x48c   : > { %20385 = vmatprep.mubr.msk.f32.mxu0 %vm1287_vm1, %v31532_v27  ;;  %v27252_v24 = vpop.f32.mrb[104].mxu1 }
 0x48d   : > { %31533 = vst [vmem:[#allocation111_spill] sm:$0xff] %v27252_v24  ;;  %v27254_v55 = vpop.f32.mrb[105].mxu1 }
 0x48e   : > { %31534 = vst [vmem:[#allocation113_spill] sm:$0xff] %v27254_v55  ;;  %v31543_v55 = vld [vmem:[#allocation218_spill] sm:$0xff] }
 0x48f   : > { %20386 = vmatmul.mubr.msk.f32.gmra.mrb[38].mxu0 %vm1287_vm1, %v31535_v36  ;;  %v31544_v36 = vld [vmem:[#allocation219_spill] sm:$0xff] }
 0x490   : > { %20388 = vmatprep.mubr.msk.f32.mxu0 %vm1287_vm1, %v31536_v17  ;;  %v27260_v41 = vpop.f32.mrb[106].mxu1 }
 0x491   : > { %31537 = vst [vmem:[#allocation114_spill] sm:$0xff] %v27260_v41  ;;  %v27262_v51 = vpop.f32.mrb[107].mxu1 }
 0x492   : > { %31538 = vst [vmem:[#allocation115_spill] sm:$0xff] %v27262_v51  ;;  %v31547_v51 = vld [vmem:[#allocation220_spill] sm:$0xff] }
 0x493   : > { %20389 = vmatmul.mubr.msk.f32.gmra.mrb[40].mxu0 %vm1287_vm1, %v31539_v47  ;;  %v31548_v47 = vld [vmem:[#allocation221_spill] sm:$0xff] }
 0x494   : > { %20391 = vmatprep.mubr.msk.f32.mxu0 %vm1287_vm1, %v31540_v37  ;;  %v27268_v27 = vpop.f32.mrb[108].mxu1 }
 0x495   : > { %31541 = vst [vmem:[#allocation116_spill] sm:$0xff] %v27268_v27  ;;  %v27270_v24 = vpop.f32.mrb[109].mxu1 }
 0x496   : > { %31542 = vst [vmem:[#allocation118_spill] sm:$0xff] %v27270_v24  ;;  %v31551_v24 = vld [vmem:[#allocation222_spill] sm:$0xff] }
 0x497   : > { %20392 = vmatmul.mubr.msk.f32.gmra.mrb[42].mxu0 %vm1287_vm1, %v31543_v55  ;;  %v31552_v55 = vld [vmem:[#allocation223_spill] sm:$0xff] }
 0x498   : > { %20394 = vmatprep.mubr.msk.f32.mxu0 %vm1287_vm1, %v31544_v36  ;;  %v27276_v17 = vpop.f32.mrb[110].mxu1 }
 0x499   : > { %31545 = vst [vmem:[#allocation119_spill] sm:$0xff] %v27276_v17  ;;  %v27278_v41 = vpop.f32.mrb[111].mxu1 }
 0x49a   : > { %31546 = vst [vmem:[#allocation120_spill] sm:$0xff] %v27278_v41  ;;  %v31555_v41 = vld [vmem:[#allocation224_spill] sm:$0xff] }
 0x49b   : > { %20395 = vmatmul.mubr.msk.f32.gmra.mrb[44].mxu0 %vm1287_vm1, %v31547_v51  ;;  %v31556_v51 = vld [vmem:[#allocation225_spill] sm:$0xff] }
 0x49c   : > { %20397 = vmatprep.mubr.msk.f32.mxu0 %vm1287_vm1, %v31548_v47  ;;  %v27284_v37 = vpop.f32.mrb[112].mxu1 }
 0x49d   : > { %31549 = vst [vmem:[#allocation121_spill] sm:$0xff] %v27284_v37  ;;  %v27286_v27 = vpop.f32.mrb[113].mxu1 }
 0x49e   : > { %31550 = vst [vmem:[#allocation123_spill] sm:$0xff] %v27286_v27  ;;  %v31559_v27 = vld [vmem:[#allocation226_spill] sm:$0xff] }
 0x49f   : > { %20398 = vmatmul.mubr.msk.f32.gmra.mrb[46].mxu0 %vm1287_vm1, %v31551_v24  ;;  %v31560_v24 = vld [vmem:[#allocation227_spill] sm:$0xff] }
 0x4a0   : > { %20400 = vmatprep.mubr.msk.f32.mxu0 %vm1287_vm1, %v31552_v55  ;;  %v27292_v36 = vpop.f32.mrb[114].mxu1 }
 0x4a1   : > { %31553 = vst [vmem:[#allocation124_spill] sm:$0xff] %v27292_v36  ;;  %v27294_v17 = vpop.f32.mrb[115].mxu1 }
 0x4a2   : > { %31554 = vst [vmem:[#allocation125_spill] sm:$0xff] %v27294_v17  ;;  %v31563_v17 = vld [vmem:[#allocation228_spill] sm:$0xff] }
 0x4a3   : > { %20401 = vmatmul.mubr.msk.f32.gmra.mrb[48].mxu0 %vm1287_vm1, %v31555_v41  ;;  %v31564_v41 = vld [vmem:[#allocation229_spill] sm:$0xff] }
 0x4a4   : > { %20403 = vmatprep.mubr.msk.f32.mxu0 %vm1287_vm1, %v31556_v51  ;;  %v27300_v47 = vpop.f32.mrb[116].mxu1 }
 0x4a5   : > { %31557 = vst [vmem:[#allocation126_spill] sm:$0xff] %v27300_v47  ;;  %v27302_v37 = vpop.f32.mrb[117].mxu1 }
 0x4a6   : > { %31558 = vst [vmem:[#allocation128_spill] sm:$0xff] %v27302_v37  ;;  %v31567_v37 = vld [vmem:[#allocation230_spill] sm:$0xff] }
 0x4a7   : > { %20404 = vmatmul.mubr.msk.f32.gmra.mrb[50].mxu0 %vm1287_vm1, %v31559_v27  ;;  %v31568_v27 = vld [vmem:[#allocation231_spill] sm:$0xff] }
 0x4a8   : > { %20406 = vmatprep.mubr.msk.f32.mxu0 %vm1287_vm1, %v31560_v24  ;;  %v27308_v55 = vpop.f32.mrb[118].mxu1 }
 0x4a9   : > { %31561 = vst [vmem:[#allocation129_spill] sm:$0xff] %v27308_v55  ;;  %v27310_v36 = vpop.f32.mrb[119].mxu1 }
 0x4aa   : > { %31562 = vst [vmem:[#allocation130_spill] sm:$0xff] %v27310_v36  ;;  %v31571_v36 = vld [vmem:[#allocation232_spill] sm:$0xff] }
 0x4ab   : > { %20407 = vmatmul.mubr.msk.f32.gmra.mrb[52].mxu0 %vm1287_vm1, %v31563_v17  ;;  %v31572_v17 = vld [vmem:[#allocation233_spill] sm:$0xff] }
 0x4ac   : > { %20409 = vmatprep.mubr.msk.f32.mxu0 %vm1287_vm1, %v31564_v41  ;;  %v27316_v51 = vpop.f32.mrb[120].mxu1 }
 0x4ad   : > { %31565 = vst [vmem:[#allocation131_spill] sm:$0xff] %v27316_v51  ;;  %v27318_v47 = vpop.f32.mrb[121].mxu1 }
 0x4ae   : > { %31566 = vst [vmem:[#allocation133_spill] sm:$0xff] %v27318_v47  ;;  %v31575_v47 = vld [vmem:[#allocation234_spill] sm:$0xff] }
 0x4af   : > { %20410 = vmatmul.mubr.msk.f32.gmra.mrb[54].mxu0 %vm1287_vm1, %v31567_v37  ;;  %v31576_v37 = vld [vmem:[#allocation235_spill] sm:$0xff] }
 0x4b0   : > { %20412 = vmatprep.mubr.msk.f32.mxu0 %vm1287_vm1, %v31568_v27  ;;  %v27324_v24 = vpop.f32.mrb[122].mxu1 }
 0x4b1   : > { %31569 = vst [vmem:[#allocation134_spill] sm:$0xff] %v27324_v24  ;;  %v27326_v55 = vpop.f32.mrb[123].mxu1 }
 0x4b2   : > { %31570 = vst [vmem:[#allocation135_spill] sm:$0xff] %v27326_v55  ;;  %v31579_v55 = vld [vmem:[#allocation236_spill] sm:$0xff] }
 0x4b3   : > { %20413 = vmatmul.mubr.msk.f32.gmra.mrb[56].mxu0 %vm1287_vm1, %v31571_v36  ;;  %v31580_v36 = vld [vmem:[#allocation237_spill] sm:$0xff] }
 0x4b4   : > { %20415 = vmatprep.mubr.msk.f32.mxu0 %vm1287_vm1, %v31572_v17  ;;  %v27332_v41 = vpop.f32.mrb[124].mxu1  ;;  %v31581_v17 = vld [vmem:[#allocation238_spill] sm:$0xff] }
 0x4b5   : > { %31573 = vst [vmem:[#allocation136_spill] sm:$0xff] %v27332_v41  ;;  %v27334_v51 = vpop.f32.mrb[125].mxu1  ;;  %v31650_v41 = vld [vmem:[#allocation36_spill] sm:$0xff] }
 0x4b6   : > { %31574 = vst [vmem:[#allocation138_spill] sm:$0xff] %v27334_v51  ;;  %v31582_v51 = vld [vmem:[#allocation239_spill] sm:$0xff] }
 0x4b7   : > { %20416 = vmatmul.mubr.msk.f32.gmra.mrb[58].mxu0 %vm1287_vm1, %v31575_v47  ;;  %v31583_v47 = vld [vmem:[#allocation240_spill] sm:$0xff] }
 0x4b8   : > { %20418 = vmatprep.mubr.msk.f32.mxu0 %vm1287_vm1, %v31576_v37  ;;  %v27340_v27 = vpop.f32.mrb[126].mxu1  ;;  %v31584_v37 = vld [vmem:[#allocation241_spill] sm:$0xff] }
 0x4b9   : > { %31577 = vst [vmem:[#allocation139_spill] sm:$0xff] %v27340_v27  ;;  %v27342_v24 = vpop.f32.mrb[127].mxu1  ;;  %v31585_v27 = vld [vmem:[#allocation242_spill] sm:$0xff] }
 0x4ba   : > { %31578 = vst [vmem:[#allocation140_spill] sm:$0xff] %v27342_v24  ;;  %v31586_v24 = vld [vmem:[#allocation243_spill] sm:$0xff] }
 0x4bb   : > { %20419 = vmatmul.mubr.msk.f32.gmra.mrb[60].mxu0 %vm1287_vm1, %v31579_v55  ;;  %v31587_v55 = vld [vmem:[#allocation244_spill] sm:$0xff] }
 0x4bc   : > { %20421 = vmatprep.mubr.msk.f32.mxu0 %vm1287_vm1, %v31580_v36  ;;  %v31588_v36 = vld [vmem:[#allocation245_spill] sm:$0xff] }
 0x4bf   : > { %20422 = vmatmul.mubr.msk.f32.gmra.mrb[62].mxu0 %vm1287_vm1, %v31581_v17  ;;  %v31589_v17 = vld [vmem:[#allocation246_spill] sm:$0xff] }
 0x4c0   : > { %20424 = vmatprep.mubr.msk.f32.mxu0 %vm1287_vm1, %v31582_v51  ;;  %v31590_v51 = vld [vmem:[#allocation247_spill] sm:$0xff] }
 0x4c3   : > { %20425 = vmatmul.mubr.msk.f32.gmra.mrb[64].mxu0 %vm1287_vm1, %v31583_v47  ;;  %v31591_v47 = vld [vmem:[#allocation248_spill] sm:$0xff] }
 0x4c4   : > { %20427 = vmatprep.mubr.msk.f32.mxu0 %vm1287_vm1, %v31584_v37  ;;  %v31592_v37 = vld [vmem:[#allocation249_spill] sm:$0xff] }
 0x4c7   : > { %20428 = vmatmul.mubr.msk.f32.gmra.mrb[66].mxu0 %vm1287_vm1, %v31585_v27  ;;  %v31593_v27 = vld [vmem:[#allocation250_spill] sm:$0xff] }
 0x4c8   : > { %20430 = vmatprep.mubr.msk.f32.mxu0 %vm1287_vm1, %v31586_v24  ;;  %v31594_v24 = vld [vmem:[#allocation251_spill] sm:$0xff] }
 0x4cb   : > { %20431 = vmatmul.mubr.msk.f32.gmra.mrb[68].mxu0 %vm1287_vm1, %v31587_v55  ;;  %v31595_v55 = vld [vmem:[#allocation252_spill] sm:$0xff] }
 0x4cc   : > { %20433 = vmatprep.mubr.msk.f32.mxu0 %vm1287_vm1, %v31588_v36  ;;  %v31596_v36 = vld [vmem:[#allocation253_spill] sm:$0xff] }
 0x4cf   : > { %20434 = vmatmul.mubr.msk.f32.gmra.mrb[70].mxu0 %vm1287_vm1, %v31589_v17  ;;  %v31597_v17 = vld [vmem:[#allocation254_spill] sm:$0xff] }
 0x4d0   : > { %20436 = vmatprep.mubr.msk.f32.mxu0 %vm1287_vm1, %v31590_v51  ;;  %v31598_v51 = vld [vmem:[#allocation255_spill] sm:$0xff] }
 0x4d3   : > { %20437 = vmatmul.mubr.msk.f32.gmra.mrb[72].mxu0 %vm1287_vm1, %v31591_v47  ;;  %v31599_v47 = vld [vmem:[#allocation256_spill] sm:$0xff] }
 0x4d4   : > { %20439 = vmatprep.mubr.msk.f32.mxu0 %vm1287_vm1, %v31592_v37  ;;  %v31600_v37 = vld [vmem:[#allocation257_spill] sm:$0xff] }
 0x4d7   : > { %20440 = vmatmul.mubr.msk.f32.gmra.mrb[74].mxu0 %vm1287_vm1, %v31593_v27  ;;  %v31601_v27 = vld [vmem:[#allocation258_spill] sm:$0xff] }
 0x4d8   : > { %20442 = vmatprep.mubr.msk.f32.mxu0 %vm1287_vm1, %v31594_v24  ;;  %v31602_v24 = vld [vmem:[#allocation259_spill] sm:$0xff] }
 0x4db   : > { %20443 = vmatmul.mubr.msk.f32.gmra.mrb[76].mxu0 %vm1287_vm1, %v31595_v55  ;;  %v31603_v55 = vld [vmem:[#allocation260_spill] sm:$0xff] }
 0x4dc   : > { %20445 = vmatprep.mubr.msk.f32.mxu0 %vm1287_vm1, %v31596_v36  ;;  %v31604_v36 = vld [vmem:[#allocation261_spill] sm:$0xff] }
 0x4df   : > { %20446 = vmatmul.mubr.msk.f32.gmra.mrb[78].mxu0 %vm1287_vm1, %v31597_v17  ;;  %v31605_v17 = vld [vmem:[#allocation262_spill] sm:$0xff] }
 0x4e0   : > { %20448 = vmatprep.mubr.msk.f32.mxu0 %vm1287_vm1, %v31598_v51  ;;  %v31606_v51 = vld [vmem:[#allocation263_spill] sm:$0xff] }
 0x4e3   : > { %20449 = vmatmul.mubr.msk.f32.gmra.mrb[80].mxu0 %vm1287_vm1, %v31599_v47  ;;  %v31607_v47 = vld [vmem:[#allocation264_spill] sm:$0xff] }
 0x4e4   : > { %20451 = vmatprep.mubr.msk.f32.mxu0 %vm1287_vm1, %v31600_v37  ;;  %v31608_v37 = vld [vmem:[#allocation265_spill] sm:$0xff] }
 0x4e7   : > { %20452 = vmatmul.mubr.msk.f32.gmra.mrb[82].mxu0 %vm1287_vm1, %v31601_v27  ;;  %v31609_v27 = vld [vmem:[#allocation266_spill] sm:$0xff] }
 0x4e8   : > { %20454 = vmatprep.mubr.msk.f32.mxu0 %vm1287_vm1, %v31602_v24  ;;  %v31610_v24 = vld [vmem:[#allocation267_spill] sm:$0xff] }
 0x4eb   : > { %20455 = vmatmul.mubr.msk.f32.gmra.mrb[84].mxu0 %vm1287_vm1, %v31603_v55  ;;  %v31611_v55 = vld [vmem:[#allocation268_spill] sm:$0xff] }
 0x4ec   : > { %20457 = vmatprep.mubr.msk.f32.mxu0 %vm1287_vm1, %v31604_v36  ;;  %v31612_v36 = vld [vmem:[#allocation269_spill] sm:$0xff] }
 0x4ef   : > { %20458 = vmatmul.mubr.msk.f32.gmra.mrb[86].mxu0 %vm1287_vm1, %v31605_v17  ;;  %v31613_v17 = vld [vmem:[#allocation270_spill] sm:$0xff] }
 0x4f0   : > { %20460 = vmatprep.mubr.msk.f32.mxu0 %vm1287_vm1, %v31606_v51  ;;  %v31614_v51 = vld [vmem:[#allocation271_spill] sm:$0xff] }
 0x4f3   : > { %20461 = vmatmul.mubr.msk.f32.gmra.mrb[88].mxu0 %vm1287_vm1, %v31607_v47  ;;  %v31615_v47 = vld [vmem:[#allocation272_spill] sm:$0xff] }
 0x4f4   : > { %20463 = vmatprep.mubr.msk.f32.mxu0 %vm1287_vm1, %v31608_v37  ;;  %v31616_v37 = vld [vmem:[#allocation273_spill] sm:$0xff] }
 0x4f7   : > { %20464 = vmatmul.mubr.msk.f32.gmra.mrb[90].mxu0 %vm1287_vm1, %v31609_v27  ;;  %v31617_v27 = vld [vmem:[#allocation274_spill] sm:$0xff] }
 0x4f8   : > { %20466 = vmatprep.mubr.msk.f32.mxu0 %vm1287_vm1, %v31610_v24  ;;  %v31618_v24 = vld [vmem:[#allocation275_spill] sm:$0xff] }
 0x4fb   : > { %20467 = vmatmul.mubr.msk.f32.gmra.mrb[92].mxu0 %vm1287_vm1, %v31611_v55  ;;  %v31619_v55 = vld [vmem:[#allocation276_spill] sm:$0xff] }
 0x4fc   : > { %20469 = vmatprep.mubr.msk.f32.mxu0 %vm1287_vm1, %v31612_v36  ;;  %v31620_v36 = vld [vmem:[#allocation277_spill] sm:$0xff] }
 0x4ff   : > { %20470 = vmatmul.mubr.msk.f32.gmra.mrb[94].mxu0 %vm1287_vm1, %v31613_v17  ;;  %v31621_v17 = vld [vmem:[#allocation278_spill] sm:$0xff] }
 0x500   : > { %20472 = vmatprep.mubr.msk.f32.mxu0 %vm1287_vm1, %v31614_v51  ;;  %v31622_v51 = vld [vmem:[#allocation155_spill] sm:$0xff] }
 0x503   : > { %20473 = vmatmul.mubr.msk.f32.gmra.mrb[96].mxu0 %vm1287_vm1, %v31615_v47  ;;  %v31623_v47 = vld [vmem:[#allocation279_spill] sm:$0xff] }
 0x504   : > { %20475 = vmatprep.mubr.msk.f32.mxu0 %vm1287_vm1, %v31616_v37  ;;  %v31624_v37 = vld [vmem:[#allocation280_spill] sm:$0xff] }
 0x507   : > { %20476 = vmatmul.mubr.msk.f32.gmra.mrb[98].mxu0 %vm1287_vm1, %v31617_v27  ;;  %v31625_v27 = vld [vmem:[#allocation281_spill] sm:$0xff] }
 0x508   : > { %20478 = vmatprep.mubr.msk.f32.mxu0 %vm1287_vm1, %v31618_v24  ;;  %v31626_v24 = vld [vmem:[#allocation282_spill] sm:$0xff] }
 0x50b   : > { %20479 = vmatmul.mubr.msk.f32.gmra.mrb[100].mxu0 %vm1287_vm1, %v31619_v55  ;;  %v31627_v55 = vld [vmem:[#allocation283_spill] sm:$0xff] }
 0x50c   : > { %20481 = vmatprep.mubr.msk.f32.mxu0 %vm1287_vm1, %v31620_v36  ;;  %v31628_v36 = vld [vmem:[#allocation284_spill] sm:$0xff] }
 0x50f   : > { %20482 = vmatmul.mubr.msk.f32.gmra.mrb[102].mxu0 %vm1287_vm1, %v31621_v17  ;;  %v31629_v17 = vld [vmem:[#allocation285_spill] sm:$0xff] }
 0x510   : > { %20484 = vmatprep.mubr.msk.f32.mxu0 %vm1287_vm1, %v31622_v51  ;;  %v31630_v51 = vld [vmem:[#allocation170_spill] sm:$0xff] }
 0x513   : > { %20485 = vmatmul.mubr.msk.f32.gmra.mrb[104].mxu0 %vm1287_vm1, %v31623_v47  ;;  %v31631_v47 = vld [vmem:[#allocation286_spill] sm:$0xff] }
 0x514   : > { %20487 = vmatprep.mubr.msk.f32.mxu0 %vm1287_vm1, %v31624_v37  ;;  %v31632_v37 = vld [vmem:[#allocation287_spill] sm:$0xff] }
 0x517   : > { %20488 = vmatmul.mubr.msk.f32.gmra.mrb[106].mxu0 %vm1287_vm1, %v31625_v27  ;;  %v31633_v27 = vld [vmem:[#allocation174_spill] sm:$0xff] }
 0x518   : > { %20490 = vmatprep.mubr.msk.f32.mxu0 %vm1287_vm1, %v31626_v24  ;;  %v31634_v24 = vld [vmem:[#allocation288_spill] sm:$0xff] }
 0x51b   : > { %20491 = vmatmul.mubr.msk.f32.gmra.mrb[108].mxu0 %vm1287_vm1, %v31627_v55  ;;  %v31635_v55 = vld [vmem:[#allocation175_spill] sm:$0xff] }
 0x51c   : > { %20493 = vmatprep.mubr.msk.f32.mxu0 %vm1287_vm1, %v31628_v36  ;;  %v31636_v36 = vld [vmem:[#allocation289_spill] sm:$0xff] }
 0x51f   : > { %20494 = vmatmul.mubr.msk.f32.gmra.mrb[110].mxu0 %vm1287_vm1, %v31629_v17  ;;  %v31637_v17 = vld [vmem:[#allocation290_spill] sm:$0xff] }
 0x520   : > { %20496 = vmatprep.mubr.msk.f32.mxu0 %vm1287_vm1, %v31630_v51  ;;  %v31638_v51 = vld [vmem:[#allocation10_spill] sm:$0xff] }
 0x523   : > { %20497 = vmatmul.mubr.msk.f32.gmra.mrb[112].mxu0 %vm1287_vm1, %v31631_v47  ;;  %v31639_v47 = vld [vmem:[#allocation9_spill] sm:$0xff] }
 0x524   : > { %20499 = vmatprep.mubr.msk.f32.mxu0 %vm1287_vm1, %v31632_v37  ;;  %v31640_v37 = vld [vmem:[#allocation11_spill] sm:$0xff] }
 0x527   : > { %20500 = vmatmul.mubr.msk.f32.gmra.mrb[114].mxu0 %vm1287_vm1, %v31633_v27  ;;  %v31641_v27 = vld [vmem:[#allocation12_spill] sm:$0xff] }
 0x528   : > { %20502 = vmatprep.mubr.msk.f32.mxu0 %vm1287_vm1, %v31634_v24  ;;  %v31642_v24 = vld [vmem:[#allocation148_spill] sm:$0xff] }
 0x529   : > { %20716 = vmatprep.mubr.msk.f32.mxu1 %vm9974_vm5, %v31642_v24 }
 0x52b   : > { %20503 = vmatmul.mubr.msk.f32.gmra.mrb[116].mxu0 %vm1287_vm1, %v31635_v55  ;;  %v31643_v55 = vld [vmem:[#allocation21_spill] sm:$0xff] }
 0x52c   : > { %20505 = vmatprep.mubr.msk.f32.mxu0 %vm1287_vm1, %v31636_v36  ;;  %v31644_v36 = vld [vmem:[#allocation24_spill] sm:$0xff] }
 0x52f   : > { %20506 = vmatmul.mubr.msk.f32.gmra.mrb[118].mxu0 %vm1287_vm1, %v31637_v17  ;;  %v31645_v17 = vld [vmem:[#allocation25_spill] sm:$0xff] }
 0x530   : > { %20508 = vmatprep.mubr.msk.f32.mxu0 %vm1287_vm1, %v31638_v51  ;;  %v31646_v51 = vld [vmem:[#allocation28_spill] sm:$0xff] }
 0x533   : > { %20509 = vmatmul.mubr.msk.f32.gmra.mrb[120].mxu0 %vm1287_vm1, %v31639_v47  ;;  %v31647_v47 = vld [vmem:[#allocation29_spill] sm:$0xff] }
 0x534   : > { %20511 = vmatprep.mubr.msk.f32.mxu0 %vm1287_vm1, %v31640_v37  ;;  %v31648_v37 = vld [vmem:[#allocation32_spill] sm:$0xff] }
 0x537   : > { %20512 = vmatmul.mubr.msk.f32.gmra.mrb[122].mxu0 %vm1287_vm1, %v31641_v27  ;;  %v31649_v27 = vld [vmem:[#allocation33_spill] sm:$0xff] }
 0x538   : > { %20514 = vmatprep.mubr.msk.f32.mxu0 %vm1287_vm1, %v31642_v24 }
 0x53b   : > { %20515 = vmatmul.mubr.msk.f32.gmra.mrb[124].mxu0 %vm1287_vm1, %v31642_v24 }
 0x53c   : > { %20517 = vmatprep.mubr.msk.f32.mxu0 %vm1287_vm1, %v31642_v24 }
 0x53f   : > { %20518 = vmatmul.mubr.msk.f32.gmra.mrb[126].mxu0 %vm1287_vm1, %v31642_v24 }
 0x540   : > { %20522 = vmatprep.mubr.msk.f32.mxu0 %vm1287_vm1, %v31643_v55  ;;  %v31651_v55 = vld [vmem:[#allocation37_spill] sm:$0xff] }
 0x543   : > { %20523 = vmatmul.mubr.msk.f32.vlgmr.msra.gmra.mrb[0].mxu0 %vm1287_vm1, %v31644_v36  ;;  %v31652_v36 = vld [vmem:[#allocation38_spill] sm:$0xff] }
 0x544   : > { %20525 = vmatprep.mubr.msk.f32.mxu0 %vm1287_vm1, %v31645_v17  ;;  %v31653_v17 = vld [vmem:[#allocation39_spill] sm:$0xff] }
 0x547   : > { %20526 = vmatmul.mubr.msk.f32.gmra.mrb[2].mxu0 %vm1287_vm1, %v31646_v51  ;;  %v31654_v51 = vld [vmem:[#allocation40_spill] sm:$0xff] }
 0x548   : > { %20528 = vmatprep.mubr.msk.f32.mxu0 %vm1287_vm1, %v31647_v47  ;;  %v31655_v47 = vld [vmem:[#allocation15_spill] sm:$0xff] }
 0x54b   : > { %20529 = vmatmul.mubr.msk.f32.gmra.mrb[4].mxu0 %vm1287_vm1, %v31648_v37  ;;  %v31656_v37 = vld [vmem:[#allocation16_spill] sm:$0xff] }
 0x54c   : > { %20531 = vmatprep.mubr.msk.f32.mxu0 %vm1287_vm1, %v31649_v27  ;;  %v31657_v27 = vld [vmem:[#allocation17_spill] sm:$0xff] }
 0x54f   : > { %20532 = vmatmul.mubr.msk.f32.gmra.mrb[6].mxu0 %vm1287_vm1, %v31650_v41  ;;  %v31658_v41 = vld [vmem:[#allocation19_spill] sm:$0xff] }
 0x550   : > { %20534 = vmatprep.mubr.msk.f32.mxu0 %vm1287_vm1, %v31651_v55  ;;  %v31659_v55 = vld [vmem:[#allocation183_spill] sm:$0xff] }
 0x553   : > { %20535 = vmatmul.mubr.msk.f32.gmra.mrb[8].mxu0 %vm1287_vm1, %v31652_v36  ;;  %v31660_v36 = vld [vmem:[#allocation291_spill] sm:$0xff] }
 0x554   : > { %20537 = vmatprep.mubr.msk.f32.mxu0 %vm1287_vm1, %v31653_v17  ;;  %v31661_v17 = vld [vmem:[#allocation188_spill] sm:$0xff] }
 0x557   : > { %20538 = vmatmul.mubr.msk.f32.gmra.mrb[10].mxu0 %vm1287_vm1, %v31654_v51  ;;  %v31662_v51 = vld [vmem:[#allocation292_spill] sm:$0xff] }
 0x558   : > { %20540 = vmatprep.mubr.msk.f32.mxu0 %vm1287_vm1, %v31655_v47  ;;  %v31663_v47 = vld [vmem:[#allocation293_spill] sm:$0xff] }
 0x55b   : > { %20541 = vmatmul.mubr.msk.f32.gmra.mrb[12].mxu0 %vm1287_vm1, %v31656_v37  ;;  %v31664_v37 = vld [vmem:[#allocation294_spill] sm:$0xff] }
 0x55c   : > { %20543 = vmatprep.mubr.msk.f32.mxu0 %vm1287_vm1, %v31657_v27  ;;  %v31665_v27 = vld [vmem:[#allocation193_spill] sm:$0xff] }
 0x55f   : > { %20544 = vmatmul.mubr.msk.f32.gmra.mrb[14].mxu0 %vm1287_vm1, %v31658_v41  ;;  %v31666_v41 = vld [vmem:[#allocation295_spill] sm:$0xff] }
 0x560   : > { %20546 = vmatprep.mubr.msk.f32.mxu0 %vm1287_vm1, %v31659_v55  ;;  %v31667_v55 = vld [vmem:[#allocation296_spill] sm:$0xff] }
 0x563   : > { %20547 = vmatmul.mubr.msk.f32.gmra.mrb[16].mxu0 %vm1287_vm1, %v31660_v36  ;;  %v31668_v36 = vld [vmem:[#allocation198_spill] sm:$0xff] }
 0x564   : > { %20549 = vmatprep.mubr.msk.f32.mxu0 %vm1287_vm1, %v31661_v17  ;;  %v31669_v17 = vld [vmem:[#allocation297_spill] sm:$0xff] }
 0x567   : > { %20550 = vmatmul.mubr.msk.f32.gmra.mrb[18].mxu0 %vm1287_vm1, %v31662_v51  ;;  %v31670_v51 = vld [vmem:[#allocation298_spill] sm:$0xff] }
 0x568   : > { %20552 = vmatprep.mubr.msk.f32.mxu0 %vm1287_vm1, %v31663_v47  ;;  %v31671_v47 = vld [vmem:[#allocation203_spill] sm:$0xff] }
 0x56b   : > { %20553 = vmatmul.mubr.msk.f32.gmra.mrb[20].mxu0 %vm1287_vm1, %v31664_v37  ;;  %v31672_v37 = vld [vmem:[#allocation299_spill] sm:$0xff] }
 0x56c   : > { %20555 = vmatprep.mubr.msk.f32.mxu0 %vm1287_vm1, %v31665_v27  ;;  %v31674_v27 = vld [vmem:[#allocation302_spill] sm:$0xff] }
 0x56f   : > { %20556 = vmatmul.mubr.msk.f32.gmra.mrb[22].mxu0 %vm1287_vm1, %v31666_v41  ;;  %v31675_v41 = vld [vmem:[#allocation303_spill] sm:$0xff] }
 0x570   : > { %20558 = vmatprep.mubr.msk.f32.mxu0 %vm1287_vm1, %v31667_v55  ;;  %v31678_v55 = vld [vmem:[#allocation305_spill] sm:$0xff] }
 0x573   : > { %20559 = vmatmul.mubr.msk.f32.gmra.mrb[24].mxu0 %vm1287_vm1, %v25715_v0  ;;  %v31673_v0 = vld [vmem:[#allocation62_spill] sm:$0xff] }
 0x574   : > { %20561 = vmatprep.mubr.msk.f32.mxu0 %vm1287_vm1, %v31668_v36  ;;  %v31680_v36 = vld [vmem:[#allocation72_spill] sm:$0xff] }
 0x577   : > { %20562 = vmatmul.mubr.msk.f32.gmra.mrb[26].mxu0 %vm1287_vm1, %v31669_v17  ;;  %v31681_v17 = vld [vmem:[#allocation307_spill] sm:$0xff] }
 0x578   : > { %20564 = vmatprep.mubr.msk.f32.mxu0 %vm1287_vm1, %v31670_v51  ;;  %v31682_v51 = vld [vmem:[#allocation308_spill] sm:$0xff] }
 0x57b   : > { %20565 = vmatmul.mubr.msk.f32.gmra.mrb[28].mxu0 %vm1287_vm1, %v25748_v60  ;;  %v16880_v60 = vld [vmem:[%s29817_s3 + $0x8] sm:$0xff] }
 0x57c   : > { %20567 = vmatprep.mubr.msk.f32.mxu0 %vm1287_vm1, %v31671_v47  ;;  %20714 = vmatprep.subr.mxu1 %v16880_v60  ;;  %v31683_v47 = vld [vmem:[#allocation309_spill] sm:$0xff] }
 0x57d   : > { %20715 = vmatpush3.msra.mxu1 %v16880_v60  ;;  %v31686_v60 = vld [vmem:[#allocation311_spill] sm:$0xff] }
 0x57e   : > { %20717 = vmatmul.mubr.msk.f32.vlgmr.msra.gmra.mrb[128].mxu1 %vm9974_vm5, %v31642_v24 }
 0x57f   : > { %20568 = vmatmul.mubr.msk.f32.gmra.mrb[30].mxu0 %vm1287_vm1, %v31672_v37  ;;  %v31684_v37 = vld [vmem:[#allocation77_spill] sm:$0xff] }
 0x580   : > { %20570 = vmatprep.mubr.msk.f32.mxu0 %vm1287_vm1, %v25769_v35  ;;  %v31676_v35 = vld [vmem:[#allocation67_spill] sm:$0xff] }
 0x583   : > { %20571 = vmatmul.mubr.msk.f32.gmra.mrb[32].mxu0 %vm1287_vm1, %v31249_v44  ;;  %v31677_v44 = vld [vmem:[#allocation304_spill] sm:$0xff] }
 0x584   : > { %20573 = vmatprep.mubr.msk.f32.mxu0 %vm1287_vm1, %v31673_v0  ;;  %v31685_v0 = vld [vmem:[#allocation310_spill] sm:$0xff] }
 0x587   : > { %20574 = vmatmul.mubr.msk.f32.gmra.mrb[34].mxu0 %vm1287_vm1, %v31252_v10  ;;  %v31679_v10 = vld [vmem:[#allocation306_spill] sm:$0xff] }
 0x588   : > { %20576 = vmatprep.mubr.msk.f32.mxu0 %vm1287_vm1, %v31674_v27  ;;  %v31687_v27 = vld [vmem:[#allocation312_spill] sm:$0xff] }
 0x58b   : > { %20577 = vmatmul.mubr.msk.f32.gmra.mrb[36].mxu0 %vm1287_vm1, %v31675_v41  ;;  %v31688_v41 = vld [vmem:[#allocation82_spill] sm:$0xff] }
 0x58c   : > { %20579 = vmatprep.mubr.msk.f32.mxu0 %vm1287_vm1, %v31676_v35  ;;  %v31689_v35 = vld [vmem:[#allocation313_spill] sm:$0xff] }
 0x58f   : > { %20580 = vmatmul.mubr.msk.f32.gmra.mrb[38].mxu0 %vm1287_vm1, %v31677_v44  ;;  %v31690_v44 = vld [vmem:[#allocation314_spill] sm:$0xff] }
 0x590   : > { %20582 = vmatprep.mubr.msk.f32.mxu0 %vm1287_vm1, %v31678_v55  ;;  %v31691_v55 = vld [vmem:[#allocation315_spill] sm:$0xff] }
 0x593   : > { %20583 = vmatmul.mubr.msk.f32.gmra.mrb[40].mxu0 %vm1287_vm1, %v31679_v10  ;;  %v31692_v10 = vld [vmem:[#allocation87_spill] sm:$0xff] }
 0x594   : > { %20585 = vmatprep.mubr.msk.f32.mxu0 %vm1287_vm1, %v31680_v36  ;;  %v31693_v36 = vld [vmem:[#allocation316_spill] sm:$0xff] }
 0x597   : > { %20586 = vmatmul.mubr.msk.f32.gmra.mrb[42].mxu0 %vm1287_vm1, %v31681_v17  ;;  %v31694_v17 = vld [vmem:[#allocation317_spill] sm:$0xff] }
 0x598   : > { %20588 = vmatprep.mubr.msk.f32.mxu0 %vm1287_vm1, %v31682_v51  ;;  %v31695_v51 = vld [vmem:[#allocation318_spill] sm:$0xff] }
 0x59b   : > { %20589 = vmatmul.mubr.msk.f32.gmra.mrb[44].mxu0 %vm1287_vm1, %v31683_v47  ;;  %v31696_v47 = vld [vmem:[#allocation92_spill] sm:$0xff] }
 0x59c   : > { %20591 = vmatprep.mubr.msk.f32.mxu0 %vm1287_vm1, %v31684_v37  ;;  %v31697_v37 = vld [vmem:[#allocation319_spill] sm:$0xff] }
 0x59f   : > { %20592 = vmatmul.mubr.msk.f32.gmra.mrb[46].mxu0 %vm1287_vm1, %v31685_v0  ;;  %v31698_v0 = vld [vmem:[#allocation320_spill] sm:$0xff] }
 0x5a0   : > { %20594 = vmatprep.mubr.msk.f32.mxu0 %vm1287_vm1, %v31686_v60  ;;  %v31699_v60 = vld [vmem:[#allocation321_spill] sm:$0xff] }
 0x5a3   : > { %20595 = vmatmul.mubr.msk.f32.gmra.mrb[48].mxu0 %vm1287_vm1, %v31687_v27  ;;  %v31700_v27 = vld [vmem:[#allocation322_spill] sm:$0xff] }
 0x5a4   : > { %20597 = vmatprep.mubr.msk.f32.mxu0 %vm1287_vm1, %v31688_v41  ;;  %v31701_v41 = vld [vmem:[#allocation323_spill] sm:$0xff] }
 0x5a7   : > { %20598 = vmatmul.mubr.msk.f32.gmra.mrb[50].mxu0 %vm1287_vm1, %v31689_v35  ;;  %v31702_v35 = vld [vmem:[#allocation324_spill] sm:$0xff] }
 0x5a8   : > { %20600 = vmatprep.mubr.msk.f32.mxu0 %vm1287_vm1, %v31690_v44  ;;  %v31703_v44 = vld [vmem:[#allocation325_spill] sm:$0xff] }
 0x5ab   : > { %20601 = vmatmul.mubr.msk.f32.gmra.mrb[52].mxu0 %vm1287_vm1, %v31691_v55  ;;  %v31704_v55 = vld [vmem:[#allocation102_spill] sm:$0xff] }
 0x5ac   : > { %20603 = vmatprep.mubr.msk.f32.mxu0 %vm1287_vm1, %v31692_v10  ;;  %v31705_v10 = vld [vmem:[#allocation326_spill] sm:$0xff] }
 0x5af   : > { %20604 = vmatmul.mubr.msk.f32.gmra.mrb[54].mxu0 %vm1287_vm1, %v31693_v36  ;;  %v31706_v36 = vld [vmem:[#allocation327_spill] sm:$0xff] }
 0x5b0   : > { %20606 = vmatprep.mubr.msk.f32.mxu0 %vm1287_vm1, %v31694_v17  ;;  %v31707_v17 = vld [vmem:[#allocation328_spill] sm:$0xff] }
 0x5b3   : > { %20607 = vmatmul.mubr.msk.f32.gmra.mrb[56].mxu0 %vm1287_vm1, %v31695_v51  ;;  %v31708_v51 = vld [vmem:[#allocation107_spill] sm:$0xff] }
 0x5b4   : > { %20609 = vmatprep.mubr.msk.f32.mxu0 %vm1287_vm1, %v31696_v47  ;;  %v31709_v47 = vld [vmem:[#allocation331_spill] sm:$0xff] }
 0x5b7   : > { %20610 = vmatmul.mubr.msk.f32.gmra.mrb[58].mxu0 %vm1287_vm1, %v31697_v37  ;;  %v31710_v37 = vld [vmem:[#allocation112_spill] sm:$0xff] }
 0x5b8   : > { %20612 = vmatprep.mubr.msk.f32.mxu0 %vm1287_vm1, %v31698_v0  ;;  %v31711_v0 = vld [vmem:[#allocation332_spill] sm:$0xff] }
 0x5bb   : > { %20613 = vmatmul.mubr.msk.f32.gmra.mrb[60].mxu0 %vm1287_vm1, %v31699_v60  ;;  %v31712_v60 = vld [vmem:[#allocation333_spill] sm:$0xff] }
 0x5bc   : > { %20615 = vmatprep.mubr.msk.f32.mxu0 %vm1287_vm1, %v31700_v27  ;;  %v31713_v27 = vld [vmem:[#allocation117_spill] sm:$0xff] }
 0x5bf   : > { %20616 = vmatmul.mubr.msk.f32.gmra.mrb[62].mxu0 %vm1287_vm1, %v31701_v41  ;;  %v31716_v41 = vld [vmem:[#allocation122_spill] sm:$0xff] }
 0x5c0   : > { %20618 = vmatprep.mubr.msk.f32.mxu0 %vm1287_vm1, %v31702_v35  ;;  %v31718_v35 = vld [vmem:[#allocation337_spill] sm:$0xff] }
 0x5c3   : > { %20619 = vmatmul.mubr.msk.f32.gmra.mrb[64].mxu0 %vm1287_vm1, %v31703_v44  ;;  %v31719_v44 = vld [vmem:[#allocation152_spill] sm:$0xff] }
 0x5c4   : > { %20621 = vmatprep.mubr.msk.f32.mxu0 %vm1287_vm1, %v31704_v55  ;;  %v31720_v55 = vld [vmem:[#allocation127_spill] sm:$0xff] }
 0x5c7   : > { %20622 = vmatmul.mubr.msk.f32.gmra.mrb[66].mxu0 %vm1287_vm1, %v31705_v10  ;;  %v31722_v10 = vld [vmem:[#allocation157_spill] sm:$0xff] }
 0x5c8   : > { %20624 = vmatprep.mubr.msk.f32.mxu0 %vm1287_vm1, %v31706_v36  ;;  %v31723_v36 = vld [vmem:[#allocation160_spill] sm:$0xff] }
 0x5cb   : > { %20625 = vmatmul.mubr.msk.f32.gmra.mrb[68].mxu0 %vm1287_vm1, %v31707_v17 }
 0x5cc   : > { %20627 = vmatprep.mubr.msk.f32.mxu0 %vm1287_vm1, %v31708_v51 }
 0x5cf   : > { %20628 = vmatmul.mubr.msk.f32.gmra.mrb[70].mxu0 %vm1287_vm1, %v31324_v12  ;;  %v31714_v12 = vld [vmem:[#allocation334_spill] sm:$0xff] }
 0x5d0   : > { %20630 = vmatprep.mubr.msk.f32.mxu0 %vm1287_vm1, %v31326_v43  ;;  %v31715_v43 = vld [vmem:[#allocation335_spill] sm:$0xff] }
 0x5d3   : > { %20631 = vmatmul.mubr.msk.f32.gmra.mrb[72].mxu0 %vm1287_vm1, %v31709_v47 }
 0x5d4   : > { %20633 = vmatprep.mubr.msk.f32.mxu0 %vm1287_vm1, %v31710_v37 }
 0x5d7   : > { %20634 = vmatmul.mubr.msk.f32.gmra.mrb[74].mxu0 %vm1287_vm1, %v26135_v63  ;;  %v31717_v63 = vld [vmem:[#allocation336_spill] sm:$0xff] }
 0x5d8   : > { %20636 = vmatprep.mubr.msk.f32.mxu0 %vm1287_vm1, %v31711_v0  ;;  %v31731_v0 = vld [vmem:[#allocation14_spill] sm:$0xff] }
 0x5db   : > { %20637 = vmatmul.mubr.msk.f32.gmra.mrb[76].mxu0 %vm1287_vm1, %v31712_v60 }
 0x5dc   : > { %20639 = vmatprep.mubr.msk.f32.mxu0 %vm1287_vm1, %v31713_v27 }
 0x5df   : > { %20640 = vmatmul.mubr.msk.f32.gmra.mrb[78].mxu0 %vm1287_vm1, %v26168_v30  ;;  %v31721_v30 = vld [vmem:[#allocation156_spill] sm:$0xff] }
 0x5e0   : > { %20642 = vmatprep.mubr.msk.f32.mxu0 %vm1287_vm1, %v31714_v12 }
 0x5e3   : > { %20643 = vmatmul.mubr.msk.f32.gmra.mrb[80].mxu0 %vm1287_vm1, %v31715_v43 }
 0x5e4   : > { %20645 = vmatprep.mubr.msk.f32.mxu0 %vm1287_vm1, %v31716_v41 }
 0x5e7   : > { %20646 = vmatmul.mubr.msk.f32.gmra.mrb[82].mxu0 %vm1287_vm1, %v31717_v63  ;;  %v31732_v63 = vld [vmem:[#allocation13_spill] sm:$0xff] }
 0x5e8   : > { %20648 = vmatprep.mubr.msk.f32.mxu0 %vm1287_vm1, %v31718_v35 }
 0x5eb   : > { %20649 = vmatmul.mubr.msk.f32.gmra.mrb[84].mxu0 %vm1287_vm1, %v31719_v44 }
 0x5ec   : > { %20651 = vmatprep.mubr.msk.f32.mxu0 %vm1287_vm1, %v31720_v55 }
 0x5ef   : > { %20652 = vmatmul.mubr.msk.f32.gmra.mrb[86].mxu0 %vm1287_vm1, %v31352_v21  ;;  %v31725_v21 = vld [vmem:[#allocation164_spill] sm:$0xff] }
 0x5f0   : > { %20654 = vmatprep.mubr.msk.f32.mxu0 %vm1287_vm1, %v31354_v1  ;;  %v31724_v1 = vld [vmem:[#allocation161_spill] sm:$0xff] }
 0x5f3   : > { %20655 = vmatmul.mubr.msk.f32.gmra.mrb[88].mxu0 %vm1287_vm1, %v31721_v30 }
 0x5f4   : > { %20657 = vmatprep.mubr.msk.f32.mxu0 %vm1287_vm1, %v31722_v10 }
 0x5f7   : > { %20658 = vmatmul.mubr.msk.f32.gmra.mrb[90].mxu0 %vm1287_vm1, %v26267_v7  ;;  %v31726_v7 = vld [vmem:[#allocation165_spill] sm:$0xff] }
 0x5f8   : > { %20660 = vmatprep.mubr.msk.f32.mxu0 %vm1287_vm1, %v26271_v40  ;;  %v31727_v40 = vld [vmem:[#allocation158_spill] sm:$0xff] }
 0x5fb   : > { %20661 = vmatmul.mubr.msk.f32.gmra.mrb[92].mxu0 %vm1287_vm1, %v31362_v59 }
 0x5fc   : > { %20663 = vmatprep.mubr.msk.f32.mxu0 %vm1287_vm1, %v31723_v36 }
 0x5ff   : > { %20664 = vmatmul.mubr.msk.f32.gmra.mrb[94].mxu0 %vm1287_vm1, %v26300_v49 }
 0x600   : > { %20666 = vmatprep.mubr.msk.f32.mxu0 %vm1287_vm1, %v26304_v61 }
 0x603   : > { %20667 = vmatmul.mubr.msk.f32.gmra.mrb[96].mxu0 %vm1287_vm1, %v31724_v1 }
 0x604   : > { %20669 = vmatprep.mubr.msk.f32.mxu0 %vm1287_vm1, %v26320_v11 }
 0x607   : > { %20670 = vmatmul.mubr.msk.f32.gmra.mrb[98].mxu0 %vm1287_vm1, %v26333_v6  ;;  %v31728_v6 = vld [vmem:[#allocation166_spill] sm:$0xff] }
 0x608   : > { %20672 = vmatprep.mubr.msk.f32.mxu0 %vm1287_vm1, %v26337_v45 }
 0x60b   : > { %20673 = vmatmul.mubr.msk.f32.gmra.mrb[100].mxu0 %vm1287_vm1, %v31725_v21 }
 0x60c   : > { %20675 = vmatprep.mubr.msk.f32.mxu0 %vm1287_vm1, %v31726_v7 }
 0x60f   : > { %20676 = vmatmul.mubr.msk.f32.gmra.mrb[102].mxu0 %vm1287_vm1, %v26366_v18 }
 0x610   : > { %20678 = vmatprep.mubr.msk.f32.mxu0 %vm1287_vm1, %v26370_v62  ;;  %v31729_v62 = vld [vmem:[#allocation300_spill] sm:$0xff] }
 0x613   : > { %20679 = vmatmul.mubr.msk.f32.gmra.mrb[104].mxu0 %vm1287_vm1, %v26382_v46  ;;  %v31730_v46 = vld [vmem:[#allocation301_spill] sm:$0xff] }
 0x614   : > { %20681 = vmatprep.mubr.msk.f32.mxu0 %vm1287_vm1, %v26386_v28  ;;  %v27711_v28 = vld [vmem:[%s29816_s2] ss:$0 sm:$0xff] }
 0x616   : > { %v20524_v11 = vpop.f32.mrb[0].mxu0 }
 0x617   : > { %v21618_v49 = vadd.f32 %v20524_v11, %v31727_v40  ;;  %v8880_v61 = vpop.f32.mrb[1].mxu0  ;;  %20682 = vmatmul.mubr.msk.f32.gmra.mrb[106].mxu0 %vm1287_vm1, %v26399_v15 }
 0x618   : > { %v21619_v45 = vadd.f32 %v8880_v61, %v31728_v6  ;;  %20684 = vmatprep.mubr.msk.f32.mxu0 %vm1287_vm1, %v26403_v42 }
 0x619   : > { %v9655_v42 = vadd.f32 %v21618_v49, %v27711_v28  ;;  %v31734_v49 = vld [vmem:[#allocation18_spill] sm:$0xff] }
 0x61a   : > { %v20527_v18 = vpop.f32.mrb[2].mxu0 }
 0x61b   : > { %v21620_v59 = vadd.f32 %v20527_v18, %v31729_v62  ;;  %v8890_v17 = vpop.f32.mrb[3].mxu0  ;;  %20685 = vmatmul.mubr.msk.f32.gmra.mrb[108].mxu0 %vm1287_vm1, %v26415_v25  ;;  %v9654_v25 = vadd.f32 %v21619_v45, %v27711_v28  ;;  %v9783_v43 = vmax.f32 %v9655_v42, 0.0  ;;  %v31735_v18 = vld [vmem:[#allocation20_spill] sm:$0xff] }
 0x61c   : > { %v21621_v51 = vadd.f32 %v8890_v17, %v31730_v46  ;;  %20687 = vmatprep.mubr.msk.f32.mxu0 %vm1287_vm1, %v26419_v54 }
 0x61d   : > { %v9657_v41 = vadd.f32 %v21620_v59, %v27711_v28 }
 0x61e   : > { %v20530_v15 = vpop.f32.mrb[4].mxu0  ;;  %v9656_v55 = vadd.f32 %v21621_v51, %v27711_v28  ;;  %v31736_v51 = vld [vmem:[#allocation23_spill] sm:$0xff] }
 0x61f   : > { %v21622_v47 = vadd.f32 %v20530_v15, %v26820_v13  ;;  %v8900_v37 = vpop.f32.mrb[5].mxu0  ;;  %20688 = vmatmul.mubr.msk.f32.gmra.mrb[110].mxu0 %vm1287_vm1, %v26432_v48  ;;  %v9782_v48 = vmax.f32 %v9654_v25, 0.0  ;;  %v9785_v40 = vmax.f32 %v9657_v41, 0.0  ;;  %v31739_v25 = vld [vmem:[#allocation169_spill] sm:$0xff] }
 0x620   : > { %v21623_v60 = vadd.f32 %v8900_v37, %v31731_v0  ;;  %20690 = vmatprep.mubr.msk.f32.mxu0 %vm1287_vm1, %v26436_v38  ;;  %v31733_v38 = vld [vmem:[#allocation97_spill] sm:$0xff]  ;;  %v9784_v45 = vmax.f32 %v9656_v55, 0.0 }
 0x621   : > { %v9659_v27 = vadd.f32 %v21622_v47, %v27711_v28  ;;  %v31737_v47 = vld [vmem:[#allocation137_spill] sm:$0xff] }
 0x622   : > { %v9658_v54 = vadd.f32 %v21623_v60, %v27711_v28  ;;  %v20533_v12 = vpop.f32.mrb[6].mxu0  ;;  %v31740_v60 = vld [vmem:[#allocation26_spill] sm:$0xff] }
 0x623   : > { %v9787_v13 = vmax.f32 %v9659_v27, 0.0  ;;  %v21624_v35 = vadd.f32 %v20533_v12, %v31732_v63  ;;  %v8910_v44 = vpop.f32.mrb[7].mxu0  ;;  %20691 = vmatmul.mubr.msk.f32.gmra.mrb[112].mxu0 %vm1287_vm1, %v26448_v39  ;;  %v31741_v12 = vld [vmem:[#allocation173_spill] sm:$0xff]  ;;  %v31742_v63 = vld [vmem:[#allocation27_spill] sm:$0xff] }
 0x624   : > { %v9786_v30 = vmax.f32 %v9658_v54, 0.0  ;;  %v21625_v10 = vadd.f32 %v8910_v44, %v31733_v38  ;;  %20693 = vmatprep.mubr.msk.f32.mxu0 %vm1287_vm1, %v26452_v5  ;;  %v31743_v44 = vld [vmem:[#allocation142_spill] sm:$0xff] }
 0x625   : > { %v9911_v36 = vmax.f32 %v9783_v43, %v9787_v13  ;;  %v9661_v1 = vadd.f32 %v21624_v35, %v27711_v28 }
 0x626   : > { %v9910_v21 = vmax.f32 %v9782_v48, %v9786_v30  ;;  %v9660_v7 = vadd.f32 %v21625_v10, %v27711_v28  ;;  %v20536_v11 = vpop.f32.mrb[8].mxu0 }
 0x627   : > { %9976 = vst.msk [vmem:[#allocation2 + $0x8] sm:$0xff] %vm9974_vm5, %v9911_v36  ;;  %v9789_v39 = vmax.f32 %v9661_v1, 0.0  ;;  %v21626_v61 = vadd.f32 %v20536_v11, %v31734_v49  ;;  %v8920_v6 = vpop.f32.mrb[9].mxu0  ;;  %20694 = vmatmul.mubr.msk.f32.gmra.mrb[114].mxu0 %vm1287_vm1, %v26465_v14  ;;  %v31738_v14 = vld [vmem:[#allocation22_spill] sm:$0xff]  ;;  %v31744_v11 = vld [vmem:[#allocation31_spill] sm:$0xff] }
 0x628   : > { %9975 = vst.msk [vmem:[#allocation2] sm:$0xff] %vm9974_vm5, %v9910_v21  ;;  %v9788_v5 = vmax.f32 %v9660_v7, 0.0  ;;  %v21627_v62 = vadd.f32 %v8920_v6, %v31735_v18  ;;  %20696 = vmatprep.mubr.msk.f32.mxu0 %vm1287_vm1, %v26469_v53  ;;  %v31745_v49 = vld [vmem:[#allocation178_spill] sm:$0xff] }
 0x629   : > { %v9913_v59 = vmax.f32 %v9785_v40, %v9789_v39  ;;  %v9663_v53 = vadd.f32 %v21626_v61, %v27711_v28  ;;  %v31746_v18 = vld [vmem:[#allocation30_spill] sm:$0xff] }
 0x62a   : > { %v9912_v17 = vmax.f32 %v9784_v45, %v9788_v5  ;;  %v20539_v46 = vpop.f32.mrb[10].mxu0  ;;  %v9662_v13 = vadd.f32 %v21627_v62, %v27711_v28 }
 0x62b   : > { %9978 = vst.msk [vmem:[#allocation2 + $0x18] sm:$0xff] %vm9974_vm5, %v9913_v59  ;;  %v21628_v15 = vadd.f32 %v20539_v46, %v31736_v51  ;;  %v8930_v42 = vpop.f32.mrb[11].mxu0  ;;  %20697 = vmatmul.mubr.msk.f32.gmra.mrb[116].mxu0 %vm1287_vm1, %v31737_v47  ;;  %v9791_v30 = vmax.f32 %v9663_v53, 0.0  ;;  %v31747_v59 = vld [vmem:[#allocation147_spill] sm:$0xff] }
 0x62c   : > { %9977 = vst.msk [vmem:[#allocation2 + $0x10] sm:$0xff] %vm9974_vm5, %v9912_v17  ;;  %v21629_v37 = vadd.f32 %v8930_v42, %v31738_v14  ;;  %20699 = vmatprep.mubr.msk.f32.mxu0 %vm1287_vm1, %v31739_v25  ;;  %v9790_v45 = vmax.f32 %v9662_v13, 0.0 }
 0x62d   : > { %v9665_v1 = vadd.f32 %v21628_v15, %v27711_v28 }
 0x62e   : > { %v20542_v0 = vpop.f32.mrb[12].mxu0  ;;  %v9664_v21 = vadd.f32 %v21629_v37, %v27711_v28 }
 0x62f   : > { %v21630_v27 = vadd.f32 %v20542_v0, %v31740_v60  ;;  %v8940_v54 = vpop.f32.mrb[13].mxu0  ;;  %20700 = vmatmul.mubr.msk.f32.gmra.mrb[118].mxu0 %vm1287_vm1, %v31741_v12  ;;  %v10039_v43 = vld [vmem:[#allocation2] ss:$2 sm:$0xff]  ;;  %v10103_v41 = vld [vmem:[#allocation2 + $0x1] ss:$2 sm:$0xff]  ;;  %v9793_v25 = vmax.f32 %v9665_v1, 0.0 }
 0x630   : > { %v21631_v35 = vadd.f32 %v8940_v54, %v31742_v63  ;;  %20702 = vmatprep.mubr.msk.f32.mxu0 %vm1287_vm1, %v31743_v44  ;;  %v10166_v48 = vmax.f32 %v10039_v43, %v10103_v41  ;;  %v9792_v53 = vmax.f32 %v9664_v21, 0.0  ;;  %v31748_v60 = vld [vmem:[#allocation34_spill] sm:$0xff]  ;;  %v31749_v12 = vld [vmem:[#allocation153_spill] sm:$0xff]  ;;  %v31750_v41 = vld [vmem:[#allocation35_spill] sm:$0xff] }
 0x631   : > { %v9667_v55 = vadd.f32 %v21630_v27, %v27711_v28  ;;  %v31751_v63 = vld [vmem:[#allocation8_spill] sm:$0xff]  ;;  %v31752_v21 = vld [vmem:[#allocation41_spill] sm:$0xff] }
 0x632   : > { %v9666_v38 = vadd.f32 %v21631_v35, %v27711_v28  ;;  %v20545_v10 = vpop.f32.mrb[14].mxu0  ;;  %v10230_v36 = vrot.slane %v10166_v48, 7 }
 0x633   : > { %v9795_v7 = vmax.f32 %v9667_v55, 0.0  ;;  %v21632_v40 = vadd.f32 %v20545_v10, %v31744_v11  ;;  %v8950_v39 = vpop.f32.mrb[15].mxu0  ;;  %20703 = vmatmul.mubr.msk.f32.gmra.mrb[120].mxu0 %vm1287_vm1, %v31745_v49  ;;  %v10041_v61 = vld [vmem:[#allocation2 + $0x10] ss:$2 sm:$0xff]  ;;  %v10105_v6 = vld [vmem:[#allocation2 + $0x11] ss:$2 sm:$0xff] }
 0x634   : > { %v9794_v5 = vmax.f32 %v9666_v38, 0.0  ;;  %v21633_v62 = vadd.f32 %v8950_v39, %v31746_v18  ;;  %20705 = vmatprep.mubr.msk.f32.mxu0 %vm1287_vm1, %v31747_v59  ;;  %v10167_v17 = vmax.f32 %v10041_v61, %v10105_v6  ;;  %v27773_v37 = vsel %vm586_vm2, 0.0, %v10230_v36  ;;  %v31755_v39 = vld [vmem:[#allocation42_spill] sm:$0xff] }
 0x635   : > { %v9915_v46 = vmax.f32 %v9791_v30, %v9795_v7  ;;  %v9669_v51 = vadd.f32 %v21632_v40, %v27711_v28  ;;  %v10373_v55 = vrot.slane %v27773_v37, 1 }
 0x636   : > { %v9914_v15 = vmax.f32 %v9790_v45, %v9794_v5  ;;  %v9668_v42 = vadd.f32 %v21633_v62, %v27711_v28  ;;  %v20548_v47 = vpop.f32.mrb[16].mxu0  ;;  %v10231_v14 = vrot.slane %v10167_v17, 7  ;;  %v31756_v45 = vld [vmem:[#allocation43_spill] sm:$0xff] }
 0x637   : > { %9980 = vst.msk [vmem:[#allocation2 + $0x28] sm:$0xff] %vm9974_vm5, %v9915_v46  ;;  %v9797_v0 = vmax.f32 %v9669_v51, 0.0  ;;  %v21634_v27 = vadd.f32 %v20548_v47, %v31748_v60  ;;  %v8960_v54 = vpop.f32.mrb[17].mxu0  ;;  %20706 = vmatmul.mubr.msk.f32.gmra.mrb[122].mxu0 %vm1287_vm1, %v31749_v12  ;;  %v31757_v46 = vld [vmem:[#allocation44_spill] sm:$0xff] }
 0x638   : > { %9979 = vst.msk [vmem:[#allocation2 + $0x20] sm:$0xff] %vm9974_vm5, %v9914_v15  ;;  %v9796_v43 = vmax.f32 %v9668_v42, 0.0  ;;  %v21635_v13 = vadd.f32 %v8960_v54, %v31750_v41  ;;  %20708 = vmatprep.mubr.msk.f32.mxu0 %vm1287_vm1, %v31751_v63  ;;  %v27784_v35 = vsel %vm586_vm2, %v10230_v36, %v10231_v14  ;;  %v27787_v44 = vsel %vm586_vm2, %v10231_v14, 0.0  ;;  %v31758_v54 = vld [vmem:[#allocation45_spill] sm:$0xff] }
 0x639   : > { %v9917_v48 = vmax.f32 %v9793_v25, %v9797_v0  ;;  %v10374_v30 = vrot.slane %v27784_v35, 1  ;;  %v10376_v38 = vrot.slane %v27787_v44, 1  ;;  %v9671_v61 = vadd.f32 %v21634_v27, %v27711_v28 }
 0x63a   : > { %v9916_v10 = vmax.f32 %v9792_v53, %v9796_v43  ;;  %v20551_v1 = vpop.f32.mrb[18].mxu0  ;;  %v9670_v17 = vadd.f32 %v21635_v13, %v27711_v28 }
 0x63b   : > { %9982 = vst.msk [vmem:[#allocation2 + $0x38] sm:$0xff] %vm9974_vm5, %v9917_v48  ;;  %v21636_v7 = vadd.f32 %v20551_v1, %v31752_v21  ;;  %v8970_v11 = vpop.f32.mrb[19].mxu0  ;;  %20709 = vmatmul.mubr.msk.f32.gmra.mrb[124].mxu0 %vm1287_vm1, %v31751_v63  ;;  %v27797_v36 = vsel %vm1003_vm4, %v10373_v55, %v10374_v30  ;;  %v27800_v40 = vsel %vm1003_vm4, %v10374_v30, %v10376_v38  ;;  %v9799_v47 = vmax.f32 %v9671_v61, 0.0  ;;  %v31759_v30 = vld [vmem:[#allocation46_spill] sm:$0xff] }
 0x63c   : > { %31753 = vst [vmem:[#allocation141_spill] sm:$0xff] %v27797_v36  ;;  %31754 = vst [vmem:[#allocation143_spill] sm:$0xff] %v27800_v40  ;;  %v21637_v49 = vadd.f32 %v8970_v11, %v31755_v39  ;;  %20719 = vmatprep.mubr.msk.f32.mxu1 %vm9974_vm5, %v27797_v36  ;;  %20711 = vmatprep.mubr.msk.f32.mxu0 %vm1287_vm1, %v31751_v63  ;;  %v9798_v48 = vmax.f32 %v9670_v17, 0.0 }
 0x63d   : > { %9981 = vst.msk [vmem:[#allocation2 + $0x30] sm:$0xff] %vm9974_vm5, %v9916_v10  ;;  %20720 = vmatmul.mubr.msk.f32.gmra.mrb[130].mxu1 %vm9974_vm5, %v27800_v40  ;;  %v9673_v0 = vadd.f32 %v21636_v7, %v27711_v28 }
 0x63e   : > { %v20554_v6 = vpop.f32.mrb[20].mxu0  ;;  %v9672_v60 = vadd.f32 %v21637_v49, %v27711_v28 }
 0x63f   : > { %v21638_v5 = vadd.f32 %v20554_v6, %v31756_v45  ;;  %v8980_v18 = vpop.f32.mrb[21].mxu0  ;;  %20712 = vmatmul.mubr.msk.f32.gmra.mrb[126].mxu0 %vm1287_vm1, %v31751_v63  ;;  %v10043_v62 = vld [vmem:[#allocation2 + $0x20] ss:$2 sm:$0xff]  ;;  %v10107_v59 = vld [vmem:[#allocation2 + $0x21] ss:$2 sm:$0xff]  ;;  %v9801_v6 = vmax.f32 %v9673_v0, 0.0 }
 0x640   : > { %v21639_v51 = vadd.f32 %v8980_v18, %v31757_v46  ;;  %v10168_v15 = vmax.f32 %v10043_v62, %v10107_v59  ;;  %v9800_v45 = vmax.f32 %v9672_v60, 0.0  ;;  %v31760_v18 = vld [vmem:[#allocation47_spill] sm:$0xff]  ;;  %v31761_v46 = vld [vmem:[#allocation48_spill] sm:$0xff] }
 0x641   : > { %v9675_v42 = vadd.f32 %v21638_v5, %v27711_v28 }
 0x642   : > { %v9674_v14 = vadd.f32 %v21639_v51, %v27711_v28  ;;  %v20557_v25 = vpop.f32.mrb[22].mxu0  ;;  %v10233_v53 = vrot.slane %v10168_v15, 7 }
 0x643   : > { %v9803_v27 = vmax.f32 %v9675_v42, 0.0  ;;  %v21640_v12 = vadd.f32 %v20557_v25, %v31758_v54  ;;  %v8990_v43 = vpop.f32.mrb[23].mxu0  ;;  %v31762_v54 = vld [vmem:[#allocation49_spill] sm:$0xff] }
 0x644   : > { %v10045_v41 = vld [vmem:[#allocation2 + $0x30] ss:$2 sm:$0xff]  ;;  %v10109_v13 = vld [vmem:[#allocation2 + $0x31] ss:$2 sm:$0xff]  ;;  %v9802_v55 = vmax.f32 %v9674_v14, 0.0  ;;  %v21641_v38 = vadd.f32 %v8990_v43, %v31759_v30  ;;  %v27825_v49 = vsel %vm586_vm2, 0.0, %v10233_v53 }
 0x645   : > { %v10169_v10 = vmax.f32 %v10045_v41, %v10109_v13  ;;  %v9919_v1 = vmax.f32 %v9799_v47, %v9803_v27  ;;  %v9677_v21 = vadd.f32 %v21640_v12, %v27711_v28  ;;  %v10378_v14 = vrot.slane %v27825_v49, 1  ;;  %v31765_v13 = vld [vmem:[#allocation50_spill] sm:$0xff] }
 0x646   : > { %v9918_v11 = vmax.f32 %v9798_v48, %v9802_v55  ;;  %v9676_v39 = vadd.f32 %v21641_v38, %v27711_v28  ;;  %v20560_v7 = vpop.f32.mrb[24].mxu0  ;;  %v31766_v38 = vld [vmem:[#allocation51_spill] sm:$0xff] }
 0x647   : > { %v10234_v61 = vrot.slane %v10169_v10, 7  ;;  %9984 = vst.msk [vmem:[#allocation2 + $0x48] sm:$0xff] %vm9974_vm5, %v9919_v1  ;;  %v9805_v5 = vmax.f32 %v9677_v21, 0.0  ;;  %v21642_v62 = vadd.f32 %v20560_v7, %v31760_v18  ;;  %v9000_v59 = vpop.f32.mrb[25].mxu0  ;;  %v31767_v7 = vld [vmem:[#allocation52_spill] sm:$0xff] }
 0x648   : > { %9983 = vst.msk [vmem:[#allocation2 + $0x40] sm:$0xff] %vm9974_vm5, %v9918_v11  ;;  %v9804_v17 = vmax.f32 %v9676_v39, 0.0  ;;  %v21643_v51 = vadd.f32 %v9000_v59, %v31761_v46 }
 0x649   : > { %v27832_v15 = vsel %vm586_vm2, %v10233_v53, %v10234_v61  ;;  %v27835_v42 = vsel %vm586_vm2, %v10234_v61, 0.0  ;;  %v9921_v47 = vmax.f32 %v9801_v6, %v9805_v5  ;;  %v9679_v55 = vadd.f32 %v21642_v62, %v27711_v28 }
 0x64a   : > { %v10379_v25 = vrot.slane %v27832_v15, 1  ;;  %v10381_v0 = vrot.slane %v27835_v42, 1  ;;  %v9920_v60 = vmax.f32 %v9800_v45, %v9804_v17  ;;  %v20563_v27 = vpop.f32.mrb[26].mxu0  ;;  %v9678_v39 = vadd.f32 %v21643_v51, %v27711_v28 }
 0x64b   : > { %9986 = vst.msk [vmem:[#allocation2 + $0x58] sm:$0xff] %vm9974_vm5, %v9921_v47  ;;  %v21644_v12 = vadd.f32 %v20563_v27, %v31762_v54  ;;  %v9010_v43 = vpop.f32.mrb[27].mxu0  ;;  %v9807_v5 = vmax.f32 %v9679_v55, 0.0 }
 0x64c   : > { %v27843_v53 = vsel %vm1003_vm4, %v10378_v14, %v10379_v25  ;;  %v27846_v41 = vsel %vm1003_vm4, %v10379_v25, %v10381_v0  ;;  %9985 = vst.msk [vmem:[#allocation2 + $0x50] sm:$0xff] %vm9974_vm5, %v9920_v60  ;;  %v21645_v48 = vadd.f32 %v9010_v43, %v31765_v13  ;;  %v31768_v14 = vld [vmem:[#allocation53_spill] sm:$0xff]  ;;  %v9806_v27 = vmax.f32 %v9678_v39, 0.0  ;;  %v31769_v43 = vld [vmem:[#allocation54_spill] sm:$0xff] }
 0x64d   : > { %31763 = vst [vmem:[#allocation144_spill] sm:$0xff] %v27843_v53  ;;  %31764 = vst [vmem:[#allocation145_spill] sm:$0xff] %v27846_v41  ;;  %20722 = vmatprep.mubr.msk.f32.mxu1 %vm9974_vm5, %v27843_v53  ;;  %v9681_v62 = vadd.f32 %v21644_v12, %v27711_v28 }
 0x64e   : > { %20723 = vmatmul.mubr.msk.f32.gmra.mrb[132].mxu1 %vm9974_vm5, %v27846_v41  ;;  %v20566_v30 = vpop.f32.mrb[28].mxu0  ;;  %v9680_v46 = vadd.f32 %v21645_v48, %v27711_v28 }
 0x64f   : > { %v21646_v10 = vadd.f32 %v20566_v30, %v31766_v38  ;;  %v9020_v1 = vpop.f32.mrb[29].mxu0  ;;  %v10047_v21 = vld [vmem:[#allocation2 + $0x40] ss:$2 sm:$0xff]  ;;  %v10111_v11 = vld [vmem:[#allocation2 + $0x41] ss:$2 sm:$0xff] }
 0x650   : > { %v21647_v61 = vadd.f32 %v9020_v1, %v31767_v7  ;;  %v10170_v6 = vmax.f32 %v10047_v21, %v10111_v11  ;;  %v9809_v11 = vmax.f32 %v9681_v62, 0.0  ;;  %v9808_v7 = vmax.f32 %v9680_v46, 0.0 }
 0x651   : > { %v9683_v45 = vadd.f32 %v21646_v10, %v27711_v28 }
 0x652   : > { %v9682_v18 = vadd.f32 %v21647_v61, %v27711_v28  ;;  %v20569_v59 = vpop.f32.mrb[30].mxu0  ;;  %v10236_v17 = vrot.slane %v10170_v6, 7  ;;  %v31770_v61 = vld [vmem:[#allocation55_spill] sm:$0xff] }
 0x653   : > { %v9811_v47 = vmax.f32 %v9683_v45, 0.0  ;;  %v21648_v25 = vadd.f32 %v20569_v59, %v31768_v14  ;;  %v9030_v0 = vpop.f32.mrb[31].mxu0  ;;  %v10049_v60 = vld [vmem:[#allocation2 + $0x50] ss:$2 sm:$0xff]  ;;  %v10113_v51 = vld [vmem:[#allocation2 + $0x51] ss:$2 sm:$0xff] }
 0x654   : > { %v9810_v54 = vmax.f32 %v9682_v18, 0.0  ;;  %v21649_v13 = vadd.f32 %v9030_v0, %v31769_v43  ;;  %v10171_v30 = vmax.f32 %v10049_v60, %v10113_v51  ;;  %v27867_v48 = vsel %vm586_vm2, 0.0, %v10236_v17  ;;  %v31771_v18 = vld [vmem:[#allocation56_spill] sm:$0xff] }
 0x655   : > { %v9923_v55 = vmax.f32 %v9807_v5, %v9811_v47  ;;  %v9685_v38 = vadd.f32 %v21648_v25, %v27711_v28  ;;  %v10383_v62 = vrot.slane %v27867_v48, 1 }
 0x656   : > { %v9922_v10 = vmax.f32 %v9806_v27, %v9810_v54  ;;  %v9684_v1 = vadd.f32 %v21649_v13, %v27711_v28  ;;  %v20572_v12 = vpop.f32.mrb[32].mxu0  ;;  %v10237_v21 = vrot.slane %v10171_v30, 7  ;;  %v31772_v27 = vld [vmem:[#allocation57_spill] sm:$0xff]  ;;  %v31775_v30 = vld [vmem:[#allocation58_spill] sm:$0xff] }
 0x657   : > { %9988 = vst.msk [vmem:[#allocation2 + $0x68] sm:$0xff] %vm9974_vm5, %v9923_v55  ;;  %v9813_v39 = vmax.f32 %v9685_v38, 0.0  ;;  %v21650_v6 = vadd.f32 %v20572_v12, %v31770_v61  ;;  %v9040_v45 = vpop.f32.mrb[33].mxu0  ;;  %v31777_v61 = vld [vmem:[#allocation60_spill] sm:$0xff] }
 0x658   : > { %9987 = vst.msk [vmem:[#allocation2 + $0x60] sm:$0xff] %vm9974_vm5, %v9922_v10  ;;  %v9812_v5 = vmax.f32 %v9684_v1, 0.0  ;;  %v21651_v59 = vadd.f32 %v9040_v45, %v31771_v18  ;;  %v27874_v47 = vsel %vm586_vm2, %v10236_v17, %v10237_v21  ;;  %v27877_v14 = vsel %vm586_vm2, %v10237_v21, 0.0  ;;  %v31776_v1 = vld [vmem:[#allocation59_spill] sm:$0xff] }
 0x659   : > { %v9925_v25 = vmax.f32 %v9809_v11, %v9813_v39  ;;  %v10384_v46 = vrot.slane %v27874_v47, 1  ;;  %v10386_v0 = vrot.slane %v27877_v14, 1  ;;  %v9687_v38 = vadd.f32 %v21650_v6, %v27711_v28 }
 0x65a   : > { %v9924_v60 = vmax.f32 %v9808_v7, %v9812_v5  ;;  %v20575_v51 = vpop.f32.mrb[34].mxu0  ;;  %v9686_v39 = vadd.f32 %v21651_v59, %v27711_v28 }
 0x65b   : > { %9990 = vst.msk [vmem:[#allocation2 + $0x78] sm:$0xff] %vm9974_vm5, %v9925_v25  ;;  %v21652_v54 = vadd.f32 %v20575_v51, %v31772_v27  ;;  %v9050_v43 = vpop.f32.mrb[35].mxu0  ;;  %v27885_v17 = vsel %vm1003_vm4, %v10383_v62, %v10384_v46  ;;  %v27888_v13 = vsel %vm1003_vm4, %v10384_v46, %v10386_v0  ;;  %v9815_v25 = vmax.f32 %v9687_v38, 0.0 }
 0x65c   : > { %31773 = vst [vmem:[#allocation146_spill] sm:$0xff] %v27885_v17  ;;  %31774 = vst [vmem:[#allocation149_spill] sm:$0xff] %v27888_v13  ;;  %v21653_v55 = vadd.f32 %v9050_v43, %v31775_v30  ;;  %20725 = vmatprep.mubr.msk.f32.mxu1 %vm9974_vm5, %v27885_v17 }
 0x65d   : > { %9989 = vst.msk [vmem:[#allocation2 + $0x70] sm:$0xff] %vm9974_vm5, %v9924_v60  ;;  %20726 = vmatmul.mubr.msk.f32.gmra.mrb[134].mxu1 %vm9974_vm5, %v27888_v13  ;;  %v9689_v6 = vadd.f32 %v21652_v54, %v27711_v28 }
 0x65e   : > { %v20578_v10 = vpop.f32.mrb[36].mxu0  ;;  %v9688_v60 = vadd.f32 %v21653_v55, %v27711_v28 }
 0x65f   : > { %v21654_v12 = vadd.f32 %v20578_v10, %v31776_v1  ;;  %v9060_v21 = vpop.f32.mrb[37].mxu0  ;;  %v10051_v11 = vld [vmem:[#allocation2 + $0x60] ss:$2 sm:$0xff]  ;;  %v10115_v7 = vld [vmem:[#allocation2 + $0x61] ss:$2 sm:$0xff]  ;;  %v9814_v10 = vmax.f32 %v9686_v39, 0.0 }
 0x660   : > { %v21655_v45 = vadd.f32 %v9060_v21, %v31777_v61  ;;  %v10172_v5 = vmax.f32 %v10051_v11, %v10115_v7 }
 0x661   : > { %v9691_v18 = vadd.f32 %v21654_v12, %v27711_v28 }
 0x662   : > { %v9690_v62 = vadd.f32 %v21655_v45, %v27711_v28  ;;  %v20581_v46 = vpop.f32.mrb[38].mxu0  ;;  %v10239_v0 = vrot.slane %v10172_v5, 7  ;;  %v9816_v5 = vmax.f32 %v9688_v60, 0.0 }
 0x663   : > { %v9819_v51 = vmax.f32 %v9691_v18, 0.0  ;;  %v21656_v27 = vadd.f32 %v20581_v46, %v26990_v22  ;;  %v9070_v43 = vpop.f32.mrb[39].mxu0  ;;  %v9817_v22 = vmax.f32 %v9689_v6, 0.0  ;;  %v10342_v6 = vld [vmem:[%s29817_s3] sm:$0xff] }
 0x664   : > { %v10053_v30 = vld [vmem:[#allocation2 + $0x70] ss:$2 sm:$0xff]  ;;  %v10117_v59 = vld [vmem:[#allocation2 + $0x71] ss:$2 sm:$0xff]  ;;  %v9818_v1 = vmax.f32 %v9690_v62, 0.0  ;;  %v21657_v21 = vadd.f32 %v9070_v43, %v26992_v29  ;;  %v27909_v55 = vsel %vm586_vm2, 0.0, %v10239_v0  ;;  %20764 = vmatprep.subr.mxu1 %v10342_v6 }
 0x665   : > { %v10173_v12 = vmax.f32 %v10053_v30, %v10117_v59  ;;  %v9927_v38 = vmax.f32 %v9815_v25, %v9819_v51  ;;  %v9693_v11 = vadd.f32 %v21656_v27, %v27711_v28  ;;  %v10388_v27 = vrot.slane %v27909_v55, 1  ;;  %20765 = vmatpush3.msra.mxu1 %v10342_v6 }
 0x666   : > { %v9926_v7 = vmax.f32 %v9814_v10, %v9818_v1  ;;  %v9692_v61 = vadd.f32 %v21657_v21, %v27711_v28  ;;  %v20584_v54 = vpop.f32.mrb[40].mxu0 }
 0x667   : > { %v10240_v45 = vrot.slane %v10173_v12, 7  ;;  %9992 = vst.msk [vmem:[#allocation2 + $0x88] sm:$0xff] %vm9974_vm5, %v9927_v38  ;;  %v9821_v39 = vmax.f32 %v9693_v11, 0.0  ;;  %v21658_v18 = vadd.f32 %v20584_v54, %v26998_v57  ;;  %v9080_v29 = vpop.f32.mrb[41].mxu0 }
 0x668   : > { %9991 = vst.msk [vmem:[#allocation2 + $0x80] sm:$0xff] %vm9974_vm5, %v9926_v7  ;;  %v9820_v25 = vmax.f32 %v9692_v61, 0.0  ;;  %v21659_v62 = vadd.f32 %v9080_v29, %v27000_v58 }
 0x669   : > { %v27916_v46 = vsel %vm586_vm2, %v10239_v0, %v10240_v45  ;;  %v27919_v51 = vsel %vm586_vm2, %v10240_v45, 0.0  ;;  %v9929_v60 = vmax.f32 %v9817_v22, %v9821_v39  ;;  %v9695_v12 = vadd.f32 %v21658_v18, %v27711_v28 }
 0x66a   : > { %v10389_v57 = vrot.slane %v27916_v46, 1  ;;  %v10391_v43 = vrot.slane %v27919_v51, 1  ;;  %v9928_v30 = vmax.f32 %v9816_v5, %v9820_v25  ;;  %v20587_v58 = vpop.f32.mrb[42].mxu0  ;;  %v9694_v54 = vadd.f32 %v21659_v62, %v27711_v28 }
 0x66b   : > { %9994 = vst.msk [vmem:[#allocation2 + $0x98] sm:$0xff] %vm9974_vm5, %v9929_v60  ;;  %v21660_v0 = vadd.f32 %v20587_v58, %v27006_v50  ;;  %v9090_v59 = vpop.f32.mrb[43].mxu0  ;;  %v9823_v5 = vmax.f32 %v9695_v12, 0.0 }
 0x66c   : > { %v27930_v10 = vsel %vm1003_vm4, %v10388_v27, %v10389_v57  ;;  %v27933_v1 = vsel %vm1003_vm4, %v10389_v57, %v10391_v43  ;;  %9993 = vst.msk [vmem:[#allocation2 + $0x90] sm:$0xff] %vm9974_vm5, %v9928_v30  ;;  %v21661_v21 = vadd.f32 %v9090_v59, %v27008_v34  ;;  %v9822_v43 = vmax.f32 %v9694_v54, 0.0 }
 0x66d   : > { %31778 = vst [vmem:[#allocation150_spill] sm:$0xff] %v27930_v10  ;;  %31779 = vst [vmem:[#allocation151_spill] sm:$0xff] %v27933_v1  ;;  %20728 = vmatprep.mubr.msk.f32.mxu1 %vm9974_vm5, %v27930_v10  ;;  %v9697_v18 = vadd.f32 %v21660_v0, %v27711_v28 }
 0x66e   : > { %20729 = vmatmul.mubr.msk.f32.gmra.mrb[136].mxu1 %vm9974_vm5, %v27933_v1  ;;  %v20590_v50 = vpop.f32.mrb[44].mxu0  ;;  %v9696_v6 = vadd.f32 %v21661_v21, %v27711_v28 }
 0x66f   : > { %v21662_v38 = vadd.f32 %v20590_v50, %v27014_v26  ;;  %v9100_v11 = vpop.f32.mrb[45].mxu0  ;;  %v10055_v7 = vld [vmem:[#allocation2 + $0x80] ss:$2 sm:$0xff]  ;;  %v10119_v61 = vld [vmem:[#allocation2 + $0x81] ss:$2 sm:$0xff] }
 0x670   : > { %v21663_v45 = vadd.f32 %v9100_v11, %v27016_v33  ;;  %v10174_v22 = vmax.f32 %v10055_v7, %v10119_v61  ;;  %v9824_v7 = vmax.f32 %v9696_v6, 0.0 }
 0x671   : > { %v9699_v34 = vadd.f32 %v21662_v38, %v27711_v28 }
 0x672   : > { %v9698_v39 = vadd.f32 %v21663_v45, %v27711_v28  ;;  %v20593_v29 = vpop.f32.mrb[46].mxu0  ;;  %v10242_v25 = vrot.slane %v10174_v22, 7 }
 0x673   : > { %v9827_v26 = vmax.f32 %v9699_v34, 0.0  ;;  %v21664_v60 = vadd.f32 %v20593_v29, %v27022_v4  ;;  %v9110_v27 = vpop.f32.mrb[47].mxu0  ;;  %v10057_v57 = vld [vmem:[#allocation2 + $0x90] ss:$2 sm:$0xff]  ;;  %v10121_v62 = vld [vmem:[#allocation2 + $0x91] ss:$2 sm:$0xff] }
 0x674   : > { %v9826_v33 = vmax.f32 %v9698_v39, 0.0  ;;  %v21665_v30 = vadd.f32 %v9110_v27, %v27024_v20  ;;  %v10175_v58 = vmax.f32 %v10057_v57, %v10121_v62  ;;  %v27954_v21 = vsel %vm586_vm2, 0.0, %v10242_v25 }
 0x675   : > { %v9931_v59 = vmax.f32 %v9823_v5, %v9827_v26  ;;  %v9701_v12 = vadd.f32 %v21664_v60, %v27711_v28  ;;  %v9825_v4 = vmax.f32 %v9697_v18, 0.0  ;;  %v10393_v29 = vrot.slane %v27954_v21, 1 }
 0x676   : > { %v9930_v50 = vmax.f32 %v9822_v43, %v9826_v33  ;;  %v9700_v38 = vadd.f32 %v21665_v30, %v27711_v28  ;;  %v20596_v0 = vpop.f32.mrb[48].mxu0  ;;  %v10243_v11 = vrot.slane %v10175_v58, 7 }
 0x677   : > { %9996 = vst.msk [vmem:[#allocation2 + $0xa8] sm:$0xff] %vm9974_vm5, %v9931_v59  ;;  %v9829_v61 = vmax.f32 %v9701_v12, 0.0  ;;  %v21666_v54 = vadd.f32 %v20596_v0, %v27030_v16  ;;  %v9120_v20 = vpop.f32.mrb[49].mxu0 }
 0x678   : > { %9995 = vst.msk [vmem:[#allocation2 + $0xa0] sm:$0xff] %vm9974_vm5, %v9930_v50  ;;  %v9828_v45 = vmax.f32 %v9700_v38, 0.0  ;;  %v21667_v22 = vadd.f32 %v9120_v20, %v27032_v3  ;;  %v27961_v34 = vsel %vm586_vm2, %v10242_v25, %v10243_v11  ;;  %v27964_v5 = vsel %vm586_vm2, %v10243_v11, 0.0 }
 0x679   : > { %v9933_v39 = vmax.f32 %v9825_v4, %v9829_v61  ;;  %v10394_v18 = vrot.slane %v27961_v34, 1  ;;  %v10396_v6 = vrot.slane %v27964_v5, 1  ;;  %v9703_v62 = vadd.f32 %v21666_v54, %v27711_v28 }
 0x67a   : > { %v9932_v16 = vmax.f32 %v9824_v7, %v9828_v45  ;;  %v20599_v26 = vpop.f32.mrb[50].mxu0  ;;  %v9702_v59 = vadd.f32 %v21667_v22, %v27711_v28 }
 0x67b   : > { %9998 = vst.msk [vmem:[#allocation2 + $0xb8] sm:$0xff] %vm9974_vm5, %v9933_v39  ;;  %v21668_v60 = vadd.f32 %v20599_v26, %v27038_v8  ;;  %v9130_v3 = vpop.f32.mrb[51].mxu0  ;;  %v27972_v25 = vsel %vm1003_vm4, %v10393_v29, %v10394_v18  ;;  %v27975_v27 = vsel %vm1003_vm4, %v10394_v18, %v10396_v6  ;;  %v9831_v38 = vmax.f32 %v9703_v62, 0.0 }
 0x67c   : > { %31780 = vst [vmem:[#allocation159_spill] sm:$0xff] %v27972_v25  ;;  %31781 = vst [vmem:[#allocation162_spill] sm:$0xff] %v27975_v27  ;;  %v21669_v57 = vadd.f32 %v9130_v3, %v27040_v2  ;;  %20731 = vmatprep.mubr.msk.f32.mxu1 %vm9974_vm5, %v27972_v25  ;;  %v9830_v39 = vmax.f32 %v9702_v59, 0.0 }
 0x67d   : > { %9997 = vst.msk [vmem:[#allocation2 + $0xb0] sm:$0xff] %vm9974_vm5, %v9932_v16  ;;  %20732 = vmatmul.mubr.msk.f32.gmra.mrb[138].mxu1 %vm9974_vm5, %v27975_v27  ;;  %v9705_v7 = vadd.f32 %v21668_v60, %v27711_v28 }
 0x67e   : > { %v20602_v8 = vpop.f32.mrb[52].mxu0  ;;  %v9704_v61 = vadd.f32 %v21669_v57, %v27711_v28 }
 0x67f   : > { %v21670_v43 = vadd.f32 %v20602_v8, %v27046_v23  ;;  %v9140_v33 = vpop.f32.mrb[53].mxu0  ;;  %v10059_v30 = vld [vmem:[#allocation2 + $0xa0] ss:$2 sm:$0xff]  ;;  %v10123_v58 = vld [vmem:[#allocation2 + $0xa1] ss:$2 sm:$0xff] }
 0x680   : > { %v21671_v12 = vadd.f32 %v9140_v33, %v27048_v52  ;;  %v10176_v50 = vmax.f32 %v10059_v30, %v10123_v58  ;;  %v9832_v8 = vmax.f32 %v9704_v61, 0.0 }
 0x681   : > { %v9707_v2 = vadd.f32 %v21670_v43, %v27711_v28 }
 0x682   : > { %v9706_v0 = vadd.f32 %v21671_v12, %v27711_v28  ;;  %v20605_v11 = vpop.f32.mrb[54].mxu0  ;;  %v10245_v4 = vrot.slane %v10176_v50, 7 }
 0x683   : > { %v9835_v23 = vmax.f32 %v9707_v2, 0.0  ;;  %v21672_v54 = vadd.f32 %v20605_v11, %v27054_v31  ;;  %v9150_v20 = vpop.f32.mrb[55].mxu0  ;;  %v9833_v31 = vmax.f32 %v9705_v7, 0.0  ;;  %v31782_v7 = vld [vmem:[#allocation61_spill] sm:$0xff] }
 0x684   : > { %v10061_v45 = vld [vmem:[#allocation2 + $0xb0] ss:$2 sm:$0xff]  ;;  %v10125_v22 = vld [vmem:[#allocation2 + $0xb1] ss:$2 sm:$0xff]  ;;  %v9834_v52 = vmax.f32 %v9706_v0, 0.0  ;;  %v21673_v29 = vadd.f32 %v9150_v20, %v27056_v32  ;;  %v27996_v57 = vsel %vm586_vm2, 0.0, %v10245_v4 }
 0x685   : > { %v10177_v18 = vmax.f32 %v10061_v45, %v10125_v22  ;;  %v9935_v6 = vmax.f32 %v9831_v38, %v9835_v23  ;;  %v9709_v16 = vadd.f32 %v21672_v54, %v27711_v28  ;;  %v10398_v2 = vrot.slane %v27996_v57, 1  ;;  %v31785_v22 = vld [vmem:[#allocation63_spill] sm:$0xff] }
 0x686   : > { %v9934_v26 = vmax.f32 %v9830_v39, %v9834_v52  ;;  %v9708_v3 = vadd.f32 %v21673_v29, %v27711_v28  ;;  %v20608_v60 = vpop.f32.mrb[56].mxu0 }
 0x687   : > { %v10246_v62 = vrot.slane %v10177_v18, 7  ;;  %10000 = vst.msk [vmem:[#allocation2 + $0xc8] sm:$0xff] %vm9974_vm5, %v9935_v6  ;;  %v9837_v43 = vmax.f32 %v9709_v16, 0.0  ;;  %v21674_v33 = vadd.f32 %v20608_v60, %v27062_v56  ;;  %v9160_v32 = vpop.f32.mrb[57].mxu0  ;;  %v31786_v16 = vld [vmem:[#allocation64_spill] sm:$0xff] }
 0x688   : > { %9999 = vst.msk [vmem:[#allocation2 + $0xc0] sm:$0xff] %vm9974_vm5, %v9934_v26  ;;  %v9836_v30 = vmax.f32 %v9708_v3, 0.0  ;;  %v21675_v58 = vadd.f32 %v9160_v32, %v27064_v9 }
 0x689   : > { %v28003_v59 = vsel %vm586_vm2, %v10245_v4, %v10246_v62  ;;  %v28006_v12 = vsel %vm586_vm2, %v10246_v62, 0.0  ;;  %v9937_v50 = vmax.f32 %v9833_v31, %v9837_v43  ;;  %v9711_v20 = vadd.f32 %v21674_v33, %v27711_v28 }
 0x68a   : > { %v10399_v38 = vrot.slane %v28003_v59, 1  ;;  %v10401_v0 = vrot.slane %v28006_v12, 1  ;;  %v9936_v56 = vmax.f32 %v9832_v8, %v9836_v30  ;;  %v20611_v11 = vpop.f32.mrb[58].mxu0  ;;  %v9710_v6 = vadd.f32 %v21675_v58, %v27711_v28  ;;  %v31787_v30 = vld [vmem:[#allocation329_spill] sm:$0xff] }
 0x68b   : > { %10002 = vst.msk [vmem:[#allocation2 + $0xd8] sm:$0xff] %vm9974_vm5, %v9937_v50  ;;  %v21676_v61 = vadd.f32 %v20611_v11, %v31782_v7  ;;  %v9170_v9 = vpop.f32.mrb[59].mxu0  ;;  %v9839_v60 = vmax.f32 %v9711_v20, 0.0  ;;  %v31788_v11 = vld [vmem:[#allocation65_spill] sm:$0xff] }
 0x68c   : > { %v28014_v4 = vsel %vm1003_vm4, %v10398_v2, %v10399_v38  ;;  %v28017_v23 = vsel %vm1003_vm4, %v10399_v38, %v10401_v0  ;;  %10001 = vst.msk [vmem:[#allocation2 + $0xd0] sm:$0xff] %vm9974_vm5, %v9936_v56  ;;  %v21677_v54 = vadd.f32 %v9170_v9, %v27072_v19  ;;  %v9838_v0 = vmax.f32 %v9710_v6, 0.0 }
 0x68d   : > { %31783 = vst [vmem:[#allocation163_spill] sm:$0xff] %v28014_v4  ;;  %31784 = vst [vmem:[#allocation167_spill] sm:$0xff] %v28017_v23  ;;  %20734 = vmatprep.mubr.msk.f32.mxu1 %vm9974_vm5, %v28014_v4  ;;  %v9713_v43 = vadd.f32 %v21676_v61, %v27711_v28 }
 0x68e   : > { %20735 = vmatmul.mubr.msk.f32.gmra.mrb[140].mxu1 %vm9974_vm5, %v28017_v23  ;;  %v20614_v45 = vpop.f32.mrb[60].mxu0  ;;  %v9712_v33 = vadd.f32 %v21677_v54, %v27711_v28 }
 0x68f   : > { %v21678_v39 = vadd.f32 %v20614_v45, %v31785_v22  ;;  %v9180_v52 = vpop.f32.mrb[61].mxu0  ;;  %v10063_v29 = vld [vmem:[#allocation2 + $0xc0] ss:$2 sm:$0xff]  ;;  %v10127_v18 = vld [vmem:[#allocation2 + $0xc1] ss:$2 sm:$0xff] }
 0x690   : > { %v21679_v26 = vadd.f32 %v9180_v52, %v31786_v16  ;;  %v10178_v3 = vmax.f32 %v10063_v29, %v10127_v18  ;;  %v9841_v29 = vmax.f32 %v9713_v43, 0.0  ;;  %v9840_v18 = vmax.f32 %v9712_v33, 0.0  ;;  %v31789_v16 = vld [vmem:[#allocation330_spill] sm:$0xff] }
 0x691   : > { %v9715_v19 = vadd.f32 %v21678_v39, %v27711_v28 }
 0x692   : > { %v9714_v62 = vadd.f32 %v21679_v26, %v27711_v28  ;;  %v20617_v31 = vpop.f32.mrb[62].mxu0  ;;  %v10248_v8 = vrot.slane %v10178_v3, 7 }
 0x693   : > { %v9843_v32 = vmax.f32 %v9715_v19, 0.0  ;;  %v21680_v50 = vadd.f32 %v20617_v31, %v31787_v30  ;;  %v9190_v2 = vpop.f32.mrb[63].mxu0  ;;  %v10065_v38 = vld [vmem:[#allocation2 + $0xd0] ss:$2 sm:$0xff]  ;;  %v10129_v58 = vld [vmem:[#allocation2 + $0xd1] ss:$2 sm:$0xff] }
 0x694   : > { %v9842_v56 = vmax.f32 %v9714_v62, 0.0  ;;  %v21681_v7 = vadd.f32 %v9190_v2, %v31788_v11  ;;  %v10179_v9 = vmax.f32 %v10065_v38, %v10129_v58  ;;  %v28038_v54 = vsel %vm586_vm2, 0.0, %v10248_v8  ;;  %v31791_v58 = vld [vmem:[#allocation68_spill] sm:$0xff] }
 0x695   : > { %v9939_v20 = vmax.f32 %v9839_v60, %v9843_v32  ;;  %v9717_v45 = vadd.f32 %v21680_v50, %v27711_v28  ;;  %v31790_v60 = vld [vmem:[#allocation66_spill] sm:$0xff]  ;;  %v10403_v43 = vrot.slane %v28038_v54, 1 }
 0x696   : > { %v9938_v22 = vmax.f32 %v9838_v0, %v9842_v56  ;;  %v9716_v39 = vadd.f32 %v21681_v7, %v27711_v28  ;;  %v20620_v61 = vpop.f32.mrb[64].mxu0  ;;  %v10249_v52 = vrot.slane %v10179_v9, 7  ;;  %v31794_v7 = vld [vmem:[#allocation69_spill] sm:$0xff] }
 0x697   : > { %10004 = vst.msk [vmem:[#allocation2 + $0xe8] sm:$0xff] %vm9974_vm5, %v9939_v20  ;;  %v9845_v6 = vmax.f32 %v9717_v45, 0.0  ;;  %v21682_v26 = vadd.f32 %v20620_v61, %v31789_v16  ;;  %v9200_v3 = vpop.f32.mrb[65].mxu0  ;;  %v31796_v16 = vld [vmem:[#allocation71_spill] sm:$0xff] }
 0x698   : > { %10003 = vst.msk [vmem:[#allocation2 + $0xe0] sm:$0xff] %vm9974_vm5, %v9938_v22  ;;  %v9844_v19 = vmax.f32 %v9716_v39, 0.0  ;;  %v21683_v62 = vadd.f32 %v9200_v3, %v31790_v60  ;;  %v28045_v31 = vsel %vm586_vm2, %v10248_v8, %v10249_v52  ;;  %v28048_v32 = vsel %vm586_vm2, %v10249_v52, 0.0  ;;  %v28071_v22 = vld [vmem:[%s29817_s3 + $0x10] sm:$0xff] }
 0x699   : > { %v9941_v30 = vmax.f32 %v9841_v29, %v9845_v6  ;;  %v10404_v33 = vrot.slane %v28045_v31, 1  ;;  %v10406_v50 = vrot.slane %v28048_v32, 1  ;;  %v9719_v20 = vadd.f32 %v21682_v26, %v27711_v28  ;;  %v31795_v39 = vld [vmem:[#allocation70_spill] sm:$0xff]  ;;  %20814 = vmatprep.subr.mxu1 %v28071_v22 }
 0x69a   : > { %v9940_v2 = vmax.f32 %v9840_v18, %v9844_v19  ;;  %v20623_v38 = vpop.f32.mrb[66].mxu0  ;;  %v9718_v6 = vadd.f32 %v21683_v62, %v27711_v28 }
 0x69b   : > { %10006 = vst.msk [vmem:[#allocation2 + $0xf8] sm:$0xff] %vm9974_vm5, %v9941_v30  ;;  %v21684_v0 = vadd.f32 %v20623_v38, %v31791_v58  ;;  %v9210_v56 = vpop.f32.mrb[67].mxu0  ;;  %v28056_v8 = vsel %vm1003_vm4, %v10403_v43, %v10404_v33  ;;  %v28059_v11 = vsel %vm1003_vm4, %v10404_v33, %v10406_v50  ;;  %v9847_v60 = vmax.f32 %v9719_v20, 0.0  ;;  %v31797_v58 = vld [vmem:[#allocation73_spill] sm:$0xff] }
 0x69c   : > { %31792 = vst [vmem:[#allocation168_spill] sm:$0xff] %v28056_v8  ;;  %31793 = vst [vmem:[#allocation171_spill] sm:$0xff] %v28059_v11  ;;  %v21685_v9 = vadd.f32 %v9210_v56, %v31794_v7  ;;  %20737 = vmatprep.mubr.msk.f32.mxu1 %vm9974_vm5, %v28056_v8 }
 0x69d   : > { %10005 = vst.msk [vmem:[#allocation2 + $0xf0] sm:$0xff] %vm9974_vm5, %v9940_v2  ;;  %20738 = vmatmul.mubr.msk.f32.gmra.mrb[142].mxu1 %vm9974_vm5, %v28059_v11  ;;  %v9721_v50 = vadd.f32 %v21684_v0, %v27711_v28 }
 0x69e   : > { %v20626_v45 = vpop.f32.mrb[68].mxu0  ;;  %v9720_v2 = vadd.f32 %v21685_v9, %v27711_v28 }
 0x69f   : > { %v21686_v61 = vadd.f32 %v20626_v45, %v31795_v39  ;;  %v9220_v52 = vpop.f32.mrb[69].mxu0  ;;  %v10067_v29 = vld [vmem:[#allocation2 + $0xe0] ss:$2 sm:$0xff]  ;;  %v10131_v18 = vld [vmem:[#allocation2 + $0xe1] ss:$2 sm:$0xff]  ;;  %v9846_v39 = vmax.f32 %v9718_v6, 0.0 }
 0x6a0   : > { %v21687_v3 = vadd.f32 %v9220_v52, %v31796_v16  ;;  %v10180_v19 = vmax.f32 %v10067_v29, %v10131_v18  ;;  %v31798_v29 = vld [vmem:[#allocation74_spill] sm:$0xff] }
 0x6a1   : > { %v9723_v26 = vadd.f32 %v21686_v61, %v27711_v28 }
 0x6a2   : > { %v9722_v30 = vadd.f32 %v21687_v3, %v27711_v28  ;;  %v20629_v43 = vpop.f32.mrb[70].mxu0  ;;  %v10251_v33 = vrot.slane %v10180_v19, 7 }
 0x6a3   : > { %v9851_v38 = vmax.f32 %v9723_v26, 0.0  ;;  %v21688_v56 = vadd.f32 %v20629_v43, %v31797_v58  ;;  %v9230_v7 = vpop.f32.mrb[71].mxu0  ;;  %v9849_v26 = vmax.f32 %v9721_v50, 0.0  ;;  %v9848_v43 = vmax.f32 %v9720_v2, 0.0 }
 0x6a4   : > { %v10069_v45 = vld [vmem:[#allocation2 + $0xf0] ss:$2 sm:$0xff]  ;;  %v10133_v62 = vld [vmem:[#allocation2 + $0xf1] ss:$2 sm:$0xff]  ;;  %v9850_v52 = vmax.f32 %v9722_v30, 0.0  ;;  %v21689_v18 = vadd.f32 %v9230_v7, %v31798_v29  ;;  %v28086_v9 = vsel %vm586_vm2, 0.0, %v10251_v33 }
 0x6a5   : > { %v10181_v61 = vmax.f32 %v10069_v45, %v10133_v62  ;;  %v9943_v20 = vmax.f32 %v9847_v60, %v9851_v38  ;;  %v9725_v16 = vadd.f32 %v21688_v56, %v27711_v28  ;;  %v31799_v30 = vld [vmem:[#allocation75_spill] sm:$0xff]  ;;  %v31800_v38 = vld [vmem:[#allocation76_spill] sm:$0xff]  ;;  %v10408_v50 = vrot.slane %v28086_v9, 1 }
 0x6a6   : > { %v9942_v3 = vmax.f32 %v9846_v39, %v9850_v52  ;;  %v9724_v19 = vadd.f32 %v21689_v18, %v27711_v28  ;;  %v20632_v0 = vpop.f32.mrb[72].mxu0  ;;  %v31801_v18 = vld [vmem:[#allocation78_spill] sm:$0xff] }
 0x6a7   : > { %v10252_v24 = vrot.slane %v10181_v61, 7  ;;  %10008 = vst.msk [vmem:[#allocation2 + $0x108] sm:$0xff] %vm9974_vm5, %v9943_v20  ;;  %v9853_v6 = vmax.f32 %v9725_v16, 0.0  ;;  %v21690_v58 = vadd.f32 %v20632_v0, %v31799_v30  ;;  %v9240_v7 = vpop.f32.mrb[73].mxu0  ;;  %v31804_v16 = vld [vmem:[#allocation79_spill] sm:$0xff] }
 0x6a8   : > { %10007 = vst.msk [vmem:[#allocation2 + $0x100] sm:$0xff] %vm9974_vm5, %v9942_v3  ;;  %v9852_v60 = vmax.f32 %v9724_v19, 0.0  ;;  %v21691_v56 = vadd.f32 %v9240_v7, %v31800_v38  ;;  %v28118_v19 = vld [vmem:[%s29816_s2] ss:$0 sm:$0xff] }
 0x6a9   : > { %v28093_v28 = vsel %vm586_vm2, %v10251_v33, %v10252_v24  ;;  %v28096_v45 = vsel %vm586_vm2, %v10252_v24, 0.0  ;;  %v9945_v62 = vmax.f32 %v9849_v26, %v9853_v6  ;;  %v9727_v0 = vadd.f32 %v28118_v19, %v21690_v58 }
 0x6aa   : > { %v10409_v2 = vrot.slane %v28093_v28, 1  ;;  %v10411_v39 = vrot.slane %v28096_v45, 1  ;;  %v9944_v52 = vmax.f32 %v9848_v43, %v9852_v60  ;;  %v20635_v29 = vpop.f32.mrb[74].mxu0  ;;  %v31805_v43 = vld [vmem:[#allocation80_spill] sm:$0xff]  ;;  %v9726_v38 = vadd.f32 %v28118_v19, %v21691_v56 }
 0x6ab   : > { %10010 = vst.msk [vmem:[#allocation2 + $0x118] sm:$0xff] %vm9974_vm5, %v9945_v62  ;;  %v21692_v61 = vadd.f32 %v20635_v29, %v31801_v18  ;;  %v9250_v20 = vpop.f32.mrb[75].mxu0  ;;  %v31806_v62 = vld [vmem:[#allocation81_spill] sm:$0xff] }
 0x6ac   : > { %v28104_v33 = vsel %vm1003_vm4, %v10408_v50, %v10409_v2  ;;  %v28107_v24 = vsel %vm1003_vm4, %v10409_v2, %v10411_v39  ;;  %10009 = vst.msk [vmem:[#allocation2 + $0x110] sm:$0xff] %vm9974_vm5, %v9944_v52  ;;  %v21693_v3 = vadd.f32 %v9250_v20, %v31804_v16  ;;  %v9855_v52 = vmax.f32 %v9727_v0, 0.0 }
 0x6ad   : > { %31802 = vst [vmem:[#allocation172_spill] sm:$0xff] %v28104_v33  ;;  %31803 = vst [vmem:[#allocation176_spill] sm:$0xff] %v28107_v24  ;;  %20740 = vmatprep.mubr.msk.f32.mxu1 %vm9974_vm5, %v28104_v33  ;;  %v9729_v58 = vadd.f32 %v28118_v19, %v21692_v61  ;;  %v9854_v8 = vmax.f32 %v9726_v38, 0.0 }
 0x6ae   : > { %20741 = vmatmul.mubr.msk.f32.gmra.mrb[144].mxu1 %vm9974_vm5, %v28107_v24  ;;  %v20638_v26 = vpop.f32.mrb[76].mxu0  ;;  %v9728_v16 = vadd.f32 %v28118_v19, %v21693_v3 }
 0x6af   : > { %v21694_v6 = vadd.f32 %v20638_v26, %v31805_v43  ;;  %v9260_v30 = vpop.f32.mrb[77].mxu0  ;;  %v10071_v7 = vld [vmem:[#allocation2 + $0x100] ss:$2 sm:$0xff]  ;;  %v10135_v60 = vld [vmem:[#allocation2 + $0x101] ss:$2 sm:$0xff] }
 0x6b0   : > { %v21695_v50 = vadd.f32 %v9260_v30, %v31806_v62  ;;  %v10182_v2 = vmax.f32 %v10071_v7, %v10135_v60  ;;  %v31807_v43 = vld [vmem:[#allocation83_spill] sm:$0xff]  ;;  %v31808_v7 = vld [vmem:[#allocation84_spill] sm:$0xff] }
 0x6b1   : > { %v9731_v39 = vadd.f32 %v28118_v19, %v21694_v6 }
 0x6b2   : > { %v9730_v29 = vadd.f32 %v28118_v19, %v21695_v50  ;;  %v20641_v18 = vpop.f32.mrb[78].mxu0  ;;  %v10254_v20 = vrot.slane %v10182_v2, 7 }
 0x6b3   : > { %v9859_v26 = vmax.f32 %v9731_v39, 0.0  ;;  %v21696_v24 = vadd.f32 %v20641_v18, %v31807_v43  ;;  %v9270_v33 = vpop.f32.mrb[79].mxu0  ;;  %v10073_v11 = vld [vmem:[#allocation2 + $0x110] ss:$2 sm:$0xff]  ;;  %v10137_v56 = vld [vmem:[#allocation2 + $0x111] ss:$2 sm:$0xff] }
 0x6b4   : > { %v9858_v30 = vmax.f32 %v9730_v29, 0.0  ;;  %v21697_v60 = vadd.f32 %v9270_v33, %v31808_v7  ;;  %v10183_v6 = vmax.f32 %v10073_v11, %v10137_v56  ;;  %v28133_v3 = vsel %vm586_vm2, 0.0, %v10254_v20  ;;  %v31809_v29 = vld [vmem:[#allocation154_spill] sm:$0xff] }
 0x6b5   : > { %v9947_v0 = vmax.f32 %v9855_v52, %v9859_v26  ;;  %v9733_v62 = vadd.f32 %v28118_v19, %v21696_v24  ;;  %v9857_v39 = vmax.f32 %v9729_v58, 0.0  ;;  %v9856_v18 = vmax.f32 %v9728_v16, 0.0  ;;  %v31810_v24 = vld [vmem:[#allocation85_spill] sm:$0xff] }
 0x6b6   : > { %v9946_v50 = vmax.f32 %v9854_v8, %v9858_v30  ;;  %v9732_v2 = vadd.f32 %v28118_v19, %v21697_v60  ;;  %v20644_v61 = vpop.f32.mrb[80].mxu0  ;;  %v10255_v23 = vrot.slane %v10183_v6, 7  ;;  %v10413_v58 = vrot.slane %v28133_v3, 1  ;;  %v31812_v6 = vld [vmem:[#allocation338_spill] sm:$0xff] }
 0x6b7   : > { %10012 = vst.msk [vmem:[#allocation2 + $0x128] sm:$0xff] %vm9974_vm5, %v9947_v0  ;;  %v9861_v38 = vmax.f32 %v9733_v62, 0.0  ;;  %v21698_v43 = vadd.f32 %v20644_v61, %v31809_v29  ;;  %v9280_v33 = vpop.f32.mrb[81].mxu0 }
 0x6b8   : > { %10011 = vst.msk [vmem:[#allocation2 + $0x120] sm:$0xff] %vm9974_vm5, %v9946_v50  ;;  %v9860_v11 = vmax.f32 %v9732_v2, 0.0  ;;  %v21699_v8 = vadd.f32 %v9280_v33, %v31810_v24  ;;  %v28140_v52 = vsel %vm586_vm2, %v10254_v20, %v10255_v23  ;;  %v28143_v26 = vsel %vm586_vm2, %v10255_v23, 0.0  ;;  %v31815_v50 = vld [vmem:[#allocation86_spill] sm:$0xff] }
 0x6b9   : > { %31811 = vst [vmem:[#allocation177_spill] sm:$0xff] %v28143_v26  ;;  %v9949_v56 = vmax.f32 %v9857_v39, %v9861_v38  ;;  %v10414_v16 = vrot.slane %v28140_v52, 1  ;;  %v10416_v30 = vrot.slane %v28143_v26, 1  ;;  %v9735_v61 = vadd.f32 %v28118_v19, %v21698_v43 }
 0x6ba   : > { %v9948_v7 = vmax.f32 %v9856_v18, %v9860_v11  ;;  %v20647_v60 = vpop.f32.mrb[82].mxu0  ;;  %v31816_v18 = vld [vmem:[#allocation88_spill] sm:$0xff]  ;;  %v9734_v24 = vadd.f32 %v28118_v19, %v21699_v8 }
 0x6bb   : > { %10014 = vst.msk [vmem:[#allocation2 + $0x138] sm:$0xff] %vm9974_vm5, %v9949_v56  ;;  %v21700_v0 = vadd.f32 %v20647_v60, %v31812_v6  ;;  %v9290_v62 = vpop.f32.mrb[83].mxu0  ;;  %v28151_v20 = vsel %vm1003_vm4, %v10413_v58, %v10414_v16  ;;  %v28154_v23 = vsel %vm1003_vm4, %v10414_v16, %v10416_v30  ;;  %v31817_v56 = vld [vmem:[#allocation89_spill] sm:$0xff] }
 0x6bc   : > { %31813 = vst [vmem:[#allocation179_spill] sm:$0xff] %v28151_v20  ;;  %31814 = vst [vmem:[#allocation180_spill] sm:$0xff] %v28154_v23  ;;  %v21701_v2 = vadd.f32 %v9290_v62, %v31815_v50  ;;  %20743 = vmatprep.mubr.msk.f32.mxu1 %vm9974_vm5, %v28151_v20  ;;  %v9862_v27 = vmax.f32 %v9734_v24, 0.0 }
 0x6bd   : > { %10013 = vst.msk [vmem:[#allocation2 + $0x130] sm:$0xff] %vm9974_vm5, %v9948_v7  ;;  %20744 = vmatmul.mubr.msk.f32.gmra.mrb[146].mxu1 %vm9974_vm5, %v28154_v23  ;;  %v9863_v7 = vmax.f32 %v9735_v61, 0.0  ;;  %v9737_v43 = vadd.f32 %v28118_v19, %v21700_v0 }
 0x6be   : > { %v20650_v39 = vpop.f32.mrb[84].mxu0  ;;  %v9736_v50 = vadd.f32 %v28118_v19, %v21701_v2 }
 0x6bf   : > { %v21702_v38 = vadd.f32 %v20650_v39, %v31816_v18  ;;  %v9300_v29 = vpop.f32.mrb[85].mxu0  ;;  %v10075_v33 = vld [vmem:[#allocation2 + $0x120] ss:$2 sm:$0xff]  ;;  %v10139_v11 = vld [vmem:[#allocation2 + $0x121] ss:$2 sm:$0xff]  ;;  %v31818_v18 = vld [vmem:[#allocation90_spill] sm:$0xff] }
 0x6c0   : > { %v21703_v58 = vadd.f32 %v9300_v29, %v31817_v56  ;;  %v10184_v16 = vmax.f32 %v10075_v33, %v10139_v11  ;;  %v31819_v33 = vld [vmem:[#allocation91_spill] sm:$0xff] }
 0x6c1   : > { %v9739_v30 = vadd.f32 %v28118_v19, %v21702_v38 }
 0x6c2   : > { %v9738_v60 = vadd.f32 %v28118_v19, %v21703_v58  ;;  %v20653_v6 = vpop.f32.mrb[86].mxu0  ;;  %v10257_v62 = vrot.slane %v10184_v16, 7 }
 0x6c3   : > { %v9867_v39 = vmax.f32 %v9739_v30, 0.0  ;;  %v21704_v23 = vadd.f32 %v20653_v6, %v31818_v18  ;;  %v9310_v20 = vpop.f32.mrb[87].mxu0  ;;  %v9865_v30 = vmax.f32 %v9737_v43, 0.0  ;;  %v9864_v6 = vmax.f32 %v9736_v50, 0.0 }
 0x6c4   : > { %v10077_v4 = vld [vmem:[#allocation2 + $0x130] ss:$2 sm:$0xff]  ;;  %v10141_v8 = vld [vmem:[#allocation2 + $0x131] ss:$2 sm:$0xff]  ;;  %v9866_v29 = vmax.f32 %v9738_v60, 0.0  ;;  %v21705_v11 = vadd.f32 %v9310_v20, %v31819_v33  ;;  %v28175_v2 = vsel %vm586_vm2, 0.0, %v10257_v62 }
 0x6c5   : > { %v10185_v38 = vmax.f32 %v10077_v4, %v10141_v8  ;;  %v9951_v61 = vmax.f32 %v9863_v7, %v9867_v39  ;;  %v9741_v56 = vadd.f32 %v28118_v19, %v21704_v23  ;;  %v31820_v60 = vld [vmem:[#allocation132_spill] sm:$0xff]  ;;  %v31821_v23 = vld [vmem:[#allocation93_spill] sm:$0xff]  ;;  %v10418_v43 = vrot.slane %v28175_v2, 1 }
 0x6c6   : > { %v9950_v58 = vmax.f32 %v9862_v27, %v9866_v29  ;;  %v9740_v16 = vadd.f32 %v28118_v19, %v21705_v11  ;;  %v20656_v0 = vpop.f32.mrb[88].mxu0 }
 0x6c7   : > { %v10258_v25 = vrot.slane %v10185_v38, 7  ;;  %10016 = vst.msk [vmem:[#allocation2 + $0x148] sm:$0xff] %vm9974_vm5, %v9951_v61  ;;  %v9869_v24 = vmax.f32 %v9741_v56, 0.0  ;;  %v21706_v18 = vadd.f32 %v20656_v0, %v31820_v60  ;;  %v9320_v20 = vpop.f32.mrb[89].mxu0  ;;  %v31823_v38 = vld [vmem:[#allocation94_spill] sm:$0xff] }
 0x6c8   : > { %10015 = vst.msk [vmem:[#allocation2 + $0x140] sm:$0xff] %vm9974_vm5, %v9950_v58  ;;  %v9868_v4 = vmax.f32 %v9740_v16, 0.0  ;;  %v21707_v27 = vadd.f32 %v9320_v20, %v31821_v23  ;;  %v31826_v58 = vld [vmem:[#allocation95_spill] sm:$0xff] }
 0x6c9   : > { %v28182_v7 = vsel %vm586_vm2, %v10257_v62, %v10258_v25  ;;  %v28185_v39 = vsel %vm586_vm2, %v10258_v25, 0.0  ;;  %v9953_v8 = vmax.f32 %v9865_v30, %v9869_v24  ;;  %v9743_v0 = vadd.f32 %v28118_v19, %v21706_v18 }
 0x6ca   : > { %31822 = vst [vmem:[#allocation181_spill] sm:$0xff] %v28185_v39  ;;  %v10419_v50 = vrot.slane %v28182_v7, 1  ;;  %v10421_v29 = vrot.slane %v28185_v39, 1  ;;  %v9952_v33 = vmax.f32 %v9864_v6, %v9868_v4  ;;  %v20659_v11 = vpop.f32.mrb[90].mxu0  ;;  %v31827_v6 = vld [vmem:[#allocation96_spill] sm:$0xff]  ;;  %v9742_v23 = vadd.f32 %v28118_v19, %v21707_v27 }
 0x6cb   : > { %10018 = vst.msk [vmem:[#allocation2 + $0x158] sm:$0xff] %vm9974_vm5, %v9953_v8  ;;  %v21708_v61 = vadd.f32 %v20659_v11, %v31823_v38  ;;  %v9330_v56 = vpop.f32.mrb[91].mxu0  ;;  %v31828_v8 = vld [vmem:[#allocation98_spill] sm:$0xff] }
 0x6cc   : > { %v28193_v62 = vsel %vm1003_vm4, %v10418_v43, %v10419_v50  ;;  %v28196_v25 = vsel %vm1003_vm4, %v10419_v50, %v10421_v29  ;;  %10017 = vst.msk [vmem:[#allocation2 + $0x150] sm:$0xff] %vm9974_vm5, %v9952_v33  ;;  %v21709_v16 = vadd.f32 %v9330_v56, %v31826_v58  ;;  %v9871_v33 = vmax.f32 %v9743_v0, 0.0 }
 0x6cd   : > { %31824 = vst [vmem:[#allocation182_spill] sm:$0xff] %v28193_v62  ;;  %31825 = vst [vmem:[#allocation184_spill] sm:$0xff] %v28196_v25  ;;  %20746 = vmatprep.mubr.msk.f32.mxu1 %vm9974_vm5, %v28193_v62  ;;  %v9745_v18 = vadd.f32 %v28118_v19, %v21708_v61  ;;  %v9870_v10 = vmax.f32 %v9742_v23, 0.0 }
 0x6ce   : > { %20747 = vmatmul.mubr.msk.f32.gmra.mrb[148].mxu1 %vm9974_vm5, %v28196_v25  ;;  %v20662_v30 = vpop.f32.mrb[92].mxu0  ;;  %v9744_v58 = vadd.f32 %v28118_v19, %v21709_v16 }
 0x6cf   : > { %v21710_v24 = vadd.f32 %v20662_v30, %v31827_v6  ;;  %v9340_v60 = vpop.f32.mrb[93].mxu0  ;;  %v10079_v20 = vld [vmem:[#allocation2 + $0x140] ss:$2 sm:$0xff]  ;;  %v10143_v4 = vld [vmem:[#allocation2 + $0x141] ss:$2 sm:$0xff] }
 0x6d0   : > { %v21711_v43 = vadd.f32 %v9340_v60, %v31828_v8  ;;  %v10186_v50 = vmax.f32 %v10079_v20, %v10143_v4  ;;  %v31829_v6 = vld [vmem:[#allocation99_spill] sm:$0xff]  ;;  %v31830_v20 = vld [vmem:[#allocation100_spill] sm:$0xff] }
 0x6d1   : > { %v9747_v29 = vadd.f32 %v28118_v19, %v21710_v24 }
 0x6d2   : > { %v9746_v11 = vadd.f32 %v28118_v19, %v21711_v43  ;;  %v20665_v38 = vpop.f32.mrb[94].mxu0  ;;  %v10260_v56 = vrot.slane %v10186_v50, 7 }
 0x6d3   : > { %v9875_v30 = vmax.f32 %v9747_v29, 0.0  ;;  %v21712_v25 = vadd.f32 %v20665_v38, %v31829_v6  ;;  %v9350_v62 = vpop.f32.mrb[95].mxu0  ;;  %v10081_v1 = vld [vmem:[#allocation2 + $0x150] ss:$2 sm:$0xff]  ;;  %v10145_v27 = vld [vmem:[#allocation2 + $0x151] ss:$2 sm:$0xff] }
 0x6d4   : > { %v9874_v60 = vmax.f32 %v9746_v11, 0.0  ;;  %v21713_v4 = vadd.f32 %v9350_v62, %v31830_v20  ;;  %v10187_v24 = vmax.f32 %v10081_v1, %v10145_v27  ;;  %v28217_v16 = vsel %vm586_vm2, 0.0, %v10260_v56  ;;  %v31831_v11 = vld [vmem:[#allocation101_spill] sm:$0xff] }
 0x6d5   : > { %v9955_v0 = vmax.f32 %v9871_v33, %v9875_v30  ;;  %v9749_v8 = vadd.f32 %v28118_v19, %v21712_v25  ;;  %v9873_v29 = vmax.f32 %v9745_v18, 0.0  ;;  %v9872_v38 = vmax.f32 %v9744_v58, 0.0  ;;  %v31832_v25 = vld [vmem:[#allocation103_spill] sm:$0xff] }
 0x6d6   : > { %v9954_v43 = vmax.f32 %v9870_v10, %v9874_v60  ;;  %v9748_v50 = vadd.f32 %v28118_v19, %v21713_v4  ;;  %v20668_v61 = vpop.f32.mrb[96].mxu0  ;;  %v10261_v13 = vrot.slane %v10187_v24, 7  ;;  %v10423_v18 = vrot.slane %v28217_v16, 1  ;;  %v31834_v24 = vld [vmem:[#allocation104_spill] sm:$0xff] }
 0x6d7   : > { %10020 = vst.msk [vmem:[#allocation2 + $0x168] sm:$0xff] %vm9974_vm5, %v9955_v0  ;;  %v9877_v23 = vmax.f32 %v9749_v8, 0.0  ;;  %v21714_v6 = vadd.f32 %v20668_v61, %v31831_v11  ;;  %v9360_v62 = vpop.f32.mrb[97].mxu0 }
 0x6d8   : > { %10019 = vst.msk [vmem:[#allocation2 + $0x160] sm:$0xff] %vm9974_vm5, %v9954_v43  ;;  %v9876_v1 = vmax.f32 %v9748_v50, 0.0  ;;  %v21715_v10 = vadd.f32 %v9360_v62, %v31832_v25  ;;  %v28224_v33 = vsel %vm586_vm2, %v10260_v56, %v10261_v13  ;;  %v28227_v30 = vsel %vm586_vm2, %v10261_v13, 0.0  ;;  %v31837_v43 = vld [vmem:[#allocation105_spill] sm:$0xff] }
 0x6d9   : > { %31833 = vst [vmem:[#allocation185_spill] sm:$0xff] %v28227_v30  ;;  %v9957_v27 = vmax.f32 %v9873_v29, %v9877_v23  ;;  %v10424_v58 = vrot.slane %v28224_v33, 1  ;;  %v10426_v60 = vrot.slane %v28227_v30, 1  ;;  %v9751_v61 = vadd.f32 %v28118_v19, %v21714_v6 }
 0x6da   : > { %v9956_v20 = vmax.f32 %v9872_v38, %v9876_v1  ;;  %v20671_v4 = vpop.f32.mrb[98].mxu0  ;;  %v31838_v38 = vld [vmem:[#allocation106_spill] sm:$0xff]  ;;  %v9750_v25 = vadd.f32 %v28118_v19, %v21715_v10 }
 0x6db   : > { %10022 = vst.msk [vmem:[#allocation2 + $0x178] sm:$0xff] %vm9974_vm5, %v9957_v27  ;;  %v21716_v0 = vadd.f32 %v20671_v4, %v31834_v24  ;;  %v9370_v8 = vpop.f32.mrb[99].mxu0  ;;  %v28235_v56 = vsel %vm1003_vm4, %v10423_v18, %v10424_v58  ;;  %v28238_v13 = vsel %vm1003_vm4, %v10424_v58, %v10426_v60  ;;  %v31839_v27 = vld [vmem:[#allocation108_spill] sm:$0xff] }
 0x6dc   : > { %31835 = vst [vmem:[#allocation186_spill] sm:$0xff] %v28235_v56  ;;  %31836 = vst [vmem:[#allocation187_spill] sm:$0xff] %v28238_v13  ;;  %v21717_v50 = vadd.f32 %v9370_v8, %v31837_v43  ;;  %20749 = vmatprep.mubr.msk.f32.mxu1 %vm9974_vm5, %v28235_v56  ;;  %v9878_v41 = vmax.f32 %v9750_v25, 0.0 }
 0x6dd   : > { %10021 = vst.msk [vmem:[#allocation2 + $0x170] sm:$0xff] %vm9974_vm5, %v9956_v20  ;;  %20750 = vmatmul.mubr.msk.f32.gmra.mrb[150].mxu1 %vm9974_vm5, %v28238_v13  ;;  %v9879_v20 = vmax.f32 %v9751_v61, 0.0  ;;  %v9753_v6 = vadd.f32 %v28118_v19, %v21716_v0 }
 0x6de   : > { %v20674_v29 = vpop.f32.mrb[100].mxu0  ;;  %v9752_v43 = vadd.f32 %v28118_v19, %v21717_v50 }
 0x6df   : > { %v21718_v23 = vadd.f32 %v20674_v29, %v31838_v38  ;;  %v9380_v11 = vpop.f32.mrb[101].mxu0  ;;  %v10083_v62 = vld [vmem:[#allocation2 + $0x160] ss:$2 sm:$0xff]  ;;  %v10147_v1 = vld [vmem:[#allocation2 + $0x161] ss:$2 sm:$0xff] }
 0x6e0   : > { %v21719_v18 = vadd.f32 %v9380_v11, %v31839_v27  ;;  %v10188_v58 = vmax.f32 %v10083_v62, %v10147_v1  ;;  %v31840_v38 = vld [vmem:[#allocation109_spill] sm:$0xff]  ;;  %v31841_v62 = vld [vmem:[#allocation110_spill] sm:$0xff] }
 0x6e1   : > { %v9755_v60 = vadd.f32 %v28118_v19, %v21718_v23 }
 0x6e2   : > { %v9754_v4 = vadd.f32 %v28118_v19, %v21719_v18  ;;  %v20677_v24 = vpop.f32.mrb[102].mxu0  ;;  %v10263_v8 = vrot.slane %v10188_v58, 7 }
 0x6e3   : > { %v9883_v29 = vmax.f32 %v9755_v60, 0.0  ;;  %v21720_v13 = vadd.f32 %v20677_v24, %v31840_v38  ;;  %v9390_v56 = vpop.f32.mrb[103].mxu0  ;;  %v9881_v60 = vmax.f32 %v9753_v6, 0.0  ;;  %v9880_v24 = vmax.f32 %v9752_v43, 0.0 }
 0x6e4   : > { %v10085_v17 = vld [vmem:[#allocation2 + $0x170] ss:$2 sm:$0xff]  ;;  %v10149_v10 = vld [vmem:[#allocation2 + $0x171] ss:$2 sm:$0xff]  ;;  %v9882_v11 = vmax.f32 %v9754_v4, 0.0  ;;  %v21721_v1 = vadd.f32 %v9390_v56, %v31841_v62  ;;  %v28259_v50 = vsel %vm586_vm2, 0.0, %v10263_v8 }
 0x6e5   : > { %v10189_v23 = vmax.f32 %v10085_v17, %v10149_v10  ;;  %v9959_v61 = vmax.f32 %v9879_v20, %v9883_v29  ;;  %v9757_v27 = vadd.f32 %v28118_v19, %v21720_v13  ;;  %v31842_v4 = vld [vmem:[#allocation111_spill] sm:$0xff]  ;;  %v31843_v13 = vld [vmem:[#allocation113_spill] sm:$0xff]  ;;  %v10428_v6 = vrot.slane %v28259_v50, 1 }
 0x6e6   : > { %v9958_v18 = vmax.f32 %v9878_v41, %v9882_v11  ;;  %v9756_v58 = vadd.f32 %v28118_v19, %v21721_v1  ;;  %v20680_v0 = vpop.f32.mrb[104].mxu0 }
 0x6e7   : > { %v10264_v53 = vrot.slane %v10189_v23, 7  ;;  %10024 = vst.msk [vmem:[#allocation2 + $0x188] sm:$0xff] %vm9974_vm5, %v9959_v61  ;;  %v9885_v25 = vmax.f32 %v9757_v27, 0.0  ;;  %v21722_v38 = vadd.f32 %v20680_v0, %v31842_v4  ;;  %v9400_v56 = vpop.f32.mrb[105].mxu0  ;;  %v31845_v23 = vld [vmem:[#allocation114_spill] sm:$0xff] }
 0x6e8   : > { %10023 = vst.msk [vmem:[#allocation2 + $0x180] sm:$0xff] %vm9974_vm5, %v9958_v18  ;;  %v9884_v17 = vmax.f32 %v9756_v58, 0.0  ;;  %v21723_v41 = vadd.f32 %v9400_v56, %v31843_v13  ;;  %v31848_v18 = vld [vmem:[#allocation115_spill] sm:$0xff] }
 0x6e9   : > { %v28266_v20 = vsel %vm586_vm2, %v10263_v8, %v10264_v53  ;;  %v28269_v29 = vsel %vm586_vm2, %v10264_v53, 0.0  ;;  %v9961_v10 = vmax.f32 %v9881_v60, %v9885_v25  ;;  %v9759_v0 = vadd.f32 %v28118_v19, %v21722_v38 }
 0x6ea   : > { %31844 = vst [vmem:[#allocation189_spill] sm:$0xff] %v28269_v29  ;;  %v10429_v43 = vrot.slane %v28266_v20, 1  ;;  %v10431_v11 = vrot.slane %v28269_v29, 1  ;;  %v9960_v62 = vmax.f32 %v9880_v24, %v9884_v17  ;;  %v20683_v1 = vpop.f32.mrb[106].mxu0  ;;  %v31849_v24 = vld [vmem:[#allocation116_spill] sm:$0xff]  ;;  %v9758_v13 = vadd.f32 %v28118_v19, %v21723_v41 }
 0x6eb   : > { %10026 = vst.msk [vmem:[#allocation2 + $0x198] sm:$0xff] %vm9974_vm5, %v9961_v10  ;;  %v21724_v61 = vadd.f32 %v20683_v1, %v31845_v23  ;;  %v9410_v27 = vpop.f32.mrb[107].mxu0  ;;  %v31850_v10 = vld [vmem:[#allocation118_spill] sm:$0xff] }
 0x6ec   : > { %v28277_v8 = vsel %vm1003_vm4, %v10428_v6, %v10429_v43  ;;  %v28280_v53 = vsel %vm1003_vm4, %v10429_v43, %v10431_v11  ;;  %10025 = vst.msk [vmem:[#allocation2 + $0x190] sm:$0xff] %vm9974_vm5, %v9960_v62  ;;  %v21725_v58 = vadd.f32 %v9410_v27, %v31848_v18  ;;  %v9887_v62 = vmax.f32 %v9759_v0, 0.0 }
 0x6ed   : > { %31846 = vst [vmem:[#allocation190_spill] sm:$0xff] %v28277_v8  ;;  %31847 = vst [vmem:[#allocation191_spill] sm:$0xff] %v28280_v53  ;;  %20752 = vmatprep.mubr.msk.f32.mxu1 %vm9974_vm5, %v28277_v8  ;;  %v9761_v38 = vadd.f32 %v28118_v19, %v21724_v61  ;;  %v9886_v36 = vmax.f32 %v9758_v13, 0.0 }
 0x6ee   : > { %20753 = vmatmul.mubr.msk.f32.gmra.mrb[152].mxu1 %vm9974_vm5, %v28280_v53  ;;  %v20686_v60 = vpop.f32.mrb[108].mxu0  ;;  %v9760_v18 = vadd.f32 %v28118_v19, %v21725_v58 }
 0x6ef   : > { %v21726_v25 = vadd.f32 %v20686_v60, %v31849_v24  ;;  %v9420_v4 = vpop.f32.mrb[109].mxu0  ;;  %v10087_v56 = vld [vmem:[#allocation2 + $0x180] ss:$2 sm:$0xff]  ;;  %v10151_v17 = vld [vmem:[#allocation2 + $0x181] ss:$2 sm:$0xff] }
 0x6f0   : > { %v21727_v6 = vadd.f32 %v9420_v4, %v31850_v10  ;;  %v10190_v43 = vmax.f32 %v10087_v56, %v10151_v17  ;;  %v31851_v24 = vld [vmem:[#allocation119_spill] sm:$0xff]  ;;  %v31852_v56 = vld [vmem:[#allocation120_spill] sm:$0xff] }
 0x6f1   : > { %v9763_v11 = vadd.f32 %v28118_v19, %v21726_v25 }
 0x6f2   : > { %v9762_v1 = vadd.f32 %v28118_v19, %v21727_v6  ;;  %v20689_v23 = vpop.f32.mrb[110].mxu0  ;;  %v10266_v27 = vrot.slane %v10190_v43, 7 }
 0x6f3   : > { %v9891_v60 = vmax.f32 %v9763_v11, 0.0  ;;  %v21728_v53 = vadd.f32 %v20689_v23, %v31851_v24  ;;  %v9430_v8 = vpop.f32.mrb[111].mxu0  ;;  %v10089_v40 = vld [vmem:[#allocation2 + $0x190] ss:$2 sm:$0xff]  ;;  %v10153_v41 = vld [vmem:[#allocation2 + $0x191] ss:$2 sm:$0xff] }
 0x6f4   : > { %v9890_v4 = vmax.f32 %v9762_v1, 0.0  ;;  %v21729_v17 = vadd.f32 %v9430_v8, %v31852_v56  ;;  %v10191_v25 = vmax.f32 %v10089_v40, %v10153_v41  ;;  %v28301_v58 = vsel %vm586_vm2, 0.0, %v10266_v27  ;;  %v31853_v1 = vld [vmem:[#allocation121_spill] sm:$0xff] }
 0x6f5   : > { %v9963_v0 = vmax.f32 %v9887_v62, %v9891_v60  ;;  %v9765_v10 = vadd.f32 %v28118_v19, %v21728_v53  ;;  %v9889_v11 = vmax.f32 %v9761_v38, 0.0  ;;  %v9888_v23 = vmax.f32 %v9760_v18, 0.0  ;;  %v31854_v53 = vld [vmem:[#allocation123_spill] sm:$0xff] }
 0x6f6   : > { %v9962_v6 = vmax.f32 %v9886_v36, %v9890_v4  ;;  %v9764_v43 = vadd.f32 %v28118_v19, %v21729_v17  ;;  %v20692_v61 = vpop.f32.mrb[112].mxu0  ;;  %v10267_v29 = vrot.slane %v10191_v25, 7  ;;  %v10433_v38 = vrot.slane %v28301_v58, 1  ;;  %v31856_v25 = vld [vmem:[#allocation124_spill] sm:$0xff] }
 0x6f7   : > { %10028 = vst.msk [vmem:[#allocation2 + $0x1a8] sm:$0xff] %vm9974_vm5, %v9963_v0  ;;  %v9893_v13 = vmax.f32 %v9765_v10, 0.0  ;;  %v21730_v24 = vadd.f32 %v20692_v61, %v31853_v1  ;;  %v9440_v8 = vpop.f32.mrb[113].mxu0 }
 0x6f8   : > { %10027 = vst.msk [vmem:[#allocation2 + $0x1a0] sm:$0xff] %vm9974_vm5, %v9962_v6  ;;  %v9892_v40 = vmax.f32 %v9764_v43, 0.0  ;;  %v21731_v36 = vadd.f32 %v9440_v8, %v31854_v53  ;;  %v28308_v62 = vsel %vm586_vm2, %v10266_v27, %v10267_v29  ;;  %v28311_v60 = vsel %vm586_vm2, %v10267_v29, 0.0  ;;  %v31859_v6 = vld [vmem:[#allocation125_spill] sm:$0xff] }
 0x6f9   : > { %31855 = vst [vmem:[#allocation192_spill] sm:$0xff] %v28311_v60  ;;  %v9965_v41 = vmax.f32 %v9889_v11, %v9893_v13  ;;  %v10434_v18 = vrot.slane %v28308_v62, 1  ;;  %v10436_v4 = vrot.slane %v28311_v60, 1  ;;  %v9767_v61 = vadd.f32 %v28118_v19, %v21730_v24 }
 0x6fa   : > { %v9964_v56 = vmax.f32 %v9888_v23, %v9892_v40  ;;  %v20695_v17 = vpop.f32.mrb[114].mxu0  ;;  %v31860_v23 = vld [vmem:[#allocation126_spill] sm:$0xff]  ;;  %v9766_v53 = vadd.f32 %v28118_v19, %v21731_v36 }
 0x6fb   : > { %10030 = vst.msk [vmem:[#allocation2 + $0x1b8] sm:$0xff] %vm9974_vm5, %v9965_v41  ;;  %v21732_v0 = vadd.f32 %v20695_v17, %v31856_v25  ;;  %v9450_v10 = vpop.f32.mrb[115].mxu0  ;;  %v28319_v27 = vsel %vm1003_vm4, %v10433_v38, %v10434_v18  ;;  %v28322_v29 = vsel %vm1003_vm4, %v10434_v18, %v10436_v4  ;;  %v31861_v41 = vld [vmem:[#allocation128_spill] sm:$0xff] }
 0x6fc   : > { %31857 = vst [vmem:[#allocation194_spill] sm:$0xff] %v28319_v27  ;;  %31858 = vst [vmem:[#allocation195_spill] sm:$0xff] %v28322_v29  ;;  %v21733_v43 = vadd.f32 %v9450_v10, %v31859_v6  ;;  %20755 = vmatprep.mubr.msk.f32.mxu1 %vm9974_vm5, %v28319_v27  ;;  %v9894_v30 = vmax.f32 %v9766_v53, 0.0 }
 0x6fd   : > { %10029 = vst.msk [vmem:[#allocation2 + $0x1b0] sm:$0xff] %vm9974_vm5, %v9964_v56  ;;  %20756 = vmatmul.mubr.msk.f32.gmra.mrb[154].mxu1 %vm9974_vm5, %v28322_v29  ;;  %v9895_v56 = vmax.f32 %v9767_v61, 0.0  ;;  %v9769_v24 = vadd.f32 %v28118_v19, %v21732_v0 }
 0x6fe   : > { %v20698_v11 = vpop.f32.mrb[116].mxu0  ;;  %v9768_v6 = vadd.f32 %v28118_v19, %v21733_v43 }
 0x6ff   : > { %v21734_v13 = vadd.f32 %v20698_v11, %v31860_v23  ;;  %v9460_v1 = vpop.f32.mrb[117].mxu0  ;;  %v10091_v8 = vld [vmem:[#allocation2 + $0x1a0] ss:$2 sm:$0xff]  ;;  %v10155_v40 = vld [vmem:[#allocation2 + $0x1a1] ss:$2 sm:$0xff] }
 0x700   : > { %v21735_v38 = vadd.f32 %v9460_v1, %v31861_v41  ;;  %v10192_v18 = vmax.f32 %v10091_v8, %v10155_v40  ;;  %v31862_v23 = vld [vmem:[#allocation129_spill] sm:$0xff]  ;;  %v31863_v8 = vld [vmem:[#allocation130_spill] sm:$0xff] }
 0x701   : > { %v9771_v4 = vadd.f32 %v28118_v19, %v21734_v13 }
 0x702   : > { %v9770_v17 = vadd.f32 %v28118_v19, %v21735_v38  ;;  %v20701_v25 = vpop.f32.mrb[118].mxu0  ;;  %v10269_v10 = vrot.slane %v10192_v18, 7 }
 0x703   : > { %v9899_v11 = vmax.f32 %v9771_v4, 0.0  ;;  %v21736_v29 = vadd.f32 %v20701_v25, %v31862_v23  ;;  %v9470_v27 = vpop.f32.mrb[119].mxu0  ;;  %v9897_v4 = vmax.f32 %v9769_v24, 0.0  ;;  %v9896_v25 = vmax.f32 %v9768_v6, 0.0 }
 0x704   : > { %v10093_v60 = vld [vmem:[#allocation2 + $0x1b0] ss:$2 sm:$0xff]  ;;  %v10157_v36 = vld [vmem:[#allocation2 + $0x1b1] ss:$2 sm:$0xff]  ;;  %v9898_v1 = vmax.f32 %v9770_v17, 0.0  ;;  %v21737_v40 = vadd.f32 %v9470_v27, %v31863_v8  ;;  %v28343_v43 = vsel %vm586_vm2, 0.0, %v10269_v10 }
 0x705   : > { %v10193_v13 = vmax.f32 %v10093_v60, %v10157_v36  ;;  %v9967_v61 = vmax.f32 %v9895_v56, %v9899_v11  ;;  %v9773_v41 = vadd.f32 %v28118_v19, %v21736_v29  ;;  %v31864_v17 = vld [vmem:[#allocation131_spill] sm:$0xff]  ;;  %v31865_v29 = vld [vmem:[#allocation133_spill] sm:$0xff]  ;;  %v10438_v24 = vrot.slane %v28343_v43, 1 }
 0x706   : > { %v9966_v38 = vmax.f32 %v9894_v30, %v9898_v1  ;;  %v9772_v18 = vadd.f32 %v28118_v19, %v21737_v40  ;;  %v20704_v0 = vpop.f32.mrb[120].mxu0 }
 0x707   : > { %v10270_v39 = vrot.slane %v10193_v13, 7  ;;  %10032 = vst.msk [vmem:[#allocation2 + $0x1c8] sm:$0xff] %vm9974_vm5, %v9967_v61  ;;  %v9901_v53 = vmax.f32 %v9773_v41, 0.0  ;;  %v21738_v23 = vadd.f32 %v20704_v0, %v31864_v17  ;;  %v9480_v27 = vpop.f32.mrb[121].mxu0  ;;  %v31867_v13 = vld [vmem:[#allocation134_spill] sm:$0xff] }
 0x708   : > { %10031 = vst.msk [vmem:[#allocation2 + $0x1c0] sm:$0xff] %vm9974_vm5, %v9966_v38  ;;  %v9900_v60 = vmax.f32 %v9772_v18, 0.0  ;;  %v21739_v30 = vadd.f32 %v9480_v27, %v31865_v29  ;;  %v31870_v38 = vld [vmem:[#allocation135_spill] sm:$0xff] }
 0x709   : > { %v28350_v56 = vsel %vm586_vm2, %v10269_v10, %v10270_v39  ;;  %v28353_v11 = vsel %vm586_vm2, %v10270_v39, 0.0  ;;  %v9969_v36 = vmax.f32 %v9897_v4, %v9901_v53  ;;  %v9775_v0 = vadd.f32 %v28118_v19, %v21738_v23  ;;  %v31871_v53 = vld [vmem:[#allocation136_spill] sm:$0xff] }
 0x70a   : > { %31866 = vst [vmem:[#allocation196_spill] sm:$0xff] %v28353_v11  ;;  %v10439_v6 = vrot.slane %v28350_v56, 1  ;;  %v10441_v1 = vrot.slane %v28353_v11, 1  ;;  %v9968_v8 = vmax.f32 %v9896_v25, %v9900_v60  ;;  %v20707_v40 = vpop.f32.mrb[122].mxu0  ;;  %v9774_v4 = vadd.f32 %v28118_v19, %v21739_v30 }
 0x70b   : > { %10034 = vst.msk [vmem:[#allocation2 + $0x1d8] sm:$0xff] %vm9974_vm5, %v9969_v36  ;;  %v21740_v61 = vadd.f32 %v20707_v40, %v31867_v13  ;;  %v9490_v41 = vpop.f32.mrb[123].mxu0  ;;  %v31872_v36 = vld [vmem:[#allocation138_spill] sm:$0xff] }
 0x70c   : > { %v28361_v10 = vsel %vm1003_vm4, %v10438_v24, %v10439_v6  ;;  %v28364_v39 = vsel %vm1003_vm4, %v10439_v6, %v10441_v1  ;;  %10033 = vst.msk [vmem:[#allocation2 + $0x1d0] sm:$0xff] %vm9974_vm5, %v9968_v8  ;;  %v21741_v18 = vadd.f32 %v9490_v41, %v31870_v38  ;;  %v9903_v8 = vmax.f32 %v9775_v0, 0.0 }
 0x70d   : > { %31868 = vst [vmem:[#allocation197_spill] sm:$0xff] %v28361_v10  ;;  %31869 = vst [vmem:[#allocation199_spill] sm:$0xff] %v28364_v39  ;;  %20758 = vmatprep.mubr.msk.f32.mxu1 %vm9974_vm5, %v28361_v10  ;;  %v9902_v40 = vmax.f32 %v9774_v4, 0.0  ;;  %v9777_v23 = vadd.f32 %v28118_v19, %v21740_v61 }
 0x70e   : > { %20759 = vmatmul.mubr.msk.f32.gmra.mrb[156].mxu1 %vm9974_vm5, %v28364_v39  ;;  %v20710_v25 = vpop.f32.mrb[124].mxu0  ;;  %v31873_v39 = vld [vmem:[#allocation139_spill] sm:$0xff]  ;;  %v9776_v26 = vadd.f32 %v28118_v19, %v21741_v18 }
 0x70f   : > { %v21742_v17 = vadd.f32 %v20710_v25, %v31871_v53  ;;  %v9500_v27 = vpop.f32.mrb[125].mxu0  ;;  %v10095_v60 = vld [vmem:[#allocation2 + $0x1c0] ss:$2 sm:$0xff]  ;;  %v10159_v29 = vld [vmem:[#allocation2 + $0x1c1] ss:$2 sm:$0xff] }
 0x710   : > { %v21743_v24 = vadd.f32 %v9500_v27, %v31872_v36  ;;  %v10194_v6 = vmax.f32 %v10095_v60, %v10159_v29  ;;  %v31874_v60 = vld [vmem:[#allocation140_spill] sm:$0xff] }
 0x711   : > { %v9779_v1 = vadd.f32 %v28118_v19, %v21742_v17 }
 0x712   : > { %v9778_v13 = vadd.f32 %v28118_v19, %v21743_v24  ;;  %v20713_v41 = vpop.f32.mrb[126].mxu0  ;;  %v10272_v38 = vrot.slane %v10194_v6, 7 }
 0x713   : > { %v9907_v30 = vmax.f32 %v9779_v1, 0.0  ;;  %v21744_v10 = vadd.f32 %v20713_v41, %v31873_v39  ;;  %v9510_v25 = vpop.f32.mrb[127].mxu0  ;;  %v10097_v53 = vld [vmem:[#allocation2 + $0x1d0] ss:$2 sm:$0xff]  ;;  %v10161_v11 = vld [vmem:[#allocation2 + $0x1d1] ss:$2 sm:$0xff] }
 0x714   : > { %v9906_v27 = vmax.f32 %v9778_v13, 0.0  ;;  %v21745_v29 = vadd.f32 %v9510_v25, %v31874_v60  ;;  %v10195_v17 = vmax.f32 %v10097_v53, %v10161_v11  ;;  %v28385_v61 = vsel %vm586_vm2, 0.0, %v10272_v38  ;;  %v16976_v25 = vld [vmem:[%s29817_s3 + $0x18] sm:$0xff]  ;;  %v28484_v60 = vld [vmem:[%s29817_s3 + $0x20] sm:$0xff] }
 0x715   : > { %v9971_v0 = vmax.f32 %v9903_v8, %v9907_v30  ;;  %v9781_v4 = vadd.f32 %v28118_v19, %v21744_v10  ;;  %31875 = vst [vmem:[#allocation200_spill] sm:$0xff] %v28385_v61  ;;  %v9905_v39 = vmax.f32 %v9777_v23, 0.0  ;;  %v9904_v41 = vmax.f32 %v9776_v26, 0.0 }
 0x716   : > { %v9970_v36 = vmax.f32 %v9902_v40, %v9906_v27  ;;  %v9780_v24 = vadd.f32 %v28118_v19, %v21745_v29  ;;  %v10273_v6 = vrot.slane %v10195_v17, 7  ;;  %v10443_v19 = vrot.slane %v28385_v61, 1 }
 0x717   : > { %10036 = vst.msk [vmem:[#allocation2 + $0x1e8] sm:$0xff] %vm9974_vm5, %v9971_v0  ;;  %v9909_v1 = vmax.f32 %v9781_v4, 0.0  ;;  %v11024_v53 = vrot.slane %v27773_v37, 2  ;;  %v11027_v27 = vrot.slane %v27787_v44, 2  ;;  %v11030_v17 = vrot.slane %v27832_v15, 2 }
 0x718   : > { %10035 = vst.msk [vmem:[#allocation2 + $0x1e0] sm:$0xff] %vm9974_vm5, %v9970_v36  ;;  %v9908_v18 = vmax.f32 %v9780_v24, 0.0  ;;  %v28390_v11 = vsel %vm586_vm2, %v10272_v38, %v10273_v6  ;;  %v28393_v10 = vsel %vm586_vm2, %v10273_v6, 0.0  ;;  %v31877_v38 = vmov 0.0  }
 0x719   : > { %31876 = vst [vmem:[#allocation201_spill] sm:$0xff] %v28390_v11  ;;  %v9973_v8 = vmax.f32 %v9905_v39, %v9909_v1  ;;  %v10444_v40 = vrot.slane %v28390_v11, 1  ;;  %v10446_v13 = vrot.slane %v28393_v10, 1  ;;  %v11029_v0 = vrot.slane %v27825_v49, 2 }
 0x71a   : > { %v9972_v23 = vmax.f32 %v9904_v41, %v9908_v18  ;;  %v11032_v4 = vrot.slane %v27835_v42, 2  ;;  %v11035_v24 = vrot.slane %v27874_v47, 2  ;;  %v11034_v6 = vrot.slane %v27867_v48, 2 }
 0x71b   : > { %10038 = vst.msk [vmem:[#allocation2 + $0x1f8] sm:$0xff] %vm9974_vm5, %v9973_v8  ;;  %v28400_v26 = vsel %vm1003_vm4, %v10443_v19, %v10444_v40  ;;  %v28403_v30 = vsel %vm1003_vm4, %v10444_v40, %v10446_v13  ;;  %v28503_v36 = vsel %vm3205_vm3, %v11029_v0, %v11030_v17  ;;  %v11037_v1 = vrot.slane %v27877_v14, 2 }
 0x71c   : > { %10037 = vst.msk [vmem:[#allocation2 + $0x1f0] sm:$0xff] %vm9974_vm5, %v9972_v23  ;;  %20761 = vmatprep.mubr.msk.f32.mxu1 %vm9974_vm5, %v28400_v26  ;;  %v28510_v39 = vsel %vm3205_vm3, %v11030_v17, %v11032_v4  ;;  %v28516_v42 = vsel %vm3205_vm3, %v11034_v6, %v11035_v24  ;;  %v11040_v41 = vrot.slane %v27916_v46, 2  ;;  %v11039_v18 = vrot.slane %v27909_v55, 2 }
 0x71d   : > { %20762 = vmatmul.mubr.msk.f32.gmra.mrb[158].mxu1 %vm9974_vm5, %v28403_v30  ;;  %v28523_v8 = vsel %vm3205_vm3, %v11035_v24, %v11037_v1  ;;  %v11042_v19 = vrot.slane %v27919_v51, 2  ;;  %v11045_v40 = vrot.slane %v27961_v34, 2  ;;  %v11044_v13 = vrot.slane %v27954_v21, 2 }
 0x71e   : > { %20766 = vmatprep.mubr.f32.mxu1 %v31877_v38  ;;  %v28529_v14 = vsel %vm3205_vm3, %v11039_v18, %v11040_v41  ;;  %v11052_v17 = vrot.slane %v28006_v12, 2  ;;  %v11055_v0 = vrot.slane %v28045_v31, 2  ;;  %v11054_v4 = vrot.slane %v28038_v54, 2 }
 0x71f   : > { %v28536_v23 = vsel %vm3205_vm3, %v11040_v41, %v11042_v19  ;;  %v28542_v51 = vsel %vm3205_vm3, %v11044_v13, %v11045_v40  ;;  %v11057_v6 = vrot.slane %v28048_v32, 2  ;;  %v11060_v1 = vrot.slane %v28093_v28, 2 }
 0x720   : > { %v28568_v12 = vsel %vm3205_vm3, %v11054_v4, %v11055_v0  ;;  %v11059_v41 = vrot.slane %v28086_v9, 2  ;;  %v11062_v19 = vrot.slane %v28096_v45, 2  ;;  %v11064_v13 = vrot.slane %v28133_v3, 2 }
 0x721   : > { %20767 = vmatmul.mubr.f32.vlgmr.msra.gmra.mrb[128].mxu1 %v31877_v38  ;;  %v28575_v18 = vsel %vm3205_vm3, %v11055_v0, %v11057_v6  ;;  %v11069_v0 = vrot.slane %v28175_v2, 2  ;;  %v31879_v6 = vld [vmem:[#allocation181_spill] sm:$0xff] }
 0x722   : > { %20815 = vmatpush3.msra.mxu1 %v28071_v22  ;;  %20769 = vmatprep.mubr.msk.f32.mxu1 %vm9974_vm5, %v27773_v37  ;;  %v11025_v22 = vrot.slane %v27784_v35, 2  ;;  %v28581_v32 = vsel %vm3205_vm3, %v11059_v41, %v11060_v1 }
 0x723   : > { %20864 = vmatprep.subr.mxu1 %v16976_v25 }
 0x724   : > { %v28489_v29 = vsel %vm3205_vm3, %v11024_v53, %v11025_v22  ;;  %v28497_v44 = vsel %vm3205_vm3, %v11025_v22, %v11027_v27  ;;  %v11050_v22 = vrot.slane %v28003_v59, 2  ;;  %v11049_v53 = vrot.slane %v27996_v57, 2 }
 0x725   : > { %20770 = vmatmul.mubr.msk.f32.gmra.mrb[130].mxu1 %vm9974_vm5, %v27784_v35 }
 0x726   : > { %20772 = vmatprep.mubr.msk.f32.mxu1 %vm9974_vm5, %v27825_v49  ;;  %v28562_v24 = vsel %vm3205_vm3, %v11050_v22, %v11052_v17  ;;  %v11070_v17 = vrot.slane %v28182_v7, 2 }
 0x728   : > { %v28607_v41 = vsel %vm3205_vm3, %v11069_v0, %v11070_v17  ;;  %v11080_v0 = vrot.slane %v28266_v20, 2 }
 0x729   : > { %20773 = vmatmul.mubr.msk.f32.gmra.mrb[132].mxu1 %vm9974_vm5, %v27832_v15 }
 0x72a   : > { %20775 = vmatprep.mubr.msk.f32.mxu1 %vm9974_vm5, %v27867_v48 }
 0x72d   : > { %20776 = vmatmul.mubr.msk.f32.gmra.mrb[134].mxu1 %vm9974_vm5, %v27874_v47 }
 0x72e   : > { %20778 = vmatprep.mubr.msk.f32.mxu1 %vm9974_vm5, %v27909_v55 }
 0x731   : > { %20779 = vmatmul.mubr.msk.f32.gmra.mrb[136].mxu1 %vm9974_vm5, %v27916_v46 }
 0x732   : > { %20781 = vmatprep.mubr.msk.f32.mxu1 %vm9974_vm5, %v27954_v21 }
 0x735   : > { %20782 = vmatmul.mubr.msk.f32.gmra.mrb[138].mxu1 %vm9974_vm5, %v27961_v34 }
 0x736   : > { %20784 = vmatprep.mubr.msk.f32.mxu1 %vm9974_vm5, %v27996_v57 }
 0x739   : > { %20785 = vmatmul.mubr.msk.f32.gmra.mrb[140].mxu1 %vm9974_vm5, %v28003_v59 }
 0x73a   : > { %20787 = vmatprep.mubr.msk.f32.mxu1 %vm9974_vm5, %v28038_v54 }
 0x73d   : > { %20788 = vmatmul.mubr.msk.f32.gmra.mrb[142].mxu1 %vm9974_vm5, %v28045_v31 }
 0x73e   : > { %20790 = vmatprep.mubr.msk.f32.mxu1 %vm9974_vm5, %v28086_v9 }
 0x741   : > { %20791 = vmatmul.mubr.msk.f32.gmra.mrb[144].mxu1 %vm9974_vm5, %v28093_v28 }
 0x742   : > { %20793 = vmatprep.mubr.msk.f32.mxu1 %vm9974_vm5, %v28133_v3 }
 0x745   : > { %20794 = vmatmul.mubr.msk.f32.gmra.mrb[146].mxu1 %vm9974_vm5, %v28140_v52 }
 0x746   : > { %20796 = vmatprep.mubr.msk.f32.mxu1 %vm9974_vm5, %v28175_v2 }
 0x749   : > { %20797 = vmatmul.mubr.msk.f32.gmra.mrb[148].mxu1 %vm9974_vm5, %v28182_v7 }
 0x74a   : > { %20799 = vmatprep.mubr.msk.f32.mxu1 %vm9974_vm5, %v28217_v16 }
 0x74d   : > { %20800 = vmatmul.mubr.msk.f32.gmra.mrb[150].mxu1 %vm9974_vm5, %v28224_v33 }
 0x74e   : > { %20802 = vmatprep.mubr.msk.f32.mxu1 %vm9974_vm5, %v28259_v50 }
 0x751   : > { %20803 = vmatmul.mubr.msk.f32.gmra.mrb[152].mxu1 %vm9974_vm5, %v28266_v20 }
 0x752   : > { %20805 = vmatprep.mubr.msk.f32.mxu1 %vm9974_vm5, %v28301_v58 }
 0x755   : > { %20806 = vmatmul.mubr.msk.f32.gmra.mrb[154].mxu1 %vm9974_vm5, %v28308_v62 }
 0x756   : > { %20808 = vmatprep.mubr.msk.f32.mxu1 %vm9974_vm5, %v28343_v43 }
 0x759   : > { %20809 = vmatmul.mubr.msk.f32.gmra.mrb[156].mxu1 %vm9974_vm5, %v28350_v56 }
 0x75a   : > { %20811 = vmatprep.mubr.msk.f32.mxu1 %vm9974_vm5, %v28385_v61 }
 0x75d   : > { %20812 = vmatmul.mubr.msk.f32.gmra.mrb[158].mxu1 %vm9974_vm5, %v28390_v11 }
 0x75e   : > { %20816 = vmatprep.mubr.msk.f32.mxu1 %vm9974_vm5, %v31751_v63 }
 0x761   : > { %20817 = vmatmul.mubr.msk.f32.vlgmr.msra.gmra.mrb[128].mxu1 %vm9974_vm5, %v31751_v63  ;;  %v11079_v63 = vrot.slane %v28259_v50, 2 }
 0x762   : > { %20865 = vmatpush3.msra.mxu1 %v16976_v25  ;;  %20819 = vmatprep.mubr.msk.f32.mxu1 %vm9974_vm5, %v28489_v29  ;;  %v11047_v25 = vrot.slane %v27964_v5, 2  ;;  %v28555_v5 = vsel %vm3205_vm3, %v11049_v53, %v11050_v22  ;;  %v31878_v22 = vld [vmem:[#allocation177_spill] sm:$0xff] }
 0x763   : > { %20914 = vmatprep.subr.mxu1 %v28484_v60  ;;  %v11067_v53 = vrot.slane %v31878_v22, 2 }
 0x764   : > { %v28549_v27 = vsel %vm3205_vm3, %v11045_v40, %v11047_v25  ;;  %v11065_v40 = vrot.slane %v28140_v52, 2  ;;  %v28588_v25 = vsel %vm3205_vm3, %v11060_v1, %v11062_v19  ;;  %v11072_v1 = vrot.slane %v31879_v6, 2 }
 0x765   : > { %20820 = vmatmul.mubr.msk.f32.gmra.mrb[130].mxu1 %vm9974_vm5, %v28497_v44  ;;  %v11075_v19 = vrot.slane %v28224_v33, 2 }
 0x766   : > { %20822 = vmatprep.mubr.msk.f32.mxu1 %vm9974_vm5, %v28503_v36  ;;  %v28594_v45 = vsel %vm3205_vm3, %v11064_v13, %v11065_v40  ;;  %v28601_v4 = vsel %vm3205_vm3, %v11065_v40, %v11067_v53  ;;  %v11074_v13 = vrot.slane %v28217_v16, 2  ;;  %v28614_v22 = vsel %vm3205_vm3, %v11070_v17, %v11072_v1  ;;  %v31881_v40 = vld [vmem:[#allocation185_spill] sm:$0xff] }
 0x767   : > { %31880 = vst [vmem:[#allocation202_spill] sm:$0xff] %v28614_v22  ;;  %v11077_v53 = vrot.slane %v31881_v40, 2  ;;  %v31884_v17 = vld [vmem:[#allocation189_spill] sm:$0xff]  ;;  %v28633_v40 = vsel %vm3205_vm3, %v11079_v63, %v11080_v0  ;;  %v11090_v63 = vrot.slane %v28350_v56, 2 }
 0x768   : > { %v28620_v6 = vsel %vm3205_vm3, %v11074_v13, %v11075_v19  ;;  %v11082_v1 = vrot.slane %v31884_v17, 2  ;;  %31885 = vst [vmem:[#allocation206_spill] sm:$0xff] %v28633_v40  ;;  %v11085_v13 = vrot.slane %v28308_v62, 2 }
 0x769   : > { %20823 = vmatmul.mubr.msk.f32.gmra.mrb[132].mxu1 %vm9974_vm5, %v28510_v39  ;;  %31882 = vst [vmem:[#allocation204_spill] sm:$0xff] %v28620_v6  ;;  %v28627_v38 = vsel %vm3205_vm3, %v11075_v19, %v11077_v53  ;;  %v31887_v19 = vld [vmem:[#allocation192_spill] sm:$0xff] }
 0x76a   : > { %20825 = vmatprep.mubr.msk.f32.mxu1 %vm9974_vm5, %v28516_v42  ;;  %31883 = vst [vmem:[#allocation205_spill] sm:$0xff] %v28627_v38  ;;  %v11087_v53 = vrot.slane %v31887_v19, 2 }
 0x76d   : > { %20826 = vmatmul.mubr.msk.f32.gmra.mrb[134].mxu1 %vm9974_vm5, %v28523_v8 }
 0x76e   : > { %20828 = vmatprep.mubr.msk.f32.mxu1 %vm9974_vm5, %v28529_v14 }
 0x771   : > { %20829 = vmatmul.mubr.msk.f32.gmra.mrb[136].mxu1 %vm9974_vm5, %v28536_v23 }
 0x772   : > { %20831 = vmatprep.mubr.msk.f32.mxu1 %vm9974_vm5, %v28542_v51 }
 0x775   : > { %20832 = vmatmul.mubr.msk.f32.gmra.mrb[138].mxu1 %vm9974_vm5, %v28549_v27 }
 0x776   : > { %20834 = vmatprep.mubr.msk.f32.mxu1 %vm9974_vm5, %v28555_v5 }
 0x779   : > { %20835 = vmatmul.mubr.msk.f32.gmra.mrb[140].mxu1 %vm9974_vm5, %v28562_v24 }
 0x77a   : > { %20837 = vmatprep.mubr.msk.f32.mxu1 %vm9974_vm5, %v28568_v12 }
 0x77d   : > { %20838 = vmatmul.mubr.msk.f32.gmra.mrb[142].mxu1 %vm9974_vm5, %v28575_v18 }
 0x77e   : > { %20840 = vmatprep.mubr.msk.f32.mxu1 %vm9974_vm5, %v28581_v32 }
 0x781   : > { %20841 = vmatmul.mubr.msk.f32.gmra.mrb[144].mxu1 %vm9974_vm5, %v28588_v25 }
 0x782   : > { %20843 = vmatprep.mubr.msk.f32.mxu1 %vm9974_vm5, %v28594_v45 }
 0x785   : > { %20844 = vmatmul.mubr.msk.f32.gmra.mrb[146].mxu1 %vm9974_vm5, %v28601_v4 }
 0x786   : > { %20846 = vmatprep.mubr.msk.f32.mxu1 %vm9974_vm5, %v28607_v41 }
 0x789   : > { %20847 = vmatmul.mubr.msk.f32.gmra.mrb[148].mxu1 %vm9974_vm5, %v28614_v22  ;;  %v28640_v22 = vsel %vm3205_vm3, %v11080_v0, %v11082_v1  ;;  %v31889_v0 = vld [vmem:[#allocation196_spill] sm:$0xff] }
 0x78a   : > { %20849 = vmatprep.mubr.msk.f32.mxu1 %vm9974_vm5, %v28620_v6  ;;  %v11084_v6 = vrot.slane %v28301_v58, 2  ;;  %31886 = vst [vmem:[#allocation207_spill] sm:$0xff] %v28640_v22  ;;  %v11092_v1 = vrot.slane %v31889_v0, 2 }
 0x78c   : > { %v28646_v17 = vsel %vm3205_vm3, %v11084_v6, %v11085_v13  ;;  %v11095_v6 = vrot.slane %v28390_v11, 2 }
 0x78d   : > { %20850 = vmatmul.mubr.msk.f32.gmra.mrb[150].mxu1 %vm9974_vm5, %v28627_v38  ;;  %31888 = vst [vmem:[#allocation208_spill] sm:$0xff] %v28646_v17  ;;  %v28653_v38 = vsel %vm3205_vm3, %v11085_v13, %v11087_v53  ;;  %v11097_v13 = vrot.slane %v28393_v10, 2  ;;  %v17042_v10 = vld [vmem:[%s29817_s3 + $0x28] sm:$0xff] }
 0x78e   : > { %20852 = vmatprep.mubr.msk.f32.mxu1 %vm9974_vm5, %v28633_v40  ;;  %v11089_v40 = vrot.slane %v28343_v43, 2 }
 0x790   : > { %v28659_v19 = vsel %vm3205_vm3, %v11089_v40, %v11090_v63  ;;  %v28677_v40 = vsel %vm3205_vm3, %v11095_v6, %v11097_v13 }
 0x791   : > { %20853 = vmatmul.mubr.msk.f32.gmra.mrb[152].mxu1 %vm9974_vm5, %v28640_v22  ;;  %31890 = vst [vmem:[#allocation209_spill] sm:$0xff] %v28659_v19  ;;  %v28666_v22 = vsel %vm3205_vm3, %v11090_v63, %v11092_v1  ;;  %v10165_v63 = vld [vmem:[#allocation2 + $0x1f1] ss:$2 sm:$0xff] }
 0x792   : > { %20855 = vmatprep.mubr.msk.f32.mxu1 %vm9974_vm5, %v28646_v17  ;;  %v11094_v17 = vrot.slane %v28385_v61, 2 }
 0x794   : > { %v28672_v53 = vsel %vm3205_vm3, %v11094_v17, %v11095_v6  ;;  %v10101_v17 = vld [vmem:[#allocation2 + $0x1f0] ss:$2 sm:$0xff] }
 0x795   : > { %20856 = vmatmul.mubr.msk.f32.gmra.mrb[154].mxu1 %vm9974_vm5, %v28653_v38  ;;  %v10197_v0 = vmax.f32 %v10101_v17, %v10165_v63  ;;  %v31892_v17 = vld [vmem:[#allocation143_spill] sm:$0xff]  ;;  %v31893_v63 = vld [vmem:[#allocation144_spill] sm:$0xff] }
 0x796   : > { %20858 = vmatprep.mubr.msk.f32.mxu1 %vm9974_vm5, %v28659_v19 }
 0x797   : > { %v10276_v6 = vrot.slane %v10197_v0, 7  ;;  %v31894_v0 = vld [vmem:[#allocation145_spill] sm:$0xff] }
 0x799   : > { %20859 = vmatmul.mubr.msk.f32.gmra.mrb[156].mxu1 %vm9974_vm5, %v28666_v22 }
 0x79a   : > { %20861 = vmatprep.mubr.msk.f32.mxu1 %vm9974_vm5, %v28672_v53 }
 0x79d   : > { %20862 = vmatmul.mubr.msk.f32.gmra.mrb[158].mxu1 %vm9974_vm5, %v28677_v40 }
 0x79e   : > { %20866 = vmatprep.mubr.msk.f32.mxu1 %vm9974_vm5, %v27773_v37  ;;  %v10099_v37 = vld [vmem:[#allocation2 + $0x1e0] ss:$2 sm:$0xff] }
 0x7a1   : > { %20867 = vmatmul.mubr.msk.f32.vlgmr.msra.gmra.mrb[128].mxu1 %vm9974_vm5, %v27784_v35  ;;  %v10163_v35 = vld [vmem:[#allocation2 + $0x1e1] ss:$2 sm:$0xff] }
 0x7a2   : > { %20915 = vmatpush3.msra.mxu1 %v28484_v60  ;;  %20869 = vmatprep.mubr.msk.f32.mxu1 %vm9974_vm5, %v27825_v49  ;;  %v10196_v60 = vmax.f32 %v10099_v37, %v10163_v35  ;;  %v31891_v35 = vld [vmem:[#allocation141_spill] sm:$0xff] }
 0x7a3   : > { %20964 = vmatprep.subr.mxu1 %v17042_v10 }
 0x7a4   : > { %v10275_v1 = vrot.slane %v10196_v60, 7  ;;  %v17075_v60 = vld [vmem:[%s29817_s3 + $0x30] sm:$0xff] }
 0x7a5   : > { %20870 = vmatmul.mubr.msk.f32.gmra.mrb[130].mxu1 %vm9974_vm5, %v27832_v15 }
 0x7a6   : > { %20872 = vmatprep.mubr.msk.f32.mxu1 %vm9974_vm5, %v27867_v48  ;;  %v28746_v13 = vsel %vm586_vm2, 0.0, %v10275_v1  ;;  %v28751_v37 = vsel %vm586_vm2, %v10275_v1, %v10276_v6  ;;  %v31895_v1 = vld [vmem:[#allocation146_spill] sm:$0xff] }
 0x7a9   : > { %20873 = vmatmul.mubr.msk.f32.gmra.mrb[132].mxu1 %vm9974_vm5, %v27874_v47 }
 0x7aa   : > { %20875 = vmatprep.mubr.msk.f32.mxu1 %vm9974_vm5, %v27909_v55 }
 0x7ad   : > { %20876 = vmatmul.mubr.msk.f32.gmra.mrb[134].mxu1 %vm9974_vm5, %v27916_v46 }
 0x7ae   : > { %20878 = vmatprep.mubr.msk.f32.mxu1 %vm9974_vm5, %v27954_v21 }
 0x7b1   : > { %20879 = vmatmul.mubr.msk.f32.gmra.mrb[136].mxu1 %vm9974_vm5, %v27961_v34 }
 0x7b2   : > { %20881 = vmatprep.mubr.msk.f32.mxu1 %vm9974_vm5, %v27996_v57 }
 0x7b5   : > { %20882 = vmatmul.mubr.msk.f32.gmra.mrb[138].mxu1 %vm9974_vm5, %v28003_v59 }
 0x7b6   : > { %20884 = vmatprep.mubr.msk.f32.mxu1 %vm9974_vm5, %v28038_v54 }
 0x7b9   : > { %20885 = vmatmul.mubr.msk.f32.gmra.mrb[140].mxu1 %vm9974_vm5, %v28045_v31 }
 0x7ba   : > { %20887 = vmatprep.mubr.msk.f32.mxu1 %vm9974_vm5, %v28086_v9 }
 0x7bd   : > { %20888 = vmatmul.mubr.msk.f32.gmra.mrb[142].mxu1 %vm9974_vm5, %v28093_v28 }
 0x7be   : > { %20890 = vmatprep.mubr.msk.f32.mxu1 %vm9974_vm5, %v28133_v3 }
 0x7c1   : > { %20891 = vmatmul.mubr.msk.f32.gmra.mrb[144].mxu1 %vm9974_vm5, %v28140_v52 }
 0x7c2   : > { %20893 = vmatprep.mubr.msk.f32.mxu1 %vm9974_vm5, %v28175_v2 }
 0x7c5   : > { %20894 = vmatmul.mubr.msk.f32.gmra.mrb[146].mxu1 %vm9974_vm5, %v28182_v7 }
 0x7c6   : > { %20896 = vmatprep.mubr.msk.f32.mxu1 %vm9974_vm5, %v28217_v16 }
 0x7c9   : > { %20897 = vmatmul.mubr.msk.f32.gmra.mrb[148].mxu1 %vm9974_vm5, %v28224_v33 }
 0x7ca   : > { %20899 = vmatprep.mubr.msk.f32.mxu1 %vm9974_vm5, %v28259_v50 }
 0x7cd   : > { %20900 = vmatmul.mubr.msk.f32.gmra.mrb[150].mxu1 %vm9974_vm5, %v28266_v20 }
 0x7ce   : > { %20902 = vmatprep.mubr.msk.f32.mxu1 %vm9974_vm5, %v28301_v58 }
 0x7d1   : > { %20903 = vmatmul.mubr.msk.f32.gmra.mrb[152].mxu1 %vm9974_vm5, %v28308_v62 }
 0x7d2   : > { %20905 = vmatprep.mubr.msk.f32.mxu1 %vm9974_vm5, %v28343_v43 }
 0x7d5   : > { %20906 = vmatmul.mubr.msk.f32.gmra.mrb[154].mxu1 %vm9974_vm5, %v28350_v56 }
 0x7d6   : > { %20908 = vmatprep.mubr.msk.f32.mxu1 %vm9974_vm5, %v28385_v61  ;;  %v31898_v61 = vld [vmem:[#allocation151_spill] sm:$0xff] }
 0x7d9   : > { %20909 = vmatmul.mubr.msk.f32.gmra.mrb[156].mxu1 %vm9974_vm5, %v28390_v11  ;;  %v31896_v11 = vld [vmem:[#allocation149_spill] sm:$0xff] }
 0x7da   : > { %20911 = vmatprep.mubr.msk.f32.mxu1 %vm9974_vm5, %v28746_v13 }
 0x7dd   : > { %20912 = vmatmul.mubr.msk.f32.gmra.mrb[158].mxu1 %vm9974_vm5, %v28751_v37 }
 0x7de   : > { %20916 = vmatprep.mubr.msk.f32.mxu1 %vm9974_vm5, %v31891_v35  ;;  %v31897_v35 = vld [vmem:[#allocation150_spill] sm:$0xff] }
 0x7e1   : > { %20917 = vmatmul.mubr.msk.f32.vlgmr.msra.gmra.mrb[128].mxu1 %vm9974_vm5, %v31892_v17  ;;  %v31900_v17 = vld [vmem:[#allocation162_spill] sm:$0xff] }
 0x7e2   : > { %20965 = vmatpush3.msra.mxu1 %v17042_v10  ;;  %20919 = vmatprep.mubr.msk.f32.mxu1 %vm9974_vm5, %v31893_v63  ;;  %v31899_v10 = vld [vmem:[#allocation159_spill] sm:$0xff] }
 0x7e3   : > { %21014 = vmatprep.subr.mxu1 %v17075_v60  ;;  %v31901_v63 = vld [vmem:[#allocation163_spill] sm:$0xff] }
 0x7e5   : > { %20920 = vmatmul.mubr.msk.f32.gmra.mrb[130].mxu1 %vm9974_vm5, %v31894_v0  ;;  %v31902_v0 = vld [vmem:[#allocation167_spill] sm:$0xff] }
 0x7e6   : > { %20922 = vmatprep.mubr.msk.f32.mxu1 %vm9974_vm5, %v31895_v1  ;;  %v31903_v1 = vld [vmem:[#allocation168_spill] sm:$0xff] }
 0x7e9   : > { %20923 = vmatmul.mubr.msk.f32.gmra.mrb[132].mxu1 %vm9974_vm5, %v31896_v11  ;;  %v31904_v11 = vld [vmem:[#allocation171_spill] sm:$0xff] }
 0x7ea   : > { %20925 = vmatprep.mubr.msk.f32.mxu1 %vm9974_vm5, %v31897_v35  ;;  %v31905_v35 = vld [vmem:[#allocation172_spill] sm:$0xff] }
 0x7ed   : > { %20926 = vmatmul.mubr.msk.f32.gmra.mrb[134].mxu1 %vm9974_vm5, %v31898_v61  ;;  %v31906_v61 = vld [vmem:[#allocation176_spill] sm:$0xff] }
 0x7ee   : > { %20928 = vmatprep.mubr.msk.f32.mxu1 %vm9974_vm5, %v31899_v10  ;;  %v31907_v10 = vld [vmem:[#allocation179_spill] sm:$0xff] }
 0x7f1   : > { %20929 = vmatmul.mubr.msk.f32.gmra.mrb[136].mxu1 %vm9974_vm5, %v31900_v17  ;;  %v31908_v17 = vld [vmem:[#allocation180_spill] sm:$0xff] }
 0x7f2   : > { %20931 = vmatprep.mubr.msk.f32.mxu1 %vm9974_vm5, %v31901_v63  ;;  %v31909_v63 = vld [vmem:[#allocation182_spill] sm:$0xff] }
 0x7f5   : > { %20932 = vmatmul.mubr.msk.f32.gmra.mrb[138].mxu1 %vm9974_vm5, %v31902_v0  ;;  %v31910_v0 = vld [vmem:[#allocation184_spill] sm:$0xff] }
 0x7f6   : > { %20934 = vmatprep.mubr.msk.f32.mxu1 %vm9974_vm5, %v31903_v1  ;;  %v31911_v1 = vld [vmem:[#allocation186_spill] sm:$0xff] }
 0x7f9   : > { %20935 = vmatmul.mubr.msk.f32.gmra.mrb[140].mxu1 %vm9974_vm5, %v31904_v11  ;;  %v31912_v11 = vld [vmem:[#allocation187_spill] sm:$0xff] }
 0x7fa   : > { %20937 = vmatprep.mubr.msk.f32.mxu1 %vm9974_vm5, %v31905_v35  ;;  %v31913_v35 = vld [vmem:[#allocation190_spill] sm:$0xff] }
 0x7fd   : > { %20938 = vmatmul.mubr.msk.f32.gmra.mrb[142].mxu1 %vm9974_vm5, %v31906_v61  ;;  %v31914_v61 = vld [vmem:[#allocation191_spill] sm:$0xff] }
 0x7fe   : > { %20940 = vmatprep.mubr.msk.f32.mxu1 %vm9974_vm5, %v31907_v10  ;;  %v31915_v10 = vld [vmem:[#allocation194_spill] sm:$0xff] }
 0x801   : > { %20941 = vmatmul.mubr.msk.f32.gmra.mrb[144].mxu1 %vm9974_vm5, %v31908_v17  ;;  %v31916_v17 = vld [vmem:[#allocation195_spill] sm:$0xff] }
 0x802   : > { %20943 = vmatprep.mubr.msk.f32.mxu1 %vm9974_vm5, %v31909_v63  ;;  %v31917_v63 = vld [vmem:[#allocation197_spill] sm:$0xff] }
 0x805   : > { %20944 = vmatmul.mubr.msk.f32.gmra.mrb[146].mxu1 %vm9974_vm5, %v31910_v0  ;;  %v31918_v0 = vld [vmem:[#allocation199_spill] sm:$0xff] }
 0x806   : > { %20946 = vmatprep.mubr.msk.f32.mxu1 %vm9974_vm5, %v31911_v1  ;;  %v11686_v1 = vrot.slane %v28751_v37, 1 }
 0x809   : > { %20947 = vmatmul.mubr.msk.f32.gmra.mrb[148].mxu1 %vm9974_vm5, %v31912_v11  ;;  %v10341_v11 = vsel %vm586_vm2, %v10276_v6, 0.0  ;;  %v17106_v6 = vld [vmem:[%s29817_s3 + $0x38] sm:$0xff] }
 0x80a   : > { %20949 = vmatprep.mubr.msk.f32.mxu1 %vm9974_vm5, %v31913_v35  ;;  %v11688_v35 = vrot.slane %v10341_v11, 1 }
 0x80d   : > { %20950 = vmatmul.mubr.msk.f32.gmra.mrb[150].mxu1 %vm9974_vm5, %v31914_v61  ;;  %v11685_v61 = vrot.slane %v28746_v13, 1 }
 0x80e   : > { %20952 = vmatprep.mubr.msk.f32.mxu1 %vm9974_vm5, %v31915_v10 }
 0x811   : > { %20953 = vmatmul.mubr.msk.f32.gmra.mrb[152].mxu1 %vm9974_vm5, %v31916_v17  ;;  %v28822_v17 = vsel %vm1003_vm4, %v11685_v61, %v11686_v1  ;;  %v31919_v61 = vld [vmem:[#allocation202_spill] sm:$0xff] }
 0x812   : > { %20955 = vmatprep.mubr.msk.f32.mxu1 %vm9974_vm5, %v31917_v63  ;;  %v28827_v63 = vsel %vm1003_vm4, %v11686_v1, %v11688_v35  ;;  %v31923_v1 = vld [vmem:[#allocation207_spill] sm:$0xff]  ;;  %v31924_v35 = vld [vmem:[#allocation208_spill] sm:$0xff] }
 0x815   : > { %20956 = vmatmul.mubr.msk.f32.gmra.mrb[154].mxu1 %vm9974_vm5, %v31918_v0 }
 0x816   : > { %20958 = vmatprep.mubr.msk.f32.mxu1 %vm9974_vm5, %v28400_v26 }
 0x819   : > { %20959 = vmatmul.mubr.msk.f32.gmra.mrb[156].mxu1 %vm9974_vm5, %v28403_v30 }
 0x81a   : > { %20961 = vmatprep.mubr.msk.f32.mxu1 %vm9974_vm5, %v28822_v17 }
 0x81d   : > { %20962 = vmatmul.mubr.msk.f32.gmra.mrb[158].mxu1 %vm9974_vm5, %v28827_v63 }
 0x81e   : > { %20966 = vmatprep.mubr.msk.f32.mxu1 %vm9974_vm5, %v28489_v29  ;;  %v31920_v29 = vld [vmem:[#allocation204_spill] sm:$0xff] }
 0x821   : > { %20967 = vmatmul.mubr.msk.f32.vlgmr.msra.gmra.mrb[128].mxu1 %vm9974_vm5, %v28497_v44  ;;  %v31921_v44 = vld [vmem:[#allocation205_spill] sm:$0xff] }
 0x822   : > { %21015 = vmatpush3.msra.mxu1 %v17075_v60  ;;  %20969 = vmatprep.mubr.msk.f32.mxu1 %vm9974_vm5, %v28503_v36  ;;  %v31922_v60 = vld [vmem:[#allocation206_spill] sm:$0xff] }
 0x823   : > { %21064 = vmatprep.subr.mxu1 %v17106_v6 }
 0x825   : > { %20970 = vmatmul.mubr.msk.f32.gmra.mrb[130].mxu1 %vm9974_vm5, %v28510_v39 }
 0x826   : > { %20972 = vmatprep.mubr.msk.f32.mxu1 %vm9974_vm5, %v28516_v42 }
 0x829   : > { %20973 = vmatmul.mubr.msk.f32.gmra.mrb[132].mxu1 %vm9974_vm5, %v28523_v8 }
 0x82a   : > { %20975 = vmatprep.mubr.msk.f32.mxu1 %vm9974_vm5, %v28529_v14 }
 0x82d   : > { %20976 = vmatmul.mubr.msk.f32.gmra.mrb[134].mxu1 %vm9974_vm5, %v28536_v23 }
 0x82e   : > { %20978 = vmatprep.mubr.msk.f32.mxu1 %vm9974_vm5, %v28542_v51 }
 0x831   : > { %20979 = vmatmul.mubr.msk.f32.gmra.mrb[136].mxu1 %vm9974_vm5, %v28549_v27 }
 0x832   : > { %20981 = vmatprep.mubr.msk.f32.mxu1 %vm9974_vm5, %v28555_v5 }
 0x835   : > { %20982 = vmatmul.mubr.msk.f32.gmra.mrb[138].mxu1 %vm9974_vm5, %v28562_v24 }
 0x836   : > { %20984 = vmatprep.mubr.msk.f32.mxu1 %vm9974_vm5, %v28568_v12 }
 0x839   : > { %20985 = vmatmul.mubr.msk.f32.gmra.mrb[140].mxu1 %vm9974_vm5, %v28575_v18 }
 0x83a   : > { %20987 = vmatprep.mubr.msk.f32.mxu1 %vm9974_vm5, %v28581_v32 }
 0x83d   : > { %20988 = vmatmul.mubr.msk.f32.gmra.mrb[142].mxu1 %vm9974_vm5, %v28588_v25 }
 0x83e   : > { %20990 = vmatprep.mubr.msk.f32.mxu1 %vm9974_vm5, %v28594_v45 }
 0x841   : > { %20991 = vmatmul.mubr.msk.f32.gmra.mrb[144].mxu1 %vm9974_vm5, %v28601_v4 }
 0x842   : > { %20993 = vmatprep.mubr.msk.f32.mxu1 %vm9974_vm5, %v28607_v41 }
 0x845   : > { %20994 = vmatmul.mubr.msk.f32.gmra.mrb[146].mxu1 %vm9974_vm5, %v31919_v61 }
 0x846   : > { %20996 = vmatprep.mubr.msk.f32.mxu1 %vm9974_vm5, %v31920_v29  ;;  %v11954_v29 = vrot.slane %v28751_v37, 2 }
 0x849   : > { %20997 = vmatmul.mubr.msk.f32.gmra.mrb[148].mxu1 %vm9974_vm5, %v31921_v44 }
 0x84a   : > { %20999 = vmatprep.mubr.msk.f32.mxu1 %vm9974_vm5, %v31922_v60  ;;  %v11953_v60 = vrot.slane %v28746_v13, 2 }
 0x84d   : > { %21000 = vmatmul.mubr.msk.f32.gmra.mrb[150].mxu1 %vm9974_vm5, %v31923_v1  ;;  %v11956_v1 = vrot.slane %v10341_v11, 2  ;;  %v17139_v11 = vld [vmem:[%s29817_s3 + $0x40] sm:$0xff] }
 0x84e   : > { %21002 = vmatprep.mubr.msk.f32.mxu1 %vm9974_vm5, %v31924_v35  ;;  %v28897_v35 = vsel %vm3205_vm3, %v11953_v60, %v11954_v29 }
 0x851   : > { %21003 = vmatmul.mubr.msk.f32.gmra.mrb[152].mxu1 %vm9974_vm5, %v28653_v38 }
 0x852   : > { %21005 = vmatprep.mubr.msk.f32.mxu1 %vm9974_vm5, %v28659_v19  ;;  %v28902_v19 = vsel %vm3205_vm3, %v11954_v29, %v11956_v1  ;;  %v31951_v29 = vld [vmem:[#allocation197_spill] sm:$0xff] }
 0x855   : > { %21006 = vmatmul.mubr.msk.f32.gmra.mrb[154].mxu1 %vm9974_vm5, %v28666_v22 }
 0x856   : > { %21008 = vmatprep.mubr.msk.f32.mxu1 %vm9974_vm5, %v28672_v53 }
 0x859   : > { %21009 = vmatmul.mubr.msk.f32.gmra.mrb[156].mxu1 %vm9974_vm5, %v28677_v40 }
 0x85a   : > { %21011 = vmatprep.mubr.msk.f32.mxu1 %vm9974_vm5, %v28897_v35 }
 0x85d   : > { %21012 = vmatmul.mubr.msk.f32.gmra.mrb[158].mxu1 %vm9974_vm5, %v28902_v19 }
 0x85e   : > { %21016 = vmatprep.mubr.msk.f32.mxu1 %vm9974_vm5, %v27825_v49  ;;  %v31925_v49 = vld [vmem:[#allocation200_spill] sm:$0xff] }
 0x861   : > { %21017 = vmatmul.mubr.msk.f32.vlgmr.msra.gmra.mrb[128].mxu1 %vm9974_vm5, %v27832_v15  ;;  %v31926_v15 = vld [vmem:[#allocation201_spill] sm:$0xff] }
 0x862   : > { %21065 = vmatpush3.msra.mxu1 %v17106_v6  ;;  %21019 = vmatprep.mubr.msk.f32.mxu1 %vm9974_vm5, %v27867_v48  ;;  %v31927_v48 = vmov 0.0   ;;  %v31950_v6 = vld [vmem:[#allocation195_spill] sm:$0xff] }
 0x863   : > { %21114 = vmatprep.subr.mxu1 %v17139_v11 }
 0x865   : > { %21020 = vmatmul.mubr.msk.f32.gmra.mrb[130].mxu1 %vm9974_vm5, %v27874_v47  ;;  %v17173_v47 = vld [vmem:[%s29819_s5 + $0x10] sm:$0xff] }
 0x866   : > { %21022 = vmatprep.mubr.msk.f32.mxu1 %vm9974_vm5, %v27909_v55  ;;  %v17174_v55 = vld [vmem:[%s29819_s5 + $0x18] sm:$0xff] }
 0x869   : > { %21023 = vmatmul.mubr.msk.f32.gmra.mrb[132].mxu1 %vm9974_vm5, %v27916_v46  ;;  %v31928_v46 = vld [vmem:[#allocation144_spill] sm:$0xff] }
 0x86a   : > { %21025 = vmatprep.mubr.msk.f32.mxu1 %vm9974_vm5, %v27954_v21  ;;  %v21484_v21 = vpack.c.bf16 %v17174_v55, %v17173_v47 }
 0x86d   : > { %21026 = vmatmul.mubr.msk.f32.gmra.mrb[134].mxu1 %vm9974_vm5, %v27961_v34  ;;  %v31929_v34 = vld [vmem:[#allocation145_spill] sm:$0xff] }
 0x86e   : > { %21028 = vmatprep.mubr.msk.f32.mxu1 %vm9974_vm5, %v27996_v57  ;;  %v31930_v57 = vld [vmem:[#allocation146_spill] sm:$0xff] }
 0x871   : > { %21029 = vmatmul.mubr.msk.f32.gmra.mrb[136].mxu1 %vm9974_vm5, %v28003_v59  ;;  %v31931_v59 = vld [vmem:[#allocation149_spill] sm:$0xff] }
 0x872   : > { %21031 = vmatprep.mubr.msk.f32.mxu1 %vm9974_vm5, %v28038_v54  ;;  %v31932_v54 = vld [vmem:[#allocation150_spill] sm:$0xff] }
 0x875   : > { %21032 = vmatmul.mubr.msk.f32.gmra.mrb[138].mxu1 %vm9974_vm5, %v28045_v31  ;;  %v31933_v31 = vld [vmem:[#allocation151_spill] sm:$0xff] }
 0x876   : > { %21034 = vmatprep.mubr.msk.f32.mxu1 %vm9974_vm5, %v28086_v9  ;;  %v31934_v9 = vld [vmem:[#allocation159_spill] sm:$0xff] }
 0x879   : > { %21035 = vmatmul.mubr.msk.f32.gmra.mrb[140].mxu1 %vm9974_vm5, %v28093_v28  ;;  %v31935_v28 = vld [vmem:[#allocation162_spill] sm:$0xff] }
 0x87a   : > { %21037 = vmatprep.mubr.msk.f32.mxu1 %vm9974_vm5, %v28133_v3  ;;  %v31936_v3 = vld [vmem:[#allocation163_spill] sm:$0xff] }
 0x87d   : > { %21038 = vmatmul.mubr.msk.f32.gmra.mrb[142].mxu1 %vm9974_vm5, %v28140_v52  ;;  %v31937_v52 = vld [vmem:[#allocation167_spill] sm:$0xff] }
 0x87e   : > { %21040 = vmatprep.mubr.msk.f32.mxu1 %vm9974_vm5, %v28175_v2  ;;  %v31938_v2 = vld [vmem:[#allocation168_spill] sm:$0xff] }
 0x881   : > { %21041 = vmatmul.mubr.msk.f32.gmra.mrb[144].mxu1 %vm9974_vm5, %v28182_v7  ;;  %v31939_v7 = vld [vmem:[#allocation171_spill] sm:$0xff] }
 0x882   : > { %21043 = vmatprep.mubr.msk.f32.mxu1 %vm9974_vm5, %v28217_v16  ;;  %v31940_v16 = vld [vmem:[#allocation172_spill] sm:$0xff] }
 0x885   : > { %21044 = vmatmul.mubr.msk.f32.gmra.mrb[146].mxu1 %vm9974_vm5, %v28224_v33  ;;  %v31941_v33 = vld [vmem:[#allocation176_spill] sm:$0xff] }
 0x886   : > { %21046 = vmatprep.mubr.msk.f32.mxu1 %vm9974_vm5, %v28259_v50  ;;  %v31942_v50 = vld [vmem:[#allocation179_spill] sm:$0xff] }
 0x889   : > { %21047 = vmatmul.mubr.msk.f32.gmra.mrb[148].mxu1 %vm9974_vm5, %v28266_v20  ;;  %v31943_v20 = vld [vmem:[#allocation180_spill] sm:$0xff] }
 0x88a   : > { %21049 = vmatprep.mubr.msk.f32.mxu1 %vm9974_vm5, %v28301_v58  ;;  %v31944_v58 = vld [vmem:[#allocation182_spill] sm:$0xff] }
 0x88d   : > { %21050 = vmatmul.mubr.msk.f32.gmra.mrb[150].mxu1 %vm9974_vm5, %v28308_v62  ;;  %v31945_v62 = vld [vmem:[#allocation184_spill] sm:$0xff] }
 0x88e   : > { %21052 = vmatprep.mubr.msk.f32.mxu1 %vm9974_vm5, %v28343_v43  ;;  %v31946_v43 = vld [vmem:[#allocation186_spill] sm:$0xff] }
 0x891   : > { %21053 = vmatmul.mubr.msk.f32.gmra.mrb[152].mxu1 %vm9974_vm5, %v28350_v56  ;;  %v31947_v56 = vld [vmem:[#allocation187_spill] sm:$0xff] }
 0x892   : > { %21055 = vmatprep.mubr.msk.f32.mxu1 %vm9974_vm5, %v31925_v49 }
 0x895   : > { %21056 = vmatmul.mubr.msk.f32.gmra.mrb[154].mxu1 %vm9974_vm5, %v31926_v15 }
 0x896   : > { %21058 = vmatprep.mubr.msk.f32.mxu1 %vm9974_vm5, %v28746_v13  ;;  %v31948_v13 = vld [vmem:[#allocation190_spill] sm:$0xff] }
 0x899   : > { %21059 = vmatmul.mubr.msk.f32.gmra.mrb[156].mxu1 %vm9974_vm5, %v28751_v37  ;;  %v31949_v37 = vld [vmem:[#allocation191_spill] sm:$0xff] }
 0x89a   : > { %21061 = vmatprep.mubr.f32.mxu1 %v31927_v48 }
 0x89d   : > { %21062 = vmatmul.mubr.f32.gmra.mrb[158].mxu1 %v31927_v48 }
 0x89e   : > { %21066 = vmatprep.mubr.msk.f32.mxu1 %vm9974_vm5, %v31928_v46 }
 0x8a1   : > { %21067 = vmatmul.mubr.msk.f32.vlgmr.msra.gmra.mrb[128].mxu1 %vm9974_vm5, %v31929_v34 }
 0x8a2   : > { %21115 = vmatpush3.msra.mxu1 %v17139_v11  ;;  %21069 = vmatprep.mubr.msk.f32.mxu1 %vm9974_vm5, %v31930_v57 }
 0x8a3   : > { %21485 = vmatprep.subr.bf16.mxu1 %v21484_v21 }
 0x8a5   : > { %21070 = vmatmul.mubr.msk.f32.gmra.mrb[130].mxu1 %vm9974_vm5, %v31931_v59 }
 0x8a6   : > { %21072 = vmatprep.mubr.msk.f32.mxu1 %vm9974_vm5, %v31932_v54 }
 0x8a9   : > { %21073 = vmatmul.mubr.msk.f32.gmra.mrb[132].mxu1 %vm9974_vm5, %v31933_v31 }
 0x8aa   : > { %21075 = vmatprep.mubr.msk.f32.mxu1 %vm9974_vm5, %v31934_v9 }
 0x8ad   : > { %21076 = vmatmul.mubr.msk.f32.gmra.mrb[134].mxu1 %vm9974_vm5, %v31935_v28 }
 0x8ae   : > { %21078 = vmatprep.mubr.msk.f32.mxu1 %vm9974_vm5, %v31936_v3 }
 0x8b1   : > { %21079 = vmatmul.mubr.msk.f32.gmra.mrb[136].mxu1 %vm9974_vm5, %v31937_v52 }
 0x8b2   : > { %21081 = vmatprep.mubr.msk.f32.mxu1 %vm9974_vm5, %v31938_v2 }
 0x8b5   : > { %21082 = vmatmul.mubr.msk.f32.gmra.mrb[138].mxu1 %vm9974_vm5, %v31939_v7 }
 0x8b6   : > { %21084 = vmatprep.mubr.msk.f32.mxu1 %vm9974_vm5, %v31940_v16 }
 0x8b9   : > { %21085 = vmatmul.mubr.msk.f32.gmra.mrb[140].mxu1 %vm9974_vm5, %v31941_v33 }
 0x8ba   : > { %21087 = vmatprep.mubr.msk.f32.mxu1 %vm9974_vm5, %v31942_v50  ;;  %v17190_v50 = vld [vmem:[%s29819_s5 + $0x20] sm:$0xff] }
 0x8bd   : > { %21088 = vmatmul.mubr.msk.f32.gmra.mrb[142].mxu1 %vm9974_vm5, %v31943_v20  ;;  %v17191_v20 = vld [vmem:[%s29819_s5 + $0x28] sm:$0xff] }
 0x8be   : > { %21090 = vmatprep.mubr.msk.f32.mxu1 %vm9974_vm5, %v31944_v58 }
 0x8c1   : > { %21091 = vmatmul.mubr.msk.f32.gmra.mrb[144].mxu1 %vm9974_vm5, %v31945_v62 }
 0x8c2   : > { %21093 = vmatprep.mubr.msk.f32.mxu1 %vm9974_vm5, %v31946_v43 }
 0x8c5   : > { %21094 = vmatmul.mubr.msk.f32.gmra.mrb[146].mxu1 %vm9974_vm5, %v31947_v56 }
 0x8c6   : > { %21096 = vmatprep.mubr.msk.f32.mxu1 %vm9974_vm5, %v31948_v13 }
 0x8c9   : > { %21097 = vmatmul.mubr.msk.f32.gmra.mrb[148].mxu1 %vm9974_vm5, %v31949_v37 }
 0x8ca   : > { %21099 = vmatprep.mubr.msk.f32.mxu1 %vm9974_vm5, %v31915_v10  ;;  %v31952_v10 = vld [vmem:[#allocation148_spill] sm:$0xff] }
 0x8cd   : > { %21100 = vmatmul.mubr.msk.f32.gmra.mrb[150].mxu1 %vm9974_vm5, %v31950_v6 }
 0x8ce   : > { %21102 = vmatprep.mubr.msk.f32.mxu1 %vm9974_vm5, %v31951_v29 }
 0x8d1   : > { %21103 = vmatmul.mubr.msk.f32.gmra.mrb[152].mxu1 %vm9974_vm5, %v31918_v0 }
 0x8d2   : > { %21105 = vmatprep.mubr.msk.f32.mxu1 %vm9974_vm5, %v28400_v26  ;;  %v31953_v26 = vld [vmem:[#allocation204_spill] sm:$0xff] }
 0x8d5   : > { %21106 = vmatmul.mubr.msk.f32.gmra.mrb[154].mxu1 %vm9974_vm5, %v28403_v30  ;;  %v31954_v30 = vld [vmem:[#allocation206_spill] sm:$0xff] }
 0x8d6   : > { %21108 = vmatprep.mubr.msk.f32.mxu1 %vm9974_vm5, %v28822_v17 }
 0x8d9   : > { %21109 = vmatmul.mubr.msk.f32.gmra.mrb[156].mxu1 %vm9974_vm5, %v28827_v63 }
 0x8da   : > { %21111 = vmatprep.mubr.msk.f32.mxu1 %vm9974_vm5, %v31952_v10 }
 0x8dd   : > { %21112 = vmatmul.mubr.msk.f32.gmra.mrb[158].mxu1 %vm9974_vm5, %v31952_v10 }
 0x8de   : > { %21116 = vmatprep.mubr.msk.f32.mxu1 %vm9974_vm5, %v28503_v36  ;;  %v31955_v36 = vld [vmem:[#allocation207_spill] sm:$0xff] }
 0x8e1   : > { %21117 = vmatmul.mubr.msk.f32.vlgmr.msra.gmra.mrb[128].mxu1 %vm9974_vm5, %v28510_v39  ;;  %v31956_v39 = vld [vmem:[#allocation208_spill] sm:$0xff] }
 0x8e2   : > { %21119 = vmatprep.mubr.msk.f32.mxu1 %vm9974_vm5, %v28516_v42  ;;  %21487 = vmatpush3.bf16.msra.mxu1 %v21484_v21  ;;  %v31957_v42 = vld [vmem:[#allocation209_spill] sm:$0xff] }
 0x8e5   : > { %21120 = vmatmul.mubr.msk.f32.gmra.mrb[130].mxu1 %vm9974_vm5, %v28523_v8  ;;  %v31958_v8 = vld [vmem:[#allocation8_spill] sm:$0xff] }
 0x8e6   : > { %21122 = vmatprep.mubr.msk.f32.mxu1 %vm9974_vm5, %v28529_v14  ;;  %v13182_v14 = vld [vmem:[%s29819_s5 + $0x8] sm:$0xff] }
 0x8e9   : > { %21123 = vmatmul.mubr.msk.f32.gmra.mrb[132].mxu1 %vm9974_vm5, %v28536_v23 }
 0x8ea   : > { %21125 = vmatprep.mubr.msk.f32.mxu1 %vm9974_vm5, %v28542_v51 }
 0x8ed   : > { %21126 = vmatmul.mubr.msk.f32.gmra.mrb[134].mxu1 %vm9974_vm5, %v28549_v27  ;;  %v29119_v27 = vld [vmem:[%s29818_s4] ss:$0 sm:$0xff] }
 0x8ee   : > { %21128 = vmatprep.mubr.msk.f32.mxu1 %vm9974_vm5, %v28555_v5 }
 0x8f1   : > { %21129 = vmatmul.mubr.msk.f32.gmra.mrb[136].mxu1 %vm9974_vm5, %v28562_v24 }
 0x8f2   : > { %21131 = vmatprep.mubr.msk.f32.mxu1 %vm9974_vm5, %v28568_v12 }
 0x8f5   : > { %21132 = vmatmul.mubr.msk.f32.gmra.mrb[138].mxu1 %vm9974_vm5, %v28575_v18 }
 0x8f6   : > { %21134 = vmatprep.mubr.msk.f32.mxu1 %vm9974_vm5, %v28581_v32 }
 0x8f9   : > { %21135 = vmatmul.mubr.msk.f32.gmra.mrb[140].mxu1 %vm9974_vm5, %v28588_v25 }
 0x8fa   : > { %21137 = vmatprep.mubr.msk.f32.mxu1 %vm9974_vm5, %v28594_v45 }
 0x8fd   : > { %21138 = vmatmul.mubr.msk.f32.gmra.mrb[142].mxu1 %vm9974_vm5, %v28601_v4 }
 0x8fe   : > { %21140 = vmatprep.mubr.msk.f32.mxu1 %vm9974_vm5, %v28607_v41 }
 0x901   : > { %21141 = vmatmul.mubr.msk.f32.gmra.mrb[144].mxu1 %vm9974_vm5, %v31919_v61 }
 0x902   : > { %21143 = vmatprep.mubr.msk.f32.mxu1 %vm9974_vm5, %v31953_v26 }
 0x905   : > { %21144 = vmatmul.mubr.msk.f32.gmra.mrb[146].mxu1 %vm9974_vm5, %v31921_v44 }
 0x906   : > { %21146 = vmatprep.mubr.msk.f32.mxu1 %vm9974_vm5, %v31954_v30 }
 0x909   : > { %21147 = vmatmul.mubr.msk.f32.gmra.mrb[148].mxu1 %vm9974_vm5, %v31955_v36  ;;  %v29151_v36 = vpack.c.bf16 %v17191_v20, %v17190_v50 }
 0x90a   : > { %21149 = vmatprep.mubr.msk.f32.mxu1 %vm9974_vm5, %v31956_v39 }
 0x90d   : > { %21150 = vmatmul.mubr.msk.f32.gmra.mrb[150].mxu1 %vm9974_vm5, %v28653_v38  ;;  %v13181_v38 = vld [vmem:[%s29819_s5] sm:$0xff] }
 0x90e   : > { %21152 = vmatprep.mubr.msk.f32.mxu1 %vm9974_vm5, %v31957_v42  ;;  %v29113_v23 = vpack.c.bf16 %v13182_v14, %v13181_v38 }
 0x910   : > { %21489 = vmatprep.subr.bf16.mxu1 %v29113_v23 }
 0x911   : > { %21153 = vmatmul.mubr.msk.f32.gmra.mrb[152].mxu1 %vm9974_vm5, %v28666_v22 }
 0x912   : > { %21155 = vmatprep.mubr.msk.f32.mxu1 %vm9974_vm5, %v28672_v53 }
 0x915   : > { %21156 = vmatmul.mubr.msk.f32.gmra.mrb[154].mxu1 %vm9974_vm5, %v28677_v40 }
 0x916   : > { %21158 = vmatprep.mubr.msk.f32.mxu1 %vm9974_vm5, %v28897_v35 }
 0x919   : > { %21159 = vmatmul.mubr.msk.f32.gmra.mrb[156].mxu1 %vm9974_vm5, %v28902_v19 }
 0x91a   : > { %21161 = vmatprep.mubr.msk.f32.mxu1 %vm9974_vm5, %v31958_v8 }
 0x91d   : > { %21162 = vmatmul.mubr.msk.f32.gmra.mrb[158].mxu1 %vm9974_vm5, %v31958_v8 }
 0x91e   : > { %21168 = vmatprep.mubr.msk.f32.mxu1 %vm13085_vm6, %v31952_v10 }
 0x9b4   : > { %v21118_v51 = vpop.f32.mrb[128].mxu1 }
 0x9b5   : > { %v12807_v5 = vpop.f32.mrb[129].mxu1  ;;  %v13006_v24 = vadd.f32 %v21118_v51, %v29119_v27 }
 0x9b6   : > { %v13005_v12 = vadd.f32 %v29119_v27, %v12807_v5 }
 0x9b7   : > { %v13038_v4 = vmax.f32 %v13006_v24, 0.0 }
 0x9b8   : > { %v21121_v18 = vpop.f32.mrb[130].mxu1  ;;  %v13037_v22 = vmax.f32 %v13005_v12, 0.0 }
 0x9b9   : > { %v13008_v32 = vadd.f32 %v21121_v18, %v29119_v27  ;;  %v12817_v25 = vpop.f32.mrb[131].mxu1 }
 0x9ba   : > { %v13007_v45 = vadd.f32 %v29119_v27, %v12817_v25 }
 0x9bb   : > { %v13040_v41 = vmax.f32 %v13008_v32, 0.0 }
 0x9bc   : > { %v13039_v19 = vmax.f32 %v13007_v45, 0.0  ;;  %v21124_v53 = vpop.f32.mrb[132].mxu1 }
 0x9bd   : > { %v13070_v40 = vmax.f32 %v13038_v4, %v13040_v41  ;;  %v12827_v63 = vpop.f32.mrb[133].mxu1  ;;  %v13010_v17 = vadd.f32 %v21124_v53, %v29119_v27 }
 0x9be   : > { %v13069_v0 = vmax.f32 %v13037_v22, %v13039_v19  ;;  %v13009_v61 = vadd.f32 %v29119_v27, %v12827_v63 }
 0x9bf   : > { %13087 = vst.msk [vmem:[#allocation3 + $0x8] sm:$0xff] %vm13085_vm6, %v13070_v40  ;;  %v13042_v11 = vmax.f32 %v13010_v17, 0.0 }
 0x9c0   : > { %13086 = vst.msk [vmem:[#allocation3] sm:$0xff] %vm13085_vm6, %v13069_v0  ;;  %v21127_v44 = vpop.f32.mrb[134].mxu1  ;;  %v13041_v15 = vmax.f32 %v13009_v61, 0.0 }
 0x9c1   : > { %v13012_v60 = vadd.f32 %v21127_v44, %v29119_v27  ;;  %v12837_v1 = vpop.f32.mrb[135].mxu1 }
 0x9c2   : > { %v13011_v35 = vadd.f32 %v29119_v27, %v12837_v1 }
 0x9c3   : > { %v13044_v49 = vmax.f32 %v13012_v60, 0.0 }
 0x9c4   : > { %v13043_v47 = vmax.f32 %v13011_v35, 0.0  ;;  %v21130_v55 = vpop.f32.mrb[136].mxu1 }
 0x9c5   : > { %v13072_v46 = vmax.f32 %v13042_v11, %v13044_v49  ;;  %v12847_v21 = vpop.f32.mrb[137].mxu1  ;;  %v13014_v57 = vadd.f32 %v21130_v55, %v29119_v27 }
 0x9c6   : > { %v13071_v34 = vmax.f32 %v13041_v15, %v13043_v47  ;;  %v13013_v31 = vadd.f32 %v29119_v27, %v12847_v21 }
 0x9c7   : > { %13089 = vst.msk [vmem:[#allocation3 + $0x18] sm:$0xff] %vm13085_vm6, %v13072_v46  ;;  %v13102_v59 = vld [vmem:[#allocation3] ss:$2 sm:$0xff]  ;;  %v13118_v54 = vld [vmem:[#allocation3 + $0x1] ss:$2 sm:$0xff]  ;;  %v13046_v16 = vmax.f32 %v13014_v57, 0.0 }
 0x9c8   : > { %13088 = vst.msk [vmem:[#allocation3 + $0x10] sm:$0xff] %vm13085_vm6, %v13071_v34  ;;  %v21133_v9 = vpop.f32.mrb[138].mxu1  ;;  %v13133_v28 = vmax.f32 %v13102_v59, %v13118_v54  ;;  %v13045_v58 = vmax.f32 %v13013_v31, 0.0 }
 0x9c9   : > { %v13016_v3 = vadd.f32 %v21133_v9, %v29119_v27  ;;  %v12857_v52 = vpop.f32.mrb[139].mxu1 }
 0x9ca   : > { %v13015_v2 = vadd.f32 %v29119_v27, %v12857_v52  ;;  %v13149_v7 = vrot.slane %v13133_v28, 7 }
 0x9cb   : > { %v13048_v33 = vmax.f32 %v13016_v3, 0.0 }
 0x9cc   : > { %v13047_v62 = vmax.f32 %v13015_v2, 0.0  ;;  %v21136_v43 = vpop.f32.mrb[140].mxu1  ;;  %v29144_v56 = vsel %vm586_vm2, 0.0, %v13149_v7  ;;  %v29147_v13 = vsel %vm586_vm2, %v13149_v7, 0.0 }
 0x9cd   : > { %v13074_v37 = vmax.f32 %v13046_v16, %v13048_v33  ;;  %v12867_v6 = vpop.f32.mrb[141].mxu1  ;;  %v13197_v29 = vrot.slane %v29144_v56, 1  ;;  %v13198_v26 = vrot.slane %v29147_v13, 1  ;;  %v13018_v39 = vadd.f32 %v21136_v43, %v29119_v27 }
 0x9ce   : > { %v13073_v30 = vmax.f32 %v13045_v58, %v13047_v62  ;;  %v13017_v51 = vadd.f32 %v29119_v27, %v12867_v6 }
 0x9cf   : > { %13091 = vst.msk [vmem:[#allocation3 + $0x28] sm:$0xff] %vm13085_vm6, %v13074_v37  ;;  %v29156_v42 = vsel %vm1003_vm4, %v13197_v29, %v13198_v26  ;;  %v13104_v38 = vld [vmem:[#allocation3 + $0x10] ss:$2 sm:$0xff]  ;;  %v13120_v14 = vld [vmem:[#allocation3 + $0x11] ss:$2 sm:$0xff]  ;;  %v13050_v45 = vmax.f32 %v13018_v39, 0.0 }
 0x9d0   : > { %13090 = vst.msk [vmem:[#allocation3 + $0x20] sm:$0xff] %vm13085_vm6, %v13073_v30  ;;  %v21139_v5 = vpop.f32.mrb[142].mxu1  ;;  %21169 = vmatmul.mubr.msk.f32.vlgmr.msra.gmra.mrb[160].mxu1 %vm13085_vm6, %v29156_v42  ;;  %v13134_v24 = vmax.f32 %v13104_v38, %v13120_v14  ;;  %v13049_v41 = vmax.f32 %v13017_v51, 0.0 }
 0x9d1   : > { %v13020_v12 = vadd.f32 %v21139_v5, %v29119_v27  ;;  %v12877_v18 = vpop.f32.mrb[143].mxu1  ;;  %21491 = vmatpush3.bf16.msra.mxu1 %v29113_v23 }
 0x9d2   : > { %v13019_v32 = vadd.f32 %v29119_v27, %v12877_v18  ;;  %v13150_v25 = vrot.slane %v13134_v24, 7  ;;  %21493 = vmatprep.subr.bf16.mxu1 %v29151_v36 }
 0x9d3   : > { %v13052_v4 = vmax.f32 %v13020_v12, 0.0 }
 0x9d4   : > { %v13051_v22 = vmax.f32 %v13019_v32, 0.0  ;;  %v21142_v19 = vpop.f32.mrb[144].mxu1  ;;  %v29167_v53 = vsel %vm586_vm2, 0.0, %v13150_v25  ;;  %v29170_v40 = vsel %vm586_vm2, %v13150_v25, 0.0 }
 0x9d5   : > { %v13076_v63 = vmax.f32 %v13050_v45, %v13052_v4  ;;  %v12887_v0 = vpop.f32.mrb[145].mxu1  ;;  %v13200_v23 = vrot.slane %v29167_v53, 1  ;;  %v13201_v17 = vrot.slane %v29170_v40, 1  ;;  %v13022_v44 = vadd.f32 %v21142_v19, %v29119_v27 }
 0x9d6   : > { %v13075_v61 = vmax.f32 %v13049_v41, %v13051_v22  ;;  %v13021_v11 = vadd.f32 %v29119_v27, %v12887_v0 }
 0x9d7   : > { %13093 = vst.msk [vmem:[#allocation3 + $0x38] sm:$0xff] %vm13085_vm6, %v13076_v63  ;;  %v29177_v60 = vsel %vm1003_vm4, %v13200_v23, %v13201_v17  ;;  %v13106_v1 = vld [vmem:[#allocation3 + $0x20] ss:$2 sm:$0xff]  ;;  %v13122_v35 = vld [vmem:[#allocation3 + $0x21] ss:$2 sm:$0xff]  ;;  %v13054_v34 = vmax.f32 %v13022_v44, 0.0 }
 0x9d8   : > { %13092 = vst.msk [vmem:[#allocation3 + $0x30] sm:$0xff] %vm13085_vm6, %v13075_v61  ;;  %v21145_v49 = vpop.f32.mrb[146].mxu1  ;;  %21171 = vmatprep.mubr.msk.f32.mxu1 %vm13085_vm6, %v29177_v60  ;;  %v13135_v15 = vmax.f32 %v13106_v1, %v13122_v35  ;;  %v13053_v59 = vmax.f32 %v13021_v11, 0.0 }
 0x9d9   : > { %v13024_v47 = vadd.f32 %v21145_v49, %v29119_v27  ;;  %v12897_v55 = vpop.f32.mrb[147].mxu1 }
 0x9da   : > { %v13023_v46 = vadd.f32 %v29119_v27, %v12897_v55  ;;  %v13151_v21 = vrot.slane %v13135_v15, 7 }
 0x9db   : > { %v13056_v57 = vmax.f32 %v13024_v47, 0.0 }
 0x9dc   : > { %v13055_v54 = vmax.f32 %v13023_v46, 0.0  ;;  %v21148_v31 = vpop.f32.mrb[148].mxu1  ;;  %v29186_v9 = vsel %vm586_vm2, 0.0, %v13151_v21  ;;  %v29189_v28 = vsel %vm586_vm2, %v13151_v21, 0.0 }
 0x9dd   : > { %v13078_v3 = vmax.f32 %v13054_v34, %v13056_v57  ;;  %v12907_v52 = vpop.f32.mrb[149].mxu1  ;;  %v13203_v2 = vrot.slane %v29186_v9, 1  ;;  %v13204_v7 = vrot.slane %v29189_v28, 1  ;;  %v13026_v33 = vadd.f32 %v21148_v31, %v29119_v27 }
 0x9de   : > { %v13077_v16 = vmax.f32 %v13053_v59, %v13055_v54  ;;  %v13025_v62 = vadd.f32 %v29119_v27, %v12907_v52 }
 0x9df   : > { %13095 = vst.msk [vmem:[#allocation3 + $0x48] sm:$0xff] %vm13085_vm6, %v13078_v3  ;;  %v29196_v50 = vsel %vm1003_vm4, %v13203_v2, %v13204_v7  ;;  %v13108_v20 = vld [vmem:[#allocation3 + $0x30] ss:$2 sm:$0xff]  ;;  %v13124_v58 = vld [vmem:[#allocation3 + $0x31] ss:$2 sm:$0xff]  ;;  %v13058_v39 = vmax.f32 %v13026_v33, 0.0 }
 0x9e0   : > { %13094 = vst.msk [vmem:[#allocation3 + $0x40] sm:$0xff] %vm13085_vm6, %v13077_v16  ;;  %v21151_v43 = vpop.f32.mrb[150].mxu1  ;;  %21172 = vmatmul.mubr.msk.f32.gmra.mrb[162].mxu1 %vm13085_vm6, %v29196_v50  ;;  %v13136_v37 = vmax.f32 %v13108_v20, %v13124_v58  ;;  %v13057_v14 = vmax.f32 %v13025_v62, 0.0 }
 0x9e1   : > { %v13028_v6 = vadd.f32 %v21151_v43, %v29119_v27  ;;  %v12917_v29 = vpop.f32.mrb[151].mxu1 }
 0x9e2   : > { %v13027_v26 = vadd.f32 %v29119_v27, %v12917_v29  ;;  %v13152_v30 = vrot.slane %v13136_v37, 7 }
 0x9e3   : > { %v13060_v38 = vmax.f32 %v13028_v6, 0.0 }
 0x9e4   : > { %v13059_v51 = vmax.f32 %v13027_v26, 0.0  ;;  %v21154_v5 = vpop.f32.mrb[152].mxu1  ;;  %v29205_v24 = vsel %vm586_vm2, 0.0, %v13152_v30  ;;  %v29208_v12 = vsel %vm586_vm2, %v13152_v30, 0.0 }
 0x9e5   : > { %v13080_v18 = vmax.f32 %v13058_v39, %v13060_v38  ;;  %v12927_v32 = vpop.f32.mrb[153].mxu1  ;;  %v13206_v25 = vrot.slane %v29205_v24, 1  ;;  %v13207_v45 = vrot.slane %v29208_v12, 1  ;;  %v13030_v41 = vadd.f32 %v21154_v5, %v29119_v27 }
 0x9e6   : > { %v13079_v4 = vmax.f32 %v13057_v14, %v13059_v51  ;;  %v13029_v0 = vadd.f32 %v29119_v27, %v12927_v32 }
 0x9e7   : > { %13097 = vst.msk [vmem:[#allocation3 + $0x58] sm:$0xff] %vm13085_vm6, %v13080_v18  ;;  %v29215_v22 = vsel %vm1003_vm4, %v13206_v25, %v13207_v45  ;;  %v13110_v19 = vld [vmem:[#allocation3 + $0x40] ss:$2 sm:$0xff]  ;;  %v13126_v63 = vld [vmem:[#allocation3 + $0x41] ss:$2 sm:$0xff]  ;;  %v13062_v11 = vmax.f32 %v13030_v41, 0.0 }
 0x9e8   : > { %13096 = vst.msk [vmem:[#allocation3 + $0x50] sm:$0xff] %vm13085_vm6, %v13079_v4  ;;  %v21157_v23 = vpop.f32.mrb[154].mxu1  ;;  %21174 = vmatprep.mubr.msk.f32.mxu1 %vm13085_vm6, %v29215_v22  ;;  %v13137_v17 = vmax.f32 %v13110_v19, %v13126_v63  ;;  %v13061_v15 = vmax.f32 %v13029_v0, 0.0 }
 0x9e9   : > { %v13032_v61 = vadd.f32 %v21157_v23, %v29119_v27  ;;  %v12937_v44 = vpop.f32.mrb[155].mxu1 }
 0x9ea   : > { %v13031_v1 = vadd.f32 %v29119_v27, %v12937_v44  ;;  %v13153_v35 = vrot.slane %v13137_v17, 7  ;;  %v17200_v17 = vld [vmem:[%s29819_s5 + $0x30] sm:$0xff] }
 0x9eb   : > { %v13064_v49 = vmax.f32 %v13032_v61, 0.0  ;;  %v17201_v61 = vld [vmem:[%s29819_s5 + $0x38] sm:$0xff] }
 0x9ec   : > { %v13063_v47 = vmax.f32 %v13031_v1, 0.0  ;;  %v21160_v55 = vpop.f32.mrb[156].mxu1  ;;  %v29224_v46 = vsel %vm586_vm2, 0.0, %v13153_v35  ;;  %v29227_v21 = vsel %vm586_vm2, %v13153_v35, 0.0  ;;  %v21496_v44 = vpack.c.bf16 %v17201_v61, %v17200_v17  ;;  %v17210_v35 = vld [vmem:[%s29819_s5 + $0x40] sm:$0xff]  ;;  %v17250_v17 = vld [vmem:[%s29819_s5 + $0x88] sm:$0xff] }
 0x9ed   : > { %v13082_v34 = vmax.f32 %v13062_v11, %v13064_v49  ;;  %v12947_v57 = vpop.f32.mrb[157].mxu1  ;;  %v13209_v59 = vrot.slane %v29224_v46, 1  ;;  %v13210_v54 = vrot.slane %v29227_v21, 1  ;;  %v13034_v3 = vadd.f32 %v21160_v55, %v29119_v27  ;;  %v17211_v11 = vld [vmem:[%s29819_s5 + $0x48] sm:$0xff] }
 0x9ee   : > { %v13081_v31 = vmax.f32 %v13061_v15, %v13063_v47  ;;  %v13033_v16 = vadd.f32 %v29119_v27, %v12947_v57  ;;  %v13463_v1 = vrot.slane %v29144_v56, 2  ;;  %v13466_v49 = vrot.slane %v29167_v53, 2 }
 0x9ef   : > { %13099 = vst.msk [vmem:[#allocation3 + $0x68] sm:$0xff] %vm13085_vm6, %v13082_v34  ;;  %v29234_v52 = vsel %vm1003_vm4, %v13209_v59, %v13210_v54  ;;  %v13112_v2 = vld [vmem:[#allocation3 + $0x50] ss:$2 sm:$0xff]  ;;  %v13128_v7 = vld [vmem:[#allocation3 + $0x51] ss:$2 sm:$0xff]  ;;  %v13066_v6 = vmax.f32 %v13034_v3, 0.0  ;;  %v21500_v47 = vpack.c.bf16 %v17211_v11, %v17210_v35 }
 0x9f0   : > { %13098 = vst.msk [vmem:[#allocation3 + $0x60] sm:$0xff] %vm13085_vm6, %v13081_v31  ;;  %v21163_v33 = vpop.f32.mrb[158].mxu1  ;;  %21175 = vmatmul.mubr.msk.f32.gmra.mrb[164].mxu1 %vm13085_vm6, %v29234_v52  ;;  %v13138_v20 = vmax.f32 %v13112_v2, %v13128_v7  ;;  %v13065_v26 = vmax.f32 %v13033_v16, 0.0  ;;  %v13467_v15 = vrot.slane %v29170_v40, 2  ;;  %v13469_v55 = vrot.slane %v29186_v9, 2 }
 0x9f1   : > { %v13036_v58 = vadd.f32 %v21163_v33, %v29119_v27  ;;  %v12957_v62 = vpop.f32.mrb[159].mxu1  ;;  %v13470_v34 = vrot.slane %v29189_v28, 2  ;;  %v13472_v59 = vrot.slane %v29205_v24, 2  ;;  %v13473_v40 = vrot.slane %v29208_v12, 2 }
 0x9f2   : > { %v13035_v43 = vadd.f32 %v29119_v27, %v12957_v62  ;;  %v13154_v37 = vrot.slane %v13138_v20, 7  ;;  %v29309_v57 = vsel %vm3205_vm3, %v13466_v49, %v13467_v15  ;;  %v13475_v28 = vrot.slane %v29224_v46, 2  ;;  %v17221_v62 = vld [vmem:[%s29819_s5 + $0x58] sm:$0xff] }
 0x9f3   : > { %v13068_v29 = vmax.f32 %v13036_v58, 0.0  ;;  %v29316_v54 = vsel %vm3205_vm3, %v13469_v55, %v13470_v34  ;;  %v13476_v31 = vrot.slane %v29227_v21, 2  ;;  %v29323_v3 = vsel %vm3205_vm3, %v13472_v59, %v13473_v40  ;;  %v17220_v58 = vld [vmem:[%s29819_s5 + $0x50] sm:$0xff] }
 0x9f4   : > { %v13067_v30 = vmax.f32 %v13035_v43, 0.0  ;;  %v29243_v39 = vsel %vm586_vm2, 0.0, %v13154_v37  ;;  %v29246_v38 = vsel %vm586_vm2, %v13154_v37, 0.0  ;;  %v21504_v43 = vpack.c.bf16 %v17221_v62, %v17220_v58 }
 0x9f5   : > { %v13084_v14 = vmax.f32 %v13066_v6, %v13068_v29  ;;  %v13212_v51 = vrot.slane %v29243_v39, 1  ;;  %v13213_v5 = vrot.slane %v29246_v38, 1  ;;  %v13478_v12 = vrot.slane %v29243_v39, 2 }
 0x9f6   : > { %v13083_v18 = vmax.f32 %v13065_v26, %v13067_v30  ;;  %v13479_v2 = vrot.slane %v29246_v38, 2  ;;  %v29330_v7 = vsel %vm3205_vm3, %v13475_v28, %v13476_v31  ;;  %v17230_v30 = vld [vmem:[%s29819_s5 + $0x60] sm:$0xff]  ;;  %v17231_v38 = vld [vmem:[%s29819_s5 + $0x68] sm:$0xff] }
 0x9f7   : > { %13101 = vst.msk [vmem:[#allocation3 + $0x78] sm:$0xff] %vm13085_vm6, %v13084_v14  ;;  %v29252_v27 = vsel %vm1003_vm4, %v13212_v51, %v13213_v5  ;;  %v13114_v32 = vld [vmem:[#allocation3 + $0x60] ss:$2 sm:$0xff]  ;;  %v13130_v25 = vld [vmem:[#allocation3 + $0x61] ss:$2 sm:$0xff]  ;;  %v21508_v14 = vpack.c.bf16 %v17231_v38, %v17230_v30 }
 0x9f8   : > { %13100 = vst.msk [vmem:[#allocation3 + $0x70] sm:$0xff] %vm13085_vm6, %v13083_v18  ;;  %21177 = vmatprep.mubr.msk.f32.mxu1 %vm13085_vm6, %v29252_v27  ;;  %v13139_v45 = vmax.f32 %v13114_v32, %v13130_v25  ;;  %v29336_v21 = vsel %vm3205_vm3, %v13478_v12, %v13479_v2  ;;  %v17239_v32 = vld [vmem:[%s29819_s5 + $0x70] sm:$0xff]  ;;  %v17240_v25 = vld [vmem:[%s29819_s5 + $0x78] sm:$0xff] }
 0x9fa   : > { %v13155_v4 = vrot.slane %v13139_v45, 7  ;;  %v21512_v45 = vpack.c.bf16 %v17240_v25, %v17239_v32 }
 0x9fc   : > { %v29258_v41 = vsel %vm586_vm2, 0.0, %v13155_v4  ;;  %v13179_v19 = vsel %vm586_vm2, %v13155_v4, 0.0 }
 0x9fd   : > { %v13215_v63 = vrot.slane %v29258_v41, 1  ;;  %v13216_v0 = vrot.slane %v13179_v19, 1  ;;  %v13481_v16 = vrot.slane %v29258_v41, 2  ;;  %v13482_v33 = vrot.slane %v13179_v19, 2 }
 0x9ff   : > { %v29263_v23 = vsel %vm1003_vm4, %v13215_v63, %v13216_v0  ;;  %v29341_v20 = vsel %vm3205_vm3, %v13481_v16, %v13482_v33  ;;  %v13116_v37 = vld [vmem:[#allocation3 + $0x70] ss:$2 sm:$0xff]  ;;  %v13132_v6 = vld [vmem:[#allocation3 + $0x71] ss:$2 sm:$0xff]  ;;  %v17249_v0 = vld [vmem:[%s29819_s5 + $0x80] sm:$0xff] }
 0xa00   : > { %21178 = vmatmul.mubr.msk.f32.gmra.mrb[166].mxu1 %vm13085_vm6, %v29263_v23  ;;  %v13140_v29 = vmax.f32 %v13116_v37, %v13132_v6  ;;  %v21516_v61 = vpack.c.bf16 %v17250_v17, %v17249_v0  ;;  %v17261_v16 = vld [vmem:[%s29821_s7 + $0x20] sm:$0xff]  ;;  %v17262_v33 = vld [vmem:[%s29821_s7 + $0x28] sm:$0xff]  ;;  %v17263_v37 = vld [vmem:[%s29821_s7 + $0x30] sm:$0xff] }
 0xa01   : > { %21184 = vmatprep.mubr.f32.mxu1 %v31927_v48  ;;  %v21527_v62 = vpack.c.bf16 %v17262_v33, %v17261_v16  ;;  %v17264_v6 = vld [vmem:[%s29821_s7 + $0x38] sm:$0xff]  ;;  %v17277_v0 = vld [vmem:[%s29821_s7 + $0x88] sm:$0xff] }
 0xa02   : > { %v13156_v26 = vrot.slane %v13140_v29, 7  ;;  %v21530_v29 = vpack.c.bf16 %v17264_v6, %v17263_v37  ;;  %v17307_v37 = vld [vmem:[%s29821_s7 + $0x148] sm:$0xff] }
 0xa04   : > { %21185 = vmatmul.mubr.msk.f32.vlgmr.msra.gmra.mrb[160].mxu1 %vm13085_vm6, %v29144_v56  ;;  %v13180_v51 = vsel %vm586_vm2, %v13156_v26, 0.0 }
 0xa05   : > { %21495 = vmatpush3.bf16.msra.mxu1 %v29151_v36  ;;  %21187 = vmatprep.mubr.msk.f32.mxu1 %vm13085_vm6, %v29167_v53  ;;  %v13464_v36 = vrot.slane %v29147_v13, 2  ;;  %v13737_v18 = vrot.slane %v13180_v51, 1  ;;  %v13858_v19 = vrot.slane %v13180_v51, 2  ;;  %v17269_v51 = vld [vmem:[%s29821_s7 + $0x58] sm:$0xff] }
 0xa06   : > { %21497 = vmatprep.subr.bf16.mxu1 %v21496_v44 }
 0xa07   : > { %v29302_v13 = vsel %vm3205_vm3, %v13463_v1, %v13464_v36 }
 0xa08   : > { %21188 = vmatmul.mubr.msk.f32.gmra.mrb[162].mxu1 %vm13085_vm6, %v29186_v9 }
 0xa09   : > { %21190 = vmatprep.mubr.msk.f32.mxu1 %vm13085_vm6, %v29205_v24 }
 0xa0c   : > { %21191 = vmatmul.mubr.msk.f32.gmra.mrb[164].mxu1 %vm13085_vm6, %v29224_v46 }
 0xa0d   : > { %21193 = vmatprep.mubr.msk.f32.mxu1 %vm13085_vm6, %v29243_v39 }
 0xa10   : > { %21194 = vmatmul.mubr.msk.f32.gmra.mrb[166].mxu1 %vm13085_vm6, %v29258_v41 }
 0xa11   : > { %21200 = vmatprep.mubr.msk.f32.mxu1 %vm13085_vm6, %v31958_v8 }
 0xa14   : > { %21201 = vmatmul.mubr.msk.f32.vlgmr.msra.gmra.mrb[160].mxu1 %vm13085_vm6, %v29302_v13 }
 0xa15   : > { %21499 = vmatpush3.bf16.msra.mxu1 %v21496_v44  ;;  %21203 = vmatprep.mubr.msk.f32.mxu1 %vm13085_vm6, %v29309_v57 }
 0xa16   : > { %21501 = vmatprep.subr.bf16.mxu1 %v21500_v47 }
 0xa18   : > { %21204 = vmatmul.mubr.msk.f32.gmra.mrb[162].mxu1 %vm13085_vm6, %v29316_v54 }
 0xa19   : > { %21206 = vmatprep.mubr.msk.f32.mxu1 %vm13085_vm6, %v29323_v3 }
 0xa1c   : > { %21207 = vmatmul.mubr.msk.f32.gmra.mrb[164].mxu1 %vm13085_vm6, %v29330_v7 }
 0xa1d   : > { %21209 = vmatprep.mubr.msk.f32.mxu1 %vm13085_vm6, %v29336_v21 }
 0xa20   : > { %21210 = vmatmul.mubr.msk.f32.gmra.mrb[166].mxu1 %vm13085_vm6, %v29341_v20 }
 0xa21   : > { %21216 = vmatprep.mubr.msk.f32.mxu1 %vm13085_vm6, %v29144_v56  ;;  %v13172_v56 = vsel %vm586_vm2, 0.0, %v13156_v26  ;;  %v17266_v26 = vld [vmem:[%s29821_s7 + $0x40] sm:$0xff] }
 0xa22   : > { %v13736_v5 = vrot.slane %v13172_v56, 1  ;;  %v13857_v4 = vrot.slane %v13172_v56, 2 }
 0xa24   : > { %21217 = vmatmul.mubr.msk.f32.vlgmr.msra.gmra.mrb[160].mxu1 %vm13085_vm6, %v29167_v53  ;;  %v13859_v63 = vsel %vm3205_vm3, %v13857_v4, %v13858_v19  ;;  %v17274_v4 = vld [vmem:[%s29821_s7 + $0x78] sm:$0xff] }
 0xa25   : > { %21503 = vmatpush3.bf16.msra.mxu1 %v21500_v47  ;;  %21219 = vmatprep.mubr.msk.f32.mxu1 %vm13085_vm6, %v29186_v9 }
 0xa26   : > { %21505 = vmatprep.subr.bf16.mxu1 %v21504_v43 }
 0xa28   : > { %21220 = vmatmul.mubr.msk.f32.gmra.mrb[162].mxu1 %vm13085_vm6, %v29205_v24 }
 0xa29   : > { %21222 = vmatprep.mubr.msk.f32.mxu1 %vm13085_vm6, %v29224_v46 }
 0xa2c   : > { %21223 = vmatmul.mubr.msk.f32.gmra.mrb[164].mxu1 %vm13085_vm6, %v29243_v39 }
 0xa2d   : > { %21225 = vmatprep.mubr.msk.f32.mxu1 %vm13085_vm6, %v29258_v41 }
 0xa30   : > { %21226 = vmatmul.mubr.msk.f32.gmra.mrb[166].mxu1 %vm13085_vm6, %v13172_v56 }
 0xa31   : > { %21232 = vmatprep.mubr.msk.f32.mxu1 %vm13085_vm6, %v29156_v42  ;;  %v13738_v42 = vsel %vm1003_vm4, %v13736_v5, %v13737_v18  ;;  %v17271_v18 = vld [vmem:[%s29821_s7 + $0x60] sm:$0xff] }
 0xa34   : > { %21233 = vmatmul.mubr.msk.f32.vlgmr.msra.gmra.mrb[160].mxu1 %vm13085_vm6, %v29177_v60 }
 0xa35   : > { %21507 = vmatpush3.bf16.msra.mxu1 %v21504_v43  ;;  %21235 = vmatprep.mubr.msk.f32.mxu1 %vm13085_vm6, %v29196_v50 }
 0xa36   : > { %21509 = vmatprep.subr.bf16.mxu1 %v21508_v14 }
 0xa38   : > { %21236 = vmatmul.mubr.msk.f32.gmra.mrb[162].mxu1 %vm13085_vm6, %v29215_v22 }
 0xa39   : > { %21238 = vmatprep.mubr.msk.f32.mxu1 %vm13085_vm6, %v29234_v52 }
 0xa3c   : > { %21239 = vmatmul.mubr.msk.f32.gmra.mrb[164].mxu1 %vm13085_vm6, %v29252_v27 }
 0xa3d   : > { %21241 = vmatprep.mubr.msk.f32.mxu1 %vm13085_vm6, %v29263_v23 }
 0xa40   : > { %21242 = vmatmul.mubr.msk.f32.gmra.mrb[166].mxu1 %vm13085_vm6, %v13738_v42 }
 0xa41   : > { %21248 = vmatprep.mubr.msk.f32.mxu1 %vm13085_vm6, %v29302_v13 }
 0xa44   : > { %21249 = vmatmul.mubr.msk.f32.vlgmr.msra.gmra.mrb[160].mxu1 %vm13085_vm6, %v29309_v57 }
 0xa45   : > { %21511 = vmatpush3.bf16.msra.mxu1 %v21508_v14  ;;  %21251 = vmatprep.mubr.msk.f32.mxu1 %vm13085_vm6, %v29316_v54  ;;  %v17268_v14 = vld [vmem:[%s29821_s7 + $0x50] sm:$0xff] }
 0xa46   : > { %21513 = vmatprep.subr.bf16.mxu1 %v21512_v45  ;;  %v21536_v5 = vpack.c.bf16 %v17269_v51, %v17268_v14  ;;  %v17312_v14 = vld [vmem:[%s29821_s7 + $0x168] sm:$0xff] }
 0xa48   : > { %21252 = vmatmul.mubr.msk.f32.gmra.mrb[162].mxu1 %vm13085_vm6, %v29323_v3 }
 0xa49   : > { %21254 = vmatprep.mubr.msk.f32.mxu1 %vm13085_vm6, %v29330_v7 }
 0xa4c   : > { %21255 = vmatmul.mubr.msk.f32.gmra.mrb[164].mxu1 %vm13085_vm6, %v29336_v21 }
 0xa4d   : > { %21257 = vmatprep.mubr.msk.f32.mxu1 %vm13085_vm6, %v29341_v20 }
 0xa50   : > { %21258 = vmatmul.mubr.msk.f32.gmra.mrb[166].mxu1 %vm13085_vm6, %v13859_v63 }
 0xa51   : > { %21264 = vmatprep.mubr.msk.f32.mxu1 %vm13085_vm6, %v29167_v53  ;;  %v14369_v53 = vld [vmem:[%s29821_s7 + $0x8] sm:$0xff] }
 0xa54   : > { %21265 = vmatmul.mubr.msk.f32.vlgmr.msra.gmra.mrb[160].mxu1 %vm13085_vm6, %v29186_v9 }
 0xa55   : > { %21515 = vmatpush3.bf16.msra.mxu1 %v21512_v45  ;;  %21267 = vmatprep.mubr.msk.f32.mxu1 %vm13085_vm6, %v29205_v24  ;;  %v17273_v45 = vld [vmem:[%s29821_s7 + $0x70] sm:$0xff] }
 0xa56   : > { %21517 = vmatprep.subr.bf16.mxu1 %v21516_v61  ;;  %v21542_v19 = vpack.c.bf16 %v17274_v4, %v17273_v45  ;;  %v17317_v45 = vld [vmem:[%s29821_s7 + $0x188] sm:$0xff] }
 0xa58   : > { %21268 = vmatmul.mubr.msk.f32.gmra.mrb[162].mxu1 %vm13085_vm6, %v29224_v46 }
 0xa59   : > { %21270 = vmatprep.mubr.msk.f32.mxu1 %vm13085_vm6, %v29243_v39 }
 0xa5c   : > { %21271 = vmatmul.mubr.msk.f32.gmra.mrb[164].mxu1 %vm13085_vm6, %v29258_v41 }
 0xa5d   : > { %21273 = vmatprep.mubr.msk.f32.mxu1 %vm13085_vm6, %v13172_v56  ;;  %v17267_v56 = vld [vmem:[%s29821_s7 + $0x48] sm:$0xff] }
 0xa5e   : > { %v21533_v30 = vpack.c.bf16 %v17267_v56, %v17266_v26  ;;  %v17308_v26 = vld [vmem:[%s29821_s7 + $0x150] sm:$0xff]  ;;  %v17309_v56 = vld [vmem:[%s29821_s7 + $0x158] sm:$0xff] }
 0xa60   : > { %21274 = vmatmul.mubr.f32.gmra.mrb[166].mxu1 %v31927_v48 }
 0xa61   : > { %21280 = vmatprep.mubr.msk.f32.mxu1 %vm13085_vm6, %v29177_v60  ;;  %v23106_v60 = vmov 0.0|0.0  }
 0xa64   : > { %21281 = vmatmul.mubr.msk.f32.vlgmr.msra.gmra.mrb[160].mxu1 %vm13085_vm6, %v29196_v50  ;;  %v14370_v50 = vld [vmem:[%s29821_s7 + $0x10] sm:$0xff] }
 0xa65   : > { %21519 = vmatpush3.bf16.msra.mxu1 %v21516_v61  ;;  %21283 = vmatprep.mubr.msk.f32.mxu1 %vm13085_vm6, %v29215_v22  ;;  %v17259_v22 = vld [vmem:[%s29820_s6] ss:$0 sm:$0xff] }
 0xa66   : > { %21520 = vmatprep.subr.bf16.mxu1 %v23106_v60 }
 0xa68   : > { %21284 = vmatmul.mubr.msk.f32.gmra.mrb[162].mxu1 %vm13085_vm6, %v29234_v52 }
 0xa69   : > { %21286 = vmatprep.mubr.msk.f32.mxu1 %vm13085_vm6, %v29252_v27 }
 0xa6c   : > { %21287 = vmatmul.mubr.msk.f32.gmra.mrb[164].mxu1 %vm13085_vm6, %v29263_v23 }
 0xa6d   : > { %21289 = vmatprep.mubr.msk.f32.mxu1 %vm13085_vm6, %v13738_v42  ;;  %v17272_v42 = vld [vmem:[%s29821_s7 + $0x68] sm:$0xff] }
 0xa6e   : > { %v21539_v32 = vpack.c.bf16 %v17272_v42, %v17271_v18  ;;  %v17313_v18 = vld [vmem:[%s29821_s7 + $0x170] sm:$0xff]  ;;  %v17314_v42 = vld [vmem:[%s29821_s7 + $0x178] sm:$0xff] }
 0xa70   : > { %21290 = vmatmul.mubr.msk.f32.gmra.mrb[166].mxu1 %vm13085_vm6, %v31952_v10  ;;  %v14368_v10 = vld [vmem:[%s29821_s7] sm:$0xff] }
 0xa71   : > { %21296 = vmatprep.mubr.msk.f32.mxu1 %vm13085_vm6, %v29309_v57  ;;  %v21521_v9 = vpack.c.bf16 %v14369_v53, %v14368_v10  ;;  %v17278_v10 = vld [vmem:[%s29821_s7 + $0x90] sm:$0xff]  ;;  %v17279_v53 = vld [vmem:[%s29821_s7 + $0x98] sm:$0xff] }
 0xa74   : > { %21297 = vmatmul.mubr.msk.f32.vlgmr.msra.gmra.mrb[160].mxu1 %vm13085_vm6, %v29316_v54 }
 0xa75   : > { %21299 = vmatprep.mubr.msk.f32.mxu1 %vm13085_vm6, %v29323_v3  ;;  %21522 = vmatpush3.bf16.msra.mxu1 %v21521_v9  ;;  %v21548_v9 = vpack.c.bf16 %v17279_v53, %v17278_v10  ;;  %v17322_v10 = vld [vmem:[%s29821_s7 + $0x1a8] sm:$0xff] }
 0xa76   : > { %21523 = vmatprep.subr.bf16.mxu1 %v23106_v60 }
 0xa78   : > { %21300 = vmatmul.mubr.msk.f32.gmra.mrb[162].mxu1 %vm13085_vm6, %v29330_v7 }
 0xa79   : > { %21302 = vmatprep.mubr.msk.f32.mxu1 %vm13085_vm6, %v29336_v21 }
 0xa7c   : > { %21303 = vmatmul.mubr.msk.f32.gmra.mrb[164].mxu1 %vm13085_vm6, %v29341_v20 }
 0xa7d   : > { %21305 = vmatprep.mubr.msk.f32.mxu1 %vm13085_vm6, %v13859_v63  ;;  %v17276_v63 = vld [vmem:[%s29821_s7 + $0x80] sm:$0xff] }
 0xa7e   : > { %v21545_v17 = vpack.c.bf16 %v17277_v0, %v17276_v63  ;;  %v17318_v63 = vld [vmem:[%s29821_s7 + $0x190] sm:$0xff]  ;;  %v17319_v0 = vld [vmem:[%s29821_s7 + $0x198] sm:$0xff] }
 0xa80   : > { %21306 = vmatmul.mubr.msk.f32.gmra.mrb[166].mxu1 %vm13085_vm6, %v31958_v8  ;;  %v14371_v8 = vld [vmem:[%s29821_s7 + $0x18] sm:$0xff] }
 0xa81   : > { %v21524_v24 = vpack.c.bf16 %v14371_v8, %v14370_v50  ;;  %21316 = vmatprep.mubr.msk.f32.mxu1 %vm23107_vm7, %v31927_v48  ;;  %v17281_v50 = vld [vmem:[%s29821_s7 + $0xa0] sm:$0xff]  ;;  %v17282_v8 = vld [vmem:[%s29821_s7 + $0xa8] sm:$0xff] }
 0xa83   : > { %21525 = vmatpush3.bf16.msra.mxu1 %v21524_v24  ;;  %v21551_v24 = vpack.c.bf16 %v17282_v8, %v17281_v50  ;;  %v17323_v50 = vld [vmem:[%s29821_s7 + $0x1b0] sm:$0xff]  ;;  %v17324_v8 = vld [vmem:[%s29821_s7 + $0x1b8] sm:$0xff] }
 0xa84   : > { %21526 = vmatprep.subr.bf16.mxu1 %v23106_v60 }
 0xb47   : > { %v21298_v46 = vpop.f32.mrb[160].mxu1 }
 0xb48   : > { %v14334_v52 = vadd.f32 %v21298_v46, %v17259_v22  ;;  %v14279_v39 = vpop.f32.mrb[161].mxu1  ;;  %v17283_v46 = vld [vmem:[%s29821_s7 + $0xb0] sm:$0xff] }
 0xb49   : > { %v14333_v27 = vadd.f32 %v17259_v22, %v14279_v39 }
 0xb4a   : > { %v14342_v41 = vmax.f32 %v14334_v52, 0.0  ;;  %v17284_v52 = vld [vmem:[%s29821_s7 + $0xb8] sm:$0xff] }
 0xb4b   : > { %v14341_v23 = vmax.f32 %v14333_v27, 0.0  ;;  %v21301_v44 = vpop.f32.mrb[162].mxu1  ;;  %v21554_v39 = vpack.c.bf16 %v17284_v52, %v17283_v46  ;;  %v17286_v27 = vld [vmem:[%s29821_s7 + $0xc0] sm:$0xff]  ;;  %v17327_v46 = vld [vmem:[%s29821_s7 + $0x1c8] sm:$0xff] }
 0xb4c   : > { %v14336_v1 = vadd.f32 %v21301_v44, %v17259_v22  ;;  %v14289_v36 = vpop.f32.mrb[163].mxu1 }
 0xb4d   : > { %v14349_v35 = vmax.f32 %v14341_v23, %v14342_v41  ;;  %v14335_v11 = vadd.f32 %v17259_v22, %v14289_v36  ;;  %v17287_v41 = vld [vmem:[%s29821_s7 + $0xc8] sm:$0xff]  ;;  %v17289_v36 = vld [vmem:[%s29821_s7 + $0xd8] sm:$0xff] }
 0xb4e   : > { %v14344_v49 = vmax.f32 %v14336_v1, 0.0  ;;  %v21557_v23 = vpack.c.bf16 %v17287_v41, %v17286_v27  ;;  %v17288_v1 = vld [vmem:[%s29821_s7 + $0xd0] sm:$0xff]  ;;  %v17329_v41 = vld [vmem:[%s29821_s7 + $0x1d8] sm:$0xff] }
 0xb4f   : > { %14354 = vst.msk [vmem:[#allocation4] sm:$0xff] %vm14353_vm8, %v14349_v35  ;;  %v14343_v15 = vmax.f32 %v14335_v11, 0.0  ;;  %v21304_v47 = vpop.f32.mrb[164].mxu1  ;;  %v21560_v35 = vpack.c.bf16 %v17289_v36, %v17288_v1  ;;  %v17291_v11 = vld [vmem:[%s29821_s7 + $0xe0] sm:$0xff]  ;;  %v17328_v27 = vld [vmem:[%s29821_s7 + $0x1d0] sm:$0xff]  ;;  %v17332_v1 = vld [vmem:[%s29821_s7 + $0x1e8] sm:$0xff] }
 0xb50   : > { %v14338_v13 = vadd.f32 %v21304_v47, %v17259_v22  ;;  %v14299_v55 = vpop.f32.mrb[165].mxu1 }
 0xb51   : > { %v14350_v34 = vmax.f32 %v14343_v15, %v14344_v49  ;;  %v14337_v57 = vadd.f32 %v17259_v22, %v14299_v55  ;;  %v17292_v49 = vld [vmem:[%s29821_s7 + $0xe8] sm:$0xff]  ;;  %v17294_v55 = vld [vmem:[%s29821_s7 + $0xf8] sm:$0xff] }
 0xb52   : > { %v14346_v59 = vmax.f32 %v14338_v13, 0.0  ;;  %v21563_v15 = vpack.c.bf16 %v17292_v49, %v17291_v11  ;;  %v17293_v13 = vld [vmem:[%s29821_s7 + $0xf0] sm:$0xff]  ;;  %v17334_v49 = vld [vmem:[%s29821_s7 + $0x1f8] sm:$0xff] }
 0xb53   : > { %14355 = vst.msk [vmem:[#allocation4 + $0x8] sm:$0xff] %vm14353_vm8, %v14350_v34  ;;  %v14345_v40 = vmax.f32 %v14337_v57, 0.0  ;;  %v21307_v54 = vpop.f32.mrb[166].mxu1  ;;  %v21566_v34 = vpack.c.bf16 %v17294_v55, %v17293_v13  ;;  %v17296_v57 = vld [vmem:[%s29821_s7 + $0x100] sm:$0xff]  ;;  %v17333_v11 = vld [vmem:[%s29821_s7 + $0x1f0] sm:$0xff] }
 0xb54   : > { %v14340_v28 = vadd.f32 %v21307_v54, %v17259_v22  ;;  %v14309_v31 = vpop.f32.mrb[167].mxu1  ;;  %v14367_v13 = vld [vmem:[%s29822_s8] sm:$0x1] }
 0xb55   : > { %v14351_v3 = vmax.f32 %v14345_v40, %v14346_v59  ;;  %v14339_v12 = vadd.f32 %v17259_v22, %v14309_v31  ;;  %v17297_v59 = vld [vmem:[%s29821_s7 + $0x108] sm:$0xff]  ;;  %v17299_v31 = vld [vmem:[%s29821_s7 + $0x118] sm:$0xff] }
 0xb56   : > { %v14348_v2 = vmax.f32 %v14340_v28, 0.0  ;;  %v21569_v40 = vpack.c.bf16 %v17297_v59, %v17296_v57  ;;  %v17298_v28 = vld [vmem:[%s29821_s7 + $0x110] sm:$0xff] }
 0xb57   : > { %14356 = vst.msk [vmem:[#allocation4 + $0x10] sm:$0xff] %vm14353_vm8, %v14351_v3  ;;  %v14347_v7 = vmax.f32 %v14339_v12, 0.0  ;;  %v21572_v3 = vpack.c.bf16 %v17299_v31, %v17298_v28  ;;  %v17301_v12 = vld [vmem:[%s29821_s7 + $0x120] sm:$0xff] }
 0xb59   : > { %v14352_v21 = vmax.f32 %v14347_v7, %v14348_v2  ;;  %v17302_v2 = vld [vmem:[%s29821_s7 + $0x128] sm:$0xff] }
 0xb5a   : > { %v14358_v20 = vld [vmem:[#allocation4] ss:$2 sm:$0xff]  ;;  %v14362_v58 = vld [vmem:[#allocation4 + $0x1] ss:$2 sm:$0xff]  ;;  %v21575_v33 = vpack.c.bf16 %v17302_v2, %v17301_v12 }
 0xb5b   : > { %14357 = vst.msk [vmem:[#allocation4 + $0x18] sm:$0xff] %vm14353_vm8, %v14352_v21  ;;  %v29492_v43 = vmax.f32 %v14358_v20, %v14362_v58  ;;  %v17303_v20 = vld [vmem:[%s29821_s7 + $0x130] sm:$0xff]  ;;  %v17304_v58 = vld [vmem:[%s29821_s7 + $0x138] sm:$0xff] }
 0xb5d   : > { %21317 = vmatmul.mubr.msk.f32.vlgmr.msra.gmra.mrb[168].mxu1 %vm14353_vm8, %v29492_v43  ;;  %v14451_v38 = vrot.slane %v29492_v43, 1  ;;  %v14530_v25 = vrot.slane %v29492_v43, 2  ;;  %v14609_v61 = vrot.slane %v29492_v43, 3  ;;  %v14688_v22 = vrot.slane %v29492_v43, 4 }
 0xb5e   : > { %21528 = vmatpush3.bf16.msra.mxu1 %v21527_v62  ;;  %21327 = vmatprep.mubr.msk.f32.mxu1 %vm23107_vm7, %v31927_v48  ;;  %v14767_v44 = vrot.slane %v29492_v43, 5  ;;  %v14846_v47 = vrot.slane %v29492_v43, 6  ;;  %v14925_v54 = vrot.slane %v29492_v43, 7  ;;  %v21578_v62 = vpack.c.bf16 %v17304_v58, %v17303_v20  ;;  %v17306_v43 = vld [vmem:[%s29821_s7 + $0x140] sm:$0xff] }
 0xb5f   : > { %21529 = vmatprep.subr.bf16.mxu1 %v23106_v60  ;;  %v21581_v6 = vpack.c.bf16 %v17307_v37, %v17306_v43 }
 0xb62   : > { %21531 = vmatpush3.bf16.msra.mxu1 %v21530_v29  ;;  %v14360_v7 = vld [vmem:[#allocation4 + $0x10] ss:$2 sm:$0xff]  ;;  %v14364_v16 = vld [vmem:[#allocation4 + $0x11] ss:$2 sm:$0xff] }
 0xb63   : > { %21532 = vmatprep.subr.bf16.mxu1 %v23106_v60  ;;  %v29638_v21 = vmax.f32 %v14360_v7, %v14364_v16 }
 0xb65   : > { %21328 = vmatmul.mubr.msk.f32.vlgmr.msra.gmra.mrb[168].mxu1 %vm14353_vm8, %v14451_v38  ;;  %v15083_v29 = vrot.slane %v29638_v21, 1  ;;  %v17311_v38 = vld [vmem:[%s29821_s7 + $0x160] sm:$0xff] }
 0xb66   : > { %21534 = vmatpush3.bf16.msra.mxu1 %v21533_v30  ;;  %21338 = vmatprep.mubr.msk.f32.mxu1 %vm23107_vm7, %v31927_v48  ;;  %v21584_v30 = vpack.c.bf16 %v17309_v56, %v17308_v26  ;;  %v21587_v51 = vpack.c.bf16 %v17312_v14, %v17311_v38 }
 0xb67   : > { %21535 = vmatprep.subr.bf16.mxu1 %v23106_v60 }
 0xb6a   : > { %21537 = vmatpush3.bf16.msra.mxu1 %v21536_v5  ;;  %v15162_v5 = vrot.slane %v29638_v21, 2 }
 0xb6b   : > { %21538 = vmatprep.subr.bf16.mxu1 %v23106_v60 }
 0xb6d   : > { %21339 = vmatmul.mubr.msk.f32.vlgmr.msra.gmra.mrb[168].mxu1 %vm14353_vm8, %v14530_v25  ;;  %v17316_v25 = vld [vmem:[%s29821_s7 + $0x180] sm:$0xff] }
 0xb6e   : > { %21540 = vmatpush3.bf16.msra.mxu1 %v21539_v32  ;;  %21349 = vmatprep.mubr.msk.f32.mxu1 %vm23107_vm7, %v31927_v48  ;;  %v21590_v32 = vpack.c.bf16 %v17314_v42, %v17313_v18  ;;  %v21593_v4 = vpack.c.bf16 %v17317_v45, %v17316_v25 }
 0xb6f   : > { %21541 = vmatprep.subr.bf16.mxu1 %v23106_v60 }
 0xb72   : > { %21543 = vmatpush3.bf16.msra.mxu1 %v21542_v19  ;;  %v15241_v19 = vrot.slane %v29638_v21, 3 }
 0xb73   : > { %21544 = vmatprep.subr.bf16.mxu1 %v23106_v60 }
 0xb75   : > { %21350 = vmatmul.mubr.msk.f32.vlgmr.msra.gmra.mrb[168].mxu1 %vm14353_vm8, %v14609_v61  ;;  %v17321_v61 = vld [vmem:[%s29821_s7 + $0x1a0] sm:$0xff] }
 0xb76   : > { %21546 = vmatpush3.bf16.msra.mxu1 %v21545_v17  ;;  %21360 = vmatprep.mubr.msk.f32.mxu1 %vm23107_vm7, %v31927_v48  ;;  %v21596_v17 = vpack.c.bf16 %v17319_v0, %v17318_v63  ;;  %v21599_v53 = vpack.c.bf16 %v17322_v10, %v17321_v61 }
 0xb77   : > { %21547 = vmatprep.subr.bf16.mxu1 %v23106_v60 }
 0xb7a   : > { %21549 = vmatpush3.bf16.msra.mxu1 %v21548_v9  ;;  %v15320_v9 = vrot.slane %v29638_v21, 4 }
 0xb7b   : > { %21550 = vmatprep.subr.bf16.mxu1 %v23106_v60 }
 0xb7d   : > { %21361 = vmatmul.mubr.msk.f32.vlgmr.msra.gmra.mrb[168].mxu1 %vm14353_vm8, %v14688_v22  ;;  %v17326_v22 = vld [vmem:[%s29821_s7 + $0x1c0] sm:$0xff] }
 0xb7e   : > { %21552 = vmatpush3.bf16.msra.mxu1 %v21551_v24  ;;  %21371 = vmatprep.mubr.msk.f32.mxu1 %vm23107_vm7, %v31927_v48  ;;  %v21602_v24 = vpack.c.bf16 %v17324_v8, %v17323_v50  ;;  %v21605_v52 = vpack.c.bf16 %v17327_v46, %v17326_v22 }
 0xb7f   : > { %21553 = vmatprep.subr.bf16.mxu1 %v23106_v60 }
 0xb82   : > { %21555 = vmatpush3.bf16.msra.mxu1 %v21554_v39  ;;  %v15399_v39 = vrot.slane %v29638_v21, 5 }
 0xb83   : > { %21556 = vmatprep.subr.bf16.mxu1 %v23106_v60 }
 0xb85   : > { %21372 = vmatmul.mubr.msk.f32.vlgmr.msra.gmra.mrb[168].mxu1 %vm14353_vm8, %v14767_v44  ;;  %v17331_v44 = vld [vmem:[%s29821_s7 + $0x1e0] sm:$0xff] }
 0xb86   : > { %21558 = vmatpush3.bf16.msra.mxu1 %v21557_v23  ;;  %21382 = vmatprep.mubr.msk.f32.mxu1 %vm23107_vm7, %v31927_v48  ;;  %v21608_v23 = vpack.c.bf16 %v17329_v41, %v17328_v27  ;;  %v21611_v36 = vpack.c.bf16 %v17332_v1, %v17331_v44 }
 0xb87   : > { %21559 = vmatprep.subr.bf16.mxu1 %v23106_v60 }
 0xb8a   : > { %21561 = vmatpush3.bf16.msra.mxu1 %v21560_v35  ;;  %v15478_v35 = vrot.slane %v29638_v21, 6 }
 0xb8b   : > { %21562 = vmatprep.subr.bf16.mxu1 %v23106_v60 }
 0xb8d   : > { %21383 = vmatmul.mubr.msk.f32.vlgmr.msra.gmra.mrb[168].mxu1 %vm14353_vm8, %v14846_v47  ;;  %v15557_v47 = vrot.slane %v29638_v21, 7 }
 0xb8e   : > { %21564 = vmatpush3.bf16.msra.mxu1 %v21563_v15  ;;  %21393 = vmatprep.mubr.msk.f32.mxu1 %vm23107_vm7, %v31927_v48  ;;  %v21614_v15 = vpack.c.bf16 %v17334_v49, %v17333_v11 }
 0xb8f   : > { %21565 = vmatprep.subr.bf16.mxu1 %v23106_v60 }
 0xb92   : > { %21567 = vmatpush3.bf16.msra.mxu1 %v21566_v34 }
 0xb93   : > { %21568 = vmatprep.subr.bf16.mxu1 %v23106_v60 }
 0xb95   : > { %21394 = vmatmul.mubr.msk.f32.vlgmr.msra.gmra.mrb[168].mxu1 %vm14353_vm8, %v14925_v54 }
 0xb96   : > { %21570 = vmatpush3.bf16.msra.mxu1 %v21569_v40  ;;  %21404 = vmatprep.mubr.msk.f32.mxu1 %vm23107_vm7, %v31927_v48 }
 0xb97   : > { %21571 = vmatprep.subr.bf16.mxu1 %v23106_v60 }
 0xb9a   : > { %21573 = vmatpush3.bf16.msra.mxu1 %v21572_v3 }
 0xb9b   : > { %21574 = vmatprep.subr.bf16.mxu1 %v23106_v60 }
 0xb9d   : > { %21405 = vmatmul.mubr.msk.f32.vlgmr.msra.gmra.mrb[168].mxu1 %vm14353_vm8, %v29638_v21 }
 0xb9e   : > { %21576 = vmatpush3.bf16.msra.mxu1 %v21575_v33  ;;  %21415 = vmatprep.mubr.msk.f32.mxu1 %vm23107_vm7, %v31927_v48 }
 0xb9f   : > { %21577 = vmatprep.subr.bf16.mxu1 %v23106_v60 }
 0xba2   : > { %21579 = vmatpush3.bf16.msra.mxu1 %v21578_v62 }
 0xba3   : > { %21580 = vmatprep.subr.bf16.mxu1 %v23106_v60 }
 0xba5   : > { %21416 = vmatmul.mubr.msk.f32.vlgmr.msra.gmra.mrb[168].mxu1 %vm14353_vm8, %v15083_v29 }
 0xba6   : > { %21582 = vmatpush3.bf16.msra.mxu1 %v21581_v6  ;;  %21426 = vmatprep.mubr.msk.f32.mxu1 %vm23107_vm7, %v31927_v48 }
 0xba7   : > { %21583 = vmatprep.subr.bf16.mxu1 %v23106_v60 }
 0xbaa   : > { %21585 = vmatpush3.bf16.msra.mxu1 %v21584_v30 }
 0xbab   : > { %21586 = vmatprep.subr.bf16.mxu1 %v23106_v60 }
 0xbad   : > { %21427 = vmatmul.mubr.msk.f32.vlgmr.msra.gmra.mrb[168].mxu1 %vm14353_vm8, %v15162_v5 }
 0xbae   : > { %21588 = vmatpush3.bf16.msra.mxu1 %v21587_v51  ;;  %21437 = vmatprep.mubr.msk.f32.mxu1 %vm23107_vm7, %v31927_v48 }
 0xbaf   : > { %21589 = vmatprep.subr.bf16.mxu1 %v23106_v60 }
 0xbb2   : > { %21591 = vmatpush3.bf16.msra.mxu1 %v21590_v32 }
 0xbb3   : > { %21592 = vmatprep.subr.bf16.mxu1 %v23106_v60 }
 0xbb5   : > { %21438 = vmatmul.mubr.msk.f32.vlgmr.msra.gmra.mrb[168].mxu1 %vm14353_vm8, %v15241_v19 }
 0xbb6   : > { %21594 = vmatpush3.bf16.msra.mxu1 %v21593_v4  ;;  %21448 = vmatprep.mubr.msk.f32.mxu1 %vm23107_vm7, %v31927_v48 }
 0xbb7   : > { %21595 = vmatprep.subr.bf16.mxu1 %v23106_v60 }
 0xbba   : > { %21597 = vmatpush3.bf16.msra.mxu1 %v21596_v17 }
 0xbbb   : > { %21598 = vmatprep.subr.bf16.mxu1 %v23106_v60 }
 0xbbd   : > { %21449 = vmatmul.mubr.msk.f32.vlgmr.msra.gmra.mrb[168].mxu1 %vm14353_vm8, %v15320_v9 }
 0xbbe   : > { %21600 = vmatpush3.bf16.msra.mxu1 %v21599_v53  ;;  %21459 = vmatprep.mubr.msk.f32.mxu1 %vm23107_vm7, %v31927_v48 }
 0xbbf   : > { %21601 = vmatprep.subr.bf16.mxu1 %v23106_v60 }
 0xbc2   : > { %21603 = vmatpush3.bf16.msra.mxu1 %v21602_v24 }
 0xbc3   : > { %21604 = vmatprep.subr.bf16.mxu1 %v23106_v60 }
 0xbc5   : > { %21460 = vmatmul.mubr.msk.f32.vlgmr.msra.gmra.mrb[168].mxu1 %vm14353_vm8, %v15399_v39 }
 0xbc6   : > { %21606 = vmatpush3.bf16.msra.mxu1 %v21605_v52  ;;  %21470 = vmatprep.mubr.msk.f32.mxu1 %vm23107_vm7, %v31927_v48 }
 0xbc7   : > { %21607 = vmatprep.subr.bf16.mxu1 %v23106_v60 }
 0xbca   : > { %21609 = vmatpush3.bf16.msra.mxu1 %v21608_v23 }
 0xbcb   : > { %21610 = vmatprep.subr.bf16.mxu1 %v23106_v60 }
 0xbcd   : > { %21471 = vmatmul.mubr.msk.f32.vlgmr.msra.gmra.mrb[168].mxu1 %vm14353_vm8, %v15478_v35 }
 0xbce   : > { %21612 = vmatpush3.bf16.msra.mxu1 %v21611_v36  ;;  %21481 = vmatprep.mubr.msk.f32.mxu1 %vm23107_vm7, %v31927_v48 }
 0xbcf   : > { %21613 = vmatprep.subr.bf16.mxu1 %v23106_v60 }
 0xbd2   : > { %21615 = vmatpush3.bf16.msra.mxu1 %v21614_v15 }
 0xbd5   : > { %21482 = vmatmul.mubr.msk.f32.vlgmr.msra.gmra.mrb[168].mxu1 %vm14353_vm8, %v15557_v47 }
 0xca8   : > { %v15626_v55 = vpop.f32.mrb[168].mxu1 }
 0xca9   : > { %v21746_v34 = vadd.f32 %v15626_v55, %v14367_v13  ;;  %v21483_v57 = vpop.f32.mrb[169].mxu1 }
 0xcab   : > { %v15632_v59 = vsel %vm15631_vm9, %v21746_v34, -inf }
 0xcac   : > { %15633 = vmax.xlane.f32.xlu0 %v15632_v59 }
 0xd39   : > { %v15634_v48 = vpop.xlane.xlu0 %15633 }
 0xd3a   : > { %v15635_v60 = vsub.f32 %v21746_v34, %v15634_v48 }
 0xd3c   : > { %v15636_v40 = vmul.f32 1.442695, %v15635_v60 }
 0xd3e   : > { %23035 = vpow2.f32 %v15636_v40 }
 0xd48   : > { %v23036_v54 = vpop.eup %23035 }
 0xd49   : > { %v15638_v28 = vsel %vm15631_vm9, %v23036_v54, 0.0 }
 0xd4a   : > { %15639 = vadd.xlane.f32.xlu0 %v15638_v28 }
 0xdd7   : > { %v15640_v31 = vpop.xlane.xlu0 %15639 }
 0xdd8   : > { %23037 = vrcp.f32 %v15640_v31 }
 0xde2   : > { %v23038_v3 = vpop.eup %23037 }
 0xde3   : > { %v15642_v12 = vmul.f32 %v23038_v3, %v23036_v54 }
 0xde5   : > { %15643 = vst.msk [vmem:[%s324_s24] sm:$0x1] %vm15631_vm9, %v15642_v12 }
 0xde6   : > { %23054 = shalt.err (!%p23051_p3)
}
 0xde7   : > { %s23055_s21 = scalar_lea.hbm %s29771_s28, 16  ;;  %s23059_s24 = scalar_lea.hbm %s29823_s9, 32 }
 0xde8   : > { %p23056_p4 = scmp.ne.s32.totalorder %s29771_s28, %s23055_s21  ;;  %p23060_p9 = scmp.lt.u32.totalorder %s29771_s28, %s29823_s9 }
 0xde9   : > { %p23061_p10 = scmp.lt.u32.totalorder %s23059_s24, %s23055_s21  ;;  %p23063_p12 = scmp.lt.u32.totalorder %s23055_s21, %s29771_s28 }
 0xdea   : > { %p23057_p7 = pnand %p23056_p4, %p23197_p5 }
 0xdeb   : > { %p23062_p11 = por %p23061_p10, %p23060_p9 }
 0xdec   : > { %p23058_p8 = pneg %p23057_p7 }
 0xded   : > { %p23064_p13 = por %p23063_p12, %p23062_p11 }
 0xdef   : > { %p23065_p0 = pnand %p23064_p13, %p23058_p8 }
 0xdf1   : > { %23068 = shalt.err (!%p23065_p0)
}
 0xdf2   : > { %22993 = dma.vmem_to_hbm [thread:$0]  (%p23197_p5), %s29773_s25, 16, %s29771_s28, %s15645_s29  }
 0xdf3 PF: > { %p22999_p1 = scmp.ge.s32.totalorder %s23103_s12, 2  ;;  %s15669_s14 = sand.u32 1, %s23091_s30  }
 0xdf4   : > { %s15670_s13 = scalar_lea.sflag [#allocation6], %s15669_s14 }
 0xdf5   : > { %p22996_p2 = pnand %p22999_p1, %p23201_p6 }
 0xdf7   : > { %23086 = dma.done.wait (!%p22996_p2), %s15670_s13, 16  }
 0xdf8   : > { %23088 = vsyncadd (!%p22996_p2), %s15670_s13, 4294967280  ;;  %p19_p3 = scmp.ge.s32.totalorder %s23184_s15, 4   ;;  %s31959_s30 = smov %s23095_s10 }
 0xdf9   : > { %s31960_s10 = smov %s23099_s11  ;;  %s31961_s11 = smov %s23195_s18 }
 0xdfa   : > { %s31962_s12 = smov %s23184_s15  ;;  %21 = sbr.rel (!%p19_p3) target bundleno = 3 (0x3), region = 211 }
 0xe01   :  { %15674 = vsyncpa [#allocation6], 1 }
 0xe02   :  { %15676 = vsyncpa [#allocation6 + $0x1], 1 }

</bundles_post_ra>
